<compile_context>
chip_gen: v7x
topology: tpu7x:2x2x1
jax: 0.10.0
libtpu: 0.0.40
codegen_flags: <defaults>
</compile_context>

<pallas_src>
import jax
import jax.numpy as jnp
from jax import lax
from jax.experimental import pallas as pl
from jax.experimental.pallas import tpu as pltpu


_K = 3     # ConvTranspose2d kernel size (fixed by the module)
_C = 64    # filters (fixed by the module)


def _next_pow2(n):
    return 1 << (int(n) - 1).bit_length()


def prepare_params(raw_params):
    """Hoisted weight prep (done once, outside the kernel).

    raw_params: [(wt (Cin, Cout, K, K), b (Cout,)) x 3] in PyTorch
    ConvTranspose2d layout.  ConvTranspose2d(stride=1, pad=0) == full
    correlation with the spatially flipped, (in,out)-transposed kernel; the
    KxK taps are folded into the contraction dimension.
    """
    def flat_corr(wt):
        wc = jnp.flip(wt, axis=(2, 3)).transpose(2, 3, 0, 1)   # (K, K, Cin, Cout)
        return wc.reshape(wt.shape[2] * wt.shape[3] * wt.shape[0], wt.shape[1])

    (w1, b1), (w2, b2), (w3, b3) = raw_params
    return (
        flat_corr(w1).astype(jnp.bfloat16),      # (9*C, C)  MXU operand
        flat_corr(w2).astype(jnp.bfloat16),      # (9*C, C)  MXU operand
        flat_corr(w3).astype(jnp.float32).T,     # (1, 9*C)  VPU operand (Cout=1)
        b1.reshape(1, -1).astype(jnp.float32),
        b2.reshape(1, -1).astype(jnp.float32),
        b3.reshape(1, -1).astype(jnp.float32),
    )


@jax.jit
def decoder_forward(x_nchw, params):
    """Full Decoder forward. x_nchw: (N, 64, H, W) -> (N, 1, H+6, W+6)."""
    w1, w2, w3, b1, b2, b3 = params
    N, C, H, W = x_nchw.shape
    assert C == _C
    K, KKC = _K, _K * _K * _C
    S = _next_pow2(W + 4 * (K - 1))   # unified padded-row stride (16 for W=8)
    off = 2 * S + 2                   # flat offset of padded position (row=2, col=2)

    wo1, wo2 = W + 2, W + 4                                # layer output widths
    m1, m2, m3 = (H + 2) * S, (H + 4) * S, (H + 6) * S     # over-wide row counts
    r1 = (H + 5) * S                                       # padded-input rows
    r2 = (H + 6) * S + 8                                   # layer-2 input buffer rows
    r3 = (H + 8) * S + 8                                   # layer-3 input buffer rows

    def kernel(x_ref, w1_ref, w2_ref, w3_ref, b1_ref, b2_ref, b3_ref,
               o_ref, buf2_ref, buf3_ref, im2_ref):

        def build_im2col(src_ref, m):
            # 9 taps = 9 *contiguous* row slices of the flat padded buffer,
            # packed on the lane axis -> a single K = 9*C contraction per layer.
            for t in range(K * K):
                ky, kx = divmod(t, K)
                s = ky * S + kx
                im2_ref[0:m, C * t:C * (t + 1)] = src_ref[s:s + m, :]

        def bias_relu_mask(acc, b_ref, wout, m):
            y = jnp.maximum(acc + b_ref[...], 0.0)          # bias + ReLU (f32)
            # Zero the junk lanes (ox >= wout) of the over-wide output so the
            # contiguous hand-off store also writes correct zero padding.
            ox = lax.broadcasted_iota(jnp.int32, (m, 1), 0) & (S - 1)
            return jnp.where(ox < wout, y, 0.0)

        # ---- layer 1: C -> C, (H, W) -> (H+2, W+2); input pre-padded --------
        build_im2col(x_ref, m1)
        acc = jnp.dot(im2_ref[0:m1, :].astype(jnp.bfloat16), w1_ref[...],
                      preferred_element_type=jnp.float32)
        y1 = bias_relu_mask(acc, b1_ref, wo1, m1)
        buf2_ref[...] = jnp.zeros_like(buf2_ref)
        buf2_ref[off:off + m1, :] = y1

        # ---- layer 2: C -> C -------------------------------------------------
        build_im2col(buf2_ref, m2)
        acc = jnp.dot(im2_ref[0:m2, :].astype(jnp.bfloat16), w2_ref[...],
                      preferred_element_type=jnp.float32)
        y2 = bias_relu_mask(acc, b2_ref, wo2, m2)
        buf3_ref[...] = jnp.zeros_like(buf3_ref)
        buf3_ref[off:off + m2, :] = y2

        # ---- layer 3: C -> 1; Cout=1 so VPU multiply + lane-sum (no MXU) -----
        build_im2col(buf3_ref, m3)
        acc = jnp.sum(im2_ref[0:m3, :] * w3_ref[...], axis=1, keepdims=True)
        y3 = jnp.maximum(acc + b3_ref[...], 0.0)            # (m3, 1)
        o_ref[...] = y3.reshape(1, m3)                      # lane-dense store

    # Zero-pad the first input once in XLA (tiny) into the flat (r1, C) layout.
    x_nhwc = jnp.transpose(x_nchw, (0, 2, 3, 1))
    xpad = jnp.pad(x_nhwc, ((0, 0), (2, r1 // S - H - 2), (2, S - W - 2), (0, 0)))
    xpad = xpad.reshape(N, r1, C)

    out = pl.pallas_call(
        kernel,
        out_shape=jax.ShapeDtypeStruct((N, 1, m3), jnp.float32),
        grid=(N,),
        in_specs=[
            pl.BlockSpec((None, r1, C), lambda n: (n, 0, 0)),   # padded input
            pl.BlockSpec((KKC, C), lambda n: (0, 0)),           # w1 (bf16)
            pl.BlockSpec((KKC, C), lambda n: (0, 0)),           # w2 (bf16)
            pl.BlockSpec((1, KKC), lambda n: (0, 0)),           # w3 row (f32)
            pl.BlockSpec((1, C), lambda n: (0, 0)),             # b1
            pl.BlockSpec((1, C), lambda n: (0, 0)),             # b2
            pl.BlockSpec((1, 1), lambda n: (0, 0)),             # b3
        ],
        out_specs=pl.BlockSpec((None, 1, m3), lambda n: (n, 0, 0)),
        scratch_shapes=[
            pltpu.VMEM((r2, C), jnp.float32),      # padded layer-2 input
            pltpu.VMEM((r3, C), jnp.float32),      # padded layer-3 input
            pltpu.VMEM((m3, KKC), jnp.float32),    # shared im2col staging buffer
        ],
        compiler_params=pltpu.CompilerParams(
            dimension_semantics=("parallel",)),
    )(xpad, w1, w2, w3, b1, b2, b3)

    # (N, 1, (H+6)*S) -> (N, 1, H+6, W+6): drop the over-wide junk lanes.
    out = out.reshape(N, H + 6, S)[:, :, :W + 6]
    return out[:, None, :, :]


def _init_params(key, filters=_C, kernel_size=_K):
    """Deterministic ConvTranspose2d-style init (uniform, fan-in scaled)."""
    layer_io = [(filters, filters), (filters, filters), (filters, 1)]
    params = []
    for (cin, cout) in layer_io:
        key, kw, kb = jax.random.split(key, 3)
        scale = 1.0 / jnp.sqrt(cin * kernel_size * kernel_size)
        wt = jax.random.uniform(kw, (cin, cout, kernel_size, kernel_size),
                                jnp.float32, -scale, scale)
        b = jax.random.uniform(kb, (cout,), jnp.float32, -scale, scale)
        params.append((wt, b))
    return params


def _reference_forward(x_nchw, raw_params):
    """Pure-JAX reference (XLA conv, f32) for correctness checking."""
    x = jnp.transpose(x_nchw, (0, 2, 3, 1))
    for (wt, b) in raw_params:
        K = wt.shape[2]
        wc = jnp.flip(wt, axis=(2, 3)).transpose(2, 3, 0, 1)
        xp = jnp.pad(x, ((0, 0), (K - 1, K - 1), (K - 1, K - 1), (0, 0)))
        y = lax.conv_general_dilated(
            xp, wc, window_strides=(1, 1), padding="VALID",
            dimension_numbers=("NHWC", "HWIO", "NHWC"),
            preferred_element_type=jnp.float32)
        x = jnp.maximum(y + b[None, None, None, :], 0.0)
    return jnp.transpose(x, (0, 3, 1, 2))


if __name__ == "__main__":
    key = jax.random.PRNGKey(0)
    kx, kp = jax.random.split(key)

    # Input: batch=2, channels=64 (module requires 64 in-channels), spatial=8x8.
    x = jax.random.normal(kx, (2, _C, 8, 8), jnp.float32)
    raw_params = _init_params(kp)
    params = prepare_params(raw_params)

    out = jax.block_until_ready(decoder_forward(x, params))
    assert out.shape == (2, 1, 14, 14), out.shape

    ref = jax.block_until_ready(_reference_forward(x, raw_params))
    max_err = float(jnp.max(jnp.abs(out - ref)))
    assert jnp.allclose(out, ref, atol=5e-2, rtol=5e-2), max_err

    print("KERNEL_OK")
</pallas_src>

<mosaic_0001>
module attributes {stable_mosaic.version = 11 : i64} {
  func.func @kernel(%arg0: i32, %arg1: memref<1x208x64xf32, #tpu.memory_space<vmem>>, %arg2: memref<576x64xbf16, #tpu.memory_space<vmem>>, %arg3: memref<576x64xbf16, #tpu.memory_space<vmem>>, %arg4: memref<1x576xf32, #tpu.memory_space<vmem>>, %arg5: memref<1x64xf32, #tpu.memory_space<vmem>>, %arg6: memref<1x64xf32, #tpu.memory_space<vmem>>, %arg7: memref<1x1xf32, #tpu.memory_space<vmem>>, %arg8: memref<1x1x224xf32, #tpu.memory_space<vmem>>, %arg9: memref<232x64xf32, #tpu.memory_space<vmem>>, %arg10: memref<264x64xf32, #tpu.memory_space<vmem>>, %arg11: memref<224x576xf32, #tpu.memory_space<vmem>>) attributes {dimension_semantics = [#tpu.dimension_semantics<parallel>], iteration_bounds = array<i64: 2>, scalar_prefetch = 0 : i64, scratch_operands = 3 : i64, tpu.core_type = #tpu.core_type<tc>, window_params = [{transform_indices = @transform_0, window_bounds = array<i64: 1, 208, 64>}, {pipeline_mode = #tpu.pipeline_mode<synchronous>, transform_indices = @transform_1, window_bounds = array<i64: 576, 64>}, {pipeline_mode = #tpu.pipeline_mode<synchronous>, transform_indices = @transform_2, window_bounds = array<i64: 576, 64>}, {pipeline_mode = #tpu.pipeline_mode<synchronous>, transform_indices = @transform_3, window_bounds = array<i64: 1, 576>}, {pipeline_mode = #tpu.pipeline_mode<synchronous>, transform_indices = @transform_4, window_bounds = array<i64: 1, 64>}, {pipeline_mode = #tpu.pipeline_mode<synchronous>, transform_indices = @transform_5, window_bounds = array<i64: 1, 64>}, {pipeline_mode = #tpu.pipeline_mode<synchronous>, transform_indices = @transform_6, window_bounds = array<i64: 1, 1>}, {transform_indices = @transform_7, window_bounds = array<i64: 1, 1, 224>}]} {
    %c0 = arith.constant 0 : index
    %c0_0 = arith.constant 0 : index
    %c0_1 = arith.constant 0 : index
    %0 = vector.load %arg1[%c0, %c0_0, %c0_1] : memref<1x208x64xf32, #tpu.memory_space<vmem>>, vector<1x160x64xf32>
    %1 = vector.shape_cast %0 : vector<1x160x64xf32> to vector<160x64xf32>
    %c0_2 = arith.constant 0 : index
    %c0_3 = arith.constant 0 : index
    %2 = vector.load %arg11[%c0_2, %c0_3] : memref<224x576xf32, #tpu.memory_space<vmem>>, vector<160x64xf32>
    tpu.vector_store %arg11[%c0_2, %c0_3], %1 {strides = array<i32>} : memref<224x576xf32, #tpu.memory_space<vmem>>, vector<160x64xf32>,
    %c0_4 = arith.constant 0 : index
    %c1 = arith.constant 1 : index
    %c0_5 = arith.constant 0 : index
    %3 = vector.load %arg1[%c0_4, %c1, %c0_5] : memref<1x208x64xf32, #tpu.memory_space<vmem>>, vector<1x160x64xf32>
    %4 = vector.shape_cast %3 : vector<1x160x64xf32> to vector<160x64xf32>
    %c0_6 = arith.constant 0 : index
    %c64 = arith.constant 64 : index
    %5 = vector.load %arg11[%c0_6, %c64] : memref<224x576xf32, #tpu.memory_space<vmem>>, vector<160x64xf32>
    tpu.vector_store %arg11[%c0_6, %c64], %4 {strides = array<i32>} : memref<224x576xf32, #tpu.memory_space<vmem>>, vector<160x64xf32>,
    %c0_7 = arith.constant 0 : index
    %c2 = arith.constant 2 : index
    %c0_8 = arith.constant 0 : index
    %6 = vector.load %arg1[%c0_7, %c2, %c0_8] : memref<1x208x64xf32, #tpu.memory_space<vmem>>, vector<1x160x64xf32>
    %7 = vector.shape_cast %6 : vector<1x160x64xf32> to vector<160x64xf32>
    %c0_9 = arith.constant 0 : index
    %c128 = arith.constant 128 : index
    %8 = vector.load %arg11[%c0_9, %c128] : memref<224x576xf32, #tpu.memory_space<vmem>>, vector<160x64xf32>
    tpu.vector_store %arg11[%c0_9, %c128], %7 {strides = array<i32>} : memref<224x576xf32, #tpu.memory_space<vmem>>, vector<160x64xf32>,
    %c0_10 = arith.constant 0 : index
    %c16 = arith.constant 16 : index
    %c0_11 = arith.constant 0 : index
    %9 = vector.load %arg1[%c0_10, %c16, %c0_11] : memref<1x208x64xf32, #tpu.memory_space<vmem>>, vector<1x160x64xf32>
    %10 = vector.shape_cast %9 : vector<1x160x64xf32> to vector<160x64xf32>
    %c0_12 = arith.constant 0 : index
    %c192 = arith.constant 192 : index
    %11 = vector.load %arg11[%c0_12, %c192] : memref<224x576xf32, #tpu.memory_space<vmem>>, vector<160x64xf32>
    tpu.vector_store %arg11[%c0_12, %c192], %10 {strides = array<i32>} : memref<224x576xf32, #tpu.memory_space<vmem>>, vector<160x64xf32>,
    %c0_13 = arith.constant 0 : index
    %c17 = arith.constant 17 : index
    %c0_14 = arith.constant 0 : index
    %12 = vector.load %arg1[%c0_13, %c17, %c0_14] : memref<1x208x64xf32, #tpu.memory_space<vmem>>, vector<1x160x64xf32>
    %13 = vector.shape_cast %12 : vector<1x160x64xf32> to vector<160x64xf32>
    %c0_15 = arith.constant 0 : index
    %c256 = arith.constant 256 : index
    %14 = vector.load %arg11[%c0_15, %c256] : memref<224x576xf32, #tpu.memory_space<vmem>>, vector<160x64xf32>
    tpu.vector_store %arg11[%c0_15, %c256], %13 {strides = array<i32>} : memref<224x576xf32, #tpu.memory_space<vmem>>, vector<160x64xf32>,
    %c0_16 = arith.constant 0 : index
    %c18 = arith.constant 18 : index
    %c0_17 = arith.constant 0 : index
    %15 = vector.load %arg1[%c0_16, %c18, %c0_17] : memref<1x208x64xf32, #tpu.memory_space<vmem>>, vector<1x160x64xf32>
    %16 = vector.shape_cast %15 : vector<1x160x64xf32> to vector<160x64xf32>
    %c0_18 = arith.constant 0 : index
    %c320 = arith.constant 320 : index
    %17 = vector.load %arg11[%c0_18, %c320] : memref<224x576xf32, #tpu.memory_space<vmem>>, vector<160x64xf32>
    tpu.vector_store %arg11[%c0_18, %c320], %16 {strides = array<i32>} : memref<224x576xf32, #tpu.memory_space<vmem>>, vector<160x64xf32>,
    %c0_19 = arith.constant 0 : index
    %c32 = arith.constant 32 : index
    %c0_20 = arith.constant 0 : index
    %18 = vector.load %arg1[%c0_19, %c32, %c0_20] : memref<1x208x64xf32, #tpu.memory_space<vmem>>, vector<1x160x64xf32>
    %19 = vector.shape_cast %18 : vector<1x160x64xf32> to vector<160x64xf32>
    %c0_21 = arith.constant 0 : index
    %c384 = arith.constant 384 : index
    %20 = vector.load %arg11[%c0_21, %c384] : memref<224x576xf32, #tpu.memory_space<vmem>>, vector<160x64xf32>
    tpu.vector_store %arg11[%c0_21, %c384], %19 {strides = array<i32>} : memref<224x576xf32, #tpu.memory_space<vmem>>, vector<160x64xf32>,
    %c0_22 = arith.constant 0 : index
    %c33 = arith.constant 33 : index
    %c0_23 = arith.constant 0 : index
    %21 = vector.load %arg1[%c0_22, %c33, %c0_23] : memref<1x208x64xf32, #tpu.memory_space<vmem>>, vector<1x160x64xf32>
    %22 = vector.shape_cast %21 : vector<1x160x64xf32> to vector<160x64xf32>
    %c0_24 = arith.constant 0 : index
    %c448 = arith.constant 448 : index
    %23 = vector.load %arg11[%c0_24, %c448] : memref<224x576xf32, #tpu.memory_space<vmem>>, vector<160x64xf32>
    tpu.vector_store %arg11[%c0_24, %c448], %22 {strides = array<i32>} : memref<224x576xf32, #tpu.memory_space<vmem>>, vector<160x64xf32>,
    %c0_25 = arith.constant 0 : index
    %c34 = arith.constant 34 : index
    %c0_26 = arith.constant 0 : index
    %24 = vector.load %arg1[%c0_25, %c34, %c0_26] : memref<1x208x64xf32, #tpu.memory_space<vmem>>, vector<1x160x64xf32>
    %25 = vector.shape_cast %24 : vector<1x160x64xf32> to vector<160x64xf32>
    %c0_27 = arith.constant 0 : index
    %c512 = arith.constant 512 : index
    %26 = vector.load %arg11[%c0_27, %c512] : memref<224x576xf32, #tpu.memory_space<vmem>>, vector<160x64xf32>
    tpu.vector_store %arg11[%c0_27, %c512], %25 {strides = array<i32>} : memref<224x576xf32, #tpu.memory_space<vmem>>, vector<160x64xf32>,
    %c0_28 = arith.constant 0 : index
    %c0_29 = arith.constant 0 : index
    %27 = vector.load %arg11[%c0_28, %c0_29] : memref<224x576xf32, #tpu.memory_space<vmem>>, vector<160x576xf32>
    %28 = arith.truncf %27 : vector<160x576xf32> to vector<160x576xbf16>
    %c0_30 = arith.constant 0 : index
    %c0_31 = arith.constant 0 : index
    %29 = vector.load %arg2[%c0_30, %c0_31] : memref<576x64xbf16, #tpu.memory_space<vmem>>, vector<576x64xbf16>
    %cst = arith.constant dense<0.000000e+00> : vector<160x64xf32>
    %30 = tpu.matmul %28, %29, %cst {dimension_numbers = #tpu.dot_dimension_numbers<[1], [0], [0], [1], [0, 0, 1, 1], [], []>} : vector<160x576xbf16>, vector<576x64xbf16>, vector<160x64xf32> -> vector<160x64xf32>
    %c0_32 = arith.constant 0 : index
    %c0_33 = arith.constant 0 : index
    %31 = vector.load %arg5[%c0_32, %c0_33] : memref<1x64xf32, #tpu.memory_space<vmem>>, vector<1x64xf32>
    %32 = vector.broadcast %31 : vector<1x64xf32> to vector<160x64xf32>
    %33 = arith.addf %30, %32 : vector<160x64xf32>
    %cst_34 = arith.constant 0.000000e+00 : f32
    %34 = vector.broadcast %cst_34 : f32 to vector<160x64xf32>
    %35 = arith.maximumf %33, %34 : vector<160x64xf32>
    %36 = tpu.iota {dimensions = array<i32: 0>} : vector<160x1xi32>
    %c15_i32 = arith.constant 15 : i32
    %37 = vector.broadcast %c15_i32 : i32 to vector<160x1xi32>
    %38 = arith.andi %36, %37 : vector<160x1xi32>
    %c10_i32 = arith.constant 10 : i32
    %39 = vector.broadcast %c10_i32 : i32 to vector<160x1xi32>
    %40 = arith.cmpi slt, %38, %39 : vector<160x1xi32>
    %cst_35 = arith.constant 0.000000e+00 : f32
    %41 = vector.shape_cast %40 : vector<160x1xi1> to vector<160x1xi1>
    %42 = vector.broadcast %41 : vector<160x1xi1> to vector<160x64xi1>
    %43 = vector.broadcast %cst_35 : f32 to vector<160x64xf32>
    %44 = arith.select %42, %35, %43 : vector<160x64xi1>, vector<160x64xf32>
    %cst_36 = arith.constant 0.000000e+00 : f32
    %45 = vector.broadcast %cst_36 : f32 to vector<232x64xf32>
    %c0_37 = arith.constant 0 : index
    %c0_38 = arith.constant 0 : index
    %46 = vector.load %arg9[%c0_37, %c0_38] : memref<232x64xf32, #tpu.memory_space<vmem>>, vector<232x64xf32>
    tpu.vector_store %arg9[%c0_37, %c0_38], %45 {strides = array<i32>} : memref<232x64xf32, #tpu.memory_space<vmem>>, vector<232x64xf32>,
    %c34_39 = arith.constant 34 : index
    %c0_40 = arith.constant 0 : index
    %47 = vector.load %arg9[%c34_39, %c0_40] : memref<232x64xf32, #tpu.memory_space<vmem>>, vector<160x64xf32>
    tpu.vector_store %arg9[%c34_39, %c0_40], %44 {strides = array<i32>} : memref<232x64xf32, #tpu.memory_space<vmem>>, vector<160x64xf32>,
    %c0_41 = arith.constant 0 : index
    %c0_42 = arith.constant 0 : index
    %48 = vector.load %arg9[%c0_41, %c0_42] : memref<232x64xf32, #tpu.memory_space<vmem>>, vector<192x64xf32>
    %c0_43 = arith.constant 0 : index
    %c0_44 = arith.constant 0 : index
    %49 = vector.load %arg11[%c0_43, %c0_44] : memref<224x576xf32, #tpu.memory_space<vmem>>, vector<192x64xf32>
    tpu.vector_store %arg11[%c0_43, %c0_44], %48 {strides = array<i32>} : memref<224x576xf32, #tpu.memory_space<vmem>>, vector<192x64xf32>,
    %c1_45 = arith.constant 1 : index
    %c0_46 = arith.constant 0 : index
    %50 = vector.load %arg9[%c1_45, %c0_46] : memref<232x64xf32, #tpu.memory_space<vmem>>, vector<192x64xf32>
    %c0_47 = arith.constant 0 : index
    %c64_48 = arith.constant 64 : index
    %51 = vector.load %arg11[%c0_47, %c64_48] : memref<224x576xf32, #tpu.memory_space<vmem>>, vector<192x64xf32>
    tpu.vector_store %arg11[%c0_47, %c64_48], %50 {strides = array<i32>} : memref<224x576xf32, #tpu.memory_space<vmem>>, vector<192x64xf32>,
    %c2_49 = arith.constant 2 : index
    %c0_50 = arith.constant 0 : index
    %52 = vector.load %arg9[%c2_49, %c0_50] : memref<232x64xf32, #tpu.memory_space<vmem>>, vector<192x64xf32>
    %c0_51 = arith.constant 0 : index
    %c128_52 = arith.constant 128 : index
    %53 = vector.load %arg11[%c0_51, %c128_52] : memref<224x576xf32, #tpu.memory_space<vmem>>, vector<192x64xf32>
    tpu.vector_store %arg11[%c0_51, %c128_52], %52 {strides = array<i32>} : memref<224x576xf32, #tpu.memory_space<vmem>>, vector<192x64xf32>,
    %c16_53 = arith.constant 16 : index
    %c0_54 = arith.constant 0 : index
    %54 = vector.load %arg9[%c16_53, %c0_54] : memref<232x64xf32, #tpu.memory_space<vmem>>, vector<192x64xf32>
    %c0_55 = arith.constant 0 : index
    %c192_56 = arith.constant 192 : index
    %55 = vector.load %arg11[%c0_55, %c192_56] : memref<224x576xf32, #tpu.memory_space<vmem>>, vector<192x64xf32>
    tpu.vector_store %arg11[%c0_55, %c192_56], %54 {strides = array<i32>} : memref<224x576xf32, #tpu.memory_space<vmem>>, vector<192x64xf32>,
    %c17_57 = arith.constant 17 : index
    %c0_58 = arith.constant 0 : index
    %56 = vector.load %arg9[%c17_57, %c0_58] : memref<232x64xf32, #tpu.memory_space<vmem>>, vector<192x64xf32>
    %c0_59 = arith.constant 0 : index
    %c256_60 = arith.constant 256 : index
    %57 = vector.load %arg11[%c0_59, %c256_60] : memref<224x576xf32, #tpu.memory_space<vmem>>, vector<192x64xf32>
    tpu.vector_store %arg11[%c0_59, %c256_60], %56 {strides = array<i32>} : memref<224x576xf32, #tpu.memory_space<vmem>>, vector<192x64xf32>,
    %c18_61 = arith.constant 18 : index
    %c0_62 = arith.constant 0 : index
    %58 = vector.load %arg9[%c18_61, %c0_62] : memref<232x64xf32, #tpu.memory_space<vmem>>, vector<192x64xf32>
    %c0_63 = arith.constant 0 : index
    %c320_64 = arith.constant 320 : index
    %59 = vector.load %arg11[%c0_63, %c320_64] : memref<224x576xf32, #tpu.memory_space<vmem>>, vector<192x64xf32>
    tpu.vector_store %arg11[%c0_63, %c320_64], %58 {strides = array<i32>} : memref<224x576xf32, #tpu.memory_space<vmem>>, vector<192x64xf32>,
    %c32_65 = arith.constant 32 : index
    %c0_66 = arith.constant 0 : index
    %60 = vector.load %arg9[%c32_65, %c0_66] : memref<232x64xf32, #tpu.memory_space<vmem>>, vector<192x64xf32>
    %c0_67 = arith.constant 0 : index
    %c384_68 = arith.constant 384 : index
    %61 = vector.load %arg11[%c0_67, %c384_68] : memref<224x576xf32, #tpu.memory_space<vmem>>, vector<192x64xf32>
    tpu.vector_store %arg11[%c0_67, %c384_68], %60 {strides = array<i32>} : memref<224x576xf32, #tpu.memory_space<vmem>>, vector<192x64xf32>,
    %c33_69 = arith.constant 33 : index
    %c0_70 = arith.constant 0 : index
    %62 = vector.load %arg9[%c33_69, %c0_70] : memref<232x64xf32, #tpu.memory_space<vmem>>, vector<192x64xf32>
    %c0_71 = arith.constant 0 : index
    %c448_72 = arith.constant 448 : index
    %63 = vector.load %arg11[%c0_71, %c448_72] : memref<224x576xf32, #tpu.memory_space<vmem>>, vector<192x64xf32>
    tpu.vector_store %arg11[%c0_71, %c448_72], %62 {strides = array<i32>} : memref<224x576xf32, #tpu.memory_space<vmem>>, vector<192x64xf32>,
    %c34_73 = arith.constant 34 : index
    %c0_74 = arith.constant 0 : index
    %64 = vector.load %arg9[%c34_73, %c0_74] : memref<232x64xf32, #tpu.memory_space<vmem>>, vector<192x64xf32>
    %c0_75 = arith.constant 0 : index
    %c512_76 = arith.constant 512 : index
    %65 = vector.load %arg11[%c0_75, %c512_76] : memref<224x576xf32, #tpu.memory_space<vmem>>, vector<192x64xf32>
    tpu.vector_store %arg11[%c0_75, %c512_76], %64 {strides = array<i32>} : memref<224x576xf32, #tpu.memory_space<vmem>>, vector<192x64xf32>,
    %c0_77 = arith.constant 0 : index
    %c0_78 = arith.constant 0 : index
    %66 = vector.load %arg11[%c0_77, %c0_78] : memref<224x576xf32, #tpu.memory_space<vmem>>, vector<192x576xf32>
    %67 = arith.truncf %66 : vector<192x576xf32> to vector<192x576xbf16>
    %c0_79 = arith.constant 0 : index
    %c0_80 = arith.constant 0 : index
    %68 = vector.load %arg3[%c0_79, %c0_80] : memref<576x64xbf16, #tpu.memory_space<vmem>>, vector<576x64xbf16>
    %cst_81 = arith.constant dense<0.000000e+00> : vector<192x64xf32>
    %69 = tpu.matmul %67, %68, %cst_81 {dimension_numbers = #tpu.dot_dimension_numbers<[1], [0], [0], [1], [0, 0, 1, 1], [], []>} : vector<192x576xbf16>, vector<576x64xbf16>, vector<192x64xf32> -> vector<192x64xf32>
    %c0_82 = arith.constant 0 : index
    %c0_83 = arith.constant 0 : index
    %70 = vector.load %arg6[%c0_82, %c0_83] : memref<1x64xf32, #tpu.memory_space<vmem>>, vector<1x64xf32>
    %71 = vector.broadcast %70 : vector<1x64xf32> to vector<192x64xf32>
    %72 = arith.addf %69, %71 : vector<192x64xf32>
    %cst_84 = arith.constant 0.000000e+00 : f32
    %73 = vector.broadcast %cst_84 : f32 to vector<192x64xf32>
    %74 = arith.maximumf %72, %73 : vector<192x64xf32>
    %75 = tpu.iota {dimensions = array<i32: 0>} : vector<192x1xi32>
    %c15_i32_85 = arith.constant 15 : i32
    %76 = vector.broadcast %c15_i32_85 : i32 to vector<192x1xi32>
    %77 = arith.andi %75, %76 : vector<192x1xi32>
    %c12_i32 = arith.constant 12 : i32
    %78 = vector.broadcast %c12_i32 : i32 to vector<192x1xi32>
    %79 = arith.cmpi slt, %77, %78 : vector<192x1xi32>
    %cst_86 = arith.constant 0.000000e+00 : f32
    %80 = vector.shape_cast %79 : vector<192x1xi1> to vector<192x1xi1>
    %81 = vector.broadcast %80 : vector<192x1xi1> to vector<192x64xi1>
    %82 = vector.broadcast %cst_86 : f32 to vector<192x64xf32>
    %83 = arith.select %81, %74, %82 : vector<192x64xi1>, vector<192x64xf32>
    %cst_87 = arith.constant 0.000000e+00 : f32
    %84 = vector.broadcast %cst_87 : f32 to vector<264x64xf32>
    %c0_88 = arith.constant 0 : index
    %c0_89 = arith.constant 0 : index
    %85 = vector.load %arg10[%c0_88, %c0_89] : memref<264x64xf32, #tpu.memory_space<vmem>>, vector<264x64xf32>
    tpu.vector_store %arg10[%c0_88, %c0_89], %84 {strides = array<i32>} : memref<264x64xf32, #tpu.memory_space<vmem>>, vector<264x64xf32>,
    %c34_90 = arith.constant 34 : index
    %c0_91 = arith.constant 0 : index
    %86 = vector.load %arg10[%c34_90, %c0_91] : memref<264x64xf32, #tpu.memory_space<vmem>>, vector<192x64xf32>
    tpu.vector_store %arg10[%c34_90, %c0_91], %83 {strides = array<i32>} : memref<264x64xf32, #tpu.memory_space<vmem>>, vector<192x64xf32>,
    %c0_92 = arith.constant 0 : index
    %c0_93 = arith.constant 0 : index
    %87 = vector.load %arg10[%c0_92, %c0_93] : memref<264x64xf32, #tpu.memory_space<vmem>>, vector<224x64xf32>
    %c0_94 = arith.constant 0 : index
    %c0_95 = arith.constant 0 : index
    %88 = vector.load %arg11[%c0_94, %c0_95] : memref<224x576xf32, #tpu.memory_space<vmem>>, vector<224x64xf32>
    tpu.vector_store %arg11[%c0_94, %c0_95], %87 {strides = array<i32>} : memref<224x576xf32, #tpu.memory_space<vmem>>, vector<224x64xf32>,
    %c1_96 = arith.constant 1 : index
    %c0_97 = arith.constant 0 : index
    %89 = vector.load %arg10[%c1_96, %c0_97] : memref<264x64xf32, #tpu.memory_space<vmem>>, vector<224x64xf32>
    %c0_98 = arith.constant 0 : index
    %c64_99 = arith.constant 64 : index
    %90 = vector.load %arg11[%c0_98, %c64_99] : memref<224x576xf32, #tpu.memory_space<vmem>>, vector<224x64xf32>
    tpu.vector_store %arg11[%c0_98, %c64_99], %89 {strides = array<i32>} : memref<224x576xf32, #tpu.memory_space<vmem>>, vector<224x64xf32>,
    %c2_100 = arith.constant 2 : index
    %c0_101 = arith.constant 0 : index
    %91 = vector.load %arg10[%c2_100, %c0_101] : memref<264x64xf32, #tpu.memory_space<vmem>>, vector<224x64xf32>
    %c0_102 = arith.constant 0 : index
    %c128_103 = arith.constant 128 : index
    %92 = vector.load %arg11[%c0_102, %c128_103] : memref<224x576xf32, #tpu.memory_space<vmem>>, vector<224x64xf32>
    tpu.vector_store %arg11[%c0_102, %c128_103], %91 {strides = array<i32>} : memref<224x576xf32, #tpu.memory_space<vmem>>, vector<224x64xf32>,
    %c16_104 = arith.constant 16 : index
    %c0_105 = arith.constant 0 : index
    %93 = vector.load %arg10[%c16_104, %c0_105] : memref<264x64xf32, #tpu.memory_space<vmem>>, vector<224x64xf32>
    %c0_106 = arith.constant 0 : index
    %c192_107 = arith.constant 192 : index
    %94 = vector.load %arg11[%c0_106, %c192_107] : memref<224x576xf32, #tpu.memory_space<vmem>>, vector<224x64xf32>
    tpu.vector_store %arg11[%c0_106, %c192_107], %93 {strides = array<i32>} : memref<224x576xf32, #tpu.memory_space<vmem>>, vector<224x64xf32>,
    %c17_108 = arith.constant 17 : index
    %c0_109 = arith.constant 0 : index
    %95 = vector.load %arg10[%c17_108, %c0_109] : memref<264x64xf32, #tpu.memory_space<vmem>>, vector<224x64xf32>
    %c0_110 = arith.constant 0 : index
    %c256_111 = arith.constant 256 : index
    %96 = vector.load %arg11[%c0_110, %c256_111] : memref<224x576xf32, #tpu.memory_space<vmem>>, vector<224x64xf32>
    tpu.vector_store %arg11[%c0_110, %c256_111], %95 {strides = array<i32>} : memref<224x576xf32, #tpu.memory_space<vmem>>, vector<224x64xf32>,
    %c18_112 = arith.constant 18 : index
    %c0_113 = arith.constant 0 : index
    %97 = vector.load %arg10[%c18_112, %c0_113] : memref<264x64xf32, #tpu.memory_space<vmem>>, vector<224x64xf32>
    %c0_114 = arith.constant 0 : index
    %c320_115 = arith.constant 320 : index
    %98 = vector.load %arg11[%c0_114, %c320_115] : memref<224x576xf32, #tpu.memory_space<vmem>>, vector<224x64xf32>
    tpu.vector_store %arg11[%c0_114, %c320_115], %97 {strides = array<i32>} : memref<224x576xf32, #tpu.memory_space<vmem>>, vector<224x64xf32>,
    %c32_116 = arith.constant 32 : index
    %c0_117 = arith.constant 0 : index
    %99 = vector.load %arg10[%c32_116, %c0_117] : memref<264x64xf32, #tpu.memory_space<vmem>>, vector<224x64xf32>
    %c0_118 = arith.constant 0 : index
    %c384_119 = arith.constant 384 : index
    %100 = vector.load %arg11[%c0_118, %c384_119] : memref<224x576xf32, #tpu.memory_space<vmem>>, vector<224x64xf32>
    tpu.vector_store %arg11[%c0_118, %c384_119], %99 {strides = array<i32>} : memref<224x576xf32, #tpu.memory_space<vmem>>, vector<224x64xf32>,
    %c33_120 = arith.constant 33 : index
    %c0_121 = arith.constant 0 : index
    %101 = vector.load %arg10[%c33_120, %c0_121] : memref<264x64xf32, #tpu.memory_space<vmem>>, vector<224x64xf32>
    %c0_122 = arith.constant 0 : index
    %c448_123 = arith.constant 448 : index
    %102 = vector.load %arg11[%c0_122, %c448_123] : memref<224x576xf32, #tpu.memory_space<vmem>>, vector<224x64xf32>
    tpu.vector_store %arg11[%c0_122, %c448_123], %101 {strides = array<i32>} : memref<224x576xf32, #tpu.memory_space<vmem>>, vector<224x64xf32>,
    %c34_124 = arith.constant 34 : index
    %c0_125 = arith.constant 0 : index
    %103 = vector.load %arg10[%c34_124, %c0_125] : memref<264x64xf32, #tpu.memory_space<vmem>>, vector<224x64xf32>
    %c0_126 = arith.constant 0 : index
    %c512_127 = arith.constant 512 : index
    %104 = vector.load %arg11[%c0_126, %c512_127] : memref<224x576xf32, #tpu.memory_space<vmem>>, vector<224x64xf32>
    tpu.vector_store %arg11[%c0_126, %c512_127], %103 {strides = array<i32>} : memref<224x576xf32, #tpu.memory_space<vmem>>, vector<224x64xf32>,
    %c0_128 = arith.constant 0 : index
    %c0_129 = arith.constant 0 : index
    %105 = vector.load %arg11[%c0_128, %c0_129] : memref<224x576xf32, #tpu.memory_space<vmem>>, vector<224x576xf32>
    %c0_130 = arith.constant 0 : index
    %c0_131 = arith.constant 0 : index
    %106 = vector.load %arg4[%c0_130, %c0_131] : memref<1x576xf32, #tpu.memory_space<vmem>>, vector<1x576xf32>
    %107 = vector.broadcast %106 : vector<1x576xf32> to vector<224x576xf32>
    %108 = arith.mulf %105, %107 : vector<224x576xf32>
    %cst_132 = arith.constant dense<0.000000e+00> : vector<224xf32>
    %109 = vector.multi_reduction <add>, %108, %cst_132 [1] : vector<224x576xf32> to vector<224xf32>
    %110 = vector.shape_cast %109 : vector<224xf32> to vector<224x1xf32>
    %c0_133 = arith.constant 0 : index
    %c0_134 = arith.constant 0 : index
    %111 = vector.load %arg7[%c0_133, %c0_134] : memref<1x1xf32, #tpu.memory_space<vmem>>, vector<1x1xf32>
    %112 = vector.broadcast %111 : vector<1x1xf32> to vector<224x1xf32>
    %113 = arith.addf %110, %112 : vector<224x1xf32>
    %cst_135 = arith.constant 0.000000e+00 : f32
    %114 = vector.broadcast %cst_135 : f32 to vector<224x1xf32>
    %115 = arith.maximumf %113, %114 : vector<224x1xf32>
    %116 = vector.shape_cast %115 : vector<224x1xf32> to vector<1x224xf32>
    %c0_136 = arith.constant 0 : index
    %c0_137 = arith.constant 0 : index
    %c0_138 = arith.constant 0 : index
    %117 = vector.load %arg8[%c0_136, %c0_137, %c0_138] : memref<1x1x224xf32, #tpu.memory_space<vmem>>, vector<1x1x224xf32>
    %118 = vector.shape_cast %117 : vector<1x1x224xf32> to vector<1x224xf32>
    %119 = vector.shape_cast %116 : vector<1x224xf32> to vector<1x1x224xf32>
    tpu.vector_store %arg8[%c0_136, %c0_137, %c0_138], %119 {strides = array<i32>} : memref<1x1x224xf32, #tpu.memory_space<vmem>>, vector<1x1x224xf32>,
    return
  }
  func.func @transform_0(%arg0: i32) -> (i32, i32, i32) {
    %c0_i32 = arith.constant 0 : i32
    %c0_i32_0 = arith.constant 0 : i32
    %c0_i32_1 = arith.constant 0 : i32
    return %arg0, %c0_i32, %c0_i32_0 : i32, i32, i32
  }
  func.func @transform_1(%arg0: i32) -> (i32, i32) {
    %c0_i32 = arith.constant 0 : i32
    %c0_i32_0 = arith.constant 0 : i32
    %c0_i32_1 = arith.constant 0 : i32
    return %c0_i32, %c0_i32_0 : i32, i32
  }
  func.func @transform_2(%arg0: i32) -> (i32, i32) {
    %c0_i32 = arith.constant 0 : i32
    %c0_i32_0 = arith.constant 0 : i32
    %c0_i32_1 = arith.constant 0 : i32
    return %c0_i32, %c0_i32_0 : i32, i32
  }
  func.func @transform_3(%arg0: i32) -> (i32, i32) {
    %c0_i32 = arith.constant 0 : i32
    %c0_i32_0 = arith.constant 0 : i32
    %c0_i32_1 = arith.constant 0 : i32
    return %c0_i32, %c0_i32_0 : i32, i32
  }
  func.func @transform_4(%arg0: i32) -> (i32, i32) {
    %c0_i32 = arith.constant 0 : i32
    %c0_i32_0 = arith.constant 0 : i32
    %c0_i32_1 = arith.constant 0 : i32
    return %c0_i32, %c0_i32_0 : i32, i32
  }
  func.func @transform_5(%arg0: i32) -> (i32, i32) {
    %c0_i32 = arith.constant 0 : i32
    %c0_i32_0 = arith.constant 0 : i32
    %c0_i32_1 = arith.constant 0 : i32
    return %c0_i32, %c0_i32_0 : i32, i32
  }
  func.func @transform_6(%arg0: i32) -> (i32, i32) {
    %c0_i32 = arith.constant 0 : i32
    %c0_i32_0 = arith.constant 0 : i32
    %c0_i32_1 = arith.constant 0 : i32
    return %c0_i32, %c0_i32_0 : i32, i32
  }
  func.func @transform_7(%arg0: i32) -> (i32, i32, i32) {
    %c0_i32 = arith.constant 0 : i32
    %c0_i32_0 = arith.constant 0 : i32
    %c0_i32_1 = arith.constant 0 : i32
    return %arg0, %c0_i32, %c0_i32_0 : i32, i32, i32
  }
}

</mosaic_0001>

<bundles_post_ra>
// kernel: decoder_forward.1
= control target key start
LH: loop header
LB: loop body
LE: loop exit
PB: predicated region body
PF: predicated region fallthrough
CT: control target
= control target key end

     0   :  { %s9206_s26 = smov 0   ;;  %s12732_s0 = inlined_call_operand.vmem [shape: f32[2,208,64], index: 0, kind: input, shape index: {}]   ;;  %s12733_s1 = inlined_call_operand.vmem [shape: bf16[576,64], index: 1, kind: input, shape index: {}]   ;;  %s12734_s2 = inlined_call_operand.vmem [shape: bf16[576,64], index: 2, kind: input, shape index: {}]   ;;  %s12735_s3 = inlined_call_operand.vmem [shape: f32[1,576], index: 3, kind: input, shape index: {}]   ;;  %s12736_s4 = inlined_call_operand.vmem [shape: f32[1,64], index: 4, kind: input, shape index: {}]   ;;  %s12737_s5 = inlined_call_operand.vmem [shape: f32[1,64], index: 5, kind: input, shape index: {}]   ;;  %s12738_s6 = inlined_call_operand.<no memory space> [shape: f32[1,1], index: 6, kind: input, shape index: {}]   ;;  %s12739_s7 = inlined_call_operand.vmem [shape: f32[2,1,224], index: 7, kind: output, shape index: {}]  }
   0x1   :  { %v12_v0 = vstv %s12738_s6 }
   0x2   :  { %13 = vst [vmem:[#allocation5] sm:$0x1] %v12_v0 }
   0x3 LB: > { %s8483_s27 = sadd.s32 4294967295, %s9157_s26   ;;  %p8487_p0 = scmp.ge.s32.totalorder %s9157_s26, 1  ;;  %s9157_s26 = sphi %s9206_s26, %s19_s26  }
   0x4   : > { %p239_p1 = scmp.lt.s32.totalorder %s9157_s26, 3 }
   0x6   : > { %p240_p2 = pnand %p8487_p0, %p239_p1 }
   0x7   : > { %p270_p3 = scmp.lt.s32.totalorder (!%p240_p2), %s8483_s27, 1  ;;  %v9078_v1 = vld [vmem:[%s12733_s1 + $0x40] sm:$0xff] (!%p240_p2)   ;;  %v9080_v3 = vld [vmem:[%s12733_s1 + $0x48] sm:$0xff] (!%p240_p2)   ;;  %v9082_v5 = vld [vmem:[%s12733_s1 + $0x50] sm:$0xff] (!%p240_p2)   ;;  %vm300_vm0 = vcmask (!%p240_p2), 523264   ;;  %s9159_s18 = smov (!%p240_p2), 64  }
   0x8   : > { %243 = sbr.rel (%p240_p2) target bundleno = 1646 (0x66e), region = 48  ;;  %v9079_v2 = vld [vmem:[%s12733_s1] sm:$0xff] (!%p240_p2)   ;;  %8645 = vmatprep.subr.bf16.mxu0 (!%p240_p2), %v9078_v1  ;;  %v9081_v4 = vld [vmem:[%s12733_s1 + $0x8] sm:$0xff] (!%p240_p2)   ;;  %v9083_v12 = vld [vmem:[%s12733_s1 + $0x10] sm:$0xff] (!%p240_p2)   ;;  %vm421_vm1 = vcmask (!%p240_p2), 1048064  }
   0x9   : > { %8646 = vmatpush3.bf16.msra.mxu0 (!%p240_p2), %v9079_v2  ;;  %v9084_v39 = vld [vmem:[%s12733_s1 + $0x58] sm:$0xff] (!%p240_p2)   ;;  %v9086_v41 = vld [vmem:[%s12733_s1 + $0x60] sm:$0xff] (!%p240_p2)   ;;  %v9088_v47 = vld [vmem:[%s12733_s1 + $0x68] sm:$0xff] (!%p240_p2)  }
   0xa   : > { %8647 = vmatprep.subr.bf16.mxu0 (!%p240_p2), %v9080_v3  ;;  %v9085_v40 = vld [vmem:[%s12733_s1 + $0x18] sm:$0xff] (!%p240_p2)   ;;  %v9087_v44 = vld [vmem:[%s12733_s1 + $0x20] sm:$0xff] (!%p240_p2)   ;;  %v9089_v52 = vld [vmem:[%s12733_s1 + $0x28] sm:$0xff] (!%p240_p2)  }
   0xb   : > { %v9090_v53 = vld [vmem:[%s12733_s1 + $0x70] sm:$0xff] (!%p240_p2)   ;;  %v9092_v57 = vld [vmem:[%s12733_s1 + $0x78] sm:$0xff] (!%p240_p2)   ;;  %v9503_v1 = vld [vmem:[%s12733_s1 + $0x100] sm:$0xff] (!%p240_p2)  }
   0xc   : > { %v9091_v54 = vld [vmem:[%s12733_s1 + $0x30] sm:$0xff] (!%p240_p2)   ;;  %v9093_v62 = vld [vmem:[%s12733_s1 + $0x38] sm:$0xff] (!%p240_p2)  }
   0xd   : > { %8648 = vmatpush3.bf16.msra.mxu0 (!%p240_p2), %v9081_v4 }
   0xe   : > { %8649 = vmatprep.subr.bf16.mxu0 (!%p240_p2), %v9082_v5 }
   0xf   : > { %s12782_s27 = smov (!%p270_p3, %s8483_s27), 1 }
  0x10   : > { %s9063_s10 = smul.u32 208, %s12782_s27 }
  0x11   : > { %8650 = vmatpush3.bf16.msra.mxu0 %v9083_v12  ;;  %v9098_v12 = vld [vmem:[%s12733_s1 + $0xc8] sm:$0xff]  }
  0x12   : > { %s9232_s15 = scalar_lea.vmem %s12732_s0, %s9063_s10  ;;  %8651 = vmatprep.subr.bf16.mxu0 %v9084_v39 }
  0x13   : > { %v482_v6 = vld [vmem:[%s9232_s15 + $0x10] sm:$0xff]  ;;  %v321_v7 = vld [vmem:[%s9232_s15 + $0x1] sm:$0xff]  ;;  %v483_v8 = vld [vmem:[%s9232_s15 + $0x18] sm:$0xff] }
  0x14   : > { %522 = vrot.lane.b32.xlu0 %v482_v6, %s9159_s18  ;;  %361 = vrot.lane.b32.xlu1 %v321_v7, %s9159_s18  ;;  %v484_v9 = vld [vmem:[%s9232_s15 + $0x20] sm:$0xff]  ;;  %303 = vst.msk [vmem:[#allocation4 + $0x50] sm:$0xff] %vm300_vm0, %v482_v6  ;;  %304 = vst.msk [vmem:[#allocation4 + $0x78] sm:$0xff] %vm300_vm0, %v483_v8  ;;  %v322_v10 = vld [vmem:[%s9232_s15 + $0x9] sm:$0xff] }
  0x15   : > { %v485_v11 = vld [vmem:[%s9232_s15 + $0x28] sm:$0xff]  ;;  %305 = vst.msk [vmem:[#allocation4 + $0xa0] sm:$0xff] %vm300_vm0, %v484_v9  ;;  %782 = vst.msk [vmem:[#allocation4 + $0x18] sm:$0xff] %vm300_vm0, %v484_v9  ;;  %v486_v13 = vld [vmem:[%s9232_s15 + $0x30] sm:$0xff]  ;;  %8652 = vmatpush3.bf16.msra.mxu0 %v9085_v40 }
  0x16   : > { %v487_v14 = vld [vmem:[%s9232_s15 + $0x38] sm:$0xff]  ;;  %306 = vst.msk [vmem:[#allocation4 + $0xc8] sm:$0xff] %vm300_vm0, %v485_v11  ;;  %783 = vst.msk [vmem:[#allocation4 + $0x40] sm:$0xff] %vm300_vm0, %v485_v11  ;;  %v9257_v15 = vld [vmem:[%s9232_s15 + $0x40] sm:$0xff]  ;;  %8653 = vmatprep.subr.bf16.mxu0 %v9086_v41 }
  0x17   : > { %v9260_v16 = vld [vmem:[%s9232_s15 + $0x48] sm:$0xff]  ;;  %307 = vst.msk [vmem:[#allocation4 + $0xf0] sm:$0xff] %vm300_vm0, %v486_v13  ;;  %308 = vst.msk [vmem:[#allocation4 + $0x118] sm:$0xff] %vm300_vm0, %v487_v14  ;;  %v9271_v17 = vld [vmem:[%s9232_s15 + $0x50] sm:$0xff] }
  0x18   : > { %524 = vrot.lane.b32.xlu0 %v483_v8, %s9159_s18  ;;  %363 = vrot.lane.b32.xlu1 %v322_v10, %s9159_s18  ;;  %309 = vst.msk [vmem:[#allocation4 + $0x140] sm:$0xff] %vm300_vm0, %v9257_v15  ;;  %310 = vst.msk [vmem:[#allocation4 + $0x168] sm:$0xff] %vm300_vm0, %v9260_v16  ;;  %v9274_v18 = vld [vmem:[%s9232_s15 + $0x58] sm:$0xff]  ;;  %v9277_v19 = vld [vmem:[%s9232_s15 + $0x60] sm:$0xff] }
  0x19   : > { %v9280_v20 = vld [vmem:[%s9232_s15 + $0x68] sm:$0xff]  ;;  %311 = vst.msk [vmem:[#allocation4 + $0x190] sm:$0xff] %vm300_vm0, %v9271_v17  ;;  %312 = vst.msk [vmem:[#allocation4 + $0x1b8] sm:$0xff] %vm300_vm0, %v9274_v18  ;;  %v9287_v21 = vld [vmem:[%s9232_s15 + $0x70] sm:$0xff]  ;;  %8654 = vmatpush3.bf16.msra.mxu0 %v9087_v44 }
  0x1a   : > { %313 = vst.msk [vmem:[#allocation4 + $0x1e0] sm:$0xff] %vm300_vm0, %v9277_v19  ;;  %314 = vst.msk [vmem:[#allocation4 + $0x208] sm:$0xff] %vm300_vm0, %v9280_v20  ;;  %v323_v22 = vld [vmem:[%s9232_s15 + $0x11] sm:$0xff]  ;;  %v324_v24 = vld [vmem:[%s9232_s15 + $0x19] sm:$0xff]  ;;  %8655 = vmatprep.subr.bf16.mxu0 %v9088_v47 }
  0x1b   : > { %v9297_v23 = vld [vmem:[%s9232_s15 + $0x78] sm:$0xff]  ;;  %315 = vst.msk [vmem:[#allocation4 + $0x230] sm:$0xff] %vm300_vm0, %v9287_v21  ;;  %v9303_v25 = vld [vmem:[%s9232_s15 + $0x80] sm:$0xff]  ;;  %v9306_v26 = vld [vmem:[%s9232_s15 + $0x88] sm:$0xff] }
  0x1c   : > { %526 = vrot.lane.b32.xlu0 %v484_v9, %s9159_s18  ;;  %528 = vrot.lane.b32.xlu1 %v485_v11, %s9159_s18  ;;  %316 = vst.msk [vmem:[#allocation4 + $0x258] sm:$0xff] %vm300_vm0, %v9297_v23  ;;  %v9311_v27 = vld [vmem:[%s9232_s15 + $0x90] sm:$0xff]  ;;  %317 = vst.msk [vmem:[#allocation4 + $0x280] sm:$0xff] %vm300_vm0, %v9303_v25  ;;  %v9318_v28 = vld [vmem:[%s9232_s15 + $0x98] sm:$0xff] }
  0x1d   : > { %318 = vst.msk [vmem:[#allocation4 + $0x2a8] sm:$0xff] %vm300_vm0, %v9306_v26  ;;  %319 = vst.msk [vmem:[#allocation4 + $0x2d0] sm:$0xff] %vm300_vm0, %v9311_v27  ;;  %v9327_v29 = vld [vmem:[%s9232_s15 + $0x12] sm:$0xff]  ;;  %v9330_v30 = vld [vmem:[%s9232_s15 + $0x1a] sm:$0xff]  ;;  %8656 = vmatpush3.bf16.msra.mxu0 %v9089_v52 }
  0x1e   : > { %320 = vst.msk [vmem:[#allocation4 + $0x2f8] sm:$0xff] %vm300_vm0, %v9318_v28  ;;  %v9333_v31 = vld [vmem:[%s9232_s15 + $0x22] sm:$0xff]  ;;  %v9336_v32 = vld [vmem:[%s9232_s15 + $0x2a] sm:$0xff]  ;;  %464 = vst.msk [vmem:[#allocation4 + $0x58] sm:$0xff] %vm300_vm0, %v9327_v29  ;;  %8657 = vmatprep.subr.bf16.mxu0 %v9090_v53 }
  0x1f   : > { %v9341_v33 = vld [vmem:[%s9232_s15 + $0x21] sm:$0xff]  ;;  %v9344_v34 = vld [vmem:[%s9232_s15 + $0x29] sm:$0xff]  ;;  %v9347_v35 = vld [vmem:[%s9232_s15 + $0x32] sm:$0xff]  ;;  %465 = vst.msk [vmem:[#allocation4 + $0x80] sm:$0xff] %vm300_vm0, %v9330_v30 }
  0x20   : > { %365 = vrot.lane.b32.xlu0 %v323_v22, %s9159_s18  ;;  %367 = vrot.lane.b32.xlu1 %v324_v24, %s9159_s18  ;;  %v9350_v36 = vld [vmem:[%s9232_s15 + $0x3a] sm:$0xff]  ;;  %v9353_v37 = vld [vmem:[%s9232_s15 + $0x42] sm:$0xff]  ;;  %466 = vst.msk [vmem:[#allocation4 + $0xa8] sm:$0xff] %vm300_vm0, %v9333_v31  ;;  %467 = vst.msk [vmem:[#allocation4 + $0xd0] sm:$0xff] %vm300_vm0, %v9336_v32 }
  0x21   : > { %942 = vst.msk [vmem:[#allocation4 + $0x20] sm:$0xff] %vm300_vm0, %v9333_v31  ;;  %943 = vst.msk [vmem:[#allocation4 + $0x48] sm:$0xff] %vm300_vm0, %v9336_v32  ;;  %v9368_v38 = vld [vmem:[%s9232_s15 + $0x4a] sm:$0xff]  ;;  %v442_v42 = vld [vmem:[%s9232_s15 + $0x2] sm:$0xff]  ;;  %8658 = vmatpush3.bf16.msra.mxu0 %v9091_v54 }
  0x22   : > { %468 = vst.msk [vmem:[#allocation4 + $0xf8] sm:$0xff] %vm300_vm0, %v9347_v35  ;;  %469 = vst.msk [vmem:[#allocation4 + $0x120] sm:$0xff] %vm300_vm0, %v9350_v36  ;;  %v280_v43 = vld [vmem:[%s9232_s15] sm:$0xff]  ;;  %v9403_v45 = vld [vmem:[%s9232_s15 + $0x52] sm:$0xff]  ;;  %8659 = vmatprep.subr.bf16.mxu0 %v9092_v57 }
  0x23   : > { %470 = vst.msk [vmem:[#allocation4 + $0x148] sm:$0xff] %vm300_vm0, %v9353_v37  ;;  %944 = vst.msk [vmem:[#allocation4 + $0x70] sm:$0xff] %vm300_vm0, %v9347_v35  ;;  %v9406_v46 = vld [vmem:[%s9232_s15 + $0x5a] sm:$0xff]  ;;  %v443_v48 = vld [vmem:[%s9232_s15 + $0xa] sm:$0xff] }
  0x24   : > { %530 = vrot.lane.b32.xlu0 %v486_v13, %s9159_s18  ;;  %532 = vrot.lane.b32.xlu1 %v487_v14, %s9159_s18  ;;  %945 = vst.msk [vmem:[#allocation4 + $0x98] sm:$0xff] %vm300_vm0, %v9350_v36  ;;  %471 = vst.msk [vmem:[#allocation4 + $0x170] sm:$0xff] %vm300_vm0, %v9368_v38  ;;  %v9421_v49 = vld [vmem:[%s9232_s15 + $0x31] sm:$0xff]  ;;  %v9424_v50 = vld [vmem:[%s9232_s15 + $0x39] sm:$0xff] }
  0x25   : > { %462 = vst.msk [vmem:[#allocation4 + $0x8] sm:$0xff] %vm300_vm0, %v442_v42  ;;  %301 = vst.msk [vmem:[#allocation4] sm:$0xff] %vm300_vm0, %v280_v43  ;;  %v281_v51 = vld [vmem:[%s9232_s15 + $0x8] sm:$0xff]  ;;  %v9460_v58 = vld [vmem:[%s9232_s15 + $0x72] sm:$0xff]  ;;  %8660 = vmatpush3.bf16.msra.mxu0 %v9093_v62 }
  0x26   : > { %472 = vst.msk [vmem:[#allocation4 + $0x198] sm:$0xff] %vm300_vm0, %v9403_v45  ;;  %473 = vst.msk [vmem:[#allocation4 + $0x1c0] sm:$0xff] %vm300_vm0, %v9406_v46  ;;  %v9443_v55 = vld [vmem:[%s9232_s15 + $0x62] sm:$0xff]  ;;  %v9446_v56 = vld [vmem:[%s9232_s15 + $0x6a] sm:$0xff]  ;;  %9003 = vmatprep.subr.bf16.mxu0 %v9503_v1 }
  0x27   : > { %948 = vst.msk [vmem:[#allocation4 + $0x110] sm:$0xff] %vm300_vm0, %v9403_v45  ;;  %949 = vst.msk [vmem:[#allocation4 + $0x138] sm:$0xff] %vm300_vm0, %v9406_v46  ;;  %v9463_v59 = vld [vmem:[%s9232_s15 + $0x7a] sm:$0xff]  ;;  %v9466_v60 = vld [vmem:[%s9232_s15 + $0x82] sm:$0xff] }
  0x28   : > { %369 = vrot.lane.b32.xlu0 %v9341_v33, %s9159_s18  ;;  %371 = vrot.lane.b32.xlu1 %v9344_v34, %s9159_s18  ;;  %463 = vst.msk [vmem:[#allocation4 + $0x30] sm:$0xff] %vm300_vm0, %v443_v48  ;;  %302 = vst.msk [vmem:[#allocation4 + $0x28] sm:$0xff] %vm300_vm0, %v281_v51  ;;  %v9469_v61 = vld [vmem:[%s9232_s15 + $0x8a] sm:$0xff]  ;;  %v9495_v63 = vld [vmem:[%s9232_s15 + $0x41] sm:$0xff] }
  0x29   : > { %474 = vst.msk [vmem:[#allocation4 + $0x1e8] sm:$0xff] %vm300_vm0, %v9443_v55  ;;  %475 = vst.msk [vmem:[#allocation4 + $0x210] sm:$0xff] %vm300_vm0, %v9446_v56  ;;  %v9498_v0 = vld [vmem:[%s9232_s15 + $0x49] sm:$0xff]  ;;  %v9506_v2 = vld [vmem:[%s9232_s15 + $0x92] sm:$0xff] }
  0x2a   : > { %476 = vst.msk [vmem:[#allocation4 + $0x238] sm:$0xff] %vm300_vm0, %v9460_v58  ;;  %952 = vst.msk [vmem:[#allocation4 + $0x1b0] sm:$0xff] %vm300_vm0, %v9460_v58  ;;  %v9509_v3 = vld [vmem:[%s9232_s15 + $0x9a] sm:$0xff]  ;;  %v9512_v4 = vld [vmem:[%s9232_s15 + $0xa2] sm:$0xff] }
  0x2b   : > { %477 = vst.msk [vmem:[#allocation4 + $0x260] sm:$0xff] %vm300_vm0, %v9463_v59  ;;  %478 = vst.msk [vmem:[#allocation4 + $0x288] sm:$0xff] %vm300_vm0, %v9466_v60  ;;  %v9515_v5 = vld [vmem:[%s9232_s15 + $0xaa] sm:$0xff]  ;;  %v9538_v7 = vld [vmem:[%s9232_s15 + $0x59] sm:$0xff] }
  0x2c   : > { %534 = vrot.lane.b32.xlu0 %v9257_v15, %s9159_s18  ;;  %536 = vrot.lane.b32.xlu1 %v9260_v16, %s9159_s18  ;;  %479 = vst.msk [vmem:[#allocation4 + $0x2b0] sm:$0xff] %vm300_vm0, %v9469_v61  ;;  %953 = vst.msk [vmem:[#allocation4 + $0x1d8] sm:$0xff] %vm300_vm0, %v9463_v59  ;;  %v9535_v6 = vld [vmem:[%s9232_s15 + $0x51] sm:$0xff]  ;;  %v9549_v8 = vld [vmem:[%s9232_s15 + $0x61] sm:$0xff] }
  0x2d   : > { %954 = vst.msk [vmem:[#allocation4 + $0x200] sm:$0xff] %vm300_vm0, %v9466_v60  ;;  %955 = vst.msk [vmem:[#allocation4 + $0x228] sm:$0xff] %vm300_vm0, %v9469_v61  ;;  %v9552_v9 = vld [vmem:[%s9232_s15 + $0x69] sm:$0xff]  ;;  %v9096_v10 = vld [vmem:[%s12733_s1 + $0xc0] sm:$0xff]  }
  0x2e   : > { %480 = vst.msk [vmem:[#allocation4 + $0x2d8] sm:$0xff] %vm300_vm0, %v9506_v2  ;;  %481 = vst.msk [vmem:[#allocation4 + $0x300] sm:$0xff] %vm300_vm0, %v9509_v3  ;;  %v9097_v11 = vld [vmem:[%s12733_s1 + $0x80] sm:$0xff]   ;;  %8721 = vmatprep.subr.bf16.mxu1 %v9096_v10  ;;  %v9100_v13 = vld [vmem:[%s12733_s1 + $0x88] sm:$0xff]  }
  0x2f   : > { %956 = vst.msk [vmem:[#allocation4 + $0x250] sm:$0xff] %vm300_vm0, %v9506_v2  ;;  %957 = vst.msk [vmem:[#allocation4 + $0x278] sm:$0xff] %vm300_vm0, %v9509_v3  ;;  %8722 = vmatpush3.bf16.msra.mxu1 %v9097_v11  ;;  %v9575_v14 = vld [vmem:[%s9232_s15 + $0x71] sm:$0xff]  ;;  %v9578_v15 = vld [vmem:[%s9232_s15 + $0x79] sm:$0xff] }
  0x30   : > { %373 = vrot.lane.b32.xlu0 %v9421_v49, %s9159_s18  ;;  %375 = vrot.lane.b32.xlu1 %v9424_v50, %s9159_s18  ;;  %958 = vst.msk [vmem:[#allocation4 + $0x2a0] sm:$0xff] %vm300_vm0, %v9512_v4  ;;  %959 = vst.msk [vmem:[#allocation4 + $0x2c8] sm:$0xff] %vm300_vm0, %v9515_v5  ;;  %v9101_v16 = vld [vmem:[%s12733_s1 + $0xd0] sm:$0xff]   ;;  %v9105_v22 = vld [vmem:[%s12733_s1 + $0xe0] sm:$0xff]  }
  0x31   : > { %8723 = vmatprep.subr.bf16.mxu1 %v9098_v12  ;;  %v500_v24 = vld [vmem:[%s9232_s15 + $0xa0] sm:$0xff]  ;;  %v9633_v40 = vld [vmem:[%s9232_s15 + $0x91] sm:$0xff]  ;;  %v605_v53 = vld [vmem:[%s9232_s15 + $0x29] sm:$0xff] }
  0x32   : > { %v603_v39 = vld [vmem:[%s9232_s15 + $0x19] sm:$0xff]  ;;  %v9109_v42 = vld [vmem:[%s12733_s1 + $0xf0] sm:$0xff]   ;;  %v604_v52 = vld [vmem:[%s9232_s15 + $0x21] sm:$0xff]  ;;  %625 = vst.msk [vmem:[#allocation4 + $0x88] sm:$0xff] %vm300_vm0, %v605_v53 }
  0x33   : > { %8724 = vmatpush3.bf16.msra.mxu1 %v9100_v13  ;;  %623 = vst.msk [vmem:[#allocation4 + $0x38] sm:$0xff] %vm300_vm0, %v603_v39  ;;  %v9636_v41 = vld [vmem:[%s9232_s15 + $0x99] sm:$0xff]  ;;  %v9111_v43 = vld [vmem:[%s12733_s1 + $0xb0] sm:$0xff]   ;;  %624 = vst.msk [vmem:[#allocation4 + $0x60] sm:$0xff] %vm300_vm0, %v604_v52 }
  0x34   : > { %538 = vrot.lane.b32.xlu0 %v9271_v17, %s9159_s18  ;;  %540 = vrot.lane.b32.xlu1 %v9274_v18, %s9159_s18  ;;  %v9102_v17 = vld [vmem:[%s12733_s1 + $0x90] sm:$0xff]   ;;  %v9103_v18 = vld [vmem:[%s12733_s1 + $0xd8] sm:$0xff]  }
  0x35   : > { %8725 = vmatprep.subr.bf16.mxu1 %v9101_v16  ;;  %v764_v44 = vld [vmem:[%s9232_s15 + $0x30] sm:$0xff]  ;;  %v765_v47 = vld [vmem:[%s9232_s15 + $0x38] sm:$0xff]  ;;  %v766_v54 = vld [vmem:[%s9232_s15 + $0x40] sm:$0xff] }
  0x36   : > { %784 = vst.msk [vmem:[#allocation4 + $0x68] sm:$0xff] %vm300_vm0, %v764_v44  ;;  %785 = vst.msk [vmem:[#allocation4 + $0x90] sm:$0xff] %vm300_vm0, %v765_v47  ;;  %v9112_v48 = vld [vmem:[%s12733_s1 + $0xf8] sm:$0xff]   ;;  %v767_v57 = vld [vmem:[%s9232_s15 + $0x48] sm:$0xff] }
  0x37   : > { %8726 = vmatpush3.bf16.msra.mxu1 %v9102_v17  ;;  %v9113_v51 = vld [vmem:[%s12733_s1 + $0xb8] sm:$0xff]   ;;  %786 = vst.msk [vmem:[#allocation4 + $0xb8] sm:$0xff] %vm300_vm0, %v766_v54  ;;  %787 = vst.msk [vmem:[#allocation4 + $0xe0] sm:$0xff] %vm300_vm0, %v767_v57  ;;  %v927_v10 = vld [vmem:[%s9232_s15 + $0x4a] sm:$0xff] }
  0x38   : > { %377 = vrot.lane.b32.xlu0 %v9495_v63, %s9159_s18  ;;  %379 = vrot.lane.b32.xlu1 %v9498_v0, %s9159_s18  ;;  %v606_v62 = vld [vmem:[%s9232_s15 + $0x31] sm:$0xff]  ;;  %947 = vst.msk [vmem:[#allocation4 + $0xe8] sm:$0xff] %vm300_vm0, %v927_v10  ;;  %v608_v11 = vld [vmem:[%s9232_s15 + $0x41] sm:$0xff] }
  0x39   : > { %8727 = vmatprep.subr.bf16.mxu1 %v9103_v18  ;;  %626 = vst.msk [vmem:[#allocation4 + $0xb0] sm:$0xff] %vm300_vm0, %v606_v62  ;;  %628 = vst.msk [vmem:[#allocation4 + $0x100] sm:$0xff] %vm300_vm0, %v608_v11  ;;  %v930_v12 = vld [vmem:[%s9232_s15 + $0x62] sm:$0xff]  ;;  %v614_v17 = vld [vmem:[%s9232_s15 + $0x71] sm:$0xff] }
  0x3a   : > { %950 = vst.msk [vmem:[#allocation4 + $0x160] sm:$0xff] %vm300_vm0, %v930_v12  ;;  %v612_v13 = vld [vmem:[%s9232_s15 + $0x61] sm:$0xff]  ;;  %634 = vst.msk [vmem:[#allocation4 + $0x1f0] sm:$0xff] %vm300_vm0, %v614_v17  ;;  %v9099_v52 = vld [vmem:[%s12733_s1 + $0x110] sm:$0xff]  }
  0x3b   : > { %632 = vst.msk [vmem:[#allocation4 + $0x1a0] sm:$0xff] %vm300_vm0, %v612_v13  ;;  %v9095_v39 = vld [vmem:[%s12733_s1 + $0x108] sm:$0xff]   ;;  %v781_v11 = vld [vmem:[%s9232_s15 + $0xb8] sm:$0xff] }
  0x3c   : > { %542 = vrot.lane.b32.xlu0 %v9277_v19, %s9159_s18  ;;  %544 = vrot.lane.b32.xlu1 %v9280_v20, %s9159_s18  ;;  %v9104_v19 = vld [vmem:[%s12733_s1 + $0x98] sm:$0xff]   ;;  %v9601_v20 = vld [vmem:[%s9232_s15 + $0x81] sm:$0xff]  ;;  %801 = vst.msk [vmem:[#allocation4 + $0x310] sm:$0xff] %vm300_vm0, %v781_v11 }
  0x3d   : > { %8728 = vmatpush3.bf16.msra.mxu1 %v9104_v19 }
  0x3e   : > { %8729 = vmatprep.subr.bf16.mxu1 %v9105_v22  ;;  %v777_v22 = vld [vmem:[%s9232_s15 + $0x98] sm:$0xff] }
  0x3f   : > { %797 = vst.msk [vmem:[#allocation4 + $0x270] sm:$0xff] %vm300_vm0, %v777_v22 }
  0x40   : > { %381 = vrot.lane.b32.xlu0 %v9535_v6, %s9159_s18  ;;  %383 = vrot.lane.b32.xlu1 %v9538_v7, %s9159_s18 }
  0x44   : > { %546 = vrot.lane.b32.xlu0 %v9287_v21, %s9159_s18  ;;  %548 = vrot.lane.b32.xlu1 %v9297_v23, %s9159_s18  ;;  %v9604_v21 = vld [vmem:[%s9232_s15 + $0x89] sm:$0xff]  ;;  %v9106_v23 = vld [vmem:[%s12733_s1 + $0xa0] sm:$0xff]  }
  0x45   : > { %8730 = vmatpush3.bf16.msra.mxu1 %v9106_v23  ;;  %v616_v23 = vld [vmem:[%s9232_s15 + $0x81] sm:$0xff] }
  0x46   : > { %636 = vst.msk [vmem:[#allocation4 + $0x240] sm:$0xff] %vm300_vm0, %v616_v23 }
  0x48   : > { %385 = vrot.lane.b32.xlu0 %v9549_v8, %s9159_s18  ;;  %387 = vrot.lane.b32.xlu1 %v9552_v9, %s9159_s18 }
  0x4c   : > { %550 = vrot.lane.b32.xlu0 %v9303_v25, %s9159_s18  ;;  %552 = vrot.lane.b32.xlu1 %v9306_v26, %s9159_s18  ;;  %v501_v25 = vld [vmem:[%s9232_s15 + $0xa8] sm:$0xff] }
  0x4d   : > { %v9107_v26 = vld [vmem:[%s12733_s1 + $0xe8] sm:$0xff]  }
  0x4e   : > { %8731 = vmatprep.subr.bf16.mxu1 %v9107_v26 }
  0x50   : > { %389 = vrot.lane.b32.xlu0 %v9575_v14, %s9159_s18  ;;  %391 = vrot.lane.b32.xlu1 %v9578_v15, %s9159_s18 }
  0x54   : > { %554 = vrot.lane.b32.xlu0 %v9311_v27, %s9159_s18  ;;  %556 = vrot.lane.b32.xlu1 %v9318_v28, %s9159_s18  ;;  %v9108_v27 = vld [vmem:[%s12733_s1 + $0xa8] sm:$0xff]   ;;  %v602_v28 = vld [vmem:[%s9232_s15 + $0x11] sm:$0xff] }
  0x55   : > { %8732 = vmatpush3.bf16.msra.mxu1 %v9108_v27  ;;  %622 = vst.msk [vmem:[#allocation4 + $0x10] sm:$0xff] %vm300_vm0, %v602_v28 }
  0x56   : > { %8733 = vmatprep.subr.bf16.mxu1 %v9109_v42  ;;  %v778_v42 = vld [vmem:[%s9232_s15 + $0xa0] sm:$0xff] }
  0x57   : > { %798 = vst.msk [vmem:[#allocation4 + $0x298] sm:$0xff] %vm300_vm0, %v778_v42 }
  0x58   : > { %393 = vrot.lane.b32.xlu0 %v9601_v20, %s9159_s18  ;;  %395 = vrot.lane.b32.xlu1 %v9604_v21, %s9159_s18 }
  0x59   : > { %8734 = vmatpush3.bf16.msra.mxu1 %v9111_v43 }
  0x5a   : > { %8735 = vmatprep.subr.bf16.mxu1 %v9112_v48 }
  0x5c   : > { %558 = vrot.lane.b32.xlu0 %v500_v24, %s9159_s18  ;;  %560 = vrot.lane.b32.xlu1 %v501_v25, %s9159_s18 }
  0x5d   : > { %8736 = vmatpush3.bf16.msra.mxu1 %v9113_v51  ;;  %v618_v51 = vld [vmem:[%s9232_s15 + $0x91] sm:$0xff] }
  0x5e   : > { %638 = vst.msk [vmem:[#allocation4 + $0x290] sm:$0xff] %vm300_vm0, %v618_v51 }
  0x60   : > { %397 = vrot.lane.b32.xlu0 %v9633_v40, %s9159_s18  ;;  %399 = vrot.lane.b32.xlu1 %v9636_v41, %s9159_s18 }
  0x64   : > { %842 = vrot.lane.b32.xlu0 %v9341_v33, %s9159_s18  ;;  %844 = vrot.lane.b32.xlu1 %v9344_v34, %s9159_s18  ;;  %v607_v33 = vld [vmem:[%s9232_s15 + $0x39] sm:$0xff]  ;;  %v926_v34 = vld [vmem:[%s9232_s15 + $0x42] sm:$0xff] }
  0x65   : > { %627 = vst.msk [vmem:[#allocation4 + $0xd8] sm:$0xff] %vm300_vm0, %v607_v33  ;;  %946 = vst.msk [vmem:[#allocation4 + $0xc0] sm:$0xff] %vm300_vm0, %v926_v34  ;;  %v780_v33 = vld [vmem:[%s9232_s15 + $0xb0] sm:$0xff] }
  0x66   : > { %800 = vst.msk [vmem:[#allocation4 + $0x2e8] sm:$0xff] %vm300_vm0, %v780_v33 }
  0x68   : > { %682 = vrot.lane.b32.xlu0 %v9327_v29, %s9159_s18  ;;  %684 = vrot.lane.b32.xlu1 %v9330_v30, %s9159_s18  ;;  %v768_v29 = vld [vmem:[%s9232_s15 + $0x50] sm:$0xff]  ;;  %v769_v30 = vld [vmem:[%s9232_s15 + $0x58] sm:$0xff] }
  0x69   : > { %788 = vst.msk [vmem:[#allocation4 + $0x108] sm:$0xff] %vm300_vm0, %v768_v29  ;;  %789 = vst.msk [vmem:[#allocation4 + $0x130] sm:$0xff] %vm300_vm0, %v769_v30 }
  0x6c   : > { %846 = vrot.lane.b32.xlu0 %v9421_v49, %s9159_s18  ;;  %848 = vrot.lane.b32.xlu1 %v9424_v50, %s9159_s18  ;;  %v609_v49 = vld [vmem:[%s9232_s15 + $0x49] sm:$0xff]  ;;  %v610_v50 = vld [vmem:[%s9232_s15 + $0x51] sm:$0xff] }
  0x6d   : > { %629 = vst.msk [vmem:[#allocation4 + $0x128] sm:$0xff] %vm300_vm0, %v609_v49  ;;  %630 = vst.msk [vmem:[#allocation4 + $0x150] sm:$0xff] %vm300_vm0, %v610_v50  ;;  %v620_v49 = vld [vmem:[%s9232_s15 + $0xa1] sm:$0xff]  ;;  %v819_v50 = vld [vmem:[%s9232_s15 + $0xa9] sm:$0xff] }
  0x6e   : > { %640 = vst.msk [vmem:[#allocation4 + $0x2e0] sm:$0xff] %vm300_vm0, %v620_v49 }
  0x70   : > { %686 = vrot.lane.b32.xlu0 %v9333_v31, %s9159_s18  ;;  %688 = vrot.lane.b32.xlu1 %v9336_v32, %s9159_s18  ;;  %v770_v31 = vld [vmem:[%s9232_s15 + $0x60] sm:$0xff]  ;;  %v771_v32 = vld [vmem:[%s9232_s15 + $0x68] sm:$0xff] }
  0x71   : > { %790 = vst.msk [vmem:[#allocation4 + $0x158] sm:$0xff] %vm300_vm0, %v770_v31  ;;  %791 = vst.msk [vmem:[#allocation4 + $0x180] sm:$0xff] %vm300_vm0, %v771_v32  ;;  %v941_v31 = vld [vmem:[%s9232_s15 + $0xba] sm:$0xff] }
  0x72   : > { %961 = vst.msk [vmem:[#allocation4 + $0x318] sm:$0xff] %vm300_vm0, %v941_v31  ;;  %v818_v32 = vld [vmem:[%s9232_s15 + $0xa1] sm:$0xff] }
  0x74   : > { %850 = vrot.lane.b32.xlu0 %v9495_v63, %s9159_s18  ;;  %852 = vrot.lane.b32.xlu1 %v9498_v0, %s9159_s18  ;;  %v611_v63 = vld [vmem:[%s9232_s15 + $0x59] sm:$0xff]  ;;  %v772_v0 = vld [vmem:[%s9232_s15 + $0x70] sm:$0xff] }
  0x75   : > { %631 = vst.msk [vmem:[#allocation4 + $0x178] sm:$0xff] %vm300_vm0, %v611_v63  ;;  %792 = vst.msk [vmem:[#allocation4 + $0x1a8] sm:$0xff] %vm300_vm0, %v772_v0  ;;  %v621_v63 = vld [vmem:[%s9232_s15 + $0xa9] sm:$0xff] }
  0x76   : > { %641 = vst.msk [vmem:[#allocation4 + $0x308] sm:$0xff] %vm300_vm0, %v621_v63 }
  0x78   : > { %690 = vrot.lane.b32.xlu0 %v9347_v35, %s9159_s18  ;;  %692 = vrot.lane.b32.xlu1 %v9350_v36, %s9159_s18  ;;  %v931_v35 = vld [vmem:[%s9232_s15 + $0x6a] sm:$0xff]  ;;  %v773_v36 = vld [vmem:[%s9232_s15 + $0x78] sm:$0xff] }
  0x79   : > { %951 = vst.msk [vmem:[#allocation4 + $0x188] sm:$0xff] %vm300_vm0, %v931_v35  ;;  %793 = vst.msk [vmem:[#allocation4 + $0x1d0] sm:$0xff] %vm300_vm0, %v773_v36 }
  0x7c   : > { %854 = vrot.lane.b32.xlu0 %v9535_v6, %s9159_s18  ;;  %856 = vrot.lane.b32.xlu1 %v9538_v7, %s9159_s18  ;;  %v613_v6 = vld [vmem:[%s9232_s15 + $0x69] sm:$0xff] }
  0x7d   : > { %633 = vst.msk [vmem:[#allocation4 + $0x1c8] sm:$0xff] %vm300_vm0, %v613_v6 }
  0x80   : > { %694 = vrot.lane.b32.xlu0 %v9353_v37, %s9159_s18  ;;  %696 = vrot.lane.b32.xlu1 %v9368_v38, %s9159_s18  ;;  %v774_v37 = vld [vmem:[%s9232_s15 + $0x80] sm:$0xff]  ;;  %v775_v38 = vld [vmem:[%s9232_s15 + $0x88] sm:$0xff] }
  0x81   : > { %794 = vst.msk [vmem:[#allocation4 + $0x1f8] sm:$0xff] %vm300_vm0, %v774_v37  ;;  %795 = vst.msk [vmem:[#allocation4 + $0x220] sm:$0xff] %vm300_vm0, %v775_v38  ;;  %v821_v38 = vld [vmem:[%s9232_s15 + $0xb9] sm:$0xff] }
  0x84   : > { %858 = vrot.lane.b32.xlu0 %v9549_v8, %s9159_s18  ;;  %860 = vrot.lane.b32.xlu1 %v9552_v9, %s9159_s18  ;;  %v615_v8 = vld [vmem:[%s9232_s15 + $0x79] sm:$0xff] }
  0x85   : > { %635 = vst.msk [vmem:[#allocation4 + $0x218] sm:$0xff] %vm300_vm0, %v615_v8 }
  0x86   : > { %v523_v7 = vpop.permute.xlu0 %522  ;;  %v362_v16 = vpop.permute.xlu1 %361 }
  0x87   : > { %582 = vst.msk [vmem:[#allocation4 + $0x8] sm:$0xff] %vm421_vm1, %v523_v7  ;;  %422 = vst.msk [vmem:[#allocation4] sm:$0xff] %vm421_vm1, %v362_v16  ;;  %v820_v16 = vld [vmem:[%s9232_s15 + $0xb1] sm:$0xff] }
  0x88   : > { %698 = vrot.lane.b32.xlu0 %v9403_v45, %s9159_s18  ;;  %700 = vrot.lane.b32.xlu1 %v9406_v46, %s9159_s18  ;;  %v776_v45 = vld [vmem:[%s9232_s15 + $0x90] sm:$0xff] }
  0x89   : > { %796 = vst.msk [vmem:[#allocation4 + $0x248] sm:$0xff] %vm300_vm0, %v776_v45 }
  0x8a   : > { %v525_v9 = vpop.permute.xlu0 %524  ;;  %v364_v18 = vpop.permute.xlu1 %363 }
  0x8b   : > { %583 = vst.msk [vmem:[#allocation4 + $0x30] sm:$0xff] %vm421_vm1, %v525_v9  ;;  %423 = vst.msk [vmem:[#allocation4 + $0x28] sm:$0xff] %vm421_vm1, %v364_v18 }
  0x8c   : > { %862 = vrot.lane.b32.xlu0 %v9575_v14, %s9159_s18  ;;  %864 = vrot.lane.b32.xlu1 %v9578_v15, %s9159_s18  ;;  %v617_v15 = vld [vmem:[%s9232_s15 + $0x89] sm:$0xff] }
  0x8d   : > { %637 = vst.msk [vmem:[#allocation4 + $0x268] sm:$0xff] %vm300_vm0, %v617_v15 }
  0x8e   : > { %v527_v46 = vpop.permute.xlu0 %526  ;;  %v529_v19 = vpop.permute.xlu1 %528  ;;  %v963_v14 = vld [vmem:[#allocation4 + $0x8] sm:$0xff]  ;;  %v962_v27 = vld [vmem:[#allocation4] sm:$0xff] }
  0x8f   : > { %584 = vst.msk [vmem:[#allocation4 + $0x58] sm:$0xff] %vm421_vm1, %v527_v46  ;;  %585 = vst.msk [vmem:[#allocation4 + $0x80] sm:$0xff] %vm421_vm1, %v529_v19 }
  0x90   : > { %702 = vrot.lane.b32.xlu0 %v9443_v55, %s9159_s18  ;;  %704 = vrot.lane.b32.xlu1 %v9446_v56, %s9159_s18 }
  0x92   : > { %v366_v24 = vpop.permute.xlu0 %365  ;;  %v368_v25 = vpop.permute.xlu1 %367  ;;  %v968_v26 = vld [vmem:[#allocation4 + $0x30] sm:$0xff]  ;;  %v967_v28 = vld [vmem:[#allocation4 + $0x28] sm:$0xff] }
  0x93   : > { %424 = vst.msk [vmem:[#allocation4 + $0x50] sm:$0xff] %vm421_vm1, %v366_v24  ;;  %425 = vst.msk [vmem:[#allocation4 + $0x78] sm:$0xff] %vm421_vm1, %v368_v25  ;;  %v1063_v55 = vpack.c.bf16 %v968_v26, %v963_v14  ;;  %v1062_v56 = vpack.c.bf16 %v967_v28, %v962_v27 }
  0x94   : > { %866 = vrot.lane.b32.xlu0 %v9601_v20, %s9159_s18  ;;  %868 = vrot.lane.b32.xlu1 %v9604_v21, %s9159_s18  ;;  %v779_v21 = vld [vmem:[%s9232_s15 + $0xa8] sm:$0xff] }
  0x95   : > { %1469 = vmatprep.mubr.bf16.mxu0 %v1063_v55  ;;  %799 = vst.msk [vmem:[#allocation4 + $0x2c0] sm:$0xff] %vm300_vm0, %v779_v21 }
  0x96   : > { %v531_v43 = vpop.permute.xlu0 %530  ;;  %v533_v44 = vpop.permute.xlu1 %532  ;;  %1470 = vmatmul.mubr.bf16.vlgmr.msra.gmra.mrb[0].mxu0 %v1062_v56  ;;  %v973_v47 = vld [vmem:[#allocation4 + $0x58] sm:$0xff]  ;;  %v978_v48 = vld [vmem:[#allocation4 + $0x80] sm:$0xff] }
  0x97   : > { %586 = vst.msk [vmem:[#allocation4 + $0xa8] sm:$0xff] %vm421_vm1, %v531_v43  ;;  %587 = vst.msk [vmem:[#allocation4 + $0xd0] sm:$0xff] %vm421_vm1, %v533_v44  ;;  %v1068_v20 = vpack.c.bf16 %v978_v48, %v973_v47  ;;  %9004 = vmatpush3.bf16.msra.mxu0 %v9503_v1  ;;  %v619_v1 = vld [vmem:[%s9232_s15 + $0x99] sm:$0xff] }
  0x98   : > { %706 = vrot.lane.b32.xlu0 %v9460_v58, %s9159_s18  ;;  %708 = vrot.lane.b32.xlu1 %v9463_v59, %s9159_s18  ;;  %639 = vst.msk [vmem:[#allocation4 + $0x2b8] sm:$0xff] %vm300_vm0, %v619_v1  ;;  %v9110_v59 = vld [vmem:[%s12733_s1 + $0x118] sm:$0xff]  }
  0x99   : > { %1477 = vmatprep.mubr.bf16.mxu0 %v1068_v20  ;;  %9005 = vmatprep.subr.bf16.mxu0 %v9095_v39 }
  0x9a   : > { %v370_v53 = vpop.permute.xlu0 %369  ;;  %v372_v54 = vpop.permute.xlu1 %371  ;;  %v972_v57 = vld [vmem:[#allocation4 + $0x50] sm:$0xff]  ;;  %v977_v62 = vld [vmem:[#allocation4 + $0x78] sm:$0xff] }
  0x9b   : > { %426 = vst.msk [vmem:[#allocation4 + $0xa0] sm:$0xff] %vm421_vm1, %v370_v53  ;;  %427 = vst.msk [vmem:[#allocation4 + $0xc8] sm:$0xff] %vm421_vm1, %v372_v54  ;;  %v1067_v58 = vpack.c.bf16 %v977_v62, %v972_v57  ;;  %9006 = vmatpush3.bf16.msra.mxu0 %v9095_v39 }
  0x9c   : > { %870 = vrot.lane.b32.xlu0 %v9633_v40, %s9159_s18  ;;  %872 = vrot.lane.b32.xlu1 %v9636_v41, %s9159_s18  ;;  %v940_v40 = vld [vmem:[%s9232_s15 + $0xb2] sm:$0xff] }
  0x9d   : > { %9007 = vmatprep.subr.bf16.mxu0 %v9099_v52  ;;  %960 = vst.msk [vmem:[#allocation4 + $0x2f0] sm:$0xff] %vm300_vm0, %v940_v40 }
  0x9e   : > { %v535_v29 = vpop.permute.xlu0 %534  ;;  %v537_v34 = vpop.permute.xlu1 %536  ;;  %1478 = vmatmul.mubr.bf16.gmra.mrb[4].mxu0 %v1067_v58  ;;  %v983_v10 = vld [vmem:[#allocation4 + $0xa8] sm:$0xff]  ;;  %v988_v30 = vld [vmem:[#allocation4 + $0xd0] sm:$0xff] }
  0x9f   : > { %588 = vst.msk [vmem:[#allocation4 + $0xf8] sm:$0xff] %vm421_vm1, %v535_v29  ;;  %589 = vst.msk [vmem:[#allocation4 + $0x120] sm:$0xff] %vm421_vm1, %v537_v34  ;;  %v1073_v41 = vpack.c.bf16 %v988_v30, %v983_v10  ;;  %9008 = vmatpush3.bf16.msra.mxu0 %v9099_v52 }
  0xa0   : > { %710 = vrot.lane.b32.xlu0 %v9466_v60, %s9159_s18  ;;  %712 = vrot.lane.b32.xlu1 %v9469_v61, %s9159_s18 }
  0xa1   : > { %1485 = vmatprep.mubr.bf16.mxu0 %v1073_v41  ;;  %9009 = vmatprep.subr.bf16.mxu0 %v9110_v59 }
  0xa2   : > { %v374_v0 = vpop.permute.xlu0 %373  ;;  %v376_v12 = vpop.permute.xlu1 %375  ;;  %v982_v35 = vld [vmem:[#allocation4 + $0xa0] sm:$0xff]  ;;  %v987_v36 = vld [vmem:[#allocation4 + $0xc8] sm:$0xff] }
  0xa3   : > { %428 = vst.msk [vmem:[#allocation4 + $0xf0] sm:$0xff] %vm421_vm1, %v374_v0  ;;  %429 = vst.msk [vmem:[#allocation4 + $0x118] sm:$0xff] %vm421_vm1, %v376_v12  ;;  %v1072_v60 = vpack.c.bf16 %v987_v36, %v982_v35  ;;  %9010 = vmatpush3.bf16.msra.mxu0 %v9110_v59 }
  0xa4   : > { %874 = vrot.lane.b32.xlu0 %v818_v32, %s9159_s18  ;;  %876 = vrot.lane.b32.xlu1 %v819_v50, %s9159_s18 }
  0xa6   : > { %v539_v61 = vpop.permute.xlu0 %538  ;;  %v541_v13 = vpop.permute.xlu1 %540  ;;  %1486 = vmatmul.mubr.bf16.gmra.mrb[8].mxu0 %v1072_v60  ;;  %v993_v6 = vld [vmem:[#allocation4 + $0xf8] sm:$0xff]  ;;  %v998_v37 = vld [vmem:[#allocation4 + $0x120] sm:$0xff] }
  0xa7   : > { %590 = vst.msk [vmem:[#allocation4 + $0x148] sm:$0xff] %vm421_vm1, %v539_v61  ;;  %591 = vst.msk [vmem:[#allocation4 + $0x170] sm:$0xff] %vm421_vm1, %v541_v13  ;;  %v1078_v7 = vpack.c.bf16 %v998_v37, %v993_v6  ;;  %v966_v37 = vld [vmem:[#allocation4 + $0x20] sm:$0xff] }
  0xa8   : > { %714 = vrot.lane.b32.xlu0 %v9506_v2, %s9159_s18  ;;  %716 = vrot.lane.b32.xlu1 %v9509_v3, %s9159_s18 }
  0xa9   : > { %1493 = vmatprep.mubr.bf16.mxu0 %v1078_v7  ;;  %v971_v7 = vld [vmem:[#allocation4 + $0x48] sm:$0xff] }
  0xaa   : > { %v378_v17 = vpop.permute.xlu0 %377  ;;  %v380_v8 = vpop.permute.xlu1 %379  ;;  %v992_v9 = vld [vmem:[#allocation4 + $0xf0] sm:$0xff]  ;;  %v997_v18 = vld [vmem:[#allocation4 + $0x118] sm:$0xff] }
  0xab   : > { %430 = vst.msk [vmem:[#allocation4 + $0x140] sm:$0xff] %vm421_vm1, %v378_v17  ;;  %431 = vst.msk [vmem:[#allocation4 + $0x168] sm:$0xff] %vm421_vm1, %v380_v8  ;;  %v1077_v45 = vpack.c.bf16 %v997_v18, %v992_v9  ;;  %v1066_v18 = vpack.c.bf16 %v971_v7, %v966_v37  ;;  %v1051_v37 = vld [vmem:[#allocation4 + $0x2c8] sm:$0xff] }
  0xac   : > { %878 = vrot.lane.b32.xlu0 %v820_v16, %s9159_s18  ;;  %880 = vrot.lane.b32.xlu1 %v821_v38, %s9159_s18 }
  0xae   : > { %v543_v2 = vpop.permute.xlu0 %542  ;;  %v545_v46 = vpop.permute.xlu1 %544  ;;  %1494 = vmatmul.mubr.bf16.gmra.mrb[12].mxu0 %v1077_v45  ;;  %v1003_v3 = vld [vmem:[#allocation4 + $0x148] sm:$0xff]  ;;  %v1008_v19 = vld [vmem:[#allocation4 + $0x170] sm:$0xff] }
  0xaf   : > { %592 = vst.msk [vmem:[#allocation4 + $0x198] sm:$0xff] %vm421_vm1, %v543_v2  ;;  %593 = vst.msk [vmem:[#allocation4 + $0x1c0] sm:$0xff] %vm421_vm1, %v545_v46  ;;  %v1083_v22 = vpack.c.bf16 %v1008_v19, %v1003_v3 }
  0xb0   : > { %718 = vrot.lane.b32.xlu0 %v9512_v4, %s9159_s18  ;;  %720 = vrot.lane.b32.xlu1 %v9515_v5, %s9159_s18 }
  0xb1   : > { %1501 = vmatprep.mubr.bf16.mxu0 %v1083_v22  ;;  %v976_v22 = vld [vmem:[#allocation4 + $0x70] sm:$0xff] }
  0xb2   : > { %v382_v23 = vpop.permute.xlu0 %381  ;;  %v384_v14 = vpop.permute.xlu1 %383  ;;  %v1002_v15 = vld [vmem:[#allocation4 + $0x140] sm:$0xff]  ;;  %v1007_v24 = vld [vmem:[#allocation4 + $0x168] sm:$0xff] }
  0xb3   : > { %432 = vst.msk [vmem:[#allocation4 + $0x190] sm:$0xff] %vm421_vm1, %v382_v23  ;;  %433 = vst.msk [vmem:[#allocation4 + $0x1b8] sm:$0xff] %vm421_vm1, %v384_v14  ;;  %v1082_v25 = vpack.c.bf16 %v1007_v24, %v1002_v15  ;;  %v981_v23 = vld [vmem:[#allocation4 + $0x98] sm:$0xff]  ;;  %v986_v14 = vld [vmem:[#allocation4 + $0xc0] sm:$0xff] }
  0xb4   : > { %v991_v15 = vld [vmem:[#allocation4 + $0xe8] sm:$0xff] }
  0xb6   : > { %v547_v26 = vpop.permute.xlu0 %546  ;;  %v549_v27 = vpop.permute.xlu1 %548  ;;  %1502 = vmatmul.mubr.bf16.gmra.mrb[16].mxu0 %v1082_v25  ;;  %v1013_v28 = vld [vmem:[#allocation4 + $0x198] sm:$0xff]  ;;  %v1018_v55 = vld [vmem:[#allocation4 + $0x1c0] sm:$0xff] }
  0xb7   : > { %594 = vst.msk [vmem:[#allocation4 + $0x1e8] sm:$0xff] %vm421_vm1, %v547_v26  ;;  %595 = vst.msk [vmem:[#allocation4 + $0x210] sm:$0xff] %vm421_vm1, %v549_v27  ;;  %v1088_v4 = vpack.c.bf16 %v1018_v55, %v1013_v28  ;;  %v1071_v28 = vpack.c.bf16 %v981_v23, %v976_v22  ;;  %v1056_v22 = vld [vmem:[#allocation4 + $0x2f0] sm:$0xff]  ;;  %v1061_v23 = vld [vmem:[#allocation4 + $0x318] sm:$0xff] }
  0xb9   : > { %1509 = vmatprep.mubr.bf16.mxu0 %v1088_v4  ;;  %v1076_v4 = vpack.c.bf16 %v991_v15, %v986_v14 }
  0xba   : > { %v386_v5 = vpop.permute.xlu0 %385  ;;  %v388_v56 = vpop.permute.xlu1 %387  ;;  %v1012_v39 = vld [vmem:[#allocation4 + $0x190] sm:$0xff]  ;;  %v1017_v42 = vld [vmem:[#allocation4 + $0x1b8] sm:$0xff] }
  0xbb   : > { %434 = vst.msk [vmem:[#allocation4 + $0x1e0] sm:$0xff] %vm421_vm1, %v386_v5  ;;  %435 = vst.msk [vmem:[#allocation4 + $0x208] sm:$0xff] %vm421_vm1, %v388_v56  ;;  %v1087_v43 = vpack.c.bf16 %v1017_v42, %v1012_v39 }
  0xbe   : > { %v551_v44 = vpop.permute.xlu0 %550  ;;  %v553_v47 = vpop.permute.xlu1 %552  ;;  %1510 = vmatmul.mubr.bf16.gmra.mrb[20].mxu0 %v1087_v43  ;;  %v1023_v48 = vld [vmem:[#allocation4 + $0x1e8] sm:$0xff]  ;;  %v1028_v20 = vld [vmem:[#allocation4 + $0x210] sm:$0xff] }
  0xbf   : > { %596 = vst.msk [vmem:[#allocation4 + $0x238] sm:$0xff] %vm421_vm1, %v551_v44  ;;  %597 = vst.msk [vmem:[#allocation4 + $0x260] sm:$0xff] %vm421_vm1, %v553_v47  ;;  %v1093_v21 = vpack.c.bf16 %v1028_v20, %v1023_v48  ;;  %v996_v44 = vld [vmem:[#allocation4 + $0x110] sm:$0xff]  ;;  %v1001_v47 = vld [vmem:[#allocation4 + $0x138] sm:$0xff] }
  0xc0   : > { %v1006_v48 = vld [vmem:[#allocation4 + $0x160] sm:$0xff]  ;;  %v1011_v20 = vld [vmem:[#allocation4 + $0x188] sm:$0xff] }
  0xc1   : > { %1517 = vmatprep.mubr.bf16.mxu0 %v1093_v21 }
  0xc2   : > { %v390_v51 = vpop.permute.xlu0 %389  ;;  %v392_v52 = vpop.permute.xlu1 %391  ;;  %v1022_v1 = vld [vmem:[#allocation4 + $0x1e0] sm:$0xff]  ;;  %v1027_v53 = vld [vmem:[#allocation4 + $0x208] sm:$0xff] }
  0xc3   : > { %436 = vst.msk [vmem:[#allocation4 + $0x230] sm:$0xff] %vm421_vm1, %v390_v51  ;;  %437 = vst.msk [vmem:[#allocation4 + $0x258] sm:$0xff] %vm421_vm1, %v392_v52  ;;  %v1092_v54 = vpack.c.bf16 %v1027_v53, %v1022_v1  ;;  %v1081_v53 = vpack.c.bf16 %v1001_v47, %v996_v44 }
  0xc6   : > { %v555_v57 = vpop.permute.xlu0 %554  ;;  %v557_v62 = vpop.permute.xlu1 %556  ;;  %1518 = vmatmul.mubr.bf16.gmra.mrb[24].mxu0 %v1092_v54  ;;  %v1033_v58 = vld [vmem:[#allocation4 + $0x238] sm:$0xff]  ;;  %v1038_v59 = vld [vmem:[#allocation4 + $0x260] sm:$0xff] }
  0xc7   : > { %598 = vst.msk [vmem:[#allocation4 + $0x288] sm:$0xff] %vm421_vm1, %v555_v57  ;;  %599 = vst.msk [vmem:[#allocation4 + $0x2b0] sm:$0xff] %vm421_vm1, %v557_v62  ;;  %v1098_v33 = vpack.c.bf16 %v1038_v59, %v1033_v58  ;;  %v1086_v57 = vpack.c.bf16 %v1011_v20, %v1006_v48 }
  0xc9   : > { %1525 = vmatprep.mubr.bf16.mxu0 %v1098_v33 }
  0xca   : > { %v394_v29 = vpop.permute.xlu0 %393  ;;  %v396_v34 = vpop.permute.xlu1 %395  ;;  %v1032_v10 = vld [vmem:[#allocation4 + $0x230] sm:$0xff]  ;;  %v1037_v30 = vld [vmem:[#allocation4 + $0x258] sm:$0xff] }
  0xcb   : > { %438 = vst.msk [vmem:[#allocation4 + $0x280] sm:$0xff] %vm421_vm1, %v394_v29  ;;  %439 = vst.msk [vmem:[#allocation4 + $0x2a8] sm:$0xff] %vm421_vm1, %v396_v34  ;;  %v1097_v40 = vpack.c.bf16 %v1037_v30, %v1032_v10  ;;  %v1016_v34 = vld [vmem:[#allocation4 + $0x1b0] sm:$0xff]  ;;  %v1021_v10 = vld [vmem:[#allocation4 + $0x1d8] sm:$0xff] }
  0xcc   : > { %v1026_v30 = vld [vmem:[#allocation4 + $0x200] sm:$0xff] }
  0xce   : > { %v559_v41 = vpop.permute.xlu0 %558  ;;  %v561_v11 = vpop.permute.xlu1 %560  ;;  %1526 = vmatmul.mubr.bf16.gmra.mrb[28].mxu0 %v1097_v40  ;;  %v1043_v49 = vld [vmem:[#allocation4 + $0x288] sm:$0xff]  ;;  %v1048_v31 = vld [vmem:[#allocation4 + $0x2b0] sm:$0xff] }
  0xcf   : > { %600 = vst.msk [vmem:[#allocation4 + $0x2d8] sm:$0xff] %vm421_vm1, %v559_v41  ;;  %601 = vst.msk [vmem:[#allocation4 + $0x300] sm:$0xff] %vm421_vm1, %v561_v11  ;;  %v1103_v32 = vpack.c.bf16 %v1048_v31, %v1043_v49  ;;  %v1031_v40 = vld [vmem:[#allocation4 + $0x228] sm:$0xff] }
  0xd1   : > { %1533 = vmatprep.mubr.bf16.mxu0 %v1103_v32  ;;  %v1091_v32 = vpack.c.bf16 %v1021_v10, %v1016_v34 }
  0xd2   : > { %v398_v50 = vpop.permute.xlu0 %397  ;;  %v400_v63 = vpop.permute.xlu1 %399  ;;  %v1042_v0 = vld [vmem:[#allocation4 + $0x280] sm:$0xff]  ;;  %v1047_v12 = vld [vmem:[#allocation4 + $0x2a8] sm:$0xff] }
  0xd3   : > { %440 = vst.msk [vmem:[#allocation4 + $0x2d0] sm:$0xff] %vm421_vm1, %v398_v50  ;;  %441 = vst.msk [vmem:[#allocation4 + $0x2f8] sm:$0xff] %vm421_vm1, %v400_v63  ;;  %v1102_v35 = vpack.c.bf16 %v1047_v12, %v1042_v0  ;;  %v1096_v63 = vpack.c.bf16 %v1031_v40, %v1026_v30 }
  0xd6   : > { %v843_v36 = vpop.permute.xlu0 %842  ;;  %v845_v60 = vpop.permute.xlu1 %844  ;;  %1534 = vmatmul.mubr.bf16.gmra.mrb[32].mxu0 %v1102_v35  ;;  %v1053_v61 = vld [vmem:[#allocation4 + $0x2d8] sm:$0xff]  ;;  %v1058_v13 = vld [vmem:[#allocation4 + $0x300] sm:$0xff] }
  0xd7   : > { %902 = vst.msk [vmem:[#allocation4 + $0x18] sm:$0xff] %vm421_vm1, %v843_v36  ;;  %903 = vst.msk [vmem:[#allocation4 + $0x40] sm:$0xff] %vm421_vm1, %v845_v60  ;;  %v1108_v6 = vpack.c.bf16 %v1058_v13, %v1053_v61  ;;  %v1036_v61 = vld [vmem:[#allocation4 + $0x250] sm:$0xff]  ;;  %v1041_v13 = vld [vmem:[#allocation4 + $0x278] sm:$0xff] }
  0xd9   : > { %1541 = vmatprep.mubr.bf16.mxu0 %v1108_v6  ;;  %v1046_v6 = vld [vmem:[#allocation4 + $0x2a0] sm:$0xff] }
  0xda   : > { %v683_v16 = vpop.permute.xlu0 %682  ;;  %v685_v38 = vpop.permute.xlu1 %684  ;;  %v1052_v17 = vld [vmem:[#allocation4 + $0x2d0] sm:$0xff]  ;;  %v1057_v8 = vld [vmem:[#allocation4 + $0x2f8] sm:$0xff] }
  0xdb   : > { %742 = vst.msk [vmem:[#allocation4 + $0x10] sm:$0xff] %vm421_vm1, %v683_v16  ;;  %743 = vst.msk [vmem:[#allocation4 + $0x38] sm:$0xff] %vm421_vm1, %v685_v38  ;;  %v1107_v9 = vpack.c.bf16 %v1057_v8, %v1052_v17  ;;  %v1101_v8 = vpack.c.bf16 %v1041_v13, %v1036_v61 }
  0xde   : > { %v847_v45 = vpop.permute.xlu0 %846  ;;  %v849_v2 = vpop.permute.xlu1 %848  ;;  %1542 = vmatmul.mubr.bf16.gmra.mrb[36].mxu0 %v1107_v9  ;;  %v965_v46 = vld [vmem:[#allocation4 + $0x18] sm:$0xff]  ;;  %v970_v3 = vld [vmem:[#allocation4 + $0x40] sm:$0xff] }
  0xdf   : > { %904 = vst.msk [vmem:[#allocation4 + $0x68] sm:$0xff] %vm421_vm1, %v847_v45  ;;  %905 = vst.msk [vmem:[#allocation4 + $0x90] sm:$0xff] %vm421_vm1, %v849_v2  ;;  %v1065_v19 = vpack.c.bf16 %v970_v3, %v965_v46  ;;  %9011 = vmatprep.mubr.msk.bf16.mxu0 %vm300_vm0, %v1066_v18  ;;  %v1106_v18 = vpack.c.bf16 %v1051_v37, %v1046_v6 }
  0xe1   : > { %1582 = vmatprep.mubr.bf16.mxu1 %v1065_v19 }
  0xe2   : > { %v687_v24 = vpop.permute.xlu0 %686  ;;  %v689_v25 = vpop.permute.xlu1 %688  ;;  %v964_v26 = vld [vmem:[#allocation4 + $0x10] sm:$0xff]  ;;  %v969_v27 = vld [vmem:[#allocation4 + $0x38] sm:$0xff] }
  0xe3   : > { %744 = vst.msk [vmem:[#allocation4 + $0x60] sm:$0xff] %vm421_vm1, %v687_v24  ;;  %745 = vst.msk [vmem:[#allocation4 + $0x88] sm:$0xff] %vm421_vm1, %v689_v25  ;;  %v1064_v55 = vpack.c.bf16 %v969_v27, %v964_v26  ;;  %v1111_v26 = vpack.c.bf16 %v1061_v23, %v1056_v22 }
  0xe5   : > { %1583 = vmatmul.mubr.bf16.vlgmr.msra.gmra.mrb[0].mxu1 %v1064_v55 }
  0xe6   : > { %v851_v5 = vpop.permute.xlu0 %850  ;;  %v853_v56 = vpop.permute.xlu1 %852  ;;  %v975_v39 = vld [vmem:[#allocation4 + $0x68] sm:$0xff]  ;;  %v980_v42 = vld [vmem:[#allocation4 + $0x90] sm:$0xff]  ;;  %9012 = vmatmul.mubr.msk.bf16.vlgmr.msra.gmra.mrb[40].mxu0 %vm300_vm0, %v1071_v28 }
  0xe7   : > { %906 = vst.msk [vmem:[#allocation4 + $0xb8] sm:$0xff] %vm421_vm1, %v851_v5  ;;  %907 = vst.msk [vmem:[#allocation4 + $0xe0] sm:$0xff] %vm421_vm1, %v853_v56  ;;  %v1070_v43 = vpack.c.bf16 %v980_v42, %v975_v39  ;;  %9015 = vmatprep.mubr.msk.bf16.mxu0 %vm300_vm0, %v1076_v4 }
  0xe9   : > { %1590 = vmatprep.mubr.bf16.mxu1 %v1070_v43 }
  0xea   : > { %v691_v21 = vpop.permute.xlu0 %690  ;;  %v693_v51 = vpop.permute.xlu1 %692  ;;  %v974_v52 = vld [vmem:[#allocation4 + $0x60] sm:$0xff]  ;;  %v979_v1 = vld [vmem:[#allocation4 + $0x88] sm:$0xff] }
  0xeb   : > { %746 = vst.msk [vmem:[#allocation4 + $0xb0] sm:$0xff] %vm421_vm1, %v691_v21  ;;  %747 = vst.msk [vmem:[#allocation4 + $0xd8] sm:$0xff] %vm421_vm1, %v693_v51  ;;  %v1069_v54 = vpack.c.bf16 %v979_v1, %v974_v52 }
  0xed   : > { %1591 = vmatmul.mubr.bf16.gmra.mrb[4].mxu1 %v1069_v54 }
  0xee   : > { %v855_v62 = vpop.permute.xlu0 %854  ;;  %v857_v58 = vpop.permute.xlu1 %856  ;;  %v985_v59 = vld [vmem:[#allocation4 + $0xb8] sm:$0xff]  ;;  %v990_v33 = vld [vmem:[#allocation4 + $0xe0] sm:$0xff]  ;;  %9016 = vmatmul.mubr.msk.bf16.gmra.mrb[44].mxu0 %vm300_vm0, %v1081_v53 }
  0xef   : > { %908 = vst.msk [vmem:[#allocation4 + $0x108] sm:$0xff] %vm421_vm1, %v855_v62  ;;  %909 = vst.msk [vmem:[#allocation4 + $0x130] sm:$0xff] %vm421_vm1, %v857_v58  ;;  %v1075_v29 = vpack.c.bf16 %v990_v33, %v985_v59  ;;  %9019 = vmatprep.mubr.msk.bf16.mxu0 %vm300_vm0, %v1086_v57 }
  0xf1   : > { %1598 = vmatprep.mubr.bf16.mxu1 %v1075_v29 }
  0xf2   : > { %v695_v41 = vpop.permute.xlu0 %694  ;;  %v697_v11 = vpop.permute.xlu1 %696  ;;  %v984_v49 = vld [vmem:[#allocation4 + $0xb0] sm:$0xff]  ;;  %v989_v31 = vld [vmem:[#allocation4 + $0xd8] sm:$0xff] }
  0xf3   : > { %748 = vst.msk [vmem:[#allocation4 + $0x100] sm:$0xff] %vm421_vm1, %v695_v41  ;;  %749 = vst.msk [vmem:[#allocation4 + $0x128] sm:$0xff] %vm421_vm1, %v697_v11  ;;  %v1074_v50 = vpack.c.bf16 %v989_v31, %v984_v49 }
  0xf5   : > { %1599 = vmatmul.mubr.bf16.gmra.mrb[8].mxu1 %v1074_v50 }
  0xf6   : > { %v859_v0 = vpop.permute.xlu0 %858  ;;  %v861_v12 = vpop.permute.xlu1 %860  ;;  %v995_v35 = vld [vmem:[#allocation4 + $0x108] sm:$0xff]  ;;  %v1000_v36 = vld [vmem:[#allocation4 + $0x130] sm:$0xff]  ;;  %9020 = vmatmul.mubr.msk.bf16.gmra.mrb[48].mxu0 %vm300_vm0, %v1091_v32 }
  0xf7   : > { %910 = vst.msk [vmem:[#allocation4 + $0x158] sm:$0xff] %vm421_vm1, %v859_v0  ;;  %911 = vst.msk [vmem:[#allocation4 + $0x180] sm:$0xff] %vm421_vm1, %v861_v12  ;;  %v1080_v60 = vpack.c.bf16 %v1000_v36, %v995_v35  ;;  %9023 = vmatprep.mubr.msk.bf16.mxu0 %vm300_vm0, %v1096_v63 }
  0xf9   : > { %1606 = vmatprep.mubr.bf16.mxu1 %v1080_v60 }
  0xfa   : > { %v699_v7 = vpop.permute.xlu0 %698  ;;  %v701_v16 = vpop.permute.xlu1 %700  ;;  %v994_v38 = vld [vmem:[#allocation4 + $0x100] sm:$0xff]  ;;  %v999_v17 = vld [vmem:[#allocation4 + $0x128] sm:$0xff] }
  0xfb   : > { %750 = vst.msk [vmem:[#allocation4 + $0x150] sm:$0xff] %vm421_vm1, %v699_v7  ;;  %751 = vst.msk [vmem:[#allocation4 + $0x178] sm:$0xff] %vm421_vm1, %v701_v16  ;;  %v1079_v9 = vpack.c.bf16 %v999_v17, %v994_v38  ;;  %v9160_v38 = vmov 0.0  }
  0xfc   : > { %1921 = vst.msk [vmem:[#allocation2 + $0x20] sm:$0xff] %vm300_vm0, %v9160_v38  ;;  %1922 = vst.msk [vmem:[#allocation2 + $0x28] sm:$0xff] %vm300_vm0, %v9160_v38 }
  0xfd   : > { %1607 = vmatmul.mubr.bf16.gmra.mrb[12].mxu1 %v1079_v9  ;;  %1917 = vst.msk [vmem:[#allocation2] sm:$0xff] %vm300_vm0, %v9160_v38  ;;  %1918 = vst.msk [vmem:[#allocation2 + $0x8] sm:$0xff] %vm300_vm0, %v9160_v38 }
  0xfe   : > { %v863_v45 = vpop.permute.xlu0 %862  ;;  %v865_v2 = vpop.permute.xlu1 %864  ;;  %v1005_v46 = vld [vmem:[#allocation4 + $0x158] sm:$0xff]  ;;  %v1010_v3 = vld [vmem:[#allocation4 + $0x180] sm:$0xff]  ;;  %9024 = vmatmul.mubr.msk.bf16.gmra.mrb[52].mxu0 %vm300_vm0, %v1101_v8  ;;  %1919 = vst.msk [vmem:[#allocation2 + $0x10] sm:$0xff] %vm300_vm0, %v9160_v38  ;;  %1920 = vst.msk [vmem:[#allocation2 + $0x18] sm:$0xff] %vm300_vm0, %v9160_v38 }
  0xff   : > { %912 = vst.msk [vmem:[#allocation4 + $0x1a8] sm:$0xff] %vm421_vm1, %v863_v45  ;;  %913 = vst.msk [vmem:[#allocation4 + $0x1d0] sm:$0xff] %vm421_vm1, %v865_v2  ;;  %v1085_v19 = vpack.c.bf16 %v1010_v3, %v1005_v46  ;;  %9027 = vmatprep.mubr.msk.bf16.mxu0 %vm300_vm0, %v1106_v18 }
 0x100   : > { %1923 = vst.msk [vmem:[#allocation2 + $0x30] sm:$0xff] %vm300_vm0, %v9160_v38  ;;  %1924 = vst.msk [vmem:[#allocation2 + $0x38] sm:$0xff] %vm300_vm0, %v9160_v38 }
 0x101   : > { %1614 = vmatprep.mubr.bf16.mxu1 %v1085_v19  ;;  %1925 = vst.msk [vmem:[#allocation2 + $0x40] sm:$0xff] %vm300_vm0, %v9160_v38  ;;  %1926 = vst.msk [vmem:[#allocation2 + $0x48] sm:$0xff] %vm300_vm0, %v9160_v38 }
 0x102   : > { %v703_v14 = vpop.permute.xlu0 %702  ;;  %v705_v15 = vpop.permute.xlu1 %704  ;;  %v1004_v24 = vld [vmem:[#allocation4 + $0x150] sm:$0xff]  ;;  %v1009_v25 = vld [vmem:[#allocation4 + $0x178] sm:$0xff]  ;;  %1927 = vst.msk [vmem:[#allocation2 + $0x50] sm:$0xff] %vm300_vm0, %v9160_v38  ;;  %1928 = vst.msk [vmem:[#allocation2 + $0x58] sm:$0xff] %vm300_vm0, %v9160_v38 }
 0x103   : > { %752 = vst.msk [vmem:[#allocation4 + $0x1a0] sm:$0xff] %vm421_vm1, %v703_v14  ;;  %753 = vst.msk [vmem:[#allocation4 + $0x1c8] sm:$0xff] %vm421_vm1, %v705_v15  ;;  %v1084_v27 = vpack.c.bf16 %v1009_v25, %v1004_v24 }
 0x104   : > { %1929 = vst.msk [vmem:[#allocation2 + $0x60] sm:$0xff] %vm300_vm0, %v9160_v38  ;;  %1930 = vst.msk [vmem:[#allocation2 + $0x68] sm:$0xff] %vm300_vm0, %v9160_v38  ;;  %v2014_v9 = vld [vmem:[#allocation2 + $0x1] sm:$0xff] }
 0x105   : > { %1615 = vmatmul.mubr.bf16.gmra.mrb[16].mxu1 %v1084_v27  ;;  %1931 = vst.msk [vmem:[#allocation2 + $0x70] sm:$0xff] %vm300_vm0, %v9160_v38  ;;  %1932 = vst.msk [vmem:[#allocation2 + $0x78] sm:$0xff] %vm300_vm0, %v9160_v38  ;;  %v2206_v17 = vld [vmem:[#allocation2 + $0x10] sm:$0xff]  ;;  %v2207_v8 = vld [vmem:[#allocation2 + $0x18] sm:$0xff] }
 0x106   : > { %v867_v28 = vpop.permute.xlu0 %866  ;;  %v869_v55 = vpop.permute.xlu1 %868  ;;  %v1015_v4 = vld [vmem:[#allocation4 + $0x1a8] sm:$0xff]  ;;  %v1020_v5 = vld [vmem:[#allocation4 + $0x1d0] sm:$0xff]  ;;  %9028 = vmatmul.mubr.msk.bf16.gmra.mrb[56].mxu0 %vm300_vm0, %v1111_v26  ;;  %1933 = vst.msk [vmem:[#allocation2 + $0x80] sm:$0xff] %vm300_vm0, %v9160_v38  ;;  %1934 = vst.msk [vmem:[#allocation2 + $0x88] sm:$0xff] %vm300_vm0, %v9160_v38  ;;  %2254 = vrot.lane.b32.xlu0 %v2206_v17, %s9159_s18 }
 0x107   : > { %914 = vst.msk [vmem:[#allocation4 + $0x1f8] sm:$0xff] %vm421_vm1, %v867_v28  ;;  %915 = vst.msk [vmem:[#allocation4 + $0x220] sm:$0xff] %vm421_vm1, %v869_v55  ;;  %v1090_v56 = vpack.c.bf16 %v1020_v5, %v1015_v4  ;;  %2256 = vrot.lane.b32.xlu1 %v2207_v8, %s9159_s18  ;;  %v2015_v18 = vld [vmem:[#allocation2 + $0x9] sm:$0xff]  ;;  %v2016_v45 = vld [vmem:[#allocation2 + $0x11] sm:$0xff] }
 0x108   : > { %1935 = vst.msk [vmem:[#allocation2 + $0x90] sm:$0xff] %vm300_vm0, %v9160_v38  ;;  %1936 = vst.msk [vmem:[#allocation2 + $0x98] sm:$0xff] %vm300_vm0, %v9160_v38  ;;  %v2017_v2 = vld [vmem:[#allocation2 + $0x19] sm:$0xff] }
 0x109   : > { %1622 = vmatprep.mubr.bf16.mxu1 %v1090_v56  ;;  %1937 = vst.msk [vmem:[#allocation2 + $0xa0] sm:$0xff] %vm300_vm0, %v9160_v38  ;;  %1938 = vst.msk [vmem:[#allocation2 + $0xa8] sm:$0xff] %vm300_vm0, %v9160_v38  ;;  %v2398_v46 = vld [vmem:[#allocation2 + $0x12] sm:$0xff]  ;;  %v2399_v3 = vld [vmem:[#allocation2 + $0x1a] sm:$0xff] }
 0x10a   : > { %v707_v39 = vpop.permute.xlu0 %706  ;;  %v709_v42 = vpop.permute.xlu1 %708  ;;  %v1014_v43 = vld [vmem:[#allocation4 + $0x1a0] sm:$0xff]  ;;  %v1019_v44 = vld [vmem:[#allocation4 + $0x1c8] sm:$0xff]  ;;  %1939 = vst.msk [vmem:[#allocation2 + $0xb0] sm:$0xff] %vm300_vm0, %v9160_v38  ;;  %1940 = vst.msk [vmem:[#allocation2 + $0xb8] sm:$0xff] %vm300_vm0, %v9160_v38  ;;  %2062 = vrot.lane.b32.xlu0 %v2014_v9, %s9159_s18 }
 0x10b   : > { %754 = vst.msk [vmem:[#allocation4 + $0x1f0] sm:$0xff] %vm421_vm1, %v707_v39  ;;  %755 = vst.msk [vmem:[#allocation4 + $0x218] sm:$0xff] %vm421_vm1, %v709_v42  ;;  %v1089_v47 = vpack.c.bf16 %v1019_v44, %v1014_v43  ;;  %2064 = vrot.lane.b32.xlu1 %v2015_v18, %s9159_s18 }
 0x10c   : > { %1941 = vst.msk [vmem:[#allocation2 + $0xc0] sm:$0xff] %vm300_vm0, %v9160_v38  ;;  %1942 = vst.msk [vmem:[#allocation2 + $0xc8] sm:$0xff] %vm300_vm0, %v9160_v38 }
 0x10d   : > { %1623 = vmatmul.mubr.bf16.gmra.mrb[20].mxu1 %v1089_v47  ;;  %1943 = vst.msk [vmem:[#allocation2 + $0xd0] sm:$0xff] %vm300_vm0, %v9160_v38  ;;  %1944 = vst.msk [vmem:[#allocation2 + $0xd8] sm:$0xff] %vm300_vm0, %v9160_v38 }
 0x10e   : > { %v871_v48 = vpop.permute.xlu0 %870  ;;  %v873_v20 = vpop.permute.xlu1 %872  ;;  %v1025_v21 = vld [vmem:[#allocation4 + $0x1f8] sm:$0xff]  ;;  %v1030_v51 = vld [vmem:[#allocation4 + $0x220] sm:$0xff]  ;;  %1945 = vst.msk [vmem:[#allocation2 + $0xe0] sm:$0xff] %vm300_vm0, %v9160_v38  ;;  %3808 = vst.msk [vmem:[#allocation3] sm:$0xff] %vm300_vm0, %v9160_v38  ;;  %2066 = vrot.lane.b32.xlu0 %v2016_v45, %s9159_s18 }
 0x10f   : > { %916 = vst.msk [vmem:[#allocation4 + $0x248] sm:$0xff] %vm421_vm1, %v871_v48  ;;  %917 = vst.msk [vmem:[#allocation4 + $0x270] sm:$0xff] %vm421_vm1, %v873_v20  ;;  %v1095_v52 = vpack.c.bf16 %v1030_v51, %v1025_v21  ;;  %2068 = vrot.lane.b32.xlu1 %v2017_v2, %s9159_s18 }
 0x110   : > { %3809 = vst.msk [vmem:[#allocation3 + $0x8] sm:$0xff] %vm300_vm0, %v9160_v38  ;;  %3810 = vst.msk [vmem:[#allocation3 + $0x10] sm:$0xff] %vm300_vm0, %v9160_v38 }
 0x111   : > { %1630 = vmatprep.mubr.bf16.mxu1 %v1095_v52  ;;  %3811 = vst.msk [vmem:[#allocation3 + $0x18] sm:$0xff] %vm300_vm0, %v9160_v38  ;;  %3812 = vst.msk [vmem:[#allocation3 + $0x20] sm:$0xff] %vm300_vm0, %v9160_v38 }
 0x112   : > { %v711_v1 = vpop.permute.xlu0 %710  ;;  %v713_v53 = vpop.permute.xlu1 %712  ;;  %v1024_v54 = vld [vmem:[#allocation4 + $0x1f0] sm:$0xff]  ;;  %v1029_v57 = vld [vmem:[#allocation4 + $0x218] sm:$0xff]  ;;  %3813 = vst.msk [vmem:[#allocation3 + $0x28] sm:$0xff] %vm300_vm0, %v9160_v38  ;;  %3814 = vst.msk [vmem:[#allocation3 + $0x30] sm:$0xff] %vm300_vm0, %v9160_v38  ;;  %2446 = vrot.lane.b32.xlu0 %v2398_v46, %s9159_s18 }
 0x113   : > { %756 = vst.msk [vmem:[#allocation4 + $0x240] sm:$0xff] %vm421_vm1, %v711_v1  ;;  %757 = vst.msk [vmem:[#allocation4 + $0x268] sm:$0xff] %vm421_vm1, %v713_v53  ;;  %v1094_v62 = vpack.c.bf16 %v1029_v57, %v1024_v54  ;;  %2448 = vrot.lane.b32.xlu1 %v2399_v3, %s9159_s18 }
 0x114   : > { %3815 = vst.msk [vmem:[#allocation3 + $0x38] sm:$0xff] %vm300_vm0, %v9160_v38  ;;  %3816 = vst.msk [vmem:[#allocation3 + $0x40] sm:$0xff] %vm300_vm0, %v9160_v38 }
 0x115   : > { %1631 = vmatmul.mubr.bf16.gmra.mrb[24].mxu1 %v1094_v62  ;;  %3817 = vst.msk [vmem:[#allocation3 + $0x48] sm:$0xff] %vm300_vm0, %v9160_v38  ;;  %3818 = vst.msk [vmem:[#allocation3 + $0x50] sm:$0xff] %vm300_vm0, %v9160_v38 }
 0x116   : > { %v875_v58 = vpop.permute.xlu0 %874  ;;  %v877_v59 = vpop.permute.xlu1 %876  ;;  %v1035_v33 = vld [vmem:[#allocation4 + $0x248] sm:$0xff]  ;;  %v1040_v29 = vld [vmem:[#allocation4 + $0x270] sm:$0xff]  ;;  %3819 = vst.msk [vmem:[#allocation3 + $0x58] sm:$0xff] %vm300_vm0, %v9160_v38  ;;  %3820 = vst.msk [vmem:[#allocation3 + $0x60] sm:$0xff] %vm300_vm0, %v9160_v38 }
 0x117   : > { %918 = vst.msk [vmem:[#allocation4 + $0x298] sm:$0xff] %vm421_vm1, %v875_v58  ;;  %919 = vst.msk [vmem:[#allocation4 + $0x2c0] sm:$0xff] %vm421_vm1, %v877_v59  ;;  %v1100_v34 = vpack.c.bf16 %v1040_v29, %v1035_v33 }
 0x118   : > { %3821 = vst.msk [vmem:[#allocation3 + $0x68] sm:$0xff] %vm300_vm0, %v9160_v38  ;;  %3822 = vst.msk [vmem:[#allocation3 + $0x70] sm:$0xff] %vm300_vm0, %v9160_v38 }
 0x119   : > { %1638 = vmatprep.mubr.bf16.mxu1 %v1100_v34  ;;  %3823 = vst.msk [vmem:[#allocation3 + $0x78] sm:$0xff] %vm300_vm0, %v9160_v38  ;;  %3824 = vst.msk [vmem:[#allocation3 + $0x80] sm:$0xff] %vm300_vm0, %v9160_v38 }
 0x11a   : > { %v715_v10 = vpop.permute.xlu0 %714  ;;  %v717_v30 = vpop.permute.xlu1 %716  ;;  %v1034_v40 = vld [vmem:[#allocation4 + $0x240] sm:$0xff]  ;;  %v1039_v41 = vld [vmem:[#allocation4 + $0x268] sm:$0xff]  ;;  %3825 = vst.msk [vmem:[#allocation3 + $0x88] sm:$0xff] %vm300_vm0, %v9160_v38  ;;  %3826 = vst.msk [vmem:[#allocation3 + $0x90] sm:$0xff] %vm300_vm0, %v9160_v38 }
 0x11b   : > { %758 = vst.msk [vmem:[#allocation4 + $0x290] sm:$0xff] %vm421_vm1, %v715_v10  ;;  %759 = vst.msk [vmem:[#allocation4 + $0x2b8] sm:$0xff] %vm421_vm1, %v717_v30  ;;  %v1099_v11 = vpack.c.bf16 %v1039_v41, %v1034_v40 }
 0x11c   : > { %3827 = vst.msk [vmem:[#allocation3 + $0x98] sm:$0xff] %vm300_vm0, %v9160_v38  ;;  %3828 = vst.msk [vmem:[#allocation3 + $0xa0] sm:$0xff] %vm300_vm0, %v9160_v38 }
 0x11d   : > { %1639 = vmatmul.mubr.bf16.gmra.mrb[28].mxu1 %v1099_v11  ;;  %3829 = vst.msk [vmem:[#allocation3 + $0xa8] sm:$0xff] %vm300_vm0, %v9160_v38  ;;  %3830 = vst.msk [vmem:[#allocation3 + $0xb0] sm:$0xff] %vm300_vm0, %v9160_v38 }
 0x11e   : > { %v879_v49 = vpop.permute.xlu0 %878  ;;  %v881_v31 = vpop.permute.xlu1 %880  ;;  %v1045_v32 = vld [vmem:[#allocation4 + $0x298] sm:$0xff]  ;;  %v1050_v50 = vld [vmem:[#allocation4 + $0x2c0] sm:$0xff]  ;;  %3831 = vst.msk [vmem:[#allocation3 + $0xb8] sm:$0xff] %vm300_vm0, %v9160_v38  ;;  %3832 = vst.msk [vmem:[#allocation3 + $0xc0] sm:$0xff] %vm300_vm0, %v9160_v38 }
 0x11f   : > { %920 = vst.msk [vmem:[#allocation4 + $0x2e8] sm:$0xff] %vm421_vm1, %v879_v49  ;;  %921 = vst.msk [vmem:[#allocation4 + $0x310] sm:$0xff] %vm421_vm1, %v881_v31  ;;  %v1105_v63 = vpack.c.bf16 %v1050_v50, %v1045_v32 }
 0x120   : > { %3833 = vst.msk [vmem:[#allocation3 + $0xc8] sm:$0xff] %vm300_vm0, %v9160_v38  ;;  %3834 = vst.msk [vmem:[#allocation3 + $0xd0] sm:$0xff] %vm300_vm0, %v9160_v38 }
 0x121   : > { %1646 = vmatprep.mubr.bf16.mxu1 %v1105_v63  ;;  %3835 = vst.msk [vmem:[#allocation3 + $0xd8] sm:$0xff] %vm300_vm0, %v9160_v38  ;;  %3836 = vst.msk [vmem:[#allocation3 + $0xe0] sm:$0xff] %vm300_vm0, %v9160_v38  ;;  %v9114_v63 = vld [vmem:[%s12734_s2 + $0x40] sm:$0xff]  }
 0x122   : > { %v719_v0 = vpop.permute.xlu0 %718  ;;  %v721_v12 = vpop.permute.xlu1 %720  ;;  %v1044_v35 = vld [vmem:[#allocation4 + $0x290] sm:$0xff]  ;;  %v1049_v36 = vld [vmem:[#allocation4 + $0x2b8] sm:$0xff]  ;;  %3837 = vst.msk [vmem:[#allocation3 + $0xe8] sm:$0xff] %vm300_vm0, %v9160_v38  ;;  %3838 = vst.msk [vmem:[#allocation3 + $0xf0] sm:$0xff] %vm300_vm0, %v9160_v38  ;;  %8811 = vmatprep.subr.bf16.mxu1 %v9114_v63 }
 0x123   : > { %760 = vst.msk [vmem:[#allocation4 + $0x2e0] sm:$0xff] %vm421_vm1, %v719_v0  ;;  %761 = vst.msk [vmem:[#allocation4 + $0x308] sm:$0xff] %vm421_vm1, %v721_v12  ;;  %v1104_v60 = vpack.c.bf16 %v1049_v36, %v1044_v35  ;;  %v9115_v12 = vld [vmem:[%s12734_s2] sm:$0xff]  }
 0x124   : > { %3839 = vst.msk [vmem:[#allocation3 + $0xf8] sm:$0xff] %vm300_vm0, %v9160_v38  ;;  %3840 = vst.msk [vmem:[#allocation3 + $0x100] sm:$0xff] %vm300_vm0, %v9160_v38  ;;  %8812 = vmatpush3.bf16.msra.mxu1 %v9115_v12  ;;  %v9119_v38 = vld [vmem:[%s12734_s2 + $0x10] sm:$0xff]  }
 0x125   : > { %1647 = vmatmul.mubr.bf16.gmra.mrb[32].mxu1 %v1104_v60  ;;  %1992 = vst.msk [vmem:[#allocation4 + $0x50] sm:$0xff] %vm300_vm0, %v2206_v17  ;;  %1993 = vst.msk [vmem:[#allocation4 + $0x78] sm:$0xff] %vm300_vm0, %v2207_v8 }
 0x126   : > { %v1055_v61 = vld [vmem:[#allocation4 + $0x2e8] sm:$0xff]  ;;  %v1060_v13 = vld [vmem:[#allocation4 + $0x310] sm:$0xff]  ;;  %2374 = vst.msk [vmem:[#allocation4 + $0x10] sm:$0xff] %vm300_vm0, %v2016_v45  ;;  %2375 = vst.msk [vmem:[#allocation4 + $0x38] sm:$0xff] %vm300_vm0, %v2017_v2 }
 0x127   : > { %v1110_v6 = vpack.c.bf16 %v1060_v13, %v1055_v61  ;;  %2184 = vst.msk [vmem:[#allocation4 + $0x58] sm:$0xff] %vm300_vm0, %v2398_v46  ;;  %2185 = vst.msk [vmem:[#allocation4 + $0x80] sm:$0xff] %vm300_vm0, %v2399_v3  ;;  %v9116_v13 = vld [vmem:[%s12734_s2 + $0x48] sm:$0xff]   ;;  %v9120_v45 = vld [vmem:[%s12734_s2 + $0x58] sm:$0xff]   ;;  %v12740_v3 = vlaneseq }
 0x128   : > { %8813 = vmatprep.subr.bf16.mxu1 %v9116_v13  ;;  %v9121_v2 = vld [vmem:[%s12734_s2 + $0x18] sm:$0xff]  }
 0x129   : > { %1654 = vmatprep.mubr.bf16.mxu1 %v1110_v6  ;;  %v9117_v6 = vld [vmem:[%s12734_s2 + $0x8] sm:$0xff]  }
 0x12a   : > { %v1054_v37 = vld [vmem:[#allocation4 + $0x2e0] sm:$0xff]  ;;  %v1059_v7 = vld [vmem:[#allocation4 + $0x308] sm:$0xff]  ;;  %8814 = vmatpush3.bf16.msra.mxu1 %v9117_v6 }
 0x12b   : > { %v1109_v16 = vpack.c.bf16 %v1059_v7, %v1054_v37  ;;  %v9118_v7 = vld [vmem:[%s12734_s2 + $0x50] sm:$0xff]  }
 0x12c   : > { %8815 = vmatprep.subr.bf16.mxu1 %v9118_v7 }
 0x12d   : > { %1655 = vmatmul.mubr.bf16.gmra.mrb[36].mxu1 %v1109_v16 }
 0x12e   : > { %8816 = vmatpush3.bf16.msra.mxu1 %v9119_v38 }
 0x12f   : > { %8817 = vmatprep.subr.bf16.mxu1 %v9120_v45 }
 0x132   : > { %8818 = vmatpush3.bf16.msra.mxu1 %v9121_v2 }
 0x169   : > { %v8661_v19 = vpop.f32.mrb[0].mxu0 }
 0x16a   : > { %v8662_v22 = vpop.f32.mrb[1].mxu0 }
 0x16b   : > { %v9996_v23 = vadd.f32 %v8662_v22, %v8661_v19  ;;  %v8664_v14 = vpop.f32.mrb[2].mxu0  ;;  %v9122_v19 = vld [vmem:[%s12734_s2 + $0x60] sm:$0xff]  }
 0x16c   : > { %v8665_v15 = vpop.f32.mrb[3].mxu0  ;;  %8819 = vmatprep.subr.bf16.mxu1 %v9122_v19 }
 0x16d   : > { %v9998_v24 = vadd.f32 %v8665_v15, %v8664_v14  ;;  %v2158_v14 = vld [vmem:[#allocation2 + $0x2] sm:$0xff] }
 0x16e   : > { %v9123_v15 = vld [vmem:[%s12734_s2 + $0x20] sm:$0xff]   ;;  %2182 = vst.msk [vmem:[#allocation4 + $0x8] sm:$0xff] %vm300_vm0, %v2158_v14 }
 0x16f   : > { %8820 = vmatpush3.bf16.msra.mxu1 %v9123_v15 }
 0x171   : > { %v8667_v25 = vpop.f32.mrb[4].mxu0 }
 0x172   : > { %v8668_v26 = vpop.f32.mrb[5].mxu0 }
 0x173   : > { %v10000_v27 = vadd.f32 %v8668_v26, %v8667_v25  ;;  %v8670_v28 = vpop.f32.mrb[6].mxu0  ;;  %v2159_v25 = vld [vmem:[#allocation2 + $0xa] sm:$0xff] }
 0x174   : > { %v8671_v55 = vpop.f32.mrb[7].mxu0  ;;  %2183 = vst.msk [vmem:[#allocation4 + $0x30] sm:$0xff] %vm300_vm0, %v2159_v25 }
 0x175   : > { %v10002_v4 = vadd.f32 %v8671_v55, %v8670_v28 }
 0x179   : > { %v8673_v5 = vpop.f32.mrb[8].mxu0 }
 0x17a   : > { %v8674_v56 = vpop.f32.mrb[9].mxu0 }
 0x17b   : > { %v10004_v39 = vadd.f32 %v8674_v56, %v8673_v5  ;;  %v8676_v42 = vpop.f32.mrb[10].mxu0  ;;  %v2255_v5 = vpop.permute.xlu0 %2254 }
 0x17c   : > { %v8677_v43 = vpop.f32.mrb[11].mxu0  ;;  %2326 = vst.msk [vmem:[#allocation4 + $0x8] sm:$0xff] %vm421_vm1, %v2255_v5 }
 0x17d   : > { %v10006_v44 = vadd.f32 %v8677_v43, %v8676_v42  ;;  %v10069_v42 = vshrl.u32 %v12740_v3, 7  ;;  %v2257_v43 = vpop.permute.xlu1 %2256 }
 0x17e   : > { %2327 = vst.msk [vmem:[#allocation4 + $0x30] sm:$0xff] %vm421_vm1, %v2257_v43 }
 0x17f   : > { %v10110_v38 = vadd.s32 24, %v10069_v42 }
 0x181   : > { %v8679_v47 = vpop.f32.mrb[12].mxu0  ;;  %v2065_v13 = vpop.permute.xlu1 %2064 }
 0x182   : > { %v8680_v48 = vpop.f32.mrb[13].mxu0 }
 0x183   : > { %v10008_v20 = vadd.f32 %v8680_v48, %v8679_v47  ;;  %v8682_v21 = vpop.f32.mrb[14].mxu0  ;;  %v9124_v47 = vld [vmem:[%s12734_s2 + $0x68] sm:$0xff]   ;;  %v1966_v48 = vld [vmem:[#allocation2] sm:$0xff] }
 0x184   : > { %v8683_v51 = vpop.f32.mrb[15].mxu0  ;;  %8821 = vmatprep.subr.bf16.mxu1 %v9124_v47  ;;  %1990 = vst.msk [vmem:[#allocation4] sm:$0xff] %vm300_vm0, %v1966_v48 }
 0x185   : > { %v10010_v52 = vadd.f32 %v8683_v51, %v8682_v21  ;;  %v9125_v21 = vld [vmem:[%s12734_s2 + $0x28] sm:$0xff]   ;;  %v2069_v19 = vpop.permute.xlu1 %2068 }
 0x186   : > { %v1967_v51 = vld [vmem:[#allocation2 + $0x8] sm:$0xff]  ;;  %8822 = vmatpush3.bf16.msra.mxu1 %v9125_v21  ;;  %2137 = vst.msk [vmem:[#allocation4 + $0x78] sm:$0xff] %vm421_vm1, %v2069_v19 }
 0x187   : > { %1991 = vst.msk [vmem:[#allocation4 + $0x28] sm:$0xff] %vm300_vm0, %v1967_v51  ;;  %v1820_v51 = vand.u32 15, %v10110_v38 }
 0x188   : > { %2135 = vst.msk [vmem:[#allocation4 + $0x28] sm:$0xff] %vm421_vm1, %v2065_v13 }
 0x189   : > { %v8685_v1 = vpop.f32.mrb[16].mxu0  ;;  %vm10138_vm3 = vcmp.lt.s32.totalorder %v1820_v51, 10  ;;  %vm3715_vm12 = vcmp.lt.s32.totalorder %v1820_v51, 12 }
 0x18a   : > { %v8686_v53 = vpop.f32.mrb[17].mxu0 }
 0x18b   : > { %v10012_v54 = vadd.f32 %v8686_v53, %v8685_v1  ;;  %v8688_v57 = vpop.f32.mrb[18].mxu0  ;;  %v10082_v1 = vld [vmem:[%s12736_s4] ss:$0 sm:$0xff] }
 0x18c   : > { %v8689_v62 = vpop.f32.mrb[19].mxu0  ;;  %v1491_v14 = vadd.f32 %v10006_v44, %v10082_v1 }
 0x18d   : > { %v10014_v58 = vadd.f32 %v8689_v62, %v8688_v57  ;;  %v2063_v57 = vpop.permute.xlu0 %2062 }
 0x18e   : > { %2134 = vst.msk [vmem:[#allocation4] sm:$0xff] %vm421_vm1, %v2063_v57  ;;  %v1483_v57 = vadd.f32 %v10002_v4, %v10082_v1 }
 0x191   : > { %v8691_v59 = vpop.f32.mrb[20].mxu0  ;;  %v2067_v6 = vpop.permute.xlu0 %2066 }
 0x192   : > { %v8692_v33 = vpop.f32.mrb[21].mxu0  ;;  %2136 = vst.msk [vmem:[#allocation4 + $0x50] sm:$0xff] %vm421_vm1, %v2067_v6 }
 0x193   : > { %v10016_v29 = vadd.f32 %v8692_v33, %v8691_v59  ;;  %v8694_v34 = vpop.f32.mrb[22].mxu0  ;;  %v10087_v33 = vadd.s32 8, %v10069_v42 }
 0x194   : > { %v8695_v10 = vpop.f32.mrb[23].mxu0 }
 0x195   : > { %v10018_v30 = vadd.f32 %v8695_v10, %v8694_v34  ;;  %v9126_v34 = vld [vmem:[%s12734_s2 + $0x70] sm:$0xff]   ;;  %v1472_v10 = vadd.f32 %v9996_v23, %v10082_v1  ;;  %v1818_v23 = vand.u32 15, %v10087_v33 }
 0x196   : > { %8823 = vmatprep.subr.bf16.mxu1 %v9126_v34  ;;  %v2782_v48 = vld [vmem:[#allocation4] sm:$0xff] }
 0x197   : > { %vm10114_vm2 = vcmp.lt.s32.totalorder %v1818_v23, 10  ;;  %vm3713_vm13 = vcmp.lt.s32.totalorder %v1818_v23, 12 }
 0x199   : > { %v8697_v40 = vpop.f32.mrb[24].mxu0 }
 0x19a   : > { %v8698_v41 = vpop.f32.mrb[25].mxu0 }
 0x19b   : > { %v10020_v11 = vadd.f32 %v8698_v41, %v8697_v40  ;;  %v8700_v49 = vpop.f32.mrb[26].mxu0 }
 0x19c   : > { %v8701_v31 = vpop.f32.mrb[27].mxu0 }
 0x19d   : > { %v10022_v32 = vadd.f32 %v8701_v31, %v8700_v49  ;;  %v9127_v31 = vld [vmem:[%s12734_s2 + $0x30] sm:$0xff]  }
 0x19e   : > { %8824 = vmatpush3.bf16.msra.mxu1 %v9127_v31 }
 0x1a1   : > { %v8703_v50 = vpop.f32.mrb[28].mxu0 }
 0x1a2   : > { %v8704_v0 = vpop.f32.mrb[29].mxu0 }
 0x1a3   : > { %v10030_v35 = vadd.f32 %v8704_v0, %v8703_v50  ;;  %v8706_v36 = vpop.f32.mrb[30].mxu0  ;;  %v1475_v0 = vadd.f32 %v9998_v24, %v10082_v1  ;;  %v9129_v24 = vld [vmem:[%s12734_s2 + $0x38] sm:$0xff]  }
 0x1a4   : > { %v8707_v60 = vpop.f32.mrb[31].mxu0 }
 0x1a5   : > { %v10032_v61 = vadd.f32 %v8707_v60, %v8706_v36 }
 0x1a9   : > { %v8709_v37 = vpop.f32.mrb[32].mxu0 }
 0x1aa   : > { %v8710_v16 = vpop.f32.mrb[33].mxu0 }
 0x1ab   : > { %v10046_v17 = vadd.f32 %v8710_v16, %v8709_v37  ;;  %v8712_v8 = vpop.f32.mrb[34].mxu0  ;;  %v9128_v37 = vld [vmem:[%s12734_s2 + $0x78] sm:$0xff]  }
 0x1ac   : > { %v8713_v9 = vpop.f32.mrb[35].mxu0  ;;  %8825 = vmatprep.subr.bf16.mxu1 %v9128_v37  ;;  %v10145_v37 = vadd.s32 40, %v10069_v42 }
 0x1ad   : > { %v10048_v18 = vadd.f32 %v8713_v9, %v8712_v8  ;;  %v2783_v8 = vld [vmem:[#allocation4 + $0x8] sm:$0xff]  ;;  %v2788_v9 = vld [vmem:[#allocation4 + $0x30] sm:$0xff]  ;;  %8826 = vmatpush3.bf16.msra.mxu1 %v9129_v24 }
 0x1ae   : > { %v1822_v44 = vand.u32 15, %v10145_v37 }
 0x1b0   : > { %vm10211_vm4 = vcmp.lt.s32.totalorder %v1822_v44, 10  ;;  %vm11048_vm15 = vcmp.lt.s32.totalorder %v1822_v44, 12 }
 0x1b1   : > { %v8715_v46 = vpop.f32.mrb[36].mxu0 }
 0x1b2   : > { %v8716_v22 = vpop.f32.mrb[37].mxu0 }
 0x1b3   : > { %v10062_v26 = vadd.f32 %v8716_v22, %v8715_v46  ;;  %v8718_v28 = vpop.f32.mrb[38].mxu0  ;;  %v2903_v22 = vpack.c.bf16 %v2788_v9, %v2783_v8 }
 0x1b4   : > { %v8719_v55 = vpop.f32.mrb[39].mxu0 }
 0x1b5   : > { %v10066_v56 = vadd.f32 %v8719_v55, %v8718_v28  ;;  %v1480_v28 = vadd.f32 %v10000_v27, %v10082_v1  ;;  %3325 = vmatprep.mubr.bf16.mxu1 %v2903_v22 }
 0x1b8   : > { %v8737_v53 = vpop.f32.mrb[0].mxu1 }
 0x1b9   : > { %v8738_v62 = vpop.f32.mrb[1].mxu1  ;;  %v9013_v59 = vpop.f32.mrb[40].mxu0 }
 0x1ba   : > { %v8739_v40 = vadd.f32 %v8738_v62, %v8737_v53  ;;  %v8740_v41 = vpop.f32.mrb[2].mxu1  ;;  %v1697_v49 = vpop.f32.mrb[41].mxu0 }
 0x1bb   : > { %v8741_v50 = vpop.f32.mrb[3].mxu1  ;;  %v9014_v63 = vpop.f32.mrb[42].mxu0 }
 0x1bc   : > { %v8742_v12 = vadd.f32 %v8741_v50, %v8740_v41  ;;  %v1585_v36 = vadd.f32 %v8739_v40, %v1472_v10  ;;  %v1700_v60 = vpop.f32.mrb[43].mxu0  ;;  %v2447_v40 = vpop.permute.xlu0 %2446  ;;  %v2787_v41 = vld [vmem:[#allocation4 + $0x28] sm:$0xff] }
 0x1bd   : > { %2518 = vst.msk [vmem:[#allocation4 + $0x10] sm:$0xff] %vm421_vm1, %v2447_v40  ;;  %v2902_v31 = vpack.c.bf16 %v2787_v41, %v2782_v48  ;;  %v10207_v40 = vadd.s32 56, %v10069_v42 }
 0x1be   : > { %v1698_v7 = vadd.f32 %v1697_v49, %v1585_v36  ;;  %v1588_v16 = vadd.f32 %v8742_v12, %v1475_v0  ;;  %v2449_v49 = vpop.permute.xlu1 %2448 }
 0x1bf   : > { %2519 = vst.msk [vmem:[#allocation4 + $0x38] sm:$0xff] %vm421_vm1, %v2449_v49  ;;  %3326 = vmatmul.mubr.bf16.vlgmr.msra.gmra.mrb[40].mxu1 %v2902_v31 }
 0x1c0   : > { %v1776_v45 = vmax.f32 %v1698_v7, 0.0  ;;  %v1701_v2 = vadd.f32 %v1700_v60, %v1588_v16  ;;  %v8743_v46 = vpop.f32.mrb[4].mxu1 }
 0x1c1   : > { %v8744_v15 = vpop.f32.mrb[5].mxu1  ;;  %v10118_v25 = vpop.f32.mrb[44].mxu0 }
 0x1c2   : > { %1946 = vst.msk [vmem:[#allocation2 + $0x22] sm:$0xff] %vm300_vm0, %v1776_v45  ;;  %v1777_v55 = vmax.f32 %v1701_v2, 0.0  ;;  %v8745_v5 = vadd.f32 %v8744_v15, %v8743_v46  ;;  %v8746_v43 = vpop.f32.mrb[6].mxu1  ;;  %v10124_v47 = vpop.f32.mrb[45].mxu0  ;;  %v9130_v2 = vld [vmem:[%s12734_s2 + $0xc0] sm:$0xff]  }
 0x1c3   : > { %v8747_v21 = vpop.f32.mrb[7].mxu1  ;;  %v10127_v53 = vpop.f32.mrb[46].mxu0  ;;  %v9131_v46 = vld [vmem:[%s12734_s2 + $0x80] sm:$0xff]   ;;  %8899 = vmatprep.subr.bf16.mxu0 %v9130_v2  ;;  %v1824_v2 = vand.u32 15, %v10207_v40 }
 0x1c4   : > { %v1898_v27 = vsel %vm10114_vm2, %v1777_v55, 0.0  ;;  %v1593_v62 = vadd.f32 %v8745_v5, %v1480_v28  ;;  %v8748_v34 = vadd.f32 %v8747_v21, %v8746_v43  ;;  %v1716_v10 = vpop.f32.mrb[47].mxu0  ;;  %8900 = vmatpush3.bf16.msra.mxu0 %v9131_v46 }
 0x1c5   : > { %1947 = vst.msk [vmem:[#allocation2 + $0x2a] sm:$0xff] %vm300_vm0, %v1898_v27  ;;  %vm10272_vm5 = vcmp.lt.s32.totalorder %v1824_v2, 10  ;;  %vm11037_vm14 = vcmp.lt.s32.totalorder %v1824_v2, 12 }
 0x1c6   : > { %v1706_v50 = vadd.f32 %v9013_v59, %v1593_v62  ;;  %v1596_v0 = vadd.f32 %v8748_v34, %v1483_v57  ;;  %v9132_v57 = vld [vmem:[%s12734_s2 + $0xc8] sm:$0xff]  }
 0x1c7   : > { %v9133_v34 = vld [vmem:[%s12734_s2 + $0x88] sm:$0xff]   ;;  %8901 = vmatprep.subr.bf16.mxu0 %v9132_v57 }
 0x1c8   : > { %v1778_v4 = vmax.f32 %v1706_v50, 0.0  ;;  %v1709_v12 = vadd.f32 %v9014_v63, %v1596_v0  ;;  %v8749_v60 = vpop.f32.mrb[8].mxu1  ;;  %v1488_v63 = vadd.f32 %v10004_v39, %v10082_v1  ;;  %8902 = vmatpush3.bf16.msra.mxu0 %v9133_v34 }
 0x1c9   : > { %v10142_v13 = vld [vmem:[#allocation2 + $0x22] sm:$0xff]  ;;  %v8750_v6 = vpop.f32.mrb[9].mxu1  ;;  %v10151_v16 = vpop.f32.mrb[48].mxu0 }
 0x1ca   : > { %v10147_v59 = vld [vmem:[#allocation2 + $0x20] sm:$0xff]  ;;  %2758 = vst.msk [vmem:[#allocation4 + $0x20] sm:$0xff] %vm300_vm0, %v10142_v13  ;;  %1948 = vst.msk [vmem:[#allocation2 + $0x32] sm:$0xff] %vm300_vm0, %v1778_v4  ;;  %v1779_v24 = vmax.f32 %v1709_v12, 0.0  ;;  %v8751_v8 = vadd.f32 %v8750_v6, %v8749_v60  ;;  %v8752_v9 = vpop.f32.mrb[10].mxu1  ;;  %v10158_v45 = vpop.f32.mrb[49].mxu0  ;;  %v1496_v60 = vadd.f32 %v10008_v20, %v10082_v1 }
 0x1cb   : > { %v10149_v7 = vld [vmem:[#allocation2 + $0x21] sm:$0xff]  ;;  %1994 = vst.msk [vmem:[#allocation4 + $0xa0] sm:$0xff] %vm300_vm0, %v10147_v59  ;;  %2566 = vst.msk [vmem:[#allocation4 + $0x18] sm:$0xff] %vm300_vm0, %v10147_v59  ;;  %v8753_v19 = vpop.f32.mrb[11].mxu1  ;;  %v10172_v22 = vpop.f32.mrb[50].mxu0 }
 0x1cc   : > { %2376 = vst.msk [vmem:[#allocation4 + $0x60] sm:$0xff] %vm300_vm0, %v10149_v7  ;;  %v2162_v39 = vld [vmem:[#allocation2 + $0x22] sm:$0xff]  ;;  %v10177_v15 = vld [vmem:[#allocation2 + $0x2a] sm:$0xff]  ;;  %v1900_v28 = vsel %vm10138_vm3, %v1779_v24, 0.0  ;;  %v8754_v55 = vadd.f32 %v8753_v19, %v8752_v9  ;;  %v1601_v5 = vadd.f32 %v8751_v8, %v1488_v63  ;;  %v10181_v43 = vpop.f32.mrb[51].mxu0  ;;  %v1499_v19 = vadd.f32 %v10010_v52, %v10082_v1 }
 0x1cd   : > { %2186 = vst.msk [vmem:[#allocation4 + $0xa8] sm:$0xff] %vm300_vm0, %v2162_v39  ;;  %v10183_v48 = vld [vmem:[#allocation2 + $0x28] sm:$0xff]  ;;  %2759 = vst.msk [vmem:[#allocation4 + $0x48] sm:$0xff] %vm300_vm0, %v10177_v15  ;;  %v9134_v8 = vld [vmem:[%s12734_s2 + $0xd0] sm:$0xff]  }
 0x1ce   : > { %v10185_v21 = vld [vmem:[#allocation2 + $0x29] sm:$0xff]  ;;  %1949 = vst.msk [vmem:[#allocation2 + $0x3a] sm:$0xff] %vm300_vm0, %v1900_v28  ;;  %2187 = vst.msk [vmem:[#allocation4 + $0xd0] sm:$0xff] %vm300_vm0, %v10177_v15  ;;  %v1714_v27 = vadd.f32 %v10124_v47, %v1601_v5  ;;  %v1604_v62 = vadd.f32 %v8754_v55, %v1491_v14  ;;  %8903 = vmatprep.subr.bf16.mxu0 %v9134_v8  ;;  %v1504_v8 = vadd.f32 %v10012_v54, %v10082_v1 }
 0x1cf   : > { %1995 = vst.msk [vmem:[#allocation4 + $0xc8] sm:$0xff] %vm300_vm0, %v10183_v48  ;;  %2567 = vst.msk [vmem:[#allocation4 + $0x40] sm:$0xff] %vm300_vm0, %v10183_v48  ;;  %v9135_v39 = vld [vmem:[%s12734_s2 + $0x90] sm:$0xff]  }
 0x1d0   : > { %2377 = vst.msk [vmem:[#allocation4 + $0x88] sm:$0xff] %vm300_vm0, %v10185_v21  ;;  %v1780_v41 = vmax.f32 %v1714_v27, 0.0  ;;  %v1717_v49 = vadd.f32 %v1716_v10, %v1604_v62  ;;  %v8755_v31 = vpop.f32.mrb[12].mxu1  ;;  %8904 = vmatpush3.bf16.msra.mxu0 %v9135_v39 }
 0x1d1   : > { %v2736_v50 = vld [vmem:[#allocation2 + $0x32] sm:$0xff]  ;;  %v8756_v47 = vpop.f32.mrb[13].mxu1  ;;  %v10219_v36 = vpop.f32.mrb[52].mxu0 }
 0x1d2   : > { %v10215_v4 = vld [vmem:[#allocation2 + $0x30] sm:$0xff]  ;;  %2760 = vst.msk [vmem:[#allocation4 + $0x70] sm:$0xff] %vm300_vm0, %v2736_v50  ;;  %1950 = vst.msk [vmem:[#allocation2 + $0x42] sm:$0xff] %vm300_vm0, %v1780_v41  ;;  %v1781_v10 = vmax.f32 %v1717_v49, 0.0  ;;  %v8757_v6 = vadd.f32 %v8756_v47, %v8755_v31  ;;  %v8758_v63 = vpop.f32.mrb[14].mxu1  ;;  %2454 = vrot.lane.b32.xlu0 %v2736_v50, %s9159_s18  ;;  %v10226_v24 = vpop.f32.mrb[53].mxu0 }
 0x1d3   : > { %v10217_v12 = vld [vmem:[#allocation2 + $0x31] sm:$0xff]  ;;  %1996 = vst.msk [vmem:[#allocation4 + $0xf0] sm:$0xff] %vm300_vm0, %v10215_v4  ;;  %2568 = vst.msk [vmem:[#allocation4 + $0x68] sm:$0xff] %vm300_vm0, %v10215_v4  ;;  %v8759_v9 = vpop.f32.mrb[15].mxu1  ;;  %v10238_v46 = vpop.f32.mrb[54].mxu0 }
 0x1d4   : > { %2378 = vst.msk [vmem:[#allocation4 + $0xb0] sm:$0xff] %vm300_vm0, %v10217_v12  ;;  %v2164_v20 = vld [vmem:[#allocation2 + $0x32] sm:$0xff]  ;;  %v1902_v28 = vsel %vm10211_vm4, %v1781_v10, 0.0  ;;  %v1609_v55 = vadd.f32 %v8757_v6, %v1496_v60  ;;  %v8760_v5 = vadd.f32 %v8759_v9, %v8758_v63  ;;  %v10250_v62 = vpop.f32.mrb[55].mxu0  ;;  %v10280_v10 = vadd.s32 72, %v10069_v42 }
 0x1d5   : > { %2188 = vst.msk [vmem:[#allocation4 + $0xf8] sm:$0xff] %vm300_vm0, %v2164_v20  ;;  %v10246_v14 = vld [vmem:[#allocation2 + $0x3a] sm:$0xff]  ;;  %1951 = vst.msk [vmem:[#allocation2 + $0x4a] sm:$0xff] %vm300_vm0, %v1902_v28 }
 0x1d6   : > { %v2211_v57 = vld [vmem:[#allocation2 + $0x38] sm:$0xff]  ;;  %2761 = vst.msk [vmem:[#allocation4 + $0x98] sm:$0xff] %vm300_vm0, %v10246_v14  ;;  %v1722_v34 = vadd.f32 %v10118_v25, %v1609_v55  ;;  %v1612_v41 = vadd.f32 %v8760_v5, %v1499_v19  ;;  %2258 = vrot.lane.b32.xlu0 %v10147_v59, %s9159_s18  ;;  %v9138_v28 = vld [vmem:[%s12734_s2 + $0xe0] sm:$0xff]  }
 0x1d7   : > { %v2021_v27 = vld [vmem:[#allocation2 + $0x39] sm:$0xff]  ;;  %2264 = vrot.lane.b32.xlu1 %v2211_v57, %s9159_s18  ;;  %1997 = vst.msk [vmem:[#allocation4 + $0x118] sm:$0xff] %vm300_vm0, %v2211_v57  ;;  %2569 = vst.msk [vmem:[#allocation4 + $0x90] sm:$0xff] %vm300_vm0, %v2211_v57 }
 0x1d8   : > { %2379 = vst.msk [vmem:[#allocation4 + $0xd8] sm:$0xff] %vm300_vm0, %v2021_v27  ;;  %v2165_v52 = vld [vmem:[#allocation2 + $0x3a] sm:$0xff]  ;;  %v1782_v50 = vmax.f32 %v1722_v34, 0.0  ;;  %v1725_v0 = vadd.f32 %v10127_v53, %v1612_v41  ;;  %v8761_v59 = vpop.f32.mrb[16].mxu1 }
 0x1d9   : > { %v9136_v49 = vld [vmem:[%s12734_s2 + $0xd8] sm:$0xff]   ;;  %2189 = vst.msk [vmem:[#allocation4 + $0x120] sm:$0xff] %vm300_vm0, %v2165_v52  ;;  %v10276_v47 = vld [vmem:[#allocation2 + $0x42] sm:$0xff]  ;;  %v8762_v60 = vpop.f32.mrb[17].mxu1  ;;  %v10286_v53 = vpop.f32.mrb[56].mxu0  ;;  %v1507_v52 = vadd.f32 %v10014_v58, %v10082_v1  ;;  %v1826_v58 = vand.u32 15, %v10280_v10 }
 0x1da   : > { %v9137_v31 = vld [vmem:[%s12734_s2 + $0x98] sm:$0xff]   ;;  %8905 = vmatprep.subr.bf16.mxu0 %v9136_v49  ;;  %v10282_v6 = vld [vmem:[#allocation2 + $0x40] sm:$0xff]  ;;  %2762 = vst.msk [vmem:[#allocation4 + $0xc0] sm:$0xff] %vm300_vm0, %v10276_v47  ;;  %1952 = vst.msk [vmem:[#allocation2 + $0x52] sm:$0xff] %vm300_vm0, %v1782_v50  ;;  %v1783_v20 = vmax.f32 %v1725_v0, 0.0  ;;  %v8763_v9 = vadd.f32 %v8762_v60, %v8761_v59  ;;  %v8764_v39 = vpop.f32.mrb[18].mxu1  ;;  %2070 = vrot.lane.b32.xlu0 %v10149_v7, %s9159_s18 }
 0x1db   : > { %2076 = vrot.lane.b32.xlu1 %v2021_v27, %s9159_s18  ;;  %v10284_v63 = vld [vmem:[#allocation2 + $0x41] sm:$0xff]  ;;  %8906 = vmatpush3.bf16.msra.mxu0 %v9137_v31  ;;  %v10295_v19 = vpop.f32.mrb[57].mxu0  ;;  %1998 = vst.msk [vmem:[#allocation4 + $0x140] sm:$0xff] %vm300_vm0, %v10282_v6  ;;  %2570 = vst.msk [vmem:[#allocation4 + $0xb8] sm:$0xff] %vm300_vm0, %v10282_v6  ;;  %v8765_v55 = vpop.f32.mrb[19].mxu1  ;;  %vm10348_vm6 = vcmp.lt.s32.totalorder %v1826_v58, 10 }
 0x1dc   : > { %2380 = vst.msk [vmem:[#allocation4 + $0x100] sm:$0xff] %vm300_vm0, %v10284_v63  ;;  %v2166_v54 = vld [vmem:[#allocation2 + $0x42] sm:$0xff]  ;;  %v10306_v5 = vpop.f32.mrb[58].mxu0  ;;  %v10314_v34 = vld [vmem:[#allocation2 + $0x4a] sm:$0xff]  ;;  %v1904_v41 = vsel %vm10272_vm5, %v1783_v20, 0.0  ;;  %v8766_v49 = vadd.f32 %v8765_v55, %v8764_v39  ;;  %v1617_v31 = vadd.f32 %v8763_v9, %v1504_v8  ;;  %8907 = vmatprep.subr.bf16.mxu0 %v9138_v28  ;;  %vm11144_vm3 = vcmp.lt.s32.totalorder %v1826_v58, 12 }
 0x1dd   : > { %v9139_v57 = vld [vmem:[%s12734_s2 + $0xa0] sm:$0xff]   ;;  %2190 = vst.msk [vmem:[#allocation4 + $0x148] sm:$0xff] %vm300_vm0, %v2166_v54  ;;  %v10318_v50 = vpop.f32.mrb[59].mxu0  ;;  %v10320_v0 = vld [vmem:[#allocation2 + $0x48] sm:$0xff]  ;;  %2763 = vst.msk [vmem:[#allocation4 + $0xe8] sm:$0xff] %vm300_vm0, %v10314_v34  ;;  %v10355_v54 = vadd.s32 88, %v10069_v42 }
 0x1de   : > { %v10322_v59 = vld [vmem:[#allocation2 + $0x49] sm:$0xff]  ;;  %1953 = vst.msk [vmem:[#allocation2 + $0x5a] sm:$0xff] %vm300_vm0, %v1904_v41  ;;  %1999 = vst.msk [vmem:[#allocation4 + $0x168] sm:$0xff] %vm300_vm0, %v10320_v0  ;;  %v1730_v60 = vadd.f32 %v10158_v45, %v1617_v31  ;;  %2638 = vrot.lane.b32.xlu0 %v10149_v7, %s9159_s18  ;;  %v1620_v8 = vadd.f32 %v8766_v49, %v1507_v52 }
 0x1df   : > { %2644 = vrot.lane.b32.xlu1 %v2021_v27, %s9159_s18  ;;  %8908 = vmatpush3.bf16.msra.mxu0 %v9139_v57  ;;  %v2167_v25 = vld [vmem:[#allocation2 + $0x4a] sm:$0xff]  ;;  %2571 = vst.msk [vmem:[#allocation4 + $0xe0] sm:$0xff] %vm300_vm0, %v10320_v0  ;;  %2381 = vst.msk [vmem:[#allocation4 + $0x128] sm:$0xff] %vm300_vm0, %v10322_v59 }
 0x1e0   : > { %v9140_v27 = vld [vmem:[%s12734_s2 + $0xe8] sm:$0xff]   ;;  %2191 = vst.msk [vmem:[#allocation4 + $0x170] sm:$0xff] %vm300_vm0, %v2167_v25  ;;  %v1784_v9 = vmax.f32 %v1730_v60, 0.0  ;;  %v1733_v39 = vadd.f32 %v10181_v43, %v1620_v8  ;;  %v8767_v28 = vpop.f32.mrb[20].mxu1  ;;  %v1512_v43 = vadd.f32 %v10016_v29, %v10082_v1  ;;  %v9143_v25 = vld [vmem:[%s12734_s2 + $0xb0] sm:$0xff]  }
 0x1e1   : > { %v9141_v20 = vld [vmem:[%s12734_s2 + $0xa8] sm:$0xff]   ;;  %8909 = vmatprep.subr.bf16.mxu0 %v9140_v27  ;;  %v8768_v45 = vpop.f32.mrb[21].mxu1  ;;  %v10357_v55 = vld [vmem:[#allocation2 + $0x50] sm:$0xff] }
 0x1e2   : > { %v10359_v57 = vld [vmem:[#allocation2 + $0x51] sm:$0xff]  ;;  %1954 = vst.msk [vmem:[#allocation2 + $0x62] sm:$0xff] %vm300_vm0, %v1784_v9  ;;  %v1785_v52 = vmax.f32 %v1733_v39, 0.0  ;;  %v8769_v41 = vadd.f32 %v8768_v45, %v8767_v28  ;;  %v8770_v49 = vpop.f32.mrb[22].mxu1  ;;  %2450 = vrot.lane.b32.xlu0 %v10142_v13, %s9159_s18  ;;  %2000 = vst.msk [vmem:[#allocation4 + $0x190] sm:$0xff] %vm300_vm0, %v10357_v55  ;;  %v1515_v13 = vadd.f32 %v10018_v30, %v10082_v1  ;;  %v1828_v28 = vand.u32 15, %v10355_v54 }
 0x1e3   : > { %2456 = vrot.lane.b32.xlu1 %v10246_v14, %s9159_s18  ;;  %8910 = vmatpush3.bf16.msra.mxu0 %v9141_v20  ;;  %v9142_v14 = vld [vmem:[%s12734_s2 + $0xf0] sm:$0xff]   ;;  %2382 = vst.msk [vmem:[#allocation4 + $0x150] sm:$0xff] %vm300_vm0, %v10359_v57  ;;  %2572 = vst.msk [vmem:[#allocation4 + $0x108] sm:$0xff] %vm300_vm0, %v10357_v55  ;;  %v8771_v31 = vpop.f32.mrb[23].mxu1 }
 0x1e4   : > { %v2168_v29 = vld [vmem:[#allocation2 + $0x52] sm:$0xff]  ;;  %v1906_v8 = vsel %vm10348_vm6, %v1785_v52, 0.0  ;;  %v1625_v27 = vadd.f32 %v8769_v41, %v1512_v43  ;;  %v8772_v20 = vadd.f32 %v8771_v31, %v8770_v49  ;;  %8911 = vmatprep.subr.bf16.mxu0 %v9142_v14  ;;  %vm10417_vm7 = vcmp.lt.s32.totalorder %v1828_v28, 10 }
 0x1e5   : > { %2192 = vst.msk [vmem:[#allocation4 + $0x198] sm:$0xff] %vm300_vm0, %v2168_v29  ;;  %2764 = vst.msk [vmem:[#allocation4 + $0x110] sm:$0xff] %vm300_vm0, %v2168_v29  ;;  %v10382_v60 = vld [vmem:[#allocation2 + $0x5a] sm:$0xff]  ;;  %v10424_v29 = vadd.s32 104, %v10069_v42  ;;  %vm11131_vm2 = vcmp.lt.s32.totalorder %v1828_v28, 12 }
 0x1e6   : > { %v10386_v9 = vld [vmem:[#allocation2 + $0x58] sm:$0xff]  ;;  %2765 = vst.msk [vmem:[#allocation4 + $0x138] sm:$0xff] %vm300_vm0, %v10382_v60  ;;  %1955 = vst.msk [vmem:[#allocation2 + $0x6a] sm:$0xff] %vm300_vm0, %v1906_v8  ;;  %v1738_v7 = vadd.f32 %v10151_v16, %v1625_v27  ;;  %v1628_v45 = vadd.f32 %v8772_v20, %v1515_v13  ;;  %2262 = vrot.lane.b32.xlu0 %v10215_v4, %s9159_s18 }
 0x1e7   : > { %v10388_v39 = vld [vmem:[#allocation2 + $0x59] sm:$0xff]  ;;  %2260 = vrot.lane.b32.xlu1 %v10183_v48, %s9159_s18  ;;  %8912 = vmatpush3.bf16.msra.mxu0 %v9143_v25  ;;  %2001 = vst.msk [vmem:[#allocation4 + $0x1b8] sm:$0xff] %vm300_vm0, %v10386_v9  ;;  %2573 = vst.msk [vmem:[#allocation4 + $0x130] sm:$0xff] %vm300_vm0, %v10386_v9 }
 0x1e8   : > { %2383 = vst.msk [vmem:[#allocation4 + $0x178] sm:$0xff] %vm300_vm0, %v10388_v39  ;;  %v2169_v30 = vld [vmem:[#allocation2 + $0x5a] sm:$0xff]  ;;  %v1786_v52 = vmax.f32 %v1738_v7, 0.0  ;;  %v1741_v41 = vadd.f32 %v10172_v22, %v1628_v45  ;;  %v8773_v49 = vpop.f32.mrb[24].mxu1  ;;  %v1520_v22 = vadd.f32 %v10020_v11, %v10082_v1 }
 0x1e9   : > { %v9144_v48 = vld [vmem:[%s12734_s2 + $0xf8] sm:$0xff]   ;;  %2193 = vst.msk [vmem:[#allocation4 + $0x1c0] sm:$0xff] %vm300_vm0, %v2169_v30  ;;  %v10413_v16 = vld [vmem:[#allocation2 + $0x62] sm:$0xff]  ;;  %v8774_v14 = vpop.f32.mrb[25].mxu1  ;;  %v1523_v30 = vadd.f32 %v10022_v32, %v10082_v1 }
 0x1ea   : > { %v9145_v43 = vld [vmem:[%s12734_s2 + $0xb8] sm:$0xff]   ;;  %8913 = vmatprep.subr.bf16.mxu0 %v9144_v48  ;;  %v10426_v31 = vld [vmem:[#allocation2 + $0x60] sm:$0xff]  ;;  %2766 = vst.msk [vmem:[#allocation4 + $0x160] sm:$0xff] %vm300_vm0, %v10413_v16  ;;  %1956 = vst.msk [vmem:[#allocation2 + $0x72] sm:$0xff] %vm300_vm0, %v1786_v52  ;;  %v1787_v25 = vmax.f32 %v1741_v41, 0.0  ;;  %v8775_v13 = vadd.f32 %v8774_v14, %v8773_v49  ;;  %v8776_v8 = vpop.f32.mrb[26].mxu1  ;;  %2074 = vrot.lane.b32.xlu0 %v10217_v12, %s9159_s18 }
 0x1eb   : > { %2072 = vrot.lane.b32.xlu1 %v10185_v21, %s9159_s18  ;;  %8914 = vmatpush3.bf16.msra.mxu0 %v9145_v43  ;;  %2002 = vst.msk [vmem:[#allocation4 + $0x1e0] sm:$0xff] %vm300_vm0, %v10426_v31  ;;  %2574 = vst.msk [vmem:[#allocation4 + $0x158] sm:$0xff] %vm300_vm0, %v10426_v31  ;;  %v2170_v27 = vld [vmem:[#allocation2 + $0x62] sm:$0xff]  ;;  %v8777_v11 = vpop.f32.mrb[27].mxu1  ;;  %v1830_v41 = vand.u32 15, %v10424_v29 }
 0x1ec   : > { %v2360_v20 = vld [vmem:[#allocation2 + $0x61] sm:$0xff]  ;;  %2194 = vst.msk [vmem:[#allocation4 + $0x1e8] sm:$0xff] %vm300_vm0, %v2170_v27  ;;  %v1908_v45 = vsel %vm10417_vm7, %v1787_v25, 0.0  ;;  %v8778_v48 = vadd.f32 %v8777_v11, %v8776_v8  ;;  %v1633_v43 = vadd.f32 %v8775_v13, %v1520_v22 }
 0x1ed   : > { %2384 = vst.msk [vmem:[#allocation4 + $0x1a0] sm:$0xff] %vm300_vm0, %v2360_v20  ;;  %v10443_v7 = vld [vmem:[#allocation2 + $0x6a] sm:$0xff]  ;;  %1957 = vst.msk [vmem:[#allocation2 + $0x7a] sm:$0xff] %vm300_vm0, %v1908_v45  ;;  %vm10467_vm8 = vcmp.lt.s32.totalorder %v1830_v41, 10  ;;  %vm11243_vm5 = vcmp.lt.s32.totalorder %v1830_v41, 12 }
 0x1ee   : > { %v10447_v52 = vld [vmem:[#allocation2 + $0x68] sm:$0xff]  ;;  %2767 = vst.msk [vmem:[#allocation4 + $0x188] sm:$0xff] %vm300_vm0, %v10443_v7  ;;  %v1746_v4 = vadd.f32 %v10226_v24, %v1633_v43  ;;  %2642 = vrot.lane.b32.xlu0 %v10217_v12, %s9159_s18  ;;  %v1636_v14 = vadd.f32 %v8778_v48, %v1523_v30  ;;  %v2406_v12 = vld [vmem:[#allocation2 + $0x52] sm:$0xff]  ;;  %v10474_v24 = vadd.s32 120, %v10069_v42 }
 0x1ef   : > { %2640 = vrot.lane.b32.xlu1 %v10185_v21, %s9159_s18  ;;  %v2171_v32 = vld [vmem:[#allocation2 + $0x6a] sm:$0xff]  ;;  %2003 = vst.msk [vmem:[#allocation4 + $0x208] sm:$0xff] %vm300_vm0, %v10447_v52  ;;  %2575 = vst.msk [vmem:[#allocation4 + $0x180] sm:$0xff] %vm300_vm0, %v10447_v52 }
 0x1f0   : > { %v2361_v49 = vld [vmem:[#allocation2 + $0x69] sm:$0xff]  ;;  %2195 = vst.msk [vmem:[#allocation4 + $0x210] sm:$0xff] %vm300_vm0, %v2171_v32  ;;  %v1788_v21 = vmax.f32 %v1746_v4, 0.0  ;;  %v1749_v22 = vadd.f32 %v10250_v62, %v1636_v14  ;;  %v8779_v25 = vpop.f32.mrb[28].mxu1  ;;  %v1528_v62 = vadd.f32 %v10030_v35, %v10082_v1  ;;  %v1531_v35 = vadd.f32 %v10032_v61, %v10082_v1 }
 0x1f1   : > { %2385 = vst.msk [vmem:[#allocation4 + $0x1c8] sm:$0xff] %vm300_vm0, %v2361_v49  ;;  %v8780_v8 = vpop.f32.mrb[29].mxu1  ;;  %v10476_v27 = vld [vmem:[#allocation2 + $0x70] sm:$0xff] }
 0x1f2   : > { %v10478_v20 = vld [vmem:[#allocation2 + $0x72] sm:$0xff]  ;;  %1958 = vst.msk [vmem:[#allocation2 + $0x82] sm:$0xff] %vm300_vm0, %v1788_v21  ;;  %v1789_v11 = vmax.f32 %v1749_v22, 0.0  ;;  %v8781_v30 = vadd.f32 %v8780_v8, %v8779_v25  ;;  %v8782_v45 = vpop.f32.mrb[30].mxu1  ;;  %2462 = vrot.lane.b32.xlu0 %v2406_v12, %s9159_s18  ;;  %2004 = vst.msk [vmem:[#allocation4 + $0x230] sm:$0xff] %vm300_vm0, %v10476_v27  ;;  %v1832_v22 = vand.u32 15, %v10474_v24 }
 0x1f3   : > { %2452 = vrot.lane.b32.xlu1 %v10177_v15, %s9159_s18  ;;  %2576 = vst.msk [vmem:[#allocation4 + $0x1a8] sm:$0xff] %vm300_vm0, %v10476_v27  ;;  %2196 = vst.msk [vmem:[#allocation4 + $0x238] sm:$0xff] %vm300_vm0, %v10478_v20  ;;  %v2362_v15 = vld [vmem:[#allocation2 + $0x71] sm:$0xff]  ;;  %v8783_v43 = vpop.f32.mrb[31].mxu1  ;;  %v10506_v61 = vld [vmem:[#allocation2 + $0xc9] sm:$0xff] }
 0x1f4   : > { %v2744_v48 = vld [vmem:[#allocation2 + $0x72] sm:$0xff]  ;;  %2386 = vst.msk [vmem:[#allocation4 + $0x1f0] sm:$0xff] %vm300_vm0, %v2362_v15  ;;  %v10494_v32 = vld [vmem:[#allocation2 + $0x7a] sm:$0xff]  ;;  %v1910_v49 = vsel %vm10467_vm8, %v1789_v11, 0.0  ;;  %v1641_v4 = vadd.f32 %v8781_v30, %v1528_v62  ;;  %v8784_v14 = vadd.f32 %v8783_v43, %v8782_v45  ;;  %2397 = vst.msk [vmem:[#allocation4 + $0x3a8] sm:$0xff] %vm300_vm0, %v10506_v61  ;;  %vm10526_vm9 = vcmp.lt.s32.totalorder %v1832_v22, 10 }
 0x1f5   : > { %2768 = vst.msk [vmem:[#allocation4 + $0x1b0] sm:$0xff] %vm300_vm0, %v2744_v48  ;;  %v10498_v21 = vld [vmem:[#allocation2 + $0x78] sm:$0xff]  ;;  %2769 = vst.msk [vmem:[#allocation4 + $0x1d8] sm:$0xff] %vm300_vm0, %v10494_v32  ;;  %v9146_v25 = vld [vmem:[%s12734_s2 + $0x100] sm:$0xff]   ;;  %v10533_v48 = vadd.s32 136, %v10069_v42  ;;  %vm11229_vm4 = vcmp.lt.s32.totalorder %v1832_v22, 12 }
 0x1f6   : > { %1959 = vst.msk [vmem:[#allocation2 + $0x8a] sm:$0xff] %vm300_vm0, %v1910_v49  ;;  %2005 = vst.msk [vmem:[#allocation4 + $0x258] sm:$0xff] %vm300_vm0, %v10498_v21  ;;  %v2173_v13 = vld [vmem:[#allocation2 + $0x7a] sm:$0xff]  ;;  %v1754_v8 = vadd.f32 %v10219_v36, %v1641_v4  ;;  %v1644_v12 = vadd.f32 %v8784_v14, %v1531_v35  ;;  %2266 = vrot.lane.b32.xlu0 %v10282_v6, %s9159_s18  ;;  %9031 = vmatprep.subr.bf16.mxu1 %v9146_v25 }
 0x1f7   : > { %2272 = vrot.lane.b32.xlu1 %v10386_v9, %s9159_s18  ;;  %2197 = vst.msk [vmem:[#allocation4 + $0x260] sm:$0xff] %vm300_vm0, %v2173_v13  ;;  %v2553_v62 = vld [vmem:[#allocation2 + $0x78] sm:$0xff]  ;;  %9032 = vmatpush3.bf16.msra.mxu1 %v9146_v25 }
 0x1f8   : > { %v2363_v9 = vld [vmem:[#allocation2 + $0x79] sm:$0xff]  ;;  %2577 = vst.msk [vmem:[#allocation4 + $0x1d0] sm:$0xff] %vm300_vm0, %v2553_v62  ;;  %v1790_v11 = vmax.f32 %v1754_v8, 0.0  ;;  %v1757_v30 = vadd.f32 %v10238_v46, %v1644_v12  ;;  %v8785_v36 = vpop.f32.mrb[32].mxu1  ;;  %v1536_v46 = vadd.f32 %v10046_v17, %v10082_v1  ;;  %v1539_v17 = vadd.f32 %v10048_v18, %v10082_v1 }
 0x1f9   : > { %2387 = vst.msk [vmem:[#allocation4 + $0x218] sm:$0xff] %vm300_vm0, %v2363_v9  ;;  %v10522_v45 = vld [vmem:[#allocation2 + $0x82] sm:$0xff]  ;;  %v8786_v15 = vpop.f32.mrb[33].mxu1 }
 0x1fa   : > { %v10535_v43 = vld [vmem:[#allocation2 + $0x80] sm:$0xff]  ;;  %2770 = vst.msk [vmem:[#allocation4 + $0x200] sm:$0xff] %vm300_vm0, %v10522_v45  ;;  %1960 = vst.msk [vmem:[#allocation2 + $0x92] sm:$0xff] %vm300_vm0, %v1790_v11  ;;  %v1791_v35 = vmax.f32 %v1757_v30, 0.0  ;;  %v8787_v49 = vadd.f32 %v8786_v15, %v8785_v36  ;;  %v8788_v4 = vpop.f32.mrb[34].mxu1  ;;  %2078 = vrot.lane.b32.xlu0 %v10284_v63, %s9159_s18  ;;  %v1834_v30 = vand.u32 15, %v10533_v48 }
 0x1fb   : > { %2084 = vrot.lane.b32.xlu1 %v10388_v39, %s9159_s18  ;;  %2006 = vst.msk [vmem:[#allocation4 + $0x280] sm:$0xff] %vm300_vm0, %v10535_v43  ;;  %v2174_v14 = vld [vmem:[#allocation2 + $0x82] sm:$0xff]  ;;  %v8789_v8 = vpop.f32.mrb[35].mxu1 }
 0x1fc   : > { %v2554_v25 = vld [vmem:[#allocation2 + $0x80] sm:$0xff]  ;;  %2198 = vst.msk [vmem:[#allocation4 + $0x288] sm:$0xff] %vm300_vm0, %v2174_v14  ;;  %v1912_v62 = vsel %vm10526_vm9, %v1791_v35, 0.0  ;;  %v8790_v9 = vadd.f32 %v8789_v8, %v8788_v4  ;;  %v1649_v11 = vadd.f32 %v8787_v49, %v1536_v46  ;;  %vm10571_vm10 = vcmp.lt.s32.totalorder %v1834_v30, 10 }
 0x1fd   : > { %v2364_v13 = vld [vmem:[#allocation2 + $0x81] sm:$0xff]  ;;  %2578 = vst.msk [vmem:[#allocation4 + $0x1f8] sm:$0xff] %vm300_vm0, %v2554_v25  ;;  %v10551_v12 = vld [vmem:[#allocation2 + $0x8a] sm:$0xff]  ;;  %1961 = vst.msk [vmem:[#allocation2 + $0x9a] sm:$0xff] %vm300_vm0, %v1912_v62  ;;  %v10578_v4 = vadd.s32 152, %v10069_v42  ;;  %vm11338_vm7 = vcmp.lt.s32.totalorder %v1834_v30, 12 }
 0x1fe   : > { %2388 = vst.msk [vmem:[#allocation4 + $0x240] sm:$0xff] %vm300_vm0, %v2364_v13  ;;  %2771 = vst.msk [vmem:[#allocation4 + $0x228] sm:$0xff] %vm300_vm0, %v10551_v12  ;;  %v2175_v36 = vld [vmem:[#allocation2 + $0x8a] sm:$0xff]  ;;  %v1762_v18 = vadd.f32 %v10295_v19, %v1649_v11  ;;  %2646 = vrot.lane.b32.xlu0 %v10284_v63, %s9159_s18  ;;  %v1652_v6 = vadd.f32 %v8790_v9, %v1539_v17 }
 0x1ff   : > { %2652 = vrot.lane.b32.xlu1 %v10388_v39, %s9159_s18  ;;  %2199 = vst.msk [vmem:[#allocation4 + $0x2b0] sm:$0xff] %vm300_vm0, %v2175_v36  ;;  %v1983_v15 = vld [vmem:[#allocation2 + $0x88] sm:$0xff] }
 0x200   : > { %v2365_v46 = vld [vmem:[#allocation2 + $0x89] sm:$0xff]  ;;  %2007 = vst.msk [vmem:[#allocation4 + $0x2a8] sm:$0xff] %vm300_vm0, %v1983_v15  ;;  %2579 = vst.msk [vmem:[#allocation4 + $0x220] sm:$0xff] %vm300_vm0, %v1983_v15  ;;  %v1792_v39 = vmax.f32 %v1762_v18, 0.0  ;;  %v1765_v35 = vadd.f32 %v10318_v50, %v1652_v6  ;;  %v8791_v49 = vpop.f32.mrb[36].mxu1  ;;  %v1544_v50 = vadd.f32 %v10062_v26, %v10082_v1 }
 0x201   : > { %2389 = vst.msk [vmem:[#allocation4 + $0x268] sm:$0xff] %vm300_vm0, %v2365_v46  ;;  %v8792_v63 = vpop.f32.mrb[37].mxu1  ;;  %v10580_v14 = vld [vmem:[#allocation2 + $0x90] sm:$0xff] }
 0x202   : > { %v10582_v25 = vld [vmem:[#allocation2 + $0x92] sm:$0xff]  ;;  %1962 = vst.msk [vmem:[#allocation2 + $0xa2] sm:$0xff] %vm300_vm0, %v1792_v39  ;;  %v1793_v13 = vmax.f32 %v1765_v35, 0.0  ;;  %v8793_v8 = vadd.f32 %v8792_v63, %v8791_v49  ;;  %v8794_v17 = vpop.f32.mrb[38].mxu1  ;;  %2458 = vrot.lane.b32.xlu0 %v10276_v47, %s9159_s18  ;;  %v10589_v62 = vld [vmem:[#allocation2 + $0xca] sm:$0xff]  ;;  %2008 = vst.msk [vmem:[#allocation4 + $0x2d0] sm:$0xff] %vm300_vm0, %v10580_v14  ;;  %v1547_v47 = vadd.f32 %v10066_v56, %v10082_v1 }
 0x203   : > { %2464 = vrot.lane.b32.xlu1 %v10382_v60, %s9159_s18  ;;  %v10591_v60 = vld [vmem:[#allocation2 + $0xc2] sm:$0xff]  ;;  %2200 = vst.msk [vmem:[#allocation4 + $0x2d8] sm:$0xff] %vm300_vm0, %v10582_v25  ;;  %v2556_v9 = vld [vmem:[#allocation2 + $0x90] sm:$0xff]  ;;  %v8795_v26 = vpop.f32.mrb[39].mxu1  ;;  %2779 = vst.msk [vmem:[#allocation4 + $0x368] sm:$0xff] %vm300_vm0, %v10589_v62  ;;  %v1836_v56 = vand.u32 15, %v10578_v4 }
 0x204   : > { %2580 = vst.msk [vmem:[#allocation4 + $0x248] sm:$0xff] %vm300_vm0, %v2556_v9  ;;  %v2366_v11 = vld [vmem:[#allocation2 + $0x91] sm:$0xff]  ;;  %2778 = vst.msk [vmem:[#allocation4 + $0x340] sm:$0xff] %vm300_vm0, %v10591_v60  ;;  %v10604_v18 = vld [vmem:[#allocation2 + $0x9a] sm:$0xff]  ;;  %v1914_v6 = vsel %vm10571_vm10, %v1793_v13, 0.0  ;;  %v1657_v15 = vadd.f32 %v8793_v8, %v1544_v50  ;;  %v8796_v46 = vadd.f32 %v8795_v26, %v8794_v17  ;;  %vm8264_vm10 = vcmask 261312  }
 0x205   : > { %v2748_v36 = vld [vmem:[#allocation2 + $0x92] sm:$0xff]  ;;  %2390 = vst.msk [vmem:[#allocation4 + $0x290] sm:$0xff] %vm300_vm0, %v2366_v11  ;;  %2773 = vst.msk [vmem:[#allocation4 + $0x278] sm:$0xff] %vm300_vm0, %v10604_v18  ;;  %v2177_v1 = vld [vmem:[#allocation2 + $0x9a] sm:$0xff]  ;;  %vm1856_vm11 = vcmp.lt.s32.totalorder %v1836_v56, 10  ;;  %vm11324_vm6 = vcmp.lt.s32.totalorder %v1836_v56, 12 }
 0x206   : > { %v10608_v39 = vld [vmem:[#allocation2 + $0x98] sm:$0xff]  ;;  %2772 = vst.msk [vmem:[#allocation4 + $0x250] sm:$0xff] %vm300_vm0, %v2748_v36  ;;  %1963 = vst.msk [vmem:[#allocation2 + $0xaa] sm:$0xff] %vm300_vm0, %v1914_v6  ;;  %v1770_v19 = vadd.f32 %v10286_v53, %v1657_v15  ;;  %v1660_v63 = vadd.f32 %v8796_v46, %v1547_v47  ;;  %2270 = vrot.lane.b32.xlu0 %v10357_v55, %s9159_s18  ;;  %v9147_v36 = vld [vmem:[%s12734_s2 + $0x108] sm:$0xff]  }
 0x207   : > { %2268 = vrot.lane.b32.xlu1 %v10320_v0, %s9159_s18  ;;  %2009 = vst.msk [vmem:[#allocation4 + $0x2f8] sm:$0xff] %vm300_vm0, %v10608_v39  ;;  %v2557_v35 = vld [vmem:[#allocation2 + $0x98] sm:$0xff]  ;;  %2201 = vst.msk [vmem:[#allocation4 + $0x300] sm:$0xff] %vm300_vm0, %v2177_v1  ;;  %9033 = vmatprep.subr.bf16.mxu1 %v9147_v36 }
 0x208   : > { %v2367_v49 = vld [vmem:[#allocation2 + $0x99] sm:$0xff]  ;;  %2581 = vst.msk [vmem:[#allocation4 + $0x270] sm:$0xff] %vm300_vm0, %v2557_v35  ;;  %v1794_v50 = vmax.f32 %v1770_v19, 0.0  ;;  %v1773_v0 = vadd.f32 %v10306_v5, %v1660_v63  ;;  %9034 = vmatpush3.bf16.msra.mxu1 %v9147_v36 }
 0x209   : > { %2391 = vst.msk [vmem:[#allocation4 + $0x2b8] sm:$0xff] %vm300_vm0, %v2367_v49  ;;  %v10627_v13 = vld [vmem:[#allocation2 + $0xa2] sm:$0xff] }
 0x20a   : > { %v10633_v53 = vld [vmem:[#allocation2 + $0xa0] sm:$0xff]  ;;  %2774 = vst.msk [vmem:[#allocation4 + $0x2a0] sm:$0xff] %vm300_vm0, %v10627_v13  ;;  %1964 = vst.msk [vmem:[#allocation2 + $0xb2] sm:$0xff] %vm300_vm0, %v1794_v50  ;;  %v1795_v55 = vmax.f32 %v1773_v0, 0.0  ;;  %2082 = vrot.lane.b32.xlu0 %v10359_v57, %s9159_s18  ;;  %v2027_v0 = vld [vmem:[#allocation2 + $0x69] sm:$0xff] }
 0x20b   : > { %2080 = vrot.lane.b32.xlu1 %v10322_v59, %s9159_s18  ;;  %2010 = vst.msk [vmem:[#allocation4 + $0x320] sm:$0xff] %vm300_vm0, %v10633_v53  ;;  %v2178_v5 = vld [vmem:[#allocation2 + $0xa2] sm:$0xff] }
 0x20c   : > { %v2558_v8 = vld [vmem:[#allocation2 + $0xa0] sm:$0xff]  ;;  %2202 = vst.msk [vmem:[#allocation4 + $0x328] sm:$0xff] %vm300_vm0, %v2178_v5  ;;  %v1916_v26 = vsel %vm1856_vm11, %v1795_v55, 0.0  ;;  %v2028_v55 = vld [vmem:[#allocation2 + $0x71] sm:$0xff]  ;;  %vm8271_vm11 = vcmask 326912  }
 0x20d   : > { %v2368_v17 = vld [vmem:[#allocation2 + $0xa1] sm:$0xff]  ;;  %2582 = vst.msk [vmem:[#allocation4 + $0x298] sm:$0xff] %vm300_vm0, %v2558_v8  ;;  %v10645_v9 = vld [vmem:[#allocation2 + $0xaa] sm:$0xff]  ;;  %1965 = vst.msk [vmem:[#allocation2 + $0xba] sm:$0xff] %vm300_vm0, %v1916_v26 }
 0x20e   : > { %2392 = vst.msk [vmem:[#allocation4 + $0x2e0] sm:$0xff] %vm300_vm0, %v2368_v17  ;;  %v10647_v11 = vld [vmem:[#allocation2 + $0xa8] sm:$0xff]  ;;  %2775 = vst.msk [vmem:[#allocation4 + $0x2c8] sm:$0xff] %vm300_vm0, %v10645_v9  ;;  %2650 = vrot.lane.b32.xlu0 %v10359_v57, %s9159_s18  ;;  %v9148_v5 = vld [vmem:[%s12734_s2 + $0x110] sm:$0xff]  }
 0x20f   : > { %2648 = vrot.lane.b32.xlu1 %v10322_v59, %s9159_s18  ;;  %v2179_v47 = vld [vmem:[#allocation2 + $0xaa] sm:$0xff]  ;;  %2011 = vst.msk [vmem:[#allocation4 + $0x348] sm:$0xff] %vm300_vm0, %v10647_v11  ;;  %9035 = vmatprep.subr.bf16.mxu1 %v9148_v5 }
 0x210   : > { %v2559_v6 = vld [vmem:[#allocation2 + $0xa8] sm:$0xff]  ;;  %2203 = vst.msk [vmem:[#allocation4 + $0x350] sm:$0xff] %vm300_vm0, %v2179_v47  ;;  %9036 = vmatpush3.bf16.msra.mxu1 %v9148_v5 }
 0x211   : > { %2583 = vst.msk [vmem:[#allocation4 + $0x2c0] sm:$0xff] %vm300_vm0, %v2559_v6  ;;  %v2369_v15 = vld [vmem:[#allocation2 + $0xa9] sm:$0xff]  ;;  %v10668_v46 = vld [vmem:[#allocation2 + $0xb2] sm:$0xff] }
 0x212   : > { %2393 = vst.msk [vmem:[#allocation4 + $0x308] sm:$0xff] %vm300_vm0, %v2369_v15  ;;  %v10666_v59 = vld [vmem:[#allocation2 + $0xb0] sm:$0xff]  ;;  %2274 = vrot.lane.b32.xlu0 %v10426_v31, %s9159_s18  ;;  %2204 = vst.msk [vmem:[#allocation4 + $0x378] sm:$0xff] %vm300_vm0, %v10668_v46  ;;  %v2026_v31 = vld [vmem:[#allocation2 + $0x61] sm:$0xff] }
 0x213   : > { %2460 = vrot.lane.b32.xlu1 %v10314_v34, %s9159_s18  ;;  %2012 = vst.msk [vmem:[#allocation4 + $0x370] sm:$0xff] %vm300_vm0, %v10666_v59  ;;  %v2560_v57 = vld [vmem:[#allocation2 + $0xb0] sm:$0xff]  ;;  %2776 = vst.msk [vmem:[#allocation4 + $0x2f0] sm:$0xff] %vm300_vm0, %v10668_v46  ;;  %v2221_v8 = vld [vmem:[#allocation2 + $0x88] sm:$0xff] }
 0x214   : > { %v2370_v1 = vld [vmem:[#allocation2 + $0xb1] sm:$0xff]  ;;  %2584 = vst.msk [vmem:[#allocation4 + $0x2e8] sm:$0xff] %vm300_vm0, %v2560_v57  ;;  %v10680_v34 = vld [vmem:[#allocation2 + $0xba] sm:$0xff]  ;;  %v2035_v47 = vld [vmem:[#allocation2 + $0xa9] sm:$0xff] }
 0x215   : > { %2394 = vst.msk [vmem:[#allocation4 + $0x330] sm:$0xff] %vm300_vm0, %v2370_v1  ;;  %2777 = vst.msk [vmem:[#allocation4 + $0x318] sm:$0xff] %vm300_vm0, %v10680_v34  ;;  %v10686_v35 = vld [vmem:[#allocation2 + $0xc1] sm:$0xff]  ;;  %v1989_v19 = vld [vmem:[#allocation2 + $0xb8] sm:$0xff] }
 0x216   : > { %v2181_v49 = vld [vmem:[#allocation2 + $0xba] sm:$0xff]  ;;  %2086 = vrot.lane.b32.xlu0 %v2026_v31, %s9159_s18  ;;  %2396 = vst.msk [vmem:[#allocation4 + $0x380] sm:$0xff] %vm300_vm0, %v10686_v35  ;;  %2013 = vst.msk [vmem:[#allocation4 + $0x398] sm:$0xff] %vm300_vm0, %v1989_v19  ;;  %v2229_v6 = vld [vmem:[#allocation2 + $0xc8] sm:$0xff] }
 0x217   : > { %2280 = vrot.lane.b32.xlu1 %v10498_v21, %s9159_s18  ;;  %2205 = vst.msk [vmem:[#allocation4 + $0x3a0] sm:$0xff] %vm300_vm0, %v2181_v49  ;;  %v2562_v63 = vld [vmem:[#allocation2 + $0xc0] sm:$0xff]  ;;  %2585 = vst.msk [vmem:[#allocation4 + $0x310] sm:$0xff] %vm300_vm0, %v1989_v19  ;;  %v2227_v17 = vld [vmem:[#allocation2 + $0xb8] sm:$0xff] }
 0x218   : > { %v2371_v50 = vld [vmem:[#allocation2 + $0xb9] sm:$0xff]  ;;  %2586 = vst.msk [vmem:[#allocation4 + $0x338] sm:$0xff] %vm300_vm0, %v2562_v63 }
 0x219   : > { %2395 = vst.msk [vmem:[#allocation4 + $0x358] sm:$0xff] %vm300_vm0, %v2371_v50  ;;  %v2029_v21 = vld [vmem:[#allocation2 + $0x79] sm:$0xff] }
 0x21a   : > { %2654 = vrot.lane.b32.xlu0 %v2026_v31, %s9159_s18  ;;  %v10752_v31 = vld [vmem:[#allocation2 + $0xb9] sm:$0xff] }
 0x21b   : > { %2092 = vrot.lane.b32.xlu1 %v2029_v21, %s9159_s18 }
 0x21e   : > { %2278 = vrot.lane.b32.xlu0 %v10476_v27, %s9159_s18  ;;  %v2030_v27 = vld [vmem:[#allocation2 + $0x81] sm:$0xff] }
 0x21f   : > { %2276 = vrot.lane.b32.xlu1 %v10447_v52, %s9159_s18  ;;  %v10713_v52 = vld [vmem:[#allocation2 + $0x99] sm:$0xff] }
 0x222   : > { %2090 = vrot.lane.b32.xlu0 %v2028_v55, %s9159_s18 }
 0x223   : > { %2088 = vrot.lane.b32.xlu1 %v2027_v0, %s9159_s18 }
 0x226   : > { %2658 = vrot.lane.b32.xlu0 %v2028_v55, %s9159_s18  ;;  %v2797_v55 = vld [vmem:[#allocation4 + $0x78] sm:$0xff] }
 0x227   : > { %2656 = vrot.lane.b32.xlu1 %v2027_v0, %s9159_s18 }
 0x22a   : > { %2282 = vrot.lane.b32.xlu0 %v10535_v43, %s9159_s18  ;;  %v2031_v43 = vld [vmem:[#allocation2 + $0x89] sm:$0xff] }
 0x22b   : > { %2288 = vrot.lane.b32.xlu1 %v10608_v39, %s9159_s18  ;;  %v2032_v39 = vld [vmem:[#allocation2 + $0x91] sm:$0xff] }
 0x22e   : > { %2094 = vrot.lane.b32.xlu0 %v2030_v27, %s9159_s18 }
 0x22f   : > { %2100 = vrot.lane.b32.xlu1 %v10713_v52, %s9159_s18 }
 0x232   : > { %2466 = vrot.lane.b32.xlu0 %v10413_v16, %s9159_s18  ;;  %v9149_v16 = vld [vmem:[%s12734_s2 + $0x118] sm:$0xff]  }
 0x233   : > { %2284 = vrot.lane.b32.xlu1 %v2221_v8, %s9159_s18  ;;  %9037 = vmatprep.subr.bf16.mxu1 %v9149_v16 }
 0x234   : > { %9038 = vmatpush3.bf16.msra.mxu1 %v9149_v16 }
 0x236   : > { %2286 = vrot.lane.b32.xlu0 %v10580_v14, %s9159_s18  ;;  %v2034_v14 = vld [vmem:[#allocation2 + $0xa1] sm:$0xff] }
 0x237   : > { %2660 = vrot.lane.b32.xlu1 %v2029_v21, %s9159_s18 }
 0x23a   : > { %2098 = vrot.lane.b32.xlu0 %v2032_v39, %s9159_s18 }
 0x23b   : > { %2096 = vrot.lane.b32.xlu1 %v2031_v43, %s9159_s18 }
 0x23e   : > { %2290 = vrot.lane.b32.xlu0 %v10633_v53, %s9159_s18 }
 0x23f   : > { %2296 = vrot.lane.b32.xlu1 %v2227_v17, %s9159_s18 }
 0x242   : > { %2102 = vrot.lane.b32.xlu0 %v2034_v14, %s9159_s18 }
 0x243   : > { %2292 = vrot.lane.b32.xlu1 %v10647_v11, %s9159_s18  ;;  %v2228_v11 = vld [vmem:[#allocation2 + $0xc0] sm:$0xff] }
 0x244   : > { %v2455_v26 = vpop.permute.xlu0 %2454 }
 0x245   : > { %2522 = vst.msk [vmem:[#allocation4 + $0xb0] sm:$0xff] %vm421_vm1, %v2455_v26 }
 0x246   : > { %2294 = vrot.lane.b32.xlu0 %v10666_v59, %s9159_s18  ;;  %v10747_v59 = vld [vmem:[#allocation2 + $0xb1] sm:$0xff] }
 0x247   : > { %2468 = vrot.lane.b32.xlu1 %v10443_v7, %s9159_s18 }
 0x248   : > { %v2259_v36 = vpop.permute.xlu0 %2258 }
 0x249   : > { %v2265_v53 = vpop.permute.xlu1 %2264  ;;  %2328 = vst.msk [vmem:[#allocation4 + $0x58] sm:$0xff] %vm421_vm1, %v2259_v36  ;;  %v2789_v36 = vld [vmem:[#allocation4 + $0x38] sm:$0xff] }
 0x24a   : > { %2331 = vst.msk [vmem:[#allocation4 + $0xd0] sm:$0xff] %vm421_vm1, %v2265_v53  ;;  %2298 = vrot.lane.b32.xlu0 %v2228_v11, %s9159_s18  ;;  %v2784_v53 = vld [vmem:[#allocation4 + $0x10] sm:$0xff]  ;;  %v2563_v11 = vld [vmem:[#allocation2 + $0xc8] sm:$0xff] }
 0x24b   : > { %2104 = vrot.lane.b32.xlu1 %v2035_v47, %s9159_s18  ;;  %2587 = vst.msk [vmem:[#allocation4 + $0x360] sm:$0xff] %vm300_vm0, %v2563_v11 }
 0x24c   : > { %v2071_v7 = vpop.permute.xlu0 %2070 }
 0x24d   : > { %v2077_v15 = vpop.permute.xlu1 %2076  ;;  %2138 = vst.msk [vmem:[#allocation4 + $0xa0] sm:$0xff] %vm421_vm1, %v2071_v7 }
 0x24e   : > { %2141 = vst.msk [vmem:[#allocation4 + $0x118] sm:$0xff] %vm421_vm1, %v2077_v15  ;;  %2106 = vrot.lane.b32.xlu0 %v10747_v59, %s9159_s18 }
 0x24f   : > { %2300 = vrot.lane.b32.xlu1 %v2229_v6, %s9159_s18 }
 0x250   : > { %v2639_v1 = vpop.permute.xlu0 %2638 }
 0x251   : > { %v2645_v57 = vpop.permute.xlu1 %2644  ;;  %2710 = vst.msk [vmem:[#allocation4 + $0x18] sm:$0xff] %vm421_vm1, %v2639_v1  ;;  %v2808_v17 = vld [vmem:[#allocation4 + $0xd0] sm:$0xff] }
 0x252   : > { %2713 = vst.msk [vmem:[#allocation4 + $0x90] sm:$0xff] %vm421_vm1, %v2645_v57  ;;  %2662 = vrot.lane.b32.xlu0 %v2030_v27, %s9159_s18  ;;  %v2793_v27 = vld [vmem:[#allocation4 + $0x58] sm:$0xff] }
 0x253   : > { %2108 = vrot.lane.b32.xlu1 %v10752_v31, %s9159_s18 }
 0x254   : > { %v2451_v19 = vpop.permute.xlu0 %2450  ;;  %v2802_v1 = vld [vmem:[#allocation4 + $0xa0] sm:$0xff] }
 0x255   : > { %v2457_v49 = vpop.permute.xlu1 %2456  ;;  %2520 = vst.msk [vmem:[#allocation4 + $0x60] sm:$0xff] %vm421_vm1, %v2451_v19 }
 0x256   : > { %2523 = vst.msk [vmem:[#allocation4 + $0xd8] sm:$0xff] %vm421_vm1, %v2457_v49  ;;  %2470 = vrot.lane.b32.xlu0 %v10478_v20, %s9159_s18  ;;  %v2792_v20 = vld [vmem:[#allocation4 + $0x50] sm:$0xff] }
 0x257   : > { %2664 = vrot.lane.b32.xlu1 %v2031_v43, %s9159_s18 }
 0x258   : > { %v2263_v50 = vpop.permute.xlu0 %2262  ;;  %v2785_v15 = vld [vmem:[#allocation4 + $0x18] sm:$0xff] }
 0x259   : > { %v2261_v63 = vpop.permute.xlu1 %2260  ;;  %2330 = vst.msk [vmem:[#allocation4 + $0xa8] sm:$0xff] %vm421_vm1, %v2263_v50  ;;  %v2800_v19 = vld [vmem:[#allocation4 + $0x90] sm:$0xff] }
 0x25a   : > { %2329 = vst.msk [vmem:[#allocation4 + $0x80] sm:$0xff] %vm421_vm1, %v2261_v63  ;;  %2666 = vrot.lane.b32.xlu0 %v2032_v39, %s9159_s18 }
 0x25b   : > { %2472 = vrot.lane.b32.xlu1 %v10494_v32, %s9159_s18 }
 0x25c   : > { %v2075_v0 = vpop.permute.xlu0 %2074 }
 0x25d   : > { %v2073_v21 = vpop.permute.xlu1 %2072  ;;  %2140 = vst.msk [vmem:[#allocation4 + $0xf0] sm:$0xff] %vm421_vm1, %v2075_v0  ;;  %v2565_v0 = vld [vmem:[#allocation2 + $0xd8] sm:$0xff] }
 0x25e   : > { %2139 = vst.msk [vmem:[#allocation4 + $0xc8] sm:$0xff] %vm421_vm1, %v2073_v21  ;;  %2474 = vrot.lane.b32.xlu0 %v10522_v45, %s9159_s18 }
 0x25f   : > { %2668 = vrot.lane.b32.xlu1 %v10713_v52, %s9159_s18  ;;  %v2907_v52 = vpack.c.bf16 %v2797_v55, %v2792_v20  ;;  %2589 = vst.msk [vmem:[#allocation4 + $0x3b0] sm:$0xff] %vm300_vm0, %v2565_v0  ;;  %v2794_v55 = vld [vmem:[#allocation4 + $0x60] sm:$0xff] }
 0x260   : > { %v2643_v32 = vpop.permute.xlu0 %2642  ;;  %v2803_v39 = vld [vmem:[#allocation4 + $0xa8] sm:$0xff] }
 0x261   : > { %v2641_v5 = vpop.permute.xlu1 %2640  ;;  %v2798_v8 = vld [vmem:[#allocation4 + $0x80] sm:$0xff]  ;;  %2712 = vst.msk [vmem:[#allocation4 + $0x68] sm:$0xff] %vm421_vm1, %v2643_v32  ;;  %v2913_v16 = vpack.c.bf16 %v2808_v17, %v2803_v39 }
 0x262   : > { %2711 = vst.msk [vmem:[#allocation4 + $0x40] sm:$0xff] %vm421_vm1, %v2641_v5  ;;  %v2908_v43 = vpack.c.bf16 %v2798_v8, %v2793_v27  ;;  %2670 = vrot.lane.b32.xlu0 %v2034_v14, %s9159_s18  ;;  %v2564_v5 = vld [vmem:[#allocation2 + $0xd0] sm:$0xff] }
 0x263   : > { %2476 = vrot.lane.b32.xlu1 %v10551_v12, %s9159_s18  ;;  %2588 = vst.msk [vmem:[#allocation4 + $0x388] sm:$0xff] %vm300_vm0, %v2564_v5  ;;  %v2612_v8 = vld [vmem:[#allocation2 + $0xd1] sm:$0xff] }
 0x264   : > { %3333 = vmatprep.mubr.bf16.mxu1 %v2908_v43  ;;  %v2463_v26 = vpop.permute.xlu0 %2462  ;;  %v2756_v32 = vld [vmem:[#allocation2 + $0xd2] sm:$0xff]  ;;  %v2757_v43 = vld [vmem:[#allocation2 + $0xda] sm:$0xff] }
 0x265   : > { %3334 = vmatmul.mubr.bf16.gmra.mrb[44].mxu1 %v2907_v52  ;;  %v2453_v45 = vpop.permute.xlu1 %2452  ;;  %2526 = vst.msk [vmem:[#allocation4 + $0x150] sm:$0xff] %vm421_vm1, %v2463_v26  ;;  %v2807_v12 = vld [vmem:[#allocation4 + $0xc8] sm:$0xff]  ;;  %v2812_v17 = vld [vmem:[#allocation4 + $0xf0] sm:$0xff] }
 0x266   : > { %2521 = vst.msk [vmem:[#allocation4 + $0x88] sm:$0xff] %vm421_vm1, %v2453_v45  ;;  %3341 = vmatprep.mubr.bf16.mxu1 %v2913_v16  ;;  %2478 = vrot.lane.b32.xlu0 %v10582_v25, %s9159_s18  ;;  %v2912_v25 = vpack.c.bf16 %v2807_v12, %v2802_v1 }
 0x267   : > { %2672 = vrot.lane.b32.xlu1 %v2035_v47, %s9159_s18  ;;  %v2904_v47 = vpack.c.bf16 %v2789_v36, %v2784_v53  ;;  %2780 = vst.msk [vmem:[#allocation4 + $0x390] sm:$0xff] %vm300_vm0, %v2756_v32  ;;  %2781 = vst.msk [vmem:[#allocation4 + $0x3b8] sm:$0xff] %vm300_vm0, %v2757_v43  ;;  %v2817_v53 = vld [vmem:[#allocation4 + $0x118] sm:$0xff] }
 0x268   : > { %v2267_v7 = vpop.permute.xlu0 %2266  ;;  %v2795_v49 = vld [vmem:[#allocation4 + $0x68] sm:$0xff]  ;;  %v2917_v11 = vpack.c.bf16 %v2817_v53, %v2812_v17 }
 0x269   : > { %v2273_v6 = vpop.permute.xlu1 %2272  ;;  %v2790_v14 = vld [vmem:[#allocation4 + $0x40] sm:$0xff]  ;;  %2332 = vst.msk [vmem:[#allocation4 + $0xf8] sm:$0xff] %vm421_vm1, %v2267_v7  ;;  %v2910_v63 = vpack.c.bf16 %v2800_v19, %v2795_v49  ;;  %v2809_v7 = vld [vmem:[#allocation4 + $0xd8] sm:$0xff]  ;;  %v2804_v19 = vld [vmem:[#allocation4 + $0xb0] sm:$0xff] }
 0x26a   : > { %2335 = vst.msk [vmem:[#allocation4 + $0x170] sm:$0xff] %vm421_vm1, %v2273_v6  ;;  %v2905_v57 = vpack.c.bf16 %v2790_v14, %v2785_v15  ;;  %2674 = vrot.lane.b32.xlu0 %v10747_v59, %s9159_s18 }
 0x26b   : > { %2480 = vrot.lane.b32.xlu1 %v10604_v18, %s9159_s18 }
 0x26c   : > { %3454 = vmatprep.mubr.bf16.mxu0 %v2905_v57  ;;  %v2079_v21 = vpop.permute.xlu0 %2078 }
 0x26d   : > { %v2085_v50 = vpop.permute.xlu1 %2084  ;;  %3342 = vmatmul.mubr.bf16.gmra.mrb[48].mxu1 %v2912_v25  ;;  %3455 = vmatmul.mubr.bf16.vlgmr.msra.gmra.mrb[60].mxu0 %v2904_v47  ;;  %2142 = vst.msk [vmem:[#allocation4 + $0x140] sm:$0xff] %vm421_vm1, %v2079_v21  ;;  %v2799_v18 = vld [vmem:[#allocation4 + $0x88] sm:$0xff] }
 0x26e   : > { %2145 = vst.msk [vmem:[#allocation4 + $0x1b8] sm:$0xff] %vm421_vm1, %v2085_v50  ;;  %3462 = vmatprep.mubr.bf16.mxu0 %v2910_v63  ;;  %2482 = vrot.lane.b32.xlu0 %v10627_v13, %s9159_s18  ;;  %v2909_v27 = vpack.c.bf16 %v2799_v18, %v2794_v55  ;;  %v2914_v18 = vpack.c.bf16 %v2809_v7, %v2804_v19 }
 0x26f   : > { %2676 = vrot.lane.b32.xlu1 %v10752_v31, %s9159_s18 }
 0x270   : > { %v2647_v59 = vpop.permute.xlu0 %2646  ;;  %v2813_v16 = vld [vmem:[#allocation4 + $0xf8] sm:$0xff] }
 0x271   : > { %v2653_v20 = vpop.permute.xlu1 %2652  ;;  %2714 = vst.msk [vmem:[#allocation4 + $0xb8] sm:$0xff] %vm421_vm1, %v2647_v59  ;;  %v2828_v36 = vld [vmem:[#allocation4 + $0x170] sm:$0xff] }
 0x272   : > { %2717 = vst.msk [vmem:[#allocation4 + $0x130] sm:$0xff] %vm421_vm1, %v2653_v20  ;;  %2678 = vrot.lane.b32.xlu0 %v10686_v35, %s9159_s18 }
 0x273   : > { %2484 = vrot.lane.b32.xlu1 %v10645_v9, %s9159_s18 }
 0x274   : > { %v2459_v31 = vpop.permute.xlu0 %2458  ;;  %v2822_v47 = vld [vmem:[#allocation4 + $0x140] sm:$0xff] }
 0x275   : > { %v2465_v13 = vpop.permute.xlu1 %2464  ;;  %3463 = vmatmul.mubr.bf16.gmra.mrb[64].mxu0 %v2909_v27  ;;  %2524 = vst.msk [vmem:[#allocation4 + $0x100] sm:$0xff] %vm421_vm1, %v2459_v31  ;;  %v2837_v17 = vld [vmem:[#allocation4 + $0x1b8] sm:$0xff] }
 0x276   : > { %2527 = vst.msk [vmem:[#allocation4 + $0x178] sm:$0xff] %vm421_vm1, %v2465_v13  ;;  %2486 = vrot.lane.b32.xlu0 %v10668_v46, %s9159_s18 }
 0x277   : > { %2680 = vrot.lane.b32.xlu1 %v10506_v61, %s9159_s18  ;;  %v2613_v61 = vld [vmem:[#allocation2 + $0xd9] sm:$0xff] }
 0x278   : > { %v2271_v35 = vpop.permute.xlu0 %2270  ;;  %v2805_v1 = vld [vmem:[#allocation4 + $0xb8] sm:$0xff] }
 0x279   : > { %v2269_v9 = vpop.permute.xlu1 %2268  ;;  %2334 = vst.msk [vmem:[#allocation4 + $0x148] sm:$0xff] %vm421_vm1, %v2271_v35  ;;  %v2820_v50 = vld [vmem:[#allocation4 + $0x130] sm:$0xff] }
 0x27a   : > { %2333 = vst.msk [vmem:[#allocation4 + $0x120] sm:$0xff] %vm421_vm1, %v2269_v9  ;;  %2682 = vrot.lane.b32.xlu0 %v2612_v8, %s9159_s18 }
 0x27b   : > { %2488 = vrot.lane.b32.xlu1 %v10680_v34, %s9159_s18 }
 0x27c   : > { %v2083_v39 = vpop.permute.xlu0 %2082  ;;  %v2814_v13 = vld [vmem:[#allocation4 + $0x100] sm:$0xff] }
 0x27d   : > { %v2081_v46 = vpop.permute.xlu1 %2080  ;;  %2144 = vst.msk [vmem:[#allocation4 + $0x190] sm:$0xff] %vm421_vm1, %v2083_v39 }
 0x27e   : > { %2143 = vst.msk [vmem:[#allocation4 + $0x168] sm:$0xff] %vm421_vm1, %v2081_v46  ;;  %2490 = vrot.lane.b32.xlu0 %v10591_v60, %s9159_s18 }
 0x27f   : > { %2684 = vrot.lane.b32.xlu1 %v2613_v61, %s9159_s18 }
 0x280   : > { %v2651_v34 = vpop.permute.xlu0 %2650  ;;  %v2823_v12 = vld [vmem:[#allocation4 + $0x148] sm:$0xff] }
 0x281   : > { %v2649_v52 = vpop.permute.xlu1 %2648  ;;  %v2818_v45 = vld [vmem:[#allocation4 + $0x120] sm:$0xff]  ;;  %2716 = vst.msk [vmem:[#allocation4 + $0x108] sm:$0xff] %vm421_vm1, %v2651_v34  ;;  %v2923_v6 = vpack.c.bf16 %v2828_v36, %v2823_v12 }
 0x282   : > { %2715 = vst.msk [vmem:[#allocation4 + $0xe0] sm:$0xff] %vm421_vm1, %v2649_v52  ;;  %v2918_v26 = vpack.c.bf16 %v2818_v45, %v2813_v16 }
 0x283   : > { %2492 = vrot.lane.b32.xlu1 %v10589_v62, %s9159_s18 }
 0x284   : > { %3349 = vmatprep.mubr.bf16.mxu1 %v2918_v26  ;;  %v2275_v15 = vpop.permute.xlu0 %2274  ;;  %v2832_v32 = vld [vmem:[#allocation4 + $0x190] sm:$0xff] }
 0x285   : > { %v2461_v60 = vpop.permute.xlu1 %2460  ;;  %3350 = vmatmul.mubr.bf16.gmra.mrb[52].mxu1 %v2917_v11  ;;  %2336 = vst.msk [vmem:[#allocation4 + $0x198] sm:$0xff] %vm421_vm1, %v2275_v15  ;;  %v2827_v14 = vld [vmem:[#allocation4 + $0x168] sm:$0xff]  ;;  %v2927_v45 = vpack.c.bf16 %v2837_v17, %v2832_v32 }
 0x286   : > { %2525 = vst.msk [vmem:[#allocation4 + $0x128] sm:$0xff] %vm421_vm1, %v2461_v60  ;;  %3357 = vmatprep.mubr.bf16.mxu1 %v2923_v6  ;;  %v2922_v21 = vpack.c.bf16 %v2827_v14, %v2822_v47  ;;  %v2829_v14 = vld [vmem:[#allocation4 + $0x178] sm:$0xff]  ;;  %v2824_v47 = vld [vmem:[#allocation4 + $0x150] sm:$0xff] }
 0x288   : > { %v2087_v62 = vpop.permute.xlu0 %2086  ;;  %v2815_v63 = vld [vmem:[#allocation4 + $0x108] sm:$0xff] }
 0x289   : > { %v2281_v57 = vpop.permute.xlu1 %2280  ;;  %v2810_v49 = vld [vmem:[#allocation4 + $0xe0] sm:$0xff]  ;;  %2146 = vst.msk [vmem:[#allocation4 + $0x1e0] sm:$0xff] %vm421_vm1, %v2087_v62  ;;  %v2920_v0 = vpack.c.bf16 %v2820_v50, %v2815_v63  ;;  %v2924_v50 = vpack.c.bf16 %v2829_v14, %v2824_v47 }
 0x28a   : > { %2339 = vst.msk [vmem:[#allocation4 + $0x210] sm:$0xff] %vm421_vm1, %v2281_v57  ;;  %v2915_v25 = vpack.c.bf16 %v2810_v49, %v2805_v1 }
 0x28c   : > { %3470 = vmatprep.mubr.bf16.mxu0 %v2915_v25  ;;  %v2655_v59 = vpop.permute.xlu0 %2654  ;;  %v2833_v35 = vld [vmem:[#allocation4 + $0x198] sm:$0xff] }
 0x28d   : > { %v2093_v20 = vpop.permute.xlu1 %2092  ;;  %3358 = vmatmul.mubr.bf16.gmra.mrb[56].mxu1 %v2922_v21  ;;  %3471 = vmatmul.mubr.bf16.gmra.mrb[68].mxu0 %v2914_v18  ;;  %2718 = vst.msk [vmem:[#allocation4 + $0x158] sm:$0xff] %vm421_vm1, %v2655_v59  ;;  %v2819_v55 = vld [vmem:[#allocation4 + $0x128] sm:$0xff] }
 0x28e   : > { %2149 = vst.msk [vmem:[#allocation4 + $0x258] sm:$0xff] %vm421_vm1, %v2093_v20  ;;  %3478 = vmatprep.mubr.bf16.mxu0 %v2920_v0  ;;  %v2919_v31 = vpack.c.bf16 %v2819_v55, %v2814_v13 }
 0x290   : > { %v2279_v27 = vpop.permute.xlu0 %2278  ;;  %v2842_v25 = vld [vmem:[#allocation4 + $0x1e0] sm:$0xff] }
 0x291   : > { %v2277_v5 = vpop.permute.xlu1 %2276  ;;  %2338 = vst.msk [vmem:[#allocation4 + $0x1e8] sm:$0xff] %vm421_vm1, %v2279_v27  ;;  %v2848_v16 = vld [vmem:[#allocation4 + $0x210] sm:$0xff] }
 0x292   : > { %2337 = vst.msk [vmem:[#allocation4 + $0x1c0] sm:$0xff] %vm421_vm1, %v2277_v5  ;;  %v8827_v26 = vpop.f32.mrb[40].mxu1 }
 0x293   : > { %v8828_v12 = vpop.f32.mrb[41].mxu1 }
 0x294   : > { %v2091_v8 = vpop.permute.xlu0 %2090  ;;  %v10840_v11 = vadd.f32 %v8828_v12, %v8827_v26  ;;  %v8830_v6 = vpop.f32.mrb[42].mxu1  ;;  %v2825_v1 = vld [vmem:[#allocation4 + $0x158] sm:$0xff] }
 0x295   : > { %v2089_v9 = vpop.permute.xlu1 %2088  ;;  %3479 = vmatmul.mubr.bf16.gmra.mrb[72].mxu0 %v2919_v31  ;;  %2148 = vst.msk [vmem:[#allocation4 + $0x230] sm:$0xff] %vm421_vm1, %v2091_v8  ;;  %v8831_v60 = vpop.f32.mrb[43].mxu1 }
 0x296   : > { %2147 = vst.msk [vmem:[#allocation4 + $0x208] sm:$0xff] %vm421_vm1, %v2089_v9  ;;  %v10843_v7 = vadd.f32 %v8831_v60, %v8830_v6  ;;  %v2857_v9 = vld [vmem:[#allocation4 + $0x258] sm:$0xff] }
 0x298   : > { %v2659_v46 = vpop.permute.xlu0 %2658  ;;  %v2843_v52 = vld [vmem:[#allocation4 + $0x1e8] sm:$0xff] }
 0x299   : > { %v2657_v43 = vpop.permute.xlu1 %2656  ;;  %v2838_v61 = vld [vmem:[#allocation4 + $0x1c0] sm:$0xff]  ;;  %2720 = vst.msk [vmem:[#allocation4 + $0x1a8] sm:$0xff] %vm421_vm1, %v2659_v46  ;;  %v2933_v34 = vpack.c.bf16 %v2848_v16, %v2843_v52 }
 0x29a   : > { %2719 = vst.msk [vmem:[#allocation4 + $0x180] sm:$0xff] %vm421_vm1, %v2657_v43  ;;  %v2928_v39 = vpack.c.bf16 %v2838_v61, %v2833_v35 }
 0x29c   : > { %3365 = vmatprep.mubr.bf16.mxu1 %v2928_v39  ;;  %v2283_v36 = vpop.permute.xlu0 %2282  ;;  %v2852_v59 = vld [vmem:[#allocation4 + $0x230] sm:$0xff] }
 0x29d   : > { %v2289_v53 = vpop.permute.xlu1 %2288  ;;  %3366 = vmatmul.mubr.bf16.gmra.mrb[60].mxu1 %v2927_v45  ;;  %2340 = vst.msk [vmem:[#allocation4 + $0x238] sm:$0xff] %vm421_vm1, %v2283_v36  ;;  %v2847_v15 = vld [vmem:[#allocation4 + $0x208] sm:$0xff]  ;;  %v2937_v8 = vpack.c.bf16 %v2857_v9, %v2852_v59 }
 0x29e   : > { %2343 = vst.msk [vmem:[#allocation4 + $0x2b0] sm:$0xff] %vm421_vm1, %v2289_v53  ;;  %3373 = vmatprep.mubr.bf16.mxu1 %v2933_v34  ;;  %v2932_v63 = vpack.c.bf16 %v2847_v15, %v2842_v25 }
 0x2a0   : > { %v2095_v19 = vpop.permute.xlu0 %2094  ;;  %v2835_v43 = vld [vmem:[#allocation4 + $0x1a8] sm:$0xff] }
 0x2a1   : > { %v2101_v57 = vpop.permute.xlu1 %2100  ;;  %v2830_v49 = vld [vmem:[#allocation4 + $0x180] sm:$0xff]  ;;  %2150 = vst.msk [vmem:[#allocation4 + $0x280] sm:$0xff] %vm421_vm1, %v2095_v19 }
 0x2a2   : > { %2153 = vst.msk [vmem:[#allocation4 + $0x2f8] sm:$0xff] %vm421_vm1, %v2101_v57  ;;  %v2925_v62 = vpack.c.bf16 %v2830_v49, %v2825_v1 }
 0x2a4   : > { %3486 = vmatprep.mubr.bf16.mxu0 %v2925_v62  ;;  %v2467_v18 = vpop.permute.xlu0 %2466  ;;  %v2853_v5 = vld [vmem:[#allocation4 + $0x238] sm:$0xff] }
 0x2a5   : > { %v2285_v21 = vpop.permute.xlu1 %2284  ;;  %3374 = vmatmul.mubr.bf16.gmra.mrb[64].mxu1 %v2932_v63  ;;  %3487 = vmatmul.mubr.bf16.gmra.mrb[76].mxu0 %v2924_v50  ;;  %2528 = vst.msk [vmem:[#allocation4 + $0x1a0] sm:$0xff] %vm421_vm1, %v2467_v18  ;;  %v2868_v17 = vld [vmem:[#allocation4 + $0x2b0] sm:$0xff] }
 0x2a6   : > { %2341 = vst.msk [vmem:[#allocation4 + $0x260] sm:$0xff] %vm421_vm1, %v2285_v21 }
 0x2a8   : > { %v2287_v20 = vpop.permute.xlu0 %2286  ;;  %v2862_v45 = vld [vmem:[#allocation4 + $0x280] sm:$0xff] }
 0x2a9   : > { %v2661_v0 = vpop.permute.xlu1 %2660  ;;  %2342 = vst.msk [vmem:[#allocation4 + $0x288] sm:$0xff] %vm421_vm1, %v2287_v20  ;;  %v2877_v49 = vld [vmem:[#allocation4 + $0x2f8] sm:$0xff] }
 0x2aa   : > { %2721 = vst.msk [vmem:[#allocation4 + $0x1d0] sm:$0xff] %vm421_vm1, %v2661_v0 }
 0x2ac   : > { %v2099_v13 = vpop.permute.xlu0 %2098  ;;  %v2834_v25 = vld [vmem:[#allocation4 + $0x1a0] sm:$0xff] }
 0x2ad   : > { %v2097_v55 = vpop.permute.xlu1 %2096  ;;  %v2858_v27 = vld [vmem:[#allocation4 + $0x260] sm:$0xff]  ;;  %2152 = vst.msk [vmem:[#allocation4 + $0x2d0] sm:$0xff] %vm421_vm1, %v2099_v13 }
 0x2ae   : > { %2151 = vst.msk [vmem:[#allocation4 + $0x2a8] sm:$0xff] %vm421_vm1, %v2097_v55  ;;  %v2938_v31 = vpack.c.bf16 %v2858_v27, %v2853_v5 }
 0x2b0   : > { %3381 = vmatprep.mubr.bf16.mxu1 %v2938_v31  ;;  %v2291_v61 = vpop.permute.xlu0 %2290  ;;  %v2863_v39 = vld [vmem:[#allocation4 + $0x288] sm:$0xff] }
 0x2b1   : > { %v2297_v32 = vpop.permute.xlu1 %2296  ;;  %3382 = vmatmul.mubr.bf16.gmra.mrb[68].mxu1 %v2937_v8  ;;  %v2840_v35 = vld [vmem:[#allocation4 + $0x1d0] sm:$0xff]  ;;  %2344 = vst.msk [vmem:[#allocation4 + $0x2d8] sm:$0xff] %vm421_vm1, %v2291_v61  ;;  %v2943_v52 = vpack.c.bf16 %v2868_v17, %v2863_v39 }
 0x2b2   : > { %2347 = vst.msk [vmem:[#allocation4 + $0x350] sm:$0xff] %vm421_vm1, %v2297_v32  ;;  %v2930_v46 = vpack.c.bf16 %v2840_v35, %v2835_v43 }
 0x2b3   : > { %3389 = vmatprep.mubr.bf16.mxu1 %v2943_v52  ;;  %v2786_v52 = vld [vmem:[#allocation4 + $0x20] sm:$0xff] }
 0x2b4   : > { %3494 = vmatprep.mubr.bf16.mxu0 %v2930_v46  ;;  %v2103_v26 = vpop.permute.xlu0 %2102  ;;  %v2872_v6 = vld [vmem:[#allocation4 + $0x2d0] sm:$0xff]  ;;  %v2791_v46 = vld [vmem:[#allocation4 + $0x48] sm:$0xff] }
 0x2b5   : > { %v2293_v16 = vpop.permute.xlu1 %2292  ;;  %v2867_v34 = vld [vmem:[#allocation4 + $0x2a8] sm:$0xff]  ;;  %2154 = vst.msk [vmem:[#allocation4 + $0x320] sm:$0xff] %vm421_vm1, %v2103_v26  ;;  %v2947_v19 = vpack.c.bf16 %v2877_v49, %v2872_v6  ;;  %v2796_v49 = vld [vmem:[#allocation4 + $0x70] sm:$0xff] }
 0x2b6   : > { %2345 = vst.msk [vmem:[#allocation4 + $0x300] sm:$0xff] %vm421_vm1, %v2293_v16  ;;  %v2942_v53 = vpack.c.bf16 %v2867_v34, %v2862_v45  ;;  %v2906_v16 = vpack.c.bf16 %v2791_v46, %v2786_v52 }
 0x2b8   : > { %v2295_v36 = vpop.permute.xlu0 %2294  ;;  %v2873_v15 = vld [vmem:[#allocation4 + $0x2d8] sm:$0xff] }
 0x2b9   : > { %v2469_v12 = vpop.permute.xlu1 %2468  ;;  %3390 = vmatmul.mubr.bf16.gmra.mrb[72].mxu1 %v2942_v53  ;;  %2346 = vst.msk [vmem:[#allocation4 + $0x328] sm:$0xff] %vm421_vm1, %v2295_v36  ;;  %v2888_v18 = vld [vmem:[#allocation4 + $0x350] sm:$0xff]  ;;  %v2801_v36 = vld [vmem:[#allocation4 + $0x98] sm:$0xff] }
 0x2ba   : > { %2529 = vst.msk [vmem:[#allocation4 + $0x1c8] sm:$0xff] %vm421_vm1, %v2469_v12 }
 0x2bc   : > { %v2299_v57 = vpop.permute.xlu0 %2298  ;;  %v2882_v59 = vld [vmem:[#allocation4 + $0x320] sm:$0xff] }
 0x2bd   : > { %v2105_v60 = vpop.permute.xlu1 %2104  ;;  %v2878_v14 = vld [vmem:[#allocation4 + $0x300] sm:$0xff]  ;;  %2348 = vst.msk [vmem:[#allocation4 + $0x378] sm:$0xff] %vm421_vm1, %v2299_v57 }
 0x2be   : > { %2155 = vst.msk [vmem:[#allocation4 + $0x348] sm:$0xff] %vm421_vm1, %v2105_v60  ;;  %v2948_v1 = vpack.c.bf16 %v2878_v14, %v2873_v15  ;;  %v2811_v14 = vld [vmem:[#allocation4 + $0xe8] sm:$0xff] }
 0x2c0   : > { %3397 = vmatprep.mubr.bf16.mxu1 %v2948_v1  ;;  %v2107_v63 = vpop.permute.xlu0 %2106  ;;  %v2883_v21 = vld [vmem:[#allocation4 + $0x328] sm:$0xff] }
 0x2c1   : > { %v2301_v62 = vpop.permute.xlu1 %2300  ;;  %3398 = vmatmul.mubr.bf16.gmra.mrb[76].mxu1 %v2947_v19  ;;  %v2839_v47 = vld [vmem:[#allocation4 + $0x1c8] sm:$0xff]  ;;  %2156 = vst.msk [vmem:[#allocation4 + $0x370] sm:$0xff] %vm421_vm1, %v2107_v63  ;;  %v2953_v0 = vpack.c.bf16 %v2888_v18, %v2883_v21  ;;  %v2911_v19 = vpack.c.bf16 %v2801_v36, %v2796_v49 }
 0x2c2   : > { %2349 = vst.msk [vmem:[#allocation4 + $0x3a0] sm:$0xff] %vm421_vm1, %v2301_v62  ;;  %v2929_v50 = vpack.c.bf16 %v2839_v47, %v2834_v25  ;;  %v2806_v62 = vld [vmem:[#allocation4 + $0xc0] sm:$0xff] }
 0x2c3   : > { %3405 = vmatprep.mubr.bf16.mxu1 %v2953_v0  ;;  %v2916_v25 = vpack.c.bf16 %v2811_v14, %v2806_v62  ;;  %v2821_v0 = vld [vmem:[#allocation4 + $0x138] sm:$0xff] }
 0x2c4   : > { %3495 = vmatmul.mubr.bf16.gmra.mrb[80].mxu0 %v2929_v50  ;;  %v2663_v5 = vpop.permute.xlu0 %2662  ;;  %v2893_v31 = vld [vmem:[#allocation4 + $0x378] sm:$0xff] }
 0x2c5   : > { %v2109_v20 = vpop.permute.xlu1 %2108  ;;  %v2887_v55 = vld [vmem:[#allocation4 + $0x348] sm:$0xff]  ;;  %2722 = vst.msk [vmem:[#allocation4 + $0x1f8] sm:$0xff] %vm421_vm1, %v2663_v5 }
 0x2c6   : > { %2157 = vst.msk [vmem:[#allocation4 + $0x398] sm:$0xff] %vm421_vm1, %v2109_v20  ;;  %v2952_v27 = vpack.c.bf16 %v2887_v55, %v2882_v59  ;;  %v2831_v5 = vld [vmem:[#allocation4 + $0x188] sm:$0xff] }
 0x2c8   : > { %v2471_v8 = vpop.permute.xlu0 %2470  ;;  %v2892_v35 = vld [vmem:[#allocation4 + $0x370] sm:$0xff] }
 0x2c9   : > { %v2665_v13 = vpop.permute.xlu1 %2664  ;;  %3406 = vmatmul.mubr.bf16.gmra.mrb[80].mxu1 %v2952_v27  ;;  %v2898_v9 = vld [vmem:[#allocation4 + $0x3a0] sm:$0xff]  ;;  %2530 = vst.msk [vmem:[#allocation4 + $0x1f0] sm:$0xff] %vm421_vm1, %v2471_v8 }
 0x2ca   : > { %2723 = vst.msk [vmem:[#allocation4 + $0x220] sm:$0xff] %vm421_vm1, %v2665_v13  ;;  %v2958_v32 = vpack.c.bf16 %v2898_v9, %v2893_v31  ;;  %v2816_v31 = vld [vmem:[#allocation4 + $0x110] sm:$0xff]  ;;  %v2826_v8 = vld [vmem:[#allocation4 + $0x160] sm:$0xff] }
 0x2cb   : > { %v2921_v9 = vpack.c.bf16 %v2821_v0, %v2816_v31 }
 0x2cc   : > { %3413 = vmatprep.mubr.bf16.mxu1 %v2958_v32  ;;  %v2667_v39 = vpop.permute.xlu0 %2666  ;;  %v2845_v34 = vld [vmem:[#allocation4 + $0x1f8] sm:$0xff]  ;;  %v2926_v32 = vpack.c.bf16 %v2831_v5, %v2826_v8  ;;  %v2891_v8 = vld [vmem:[#allocation4 + $0x368] sm:$0xff] }
 0x2cd   : > { %v2473_v43 = vpop.permute.xlu1 %2472  ;;  %v2897_v61 = vld [vmem:[#allocation4 + $0x398] sm:$0xff]  ;;  %2724 = vst.msk [vmem:[#allocation4 + $0x248] sm:$0xff] %vm421_vm1, %v2667_v39 }
 0x2ce   : > { %2531 = vst.msk [vmem:[#allocation4 + $0x218] sm:$0xff] %vm421_vm1, %v2473_v43  ;;  %v2957_v17 = vpack.c.bf16 %v2897_v61, %v2892_v35 }
 0x2d0   : > { %v2475_v53 = vpop.permute.xlu0 %2474  ;;  %v2844_v60 = vld [vmem:[#allocation4 + $0x1f0] sm:$0xff] }
 0x2d1   : > { %v2669_v45 = vpop.permute.xlu1 %2668  ;;  %3414 = vmatmul.mubr.bf16.gmra.mrb[84].mxu1 %v2957_v17  ;;  %v2850_v26 = vld [vmem:[#allocation4 + $0x220] sm:$0xff]  ;;  %2532 = vst.msk [vmem:[#allocation4 + $0x240] sm:$0xff] %vm421_vm1, %v2475_v53  ;;  %v2841_v17 = vld [vmem:[#allocation4 + $0x1d8] sm:$0xff] }
 0x2d2   : > { %2725 = vst.msk [vmem:[#allocation4 + $0x270] sm:$0xff] %vm421_vm1, %v2669_v45  ;;  %9039 = vmatprep.mubr.msk.bf16.mxu1 %vm300_vm0, %v2906_v16  ;;  %v2935_v12 = vpack.c.bf16 %v2850_v26, %v2845_v34  ;;  %v2851_v34 = vld [vmem:[#allocation4 + $0x228] sm:$0xff] }
 0x2d4   : > { %3502 = vmatprep.mubr.bf16.mxu0 %v2935_v12  ;;  %v2671_v57 = vpop.permute.xlu0 %2670  ;;  %v2855_v63 = vld [vmem:[#allocation4 + $0x248] sm:$0xff]  ;;  %v2836_v12 = vld [vmem:[#allocation4 + $0x1b0] sm:$0xff] }
 0x2d5   : > { %v2477_v6 = vpop.permute.xlu1 %2476  ;;  %v2849_v15 = vld [vmem:[#allocation4 + $0x218] sm:$0xff]  ;;  %2726 = vst.msk [vmem:[#allocation4 + $0x298] sm:$0xff] %vm421_vm1, %v2671_v57  ;;  %v2931_v36 = vpack.c.bf16 %v2841_v17, %v2836_v12 }
 0x2d6   : > { %2533 = vst.msk [vmem:[#allocation4 + $0x268] sm:$0xff] %vm421_vm1, %v2477_v6  ;;  %v2934_v1 = vpack.c.bf16 %v2849_v15, %v2844_v60  ;;  %v2846_v6 = vld [vmem:[#allocation4 + $0x200] sm:$0xff] }
 0x2d7   : > { %v2936_v60 = vpack.c.bf16 %v2851_v34, %v2846_v6 }
 0x2d8   : > { %3503 = vmatmul.mubr.bf16.gmra.mrb[84].mxu0 %v2934_v1  ;;  %v2479_v21 = vpop.permute.xlu0 %2478  ;;  %v2854_v59 = vld [vmem:[#allocation4 + $0x240] sm:$0xff] }
 0x2d9   : > { %v2673_v47 = vpop.permute.xlu1 %2672  ;;  %9040 = vmatmul.mubr.msk.bf16.vlgmr.msra.gmra.mrb[88].mxu1 %vm300_vm0, %v2911_v19  ;;  %v2860_v50 = vld [vmem:[#allocation4 + $0x270] sm:$0xff]  ;;  %2534 = vst.msk [vmem:[#allocation4 + $0x290] sm:$0xff] %vm421_vm1, %v2479_v21  ;;  %v2861_v19 = vld [vmem:[#allocation4 + $0x278] sm:$0xff] }
 0x2da   : > { %2727 = vst.msk [vmem:[#allocation4 + $0x2c0] sm:$0xff] %vm421_vm1, %v2673_v47  ;;  %9043 = vmatprep.mubr.msk.bf16.mxu1 %vm300_vm0, %v2916_v25  ;;  %v2940_v18 = vpack.c.bf16 %v2860_v50, %v2855_v63  ;;  %v2871_v63 = vld [vmem:[#allocation4 + $0x2c8] sm:$0xff] }
 0x2dc   : > { %3510 = vmatprep.mubr.bf16.mxu0 %v2940_v18  ;;  %v2675_v27 = vpop.permute.xlu0 %2674  ;;  %v2865_v35 = vld [vmem:[#allocation4 + $0x298] sm:$0xff]  ;;  %v2856_v18 = vld [vmem:[#allocation4 + $0x250] sm:$0xff] }
 0x2dd   : > { %v2481_v20 = vpop.permute.xlu1 %2480  ;;  %v2859_v55 = vld [vmem:[#allocation4 + $0x268] sm:$0xff]  ;;  %2728 = vst.msk [vmem:[#allocation4 + $0x2e8] sm:$0xff] %vm421_vm1, %v2675_v27  ;;  %v2941_v0 = vpack.c.bf16 %v2861_v19, %v2856_v18  ;;  %v4146_v19 = vld [vmem:[#allocation3 + $0x18] sm:$0xff] }
 0x2de   : > { %2535 = vst.msk [vmem:[#allocation4 + $0x2b8] sm:$0xff] %vm421_vm1, %v2481_v20  ;;  %v2939_v13 = vpack.c.bf16 %v2859_v55, %v2854_v59  ;;  %v2866_v20 = vld [vmem:[#allocation4 + $0x2a0] sm:$0xff] }
 0x2df   : > { %v2946_v59 = vpack.c.bf16 %v2871_v63, %v2866_v20  ;;  %3896 = vst.msk [vmem:[#allocation4 + $0x78] sm:$0xff] %vm300_vm0, %v4146_v19  ;;  %v4396_v63 = vld [vmem:[#allocation3 + $0xea] sm:$0xff] }
 0x2e0   : > { %3511 = vmatmul.mubr.bf16.gmra.mrb[88].mxu0 %v2939_v13  ;;  %v2483_v46 = vpop.permute.xlu0 %2482  ;;  %v2864_v16 = vld [vmem:[#allocation4 + $0x290] sm:$0xff] }
 0x2e1   : > { %v2677_v43 = vpop.permute.xlu1 %2676  ;;  %9044 = vmatmul.mubr.msk.bf16.gmra.mrb[92].mxu1 %vm300_vm0, %v2921_v9  ;;  %v2870_v61 = vld [vmem:[#allocation4 + $0x2c0] sm:$0xff]  ;;  %2536 = vst.msk [vmem:[#allocation4 + $0x2e0] sm:$0xff] %vm421_vm1, %v2483_v46 }
 0x2e2   : > { %2729 = vst.msk [vmem:[#allocation4 + $0x310] sm:$0xff] %vm421_vm1, %v2677_v43  ;;  %9047 = vmatprep.mubr.msk.bf16.mxu1 %vm300_vm0, %v2926_v32  ;;  %v2945_v39 = vpack.c.bf16 %v2870_v61, %v2865_v35  ;;  %v2886_v9 = vld [vmem:[#allocation4 + $0x340] sm:$0xff]  ;;  %v2881_v32 = vld [vmem:[#allocation4 + $0x318] sm:$0xff] }
 0x2e3   : > { %v2956_v17 = vpack.c.bf16 %v2891_v8, %v2886_v9 }
 0x2e4   : > { %3518 = vmatprep.mubr.bf16.mxu0 %v2945_v39  ;;  %v2679_v26 = vpop.permute.xlu0 %2678  ;;  %v2875_v14 = vld [vmem:[#allocation4 + $0x2e8] sm:$0xff]  ;;  %v2876_v39 = vld [vmem:[#allocation4 + $0x2f0] sm:$0xff] }
 0x2e5   : > { %v2485_v52 = vpop.permute.xlu1 %2484  ;;  %v2869_v45 = vld [vmem:[#allocation4 + $0x2b8] sm:$0xff]  ;;  %2730 = vst.msk [vmem:[#allocation4 + $0x338] sm:$0xff] %vm421_vm1, %v2679_v26  ;;  %v2896_v26 = vld [vmem:[#allocation4 + $0x390] sm:$0xff] }
 0x2e6   : > { %2537 = vst.msk [vmem:[#allocation4 + $0x308] sm:$0xff] %vm421_vm1, %v2485_v52  ;;  %v2944_v53 = vpack.c.bf16 %v2869_v45, %v2864_v16  ;;  %v2951_v52 = vpack.c.bf16 %v2881_v32, %v2876_v39 }
 0x2e8   : > { %3519 = vmatmul.mubr.bf16.gmra.mrb[92].mxu0 %v2944_v53  ;;  %v2487_v1 = vpop.permute.xlu0 %2486  ;;  %v2874_v25 = vld [vmem:[#allocation4 + $0x2e0] sm:$0xff]  ;;  %v2901_v53 = vld [vmem:[#allocation4 + $0x3b8] sm:$0xff] }
 0x2e9   : > { %v2681_v15 = vpop.permute.xlu1 %2680  ;;  %9048 = vmatmul.mubr.msk.bf16.gmra.mrb[96].mxu1 %vm300_vm0, %v2931_v36  ;;  %v2880_v57 = vld [vmem:[#allocation4 + $0x310] sm:$0xff]  ;;  %2538 = vst.msk [vmem:[#allocation4 + $0x330] sm:$0xff] %vm421_vm1, %v2487_v1  ;;  %v2961_v6 = vpack.c.bf16 %v2901_v53, %v2896_v26 }
 0x2ea   : > { %2731 = vst.msk [vmem:[#allocation4 + $0x360] sm:$0xff] %vm421_vm1, %v2681_v15  ;;  %9051 = vmatprep.mubr.msk.bf16.mxu1 %vm300_vm0, %v2936_v60  ;;  %v2950_v49 = vpack.c.bf16 %v2880_v57, %v2875_v14  ;;  %v3921_v15 = vld [vmem:[#allocation3 + $0x1] sm:$0xff]  ;;  %v3922_v14 = vld [vmem:[#allocation3 + $0x9] sm:$0xff]  ;;  %v3923_v57 = vld [vmem:[#allocation3 + $0x11] sm:$0xff] }
 0x2eb   : > { %3977 = vrot.lane.b32.xlu0 %v3921_v15, %s9159_s18  ;;  %3979 = vrot.lane.b32.xlu1 %v3922_v14, %s9159_s18  ;;  %4341 = vst.msk [vmem:[#allocation4 + $0x10] sm:$0xff] %vm300_vm0, %v3923_v57  ;;  %v3924_v1 = vld [vmem:[#allocation3 + $0x19] sm:$0xff] }
 0x2ec   : > { %3526 = vmatprep.mubr.bf16.mxu0 %v2950_v49  ;;  %v2683_v21 = vpop.permute.xlu0 %2682  ;;  %v2885_v5 = vld [vmem:[#allocation4 + $0x338] sm:$0xff]  ;;  %v4145_v49 = vld [vmem:[#allocation3 + $0x10] sm:$0xff]  ;;  %4342 = vst.msk [vmem:[#allocation4 + $0x38] sm:$0xff] %vm300_vm0, %v3924_v1 }
 0x2ed   : > { %v2489_v62 = vpop.permute.xlu1 %2488  ;;  %v2879_v47 = vld [vmem:[#allocation4 + $0x308] sm:$0xff]  ;;  %2732 = vst.msk [vmem:[#allocation4 + $0x388] sm:$0xff] %vm421_vm1, %v2683_v21  ;;  %v4395_v21 = vld [vmem:[#allocation3 + $0xe2] sm:$0xff] }
 0x2ee   : > { %2539 = vst.msk [vmem:[#allocation4 + $0x358] sm:$0xff] %vm421_vm1, %v2489_v62  ;;  %v2949_v50 = vpack.c.bf16 %v2879_v47, %v2874_v25  ;;  %v4369_v62 = vld [vmem:[#allocation3 + $0x12] sm:$0xff]  ;;  %v4172_v25 = vld [vmem:[#allocation3 + $0xe8] sm:$0xff]  ;;  %v4370_v47 = vld [vmem:[#allocation3 + $0x1a] sm:$0xff] }
 0x2ef   : > { %3981 = vrot.lane.b32.xlu0 %v3923_v57, %s9159_s18  ;;  %3983 = vrot.lane.b32.xlu1 %v3924_v1, %s9159_s18  ;;  %3895 = vst.msk [vmem:[#allocation4 + $0x50] sm:$0xff] %vm300_vm0, %v4145_v49  ;;  %4119 = vst.msk [vmem:[#allocation4 + $0x58] sm:$0xff] %vm300_vm0, %v4369_v62 }
 0x2f0   : > { %3527 = vmatmul.mubr.bf16.gmra.mrb[96].mxu0 %v2949_v50  ;;  %v2491_v31 = vpop.permute.xlu0 %2490  ;;  %v2884_v35 = vld [vmem:[#allocation4 + $0x330] sm:$0xff]  ;;  %4590 = vst.msk [vmem:[#allocation4 + $0x400] sm:$0xff] %vm300_vm0, %v4172_v25  ;;  %4120 = vst.msk [vmem:[#allocation4 + $0x80] sm:$0xff] %vm300_vm0, %v4370_v47  ;;  %v4618_v50 = vld [vmem:[#allocation3 + $0xe9] sm:$0xff] }
 0x2f1   : > { %v2685_v55 = vpop.permute.xlu1 %2684  ;;  %9052 = vmatmul.mubr.msk.bf16.gmra.mrb[100].mxu1 %vm300_vm0, %v2941_v0  ;;  %v2890_v27 = vld [vmem:[#allocation4 + $0x360] sm:$0xff]  ;;  %2540 = vst.msk [vmem:[#allocation4 + $0x380] sm:$0xff] %vm421_vm1, %v2491_v31 }
 0x2f2   : > { %2733 = vst.msk [vmem:[#allocation4 + $0x3b0] sm:$0xff] %vm421_vm1, %v2685_v55  ;;  %9055 = vmatprep.mubr.msk.bf16.mxu1 %vm300_vm0, %v2946_v59  ;;  %v2955_v13 = vpack.c.bf16 %v2890_v27, %v2885_v5  ;;  %v4619_v55 = vld [vmem:[#allocation3 + $0xf1] sm:$0xff] }
 0x2f3   : > { %4201 = vrot.lane.b32.xlu0 %v4145_v49, %s9159_s18  ;;  %4203 = vrot.lane.b32.xlu1 %v4146_v19, %s9159_s18  ;;  %4368 = vst.msk [vmem:[#allocation4 + $0x448] sm:$0xff] %vm300_vm0, %v4618_v50 }
 0x2f4   : > { %3534 = vmatprep.mubr.bf16.mxu0 %v2955_v13  ;;  %v2895_v16 = vld [vmem:[#allocation4 + $0x388] sm:$0xff]  ;;  %v10924_v13 = vld [vmem:[%s12737_s5] ss:$0 sm:$0xff] }
 0x2f5   : > { %v2493_v43 = vpop.permute.xlu1 %2492  ;;  %v2889_v61 = vld [vmem:[#allocation4 + $0x358] sm:$0xff] }
 0x2f6   : > { %2541 = vst.msk [vmem:[#allocation4 + $0x3a8] sm:$0xff] %vm421_vm1, %v2493_v43  ;;  %v2954_v46 = vpack.c.bf16 %v2889_v61, %v2884_v35  ;;  %v3328_v43 = vadd.f32 %v10840_v11, %v10924_v13 }
 0x2f7   : > { %4425 = vrot.lane.b32.xlu0 %v4369_v62, %s9159_s18  ;;  %4255 = vrot.lane.b32.xlu1 %v4172_v25, %s9159_s18 }
 0x2f8   : > { %3535 = vmatmul.mubr.bf16.gmra.mrb[100].mxu0 %v2954_v46  ;;  %v2894_v12 = vld [vmem:[#allocation4 + $0x380] sm:$0xff] }
 0x2f9   : > { %9056 = vmatmul.mubr.msk.bf16.gmra.mrb[104].mxu1 %vm300_vm0, %v2951_v52  ;;  %v2900_v45 = vld [vmem:[#allocation4 + $0x3b0] sm:$0xff] }
 0x2fa   : > { %v2960_v34 = vpack.c.bf16 %v2900_v45, %v2895_v16  ;;  %9059 = vmatprep.mubr.msk.bf16.mxu1 %vm300_vm0, %v2956_v17  ;;  %v3331_v16 = vadd.f32 %v10843_v7, %v10924_v13 }
 0x2fb   : > { %4427 = vrot.lane.b32.xlu1 %v4370_v47, %s9159_s18  ;;  %4477 = vrot.lane.b32.xlu0 %v4395_v21, %s9159_s18 }
 0x2fc   : > { %3542 = vmatprep.mubr.bf16.mxu0 %v2960_v34 }
 0x2fd   : > { %v2899_v36 = vld [vmem:[#allocation4 + $0x3a8] sm:$0xff] }
 0x2fe   : > { %v2959_v60 = vpack.c.bf16 %v2899_v36, %v2894_v12 }
 0x2ff   : > { %4479 = vrot.lane.b32.xlu1 %v4396_v63, %s9159_s18 }
 0x300   : > { %3543 = vmatmul.mubr.bf16.gmra.mrb[104].mxu0 %v2959_v60 }
 0x301   : > { %9060 = vmatmul.mubr.msk.bf16.gmra.mrb[108].mxu1 %vm300_vm0, %v2961_v6 }
 0x303   : > { %4699 = vrot.lane.b32.xlu1 %v4618_v50, %s9159_s18 }
 0x307   : > { %4701 = vrot.lane.b32.xlu1 %v4619_v55, %s9159_s18 }
 0x338   : > { %v8833_v18 = vpop.f32.mrb[44].mxu1 }
 0x339   : > { %v8834_v0 = vpop.f32.mrb[45].mxu1 }
 0x33a   : > { %v8835_v20 = vadd.f32 %v8834_v0, %v8833_v18  ;;  %v8836_v59 = vpop.f32.mrb[46].mxu1 }
 0x33b   : > { %v8837_v5 = vpop.f32.mrb[47].mxu1 }
 0x33c   : > { %v8838_v27 = vadd.f32 %v8837_v5, %v8836_v59  ;;  %v3336_v6 = vadd.f32 %v8835_v20, %v10924_v13 }
 0x33e   : > { %v3339_v14 = vadd.f32 %v8838_v27, %v10924_v13 }
 0x340   : > { %v8839_v31 = vpop.f32.mrb[48].mxu1  ;;  %v8915_v9 = vpop.f32.mrb[60].mxu0 }
 0x341   : > { %v8840_v8 = vpop.f32.mrb[49].mxu1  ;;  %v8916_v32 = vpop.f32.mrb[61].mxu0 }
 0x342   : > { %v8841_v35 = vadd.f32 %v8840_v8, %v8839_v31  ;;  %v8917_v61 = vadd.f32 %v8916_v32, %v8915_v9  ;;  %v8842_v46 = vpop.f32.mrb[50].mxu1  ;;  %v8918_v39 = vpop.f32.mrb[62].mxu0 }
 0x343   : > { %v8843_v17 = vpop.f32.mrb[51].mxu1  ;;  %v8919_v52 = vpop.f32.mrb[63].mxu0 }
 0x344   : > { %v8844_v45 = vadd.f32 %v8843_v17, %v8842_v46  ;;  %v8920_v34 = vadd.f32 %v8919_v52, %v8918_v39  ;;  %v10930_v26 = vadd.f32 %v8917_v61, %v3328_v43  ;;  %v3344_v20 = vadd.f32 %v8841_v35, %v10924_v13 }
 0x346   : > { %v10932_v53 = vadd.f32 %v8920_v34, %v3331_v16  ;;  %v3347_v8 = vadd.f32 %v8844_v45, %v10924_v13 }
 0x348   : > { %v8921_v12 = vpop.f32.mrb[64].mxu0 }
 0x349   : > { %v8922_v36 = vpop.f32.mrb[65].mxu0 }
 0x34a   : > { %v8923_v11 = vadd.f32 %v8922_v36, %v8921_v12  ;;  %v8924_v60 = vpop.f32.mrb[66].mxu0 }
 0x34b   : > { %v8925_v15 = vpop.f32.mrb[67].mxu0 }
 0x34c   : > { %v8926_v57 = vadd.f32 %v8925_v15, %v8924_v60  ;;  %v10936_v1 = vadd.f32 %v8923_v11, %v3336_v6 }
 0x34e   : > { %v10938_v49 = vadd.f32 %v8926_v57, %v3339_v14 }
 0x358   : > { %v8845_v7 = vpop.f32.mrb[52].mxu1 }
 0x359   : > { %v8846_v19 = vpop.f32.mrb[53].mxu1 }
 0x35a   : > { %v8847_v62 = vadd.f32 %v8846_v19, %v8845_v7  ;;  %v8848_v25 = vpop.f32.mrb[54].mxu1 }
 0x35b   : > { %v8849_v47 = vpop.f32.mrb[55].mxu1 }
 0x35c   : > { %v8850_v63 = vadd.f32 %v8849_v47, %v8848_v25  ;;  %v3352_v52 = vadd.f32 %v8847_v62, %v10924_v13 }
 0x35e   : > { %v3355_v12 = vadd.f32 %v8850_v63, %v10924_v13 }
 0x360   : > { %v8851_v50 = vpop.f32.mrb[56].mxu1  ;;  %v8927_v21 = vpop.f32.mrb[68].mxu0 }
 0x361   : > { %v8852_v18 = vpop.f32.mrb[57].mxu1  ;;  %v8928_v0 = vpop.f32.mrb[69].mxu0 }
 0x362   : > { %v8853_v59 = vadd.f32 %v8852_v18, %v8851_v50  ;;  %v8929_v55 = vadd.f32 %v8928_v0, %v8927_v21  ;;  %v8854_v5 = vpop.f32.mrb[58].mxu1  ;;  %v8930_v27 = vpop.f32.mrb[70].mxu0 }
 0x363   : > { %v8855_v31 = vpop.f32.mrb[59].mxu1  ;;  %v8931_v9 = vpop.f32.mrb[71].mxu0 }
 0x364   : > { %v8856_v32 = vadd.f32 %v8855_v31, %v8854_v5  ;;  %v8932_v43 = vadd.f32 %v8931_v9, %v8930_v27  ;;  %v10942_v61 = vadd.f32 %v8929_v55, %v3344_v20  ;;  %v3360_v50 = vadd.f32 %v8853_v59, %v10924_v13 }
 0x366   : > { %v10944_v46 = vadd.f32 %v8932_v43, %v3347_v8  ;;  %v3363_v5 = vadd.f32 %v8856_v32, %v10924_v13  ;;  %v3866_v32 = vld [vmem:[#allocation3 + $0x8] sm:$0xff] }
 0x367   : > { %3894 = vst.msk [vmem:[#allocation4 + $0x28] sm:$0xff] %vm300_vm0, %v3866_v32 }
 0x368   : > { %v8933_v39 = vpop.f32.mrb[72].mxu0 }
 0x369   : > { %v8934_v17 = vpop.f32.mrb[73].mxu0 }
 0x36a   : > { %v8935_v16 = vadd.f32 %v8934_v17, %v8933_v39  ;;  %v8936_v35 = vpop.f32.mrb[74].mxu0 }
 0x36b   : > { %v8937_v34 = vpop.f32.mrb[75].mxu0 }
 0x36c   : > { %v8938_v36 = vadd.f32 %v8937_v34, %v8936_v35  ;;  %v10948_v6 = vadd.f32 %v8935_v16, %v3352_v52  ;;  %v3865_v34 = vld [vmem:[#allocation3] sm:$0xff] }
 0x36d   : > { %3893 = vst.msk [vmem:[#allocation4] sm:$0xff] %vm300_vm0, %v3865_v34 }
 0x36e   : > { %v10950_v11 = vadd.f32 %v8938_v36, %v3355_v12 }
 0x370   : > { %v8857_v45 = vpop.f32.mrb[60].mxu1 }
 0x371   : > { %v8858_v60 = vpop.f32.mrb[61].mxu1 }
 0x372   : > { %v8859_v15 = vadd.f32 %v8858_v60, %v8857_v45  ;;  %v8860_v14 = vpop.f32.mrb[62].mxu1  ;;  %v3978_v60 = vpop.permute.xlu0 %3977 }
 0x373   : > { %v8861_v57 = vpop.f32.mrb[63].mxu1  ;;  %4061 = vst.msk [vmem:[#allocation4] sm:$0xff] %vm421_vm1, %v3978_v60 }
 0x374   : > { %v8862_v7 = vadd.f32 %v8861_v57, %v8860_v14  ;;  %v3980_v57 = vpop.permute.xlu1 %3979 }
 0x375   : > { %4062 = vst.msk [vmem:[#allocation4 + $0x28] sm:$0xff] %vm421_vm1, %v3980_v57 }
 0x376   : > { %v3371_v32 = vadd.f32 %v8862_v7, %v10924_v13 }
 0x378   : > { %v8863_v19 = vpop.f32.mrb[64].mxu1  ;;  %v8939_v25 = vpop.f32.mrb[76].mxu0 }
 0x379   : > { %v8864_v47 = vpop.f32.mrb[65].mxu1  ;;  %v8940_v62 = vpop.f32.mrb[77].mxu0 }
 0x37a   : > { %v10953_v21 = vadd.f32 %v8864_v47, %v8863_v19  ;;  %v8941_v63 = vadd.f32 %v8940_v62, %v8939_v25  ;;  %v8866_v18 = vpop.f32.mrb[66].mxu1  ;;  %v8942_v0 = vpop.f32.mrb[78].mxu0  ;;  %v4089_v62 = vld [vmem:[#allocation3 + $0x2] sm:$0xff] }
 0x37b   : > { %v8867_v20 = vpop.f32.mrb[67].mxu1  ;;  %v8943_v55 = vpop.f32.mrb[79].mxu0  ;;  %4117 = vst.msk [vmem:[#allocation4 + $0x8] sm:$0xff] %vm300_vm0, %v4089_v62 }
 0x37c   : > { %v10956_v27 = vadd.f32 %v8867_v20, %v8866_v18  ;;  %v8944_v31 = vadd.f32 %v8943_v55, %v8942_v0  ;;  %v10958_v9 = vadd.f32 %v8941_v63, %v3360_v50  ;;  %v3982_v25 = vpop.permute.xlu0 %3981  ;;  %v3984_v63 = vpop.permute.xlu1 %3983  ;;  %v4090_v18 = vld [vmem:[#allocation3 + $0xa] sm:$0xff] }
 0x37d   : > { %4063 = vst.msk [vmem:[#allocation4 + $0x50] sm:$0xff] %vm421_vm1, %v3982_v25  ;;  %4064 = vst.msk [vmem:[#allocation4 + $0x78] sm:$0xff] %vm421_vm1, %v3984_v63 }
 0x37e   : > { %v10960_v8 = vadd.f32 %v8944_v31, %v3363_v5  ;;  %4118 = vst.msk [vmem:[#allocation4 + $0x30] sm:$0xff] %vm300_vm0, %v4090_v18 }
 0x380   : > { %v4204_v34 = vpop.permute.xlu1 %4203 }
 0x381   : > { %4286 = vst.msk [vmem:[#allocation4 + $0x30] sm:$0xff] %vm421_vm1, %v4204_v34  ;;  %v4563_v34 = vld [vmem:[#allocation3 + $0xf0] sm:$0xff] }
 0x382   : > { %4591 = vst.msk [vmem:[#allocation4 + $0x428] sm:$0xff] %vm300_vm0, %v4563_v34 }
 0x384   : > { %v8869_v43 = vpop.f32.mrb[68].mxu1 }
 0x385   : > { %v8870_v39 = vpop.f32.mrb[69].mxu1 }
 0x386   : > { %v10962_v17 = vadd.f32 %v8870_v39, %v8869_v43  ;;  %v8872_v59 = vpop.f32.mrb[70].mxu1  ;;  %v4202_v39 = vpop.permute.xlu0 %4201 }
 0x387   : > { %v8873_v52 = vpop.f32.mrb[71].mxu1  ;;  %4285 = vst.msk [vmem:[#allocation4 + $0x8] sm:$0xff] %vm421_vm1, %v4202_v39 }
 0x388   : > { %v10964_v16 = vadd.f32 %v8873_v52, %v8872_v59  ;;  %v3368_v59 = vadd.f32 %v8859_v15, %v10924_v13  ;;  %v10991_v15 = vpop.permute.xlu1 %4255 }
 0x38a   : > { %v4426_v57 = vpop.permute.xlu0 %4425 }
 0x38b   : > { %4509 = vst.msk [vmem:[#allocation4 + $0x10] sm:$0xff] %vm421_vm1, %v4426_v57 }
 0x38c   : > { %v8875_v35 = vpop.f32.mrb[72].mxu1 }
 0x38d   : > { %v8876_v12 = vpop.f32.mrb[73].mxu1 }
 0x38e   : > { %v10967_v36 = vadd.f32 %v8876_v12, %v8875_v35  ;;  %v8878_v45 = vpop.f32.mrb[74].mxu1 }
 0x38f   : > { %v8879_v14 = vpop.f32.mrb[75].mxu1 }
 0x390   : > { %v10971_v19 = vadd.f32 %v8879_v14, %v8878_v45 }
 0x394   : > { %v8881_v47 = vpop.f32.mrb[76].mxu1 }
 0x395   : > { %v8882_v50 = vpop.f32.mrb[77].mxu1 }
 0x396   : > { %v10976_v0 = vadd.f32 %v8882_v50, %v8881_v47  ;;  %v8884_v20 = vpop.f32.mrb[78].mxu1 }
 0x397   : > { %v8885_v55 = vpop.f32.mrb[79].mxu1  ;;  %v8945_v5 = vpop.f32.mrb[80].mxu0 }
 0x398   : > { %v10980_v31 = vadd.f32 %v8885_v55, %v8884_v20  ;;  %v8946_v43 = vpop.f32.mrb[81].mxu0  ;;  %v4428_v20 = vpop.permute.xlu1 %4427 }
 0x399   : > { %v8947_v52 = vadd.f32 %v8946_v43, %v8945_v5  ;;  %v8948_v35 = vpop.f32.mrb[82].mxu0  ;;  %4510 = vst.msk [vmem:[#allocation4 + $0x38] sm:$0xff] %vm421_vm1, %v4428_v20  ;;  %v3379_v20 = vadd.f32 %v10956_v27, %v10924_v13 }
 0x39a   : > { %v8949_v12 = vpop.f32.mrb[83].mxu0 }
 0x39b   : > { %v8950_v45 = vadd.f32 %v8949_v12, %v8948_v35  ;;  %v10986_v60 = vadd.f32 %v8947_v52, %v3368_v59 }
 0x39c   : > { %v8887_v14 = vpop.f32.mrb[80].mxu1  ;;  %v4480_v5 = vpop.permute.xlu1 %4479 }
 0x39d   : > { %v8888_v25 = vpop.f32.mrb[81].mxu1  ;;  %v10988_v47 = vadd.f32 %v8950_v45, %v3371_v32  ;;  %4536 = vst.msk [vmem:[#allocation4 + $0x448] sm:$0xff] %vm421_vm1, %v4480_v5 }
 0x39e   : > { %v10993_v62 = vadd.f32 %v8888_v25, %v8887_v14  ;;  %v8890_v50 = vpop.f32.mrb[82].mxu1  ;;  %v3376_v14 = vadd.f32 %v10953_v21, %v10924_v13 }
 0x39f   : > { %v8891_v63 = vpop.f32.mrb[83].mxu1 }
 0x3a0   : > { %v10995_v18 = vadd.f32 %v8891_v63, %v8890_v50  ;;  %v4700_v35 = vpop.permute.xlu1 %4699 }
 0x3a1   : > { %4758 = vst.msk [vmem:[#allocation4 + $0x400] sm:$0xff] %vm421_vm1, %v4700_v35 }
 0x3a4   : > { %v8893_v7 = vpop.f32.mrb[84].mxu1  ;;  %v4702_v21 = vpop.permute.xlu1 %4701 }
 0x3a5   : > { %v8894_v55 = vpop.f32.mrb[85].mxu1  ;;  %4759 = vst.msk [vmem:[#allocation4 + $0x428] sm:$0xff] %vm421_vm1, %v4702_v21 }
 0x3a6   : > { %v10998_v43 = vadd.f32 %v8894_v55, %v8893_v7  ;;  %v8896_v39 = vpop.f32.mrb[86].mxu1 }
 0x3a7   : > { %v8897_v59 = vpop.f32.mrb[87].mxu1 }
 0x3a8   : > { %v11001_v52 = vadd.f32 %v8897_v59, %v8896_v39 }
 0x3ab   : > { %v8951_v12 = vpop.f32.mrb[84].mxu0 }
 0x3ac   : > { %v8952_v32 = vpop.f32.mrb[85].mxu0  ;;  %v9041_v45 = vpop.f32.mrb[88].mxu1 }
 0x3ad   : > { %v8953_v57 = vadd.f32 %v8952_v32, %v8951_v12  ;;  %v3594_v25 = vadd.f32 %v9041_v45, %v10936_v1  ;;  %v8954_v50 = vpop.f32.mrb[86].mxu0  ;;  %v3585_v63 = vpop.f32.mrb[89].mxu1 }
 0x3ae   : > { %v3586_v7 = vadd.f32 %v3585_v63, %v10930_v26  ;;  %v8955_v55 = vpop.f32.mrb[87].mxu0  ;;  %v9042_v5 = vpop.f32.mrb[90].mxu1 }
 0x3af   : > { %v3682_v39 = vmax.f32 %v3594_v25, 0.0  ;;  %v8956_v59 = vadd.f32 %v8955_v55, %v8954_v50  ;;  %v3597_v35 = vadd.f32 %v9042_v5, %v10938_v49  ;;  %v3588_v34 = vpop.f32.mrb[91].mxu1  ;;  %v11012_v3 = vadd.f32 %v8953_v57, %v3376_v14 }
 0x3b0   : > { %v3680_v12 = vmax.f32 %v3586_v7, 0.0  ;;  %v3589_v1 = vadd.f32 %v3588_v34, %v10932_v53  ;;  %v3384_v14 = vadd.f32 %v10962_v17, %v10924_v13  ;;  %v3387_v50 = vadd.f32 %v10964_v16, %v10924_v13 }
 0x3b1   : > { %3843 = vst.msk [vmem:[#allocation3 + $0x32] sm:$0xff] %vm300_vm0, %v3682_v39  ;;  %v3683_v26 = vmax.f32 %v3597_v35, 0.0  ;;  %v11021_v27 = vadd.f32 %v8956_v59, %v3379_v20 }
 0x3b2   : > { %3841 = vst.msk [vmem:[#allocation3 + $0x22] sm:$0xff] %vm300_vm0, %v3680_v12  ;;  %v3681_v49 = vmax.f32 %v3589_v1, 0.0 }
 0x3b3   : > { %v3787_v32 = vsel %vm3715_vm12, %v3683_v26, 0.0  ;;  %v8957_v45 = vpop.f32.mrb[88].mxu0  ;;  %vm8278_vm12 = vcmask 392512  }
 0x3b4   : > { %3844 = vst.msk [vmem:[#allocation3 + $0x3a] sm:$0xff] %vm300_vm0, %v3787_v32  ;;  %v3785_v38 = vsel %vm3713_vm13, %v3681_v49, 0.0  ;;  %v8958_v51 = vpop.f32.mrb[89].mxu0  ;;  %v9045_v53 = vpop.f32.mrb[92].mxu1  ;;  %vm8285_vm13 = vcmask 458112  }
 0x3b5   : > { %3842 = vst.msk [vmem:[#allocation3 + $0x2a] sm:$0xff] %vm300_vm0, %v3785_v38  ;;  %v8959_v57 = vadd.f32 %v8958_v51, %v8957_v45  ;;  %v3610_v33 = vadd.f32 %v9045_v53, %v10948_v6  ;;  %v8960_v23 = vpop.f32.mrb[90].mxu0  ;;  %v3601_v25 = vpop.f32.mrb[93].mxu1 }
 0x3b6   : > { %v3602_v63 = vadd.f32 %v3601_v25, %v10942_v61  ;;  %v8961_v20 = vpop.f32.mrb[91].mxu0  ;;  %v9046_v7 = vpop.f32.mrb[94].mxu1 }
 0x3b7   : > { %v3686_v55 = vmax.f32 %v3610_v33, 0.0  ;;  %v8962_v5 = vadd.f32 %v8961_v20, %v8960_v23  ;;  %v3613_v39 = vadd.f32 %v9046_v7, %v10950_v11  ;;  %v3604_v59 = vpop.f32.mrb[95].mxu1  ;;  %v11033_v17 = vadd.f32 %v8959_v57, %v3384_v14 }
 0x3b8   : > { %v4763_v35 = vld [vmem:[#allocation3 + $0x32] sm:$0xff]  ;;  %v3684_v34 = vmax.f32 %v3602_v63, 0.0  ;;  %v3605_v16 = vadd.f32 %v3604_v59, %v10944_v46  ;;  %v3392_v33 = vadd.f32 %v10967_v36, %v10924_v13 }
 0x3b9   : > { %v4095_v61 = vld [vmem:[#allocation3 + $0x32] sm:$0xff]  ;;  %4791 = vst.msk [vmem:[#allocation4 + $0x70] sm:$0xff] %vm300_vm0, %v4763_v35  ;;  %v11043_v21 = vld [vmem:[#allocation3 + $0x22] sm:$0xff]  ;;  %3847 = vst.msk [vmem:[#allocation3 + $0x52] sm:$0xff] %vm300_vm0, %v3686_v55  ;;  %v3687_v11 = vmax.f32 %v3613_v39, 0.0  ;;  %4433 = vrot.lane.b32.xlu0 %v4763_v35, %s9159_s18  ;;  %v11057_v46 = vadd.f32 %v8962_v5, %v3387_v50 }
 0x3ba   : > { %v11053_v40 = vld [vmem:[#allocation3 + $0x21] sm:$0xff]  ;;  %4123 = vst.msk [vmem:[#allocation4 + $0xf8] sm:$0xff] %vm300_vm0, %v4095_v61  ;;  %4789 = vst.msk [vmem:[#allocation4 + $0x20] sm:$0xff] %vm300_vm0, %v11043_v21  ;;  %v3685_v37 = vmax.f32 %v3605_v16, 0.0 }
 0x3bb   : > { %v11055_v2 = vld [vmem:[#allocation3 + $0x20] sm:$0xff]  ;;  %3845 = vst.msk [vmem:[#allocation3 + $0x42] sm:$0xff] %vm300_vm0, %v3684_v34  ;;  %4343 = vst.msk [vmem:[#allocation4 + $0x60] sm:$0xff] %vm300_vm0, %v11053_v40  ;;  %v3791_v1 = vsel %vm11037_vm14, %v3687_v11, 0.0  ;;  %v8963_v26 = vpop.f32.mrb[92].mxu0  ;;  %v4150_v32 = vld [vmem:[#allocation3 + $0x38] sm:$0xff] }
 0x3bc   : > { %3897 = vst.msk [vmem:[#allocation4 + $0xa0] sm:$0xff] %vm300_vm0, %v11055_v2  ;;  %4565 = vst.msk [vmem:[#allocation4 + $0x18] sm:$0xff] %vm300_vm0, %v11055_v2  ;;  %v11071_v44 = vld [vmem:[#allocation3 + $0x3a] sm:$0xff]  ;;  %v11079_v45 = vld [vmem:[#allocation3 + $0x2a] sm:$0xff]  ;;  %v3789_v38 = vsel %vm11048_vm15, %v3685_v37, 0.0  ;;  %v8964_v51 = vpop.f32.mrb[93].mxu0 }
 0x3bd   : > { %4121 = vst.msk [vmem:[#allocation4 + $0xa8] sm:$0xff] %vm300_vm0, %v11043_v21  ;;  %v11075_v49 = vld [vmem:[#allocation3 + $0x39] sm:$0xff]  ;;  %4792 = vst.msk [vmem:[#allocation4 + $0x98] sm:$0xff] %vm300_vm0, %v11071_v44  ;;  %v9049_v53 = vpop.f32.mrb[96].mxu1  ;;  %v11086_v14 = vld [vmem:[#allocation3 + $0x29] sm:$0xff]  ;;  %v8965_v23 = vadd.f32 %v8964_v51, %v8963_v26  ;;  %v8966_v50 = vpop.f32.mrb[94].mxu0  ;;  %3985 = vrot.lane.b32.xlu0 %v11053_v40, %s9159_s18 }
 0x3be   : > { %3848 = vst.msk [vmem:[#allocation3 + $0x5a] sm:$0xff] %vm300_vm0, %v3791_v1  ;;  %3991 = vrot.lane.b32.xlu1 %v11075_v49, %s9159_s18  ;;  %v11088_v57 = vld [vmem:[#allocation3 + $0x31] sm:$0xff]  ;;  %3900 = vst.msk [vmem:[#allocation4 + $0x118] sm:$0xff] %vm300_vm0, %v4150_v32  ;;  %v3626_v25 = vadd.f32 %v9049_v53, %v10986_v60  ;;  %v3617_v63 = vpop.f32.mrb[97].mxu1  ;;  %v11102_v20 = vld [vmem:[#allocation3 + $0x28] sm:$0xff]  ;;  %v3395_v60 = vadd.f32 %v10971_v19, %v10924_v13  ;;  %v8967_v5 = vpop.f32.mrb[95].mxu0 }
 0x3bf   : > { %4346 = vst.msk [vmem:[#allocation4 + $0xd8] sm:$0xff] %vm300_vm0, %v11075_v49  ;;  %4568 = vst.msk [vmem:[#allocation4 + $0x90] sm:$0xff] %vm300_vm0, %v4150_v32  ;;  %v11104_v7 = vld [vmem:[#allocation3 + $0x30] sm:$0xff]  ;;  %v4096_v36 = vld [vmem:[#allocation3 + $0x3a] sm:$0xff]  ;;  %v3618_v55 = vadd.f32 %v3617_v63, %v10958_v9  ;;  %v9050_v39 = vpop.f32.mrb[98].mxu1  ;;  %v8968_v19 = vadd.f32 %v8967_v5, %v8966_v50  ;;  %v11125_v34 = vadd.f32 %v8965_v23, %v3392_v33  ;;  %vm8292_vm14 = vcmask 523712  }
 0x3c0   : > { %4790 = vst.msk [vmem:[#allocation4 + $0x48] sm:$0xff] %vm300_vm0, %v11079_v45  ;;  %3846 = vst.msk [vmem:[#allocation3 + $0x4a] sm:$0xff] %vm300_vm0, %v3789_v38  ;;  %v3690_v59 = vmax.f32 %v3626_v25, 0.0  ;;  %v3629_v9 = vadd.f32 %v9050_v39, %v10988_v47  ;;  %v3620_v35 = vpop.f32.mrb[99].mxu1  ;;  %v11127_v6 = vld [vmem:[#allocation3 + $0x52] sm:$0xff]  ;;  %vm8299_vm15 = vcmask 589312  }
 0x3c1   : > { %4345 = vst.msk [vmem:[#allocation4 + $0xb0] sm:$0xff] %vm300_vm0, %v11088_v57  ;;  %4122 = vst.msk [vmem:[#allocation4 + $0xd0] sm:$0xff] %vm300_vm0, %v11079_v45  ;;  %v3688_v16 = vmax.f32 %v3618_v55, 0.0  ;;  %v3621_v11 = vadd.f32 %v3620_v35, %v10960_v8  ;;  %v4099_v12 = vld [vmem:[#allocation3 + $0x52] sm:$0xff]  ;;  %4205 = vrot.lane.b32.xlu0 %v11055_v2, %s9159_s18  ;;  %v11150_v28 = vadd.f32 %v8968_v19, %v3395_v60 }
 0x3c2   : > { %4344 = vst.msk [vmem:[#allocation4 + $0x88] sm:$0xff] %vm300_vm0, %v11086_v14  ;;  %3898 = vst.msk [vmem:[#allocation4 + $0xc8] sm:$0xff] %vm300_vm0, %v11102_v20  ;;  %4211 = vrot.lane.b32.xlu1 %v4150_v32, %s9159_s18  ;;  %v11139_v47 = vld [vmem:[#allocation3 + $0x42] sm:$0xff]  ;;  %v3691_v37 = vmax.f32 %v3629_v9, 0.0 }
 0x3c3   : > { %3899 = vst.msk [vmem:[#allocation4 + $0xf0] sm:$0xff] %vm300_vm0, %v11104_v7  ;;  %4567 = vst.msk [vmem:[#allocation4 + $0x68] sm:$0xff] %vm300_vm0, %v11104_v7  ;;  %v11152_v8 = vld [vmem:[#allocation3 + $0x41] sm:$0xff]  ;;  %v3689_v10 = vmax.f32 %v3621_v11, 0.0  ;;  %v8969_v32 = vpop.f32.mrb[96].mxu0 }
 0x3c4   : > { %4566 = vst.msk [vmem:[#allocation4 + $0x40] sm:$0xff] %vm300_vm0, %v11102_v20  ;;  %4124 = vst.msk [vmem:[#allocation4 + $0x120] sm:$0xff] %vm300_vm0, %v4096_v36  ;;  %v11154_v1 = vld [vmem:[#allocation3 + $0x40] sm:$0xff]  ;;  %v3795_v26 = vsel %vm11131_vm2, %v3691_v37, 0.0  ;;  %v8970_v23 = vpop.f32.mrb[97].mxu0  ;;  %v9053_v25 = vpop.f32.mrb[100].mxu1  ;;  %v3400_v36 = vadd.f32 %v10976_v0, %v10924_v13 }
 0x3c5   : > { %4795 = vst.msk [vmem:[#allocation4 + $0x110] sm:$0xff] %vm300_vm0, %v11127_v6  ;;  %3851 = vst.msk [vmem:[#allocation3 + $0x72] sm:$0xff] %vm300_vm0, %v3690_v59  ;;  %v4097_v58 = vld [vmem:[#allocation3 + $0x42] sm:$0xff]  ;;  %v11166_v2 = vld [vmem:[#allocation3 + $0x5a] sm:$0xff]  ;;  %v3793_v33 = vsel %vm11144_vm3, %v3689_v10, 0.0  ;;  %v3642_v60 = vadd.f32 %v9053_v25, %v11033_v17  ;;  %v8972_v55 = vpop.f32.mrb[98].mxu0  ;;  %4429 = vrot.lane.b32.xlu0 %v11043_v21, %s9159_s18  ;;  %v3403_v17 = vadd.f32 %v10980_v31, %v10924_v13 }
 0x3c6   : > { %4127 = vst.msk [vmem:[#allocation4 + $0x198] sm:$0xff] %vm300_vm0, %v4099_v12  ;;  %4793 = vst.msk [vmem:[#allocation4 + $0xc0] sm:$0xff] %vm300_vm0, %v11139_v47  ;;  %v11170_v38 = vld [vmem:[#allocation3 + $0x59] sm:$0xff]  ;;  %4435 = vrot.lane.b32.xlu1 %v11071_v44, %s9159_s18  ;;  %v8971_v44 = vadd.f32 %v8970_v23, %v8969_v32  ;;  %v3633_v5 = vpop.f32.mrb[101].mxu1  ;;  %v8973_v19 = vpop.f32.mrb[99].mxu0  ;;  %vm8306_vm2 = vcmask 654912  }
 0x3c7   : > { %3849 = vst.msk [vmem:[#allocation3 + $0x62] sm:$0xff] %vm300_vm0, %v3688_v16  ;;  %3901 = vst.msk [vmem:[#allocation4 + $0x140] sm:$0xff] %vm300_vm0, %v11154_v1  ;;  %v11172_v51 = vld [vmem:[#allocation3 + $0x58] sm:$0xff]  ;;  %v11177_v53 = vld [vmem:[#allocation3 + $0x4a] sm:$0xff]  ;;  %v3634_v21 = vadd.f32 %v3633_v5, %v11012_v3  ;;  %v9054_v9 = vpop.f32.mrb[102].mxu1  ;;  %v3694_v35 = vmax.f32 %v3642_v60, 0.0  ;;  %v8974_v16 = vadd.f32 %v8973_v19, %v8972_v55 }
 0x3c8   : > { %4347 = vst.msk [vmem:[#allocation4 + $0x100] sm:$0xff] %vm300_vm0, %v11152_v8  ;;  %4569 = vst.msk [vmem:[#allocation4 + $0xb8] sm:$0xff] %vm300_vm0, %v11154_v1  ;;  %v11184_v50 = vld [vmem:[#allocation3 + $0x49] sm:$0xff]  ;;  %v11202_v39 = vld [vmem:[#allocation3 + $0x51] sm:$0xff]  ;;  %v3645_v61 = vadd.f32 %v9054_v9, %v11057_v46  ;;  %v3636_v31 = vpop.f32.mrb[103].mxu1  ;;  %v3529_v11 = vadd.f32 %v8971_v44, %v3400_v36  ;;  %vm8313_vm3 = vcmask 720512  }
 0x3c9   : > { %4125 = vst.msk [vmem:[#allocation4 + $0x148] sm:$0xff] %vm300_vm0, %v4097_v58  ;;  %4796 = vst.msk [vmem:[#allocation4 + $0x138] sm:$0xff] %vm300_vm0, %v11166_v2  ;;  %v11186_v63 = vld [vmem:[#allocation3 + $0x48] sm:$0xff]  ;;  %v11204_v59 = vld [vmem:[#allocation3 + $0x50] sm:$0xff]  ;;  %v3692_v12 = vmax.f32 %v3634_v21, 0.0  ;;  %v3637_v54 = vadd.f32 %v3636_v31, %v11021_v27  ;;  %4649 = vrot.lane.b32.xlu0 %v11053_v40, %s9159_s18  ;;  %v3532_v22 = vadd.f32 %v8974_v16, %v3403_v17 }
 0x3ca   : > { %3852 = vst.msk [vmem:[#allocation3 + $0x7a] sm:$0xff] %vm300_vm0, %v3795_v26  ;;  %3904 = vst.msk [vmem:[#allocation4 + $0x1b8] sm:$0xff] %vm300_vm0, %v11172_v51  ;;  %v4100_v0 = vld [vmem:[#allocation3 + $0x5a] sm:$0xff]  ;;  %4655 = vrot.lane.b32.xlu1 %v11075_v49, %s9159_s18  ;;  %v3695_v58 = vmax.f32 %v3645_v61, 0.0  ;;  %v3411_v61 = vadd.f32 %v10995_v18, %v10924_v13 }
 0x3cb   : > { %4350 = vst.msk [vmem:[#allocation4 + $0x178] sm:$0xff] %vm300_vm0, %v11170_v38  ;;  %4572 = vst.msk [vmem:[#allocation4 + $0x130] sm:$0xff] %vm300_vm0, %v11172_v51  ;;  %v3693_v29 = vmax.f32 %v3637_v54, 0.0  ;;  %v8975_v32 = vpop.f32.mrb[100].mxu0 }
 0x3cc   : > { %4794 = vst.msk [vmem:[#allocation4 + $0xe8] sm:$0xff] %vm300_vm0, %v11177_v53  ;;  %3850 = vst.msk [vmem:[#allocation3 + $0x6a] sm:$0xff] %vm300_vm0, %v3793_v33  ;;  %v11225_v3 = vld [vmem:[#allocation3 + $0x72] sm:$0xff]  ;;  %v3799_v26 = vsel %vm11229_vm4, %v3695_v58, 0.0  ;;  %v8976_v44 = vpop.f32.mrb[101].mxu0  ;;  %v9057_v60 = vpop.f32.mrb[104].mxu1 }
 0x3cd   : > { %4126 = vst.msk [vmem:[#allocation4 + $0x170] sm:$0xff] %vm300_vm0, %v11177_v53  ;;  %3902 = vst.msk [vmem:[#allocation4 + $0x168] sm:$0xff] %vm300_vm0, %v11186_v63  ;;  %v4103_v10 = vld [vmem:[#allocation3 + $0x72] sm:$0xff]  ;;  %v3797_v36 = vsel %vm11243_vm5, %v3693_v29, 0.0  ;;  %v8977_v17 = vadd.f32 %v8976_v44, %v8975_v32  ;;  %v3658_v21 = vadd.f32 %v9057_v60, %v3529_v11  ;;  %v8978_v19 = vpop.f32.mrb[102].mxu0  ;;  %v3649_v9 = vpop.f32.mrb[105].mxu1  ;;  %3989 = vrot.lane.b32.xlu0 %v11088_v57, %s9159_s18 }
 0x3ce   : > { %4348 = vst.msk [vmem:[#allocation4 + $0x128] sm:$0xff] %vm300_vm0, %v11184_v50  ;;  %4570 = vst.msk [vmem:[#allocation4 + $0xe0] sm:$0xff] %vm300_vm0, %v11186_v63  ;;  %v11238_v46 = vld [vmem:[#allocation3 + $0x62] sm:$0xff]  ;;  %3987 = vrot.lane.b32.xlu1 %v11086_v14, %s9159_s18  ;;  %v3650_v31 = vadd.f32 %v3649_v9, %v11125_v34  ;;  %v8979_v11 = vpop.f32.mrb[103].mxu0  ;;  %vm8320_vm4 = vcmask 786112   ;;  %vm8327_vm5 = vcmask 851712  }
 0x3cf   : > { %4349 = vst.msk [vmem:[#allocation4 + $0x150] sm:$0xff] %vm300_vm0, %v11202_v39  ;;  %3903 = vst.msk [vmem:[#allocation4 + $0x190] sm:$0xff] %vm300_vm0, %v11204_v59  ;;  %v11249_v27 = vld [vmem:[#allocation3 + $0x61] sm:$0xff]  ;;  %v3698_v37 = vmax.f32 %v3658_v21, 0.0  ;;  %v8980_v54 = vadd.f32 %v8979_v11, %v8978_v19 }
 0x3d0   : > { %4571 = vst.msk [vmem:[#allocation4 + $0x108] sm:$0xff] %vm300_vm0, %v11204_v59  ;;  %4128 = vst.msk [vmem:[#allocation4 + $0x1c0] sm:$0xff] %vm300_vm0, %v4100_v0  ;;  %v11251_v49 = vld [vmem:[#allocation3 + $0x60] sm:$0xff]  ;;  %v3408_v0 = vadd.f32 %v10993_v62, %v10924_v13  ;;  %v3696_v34 = vmax.f32 %v3650_v31, 0.0 }
 0x3d1   : > { %4799 = vst.msk [vmem:[#allocation4 + $0x1b0] sm:$0xff] %vm300_vm0, %v11225_v3  ;;  %3855 = vst.msk [vmem:[#allocation3 + $0x92] sm:$0xff] %vm300_vm0, %v3694_v35  ;;  %v4101_v41 = vld [vmem:[#allocation3 + $0x62] sm:$0xff]  ;;  %v11263_v40 = vld [vmem:[#allocation3 + $0x7a] sm:$0xff]  ;;  %4209 = vrot.lane.b32.xlu0 %v11104_v7, %s9159_s18  ;;  %v3540_v56 = vadd.f32 %v8980_v54, %v3411_v61 }
 0x3d2   : > { %4131 = vst.msk [vmem:[#allocation4 + $0x238] sm:$0xff] %vm300_vm0, %v4103_v10  ;;  %4797 = vst.msk [vmem:[#allocation4 + $0x160] sm:$0xff] %vm300_vm0, %v11238_v46  ;;  %v11267_v33 = vld [vmem:[#allocation3 + $0x79] sm:$0xff]  ;;  %v3537_v18 = vadd.f32 %v8977_v17, %v3408_v0  ;;  %4207 = vrot.lane.b32.xlu1 %v11102_v20, %s9159_s18  ;;  %v11345_v20 = vadd.s32 168, %v10069_v42  ;;  %v11366_v0 = vadd.s32 184, %v10069_v42 }
 0x3d3   : > { %3853 = vst.msk [vmem:[#allocation3 + $0x82] sm:$0xff] %vm300_vm0, %v3692_v12  ;;  %3905 = vst.msk [vmem:[#allocation4 + $0x1e0] sm:$0xff] %vm300_vm0, %v11251_v49  ;;  %v11269_v23 = vld [vmem:[#allocation3 + $0x78] sm:$0xff]  ;;  %v11274_v25 = vld [vmem:[#allocation3 + $0x6a] sm:$0xff]  ;;  %v9058_v12 = vpop.f32.mrb[106].mxu1  ;;  %v8981_v60 = vpop.f32.mrb[104].mxu0 }
 0x3d4   : > { %4351 = vst.msk [vmem:[#allocation4 + $0x1a0] sm:$0xff] %vm300_vm0, %v11249_v27  ;;  %4573 = vst.msk [vmem:[#allocation4 + $0x158] sm:$0xff] %vm300_vm0, %v11251_v49  ;;  %v11281_v55 = vld [vmem:[#allocation3 + $0x69] sm:$0xff]  ;;  %v11298_v35 = vld [vmem:[#allocation3 + $0x71] sm:$0xff]  ;;  %v3661_v10 = vadd.f32 %v9058_v12, %v3532_v22  ;;  %v3652_v58 = vpop.f32.mrb[107].mxu1  ;;  %v3416_v12 = vadd.f32 %v10998_v43, %v10924_v13 }
 0x3d5   : > { %4129 = vst.msk [vmem:[#allocation4 + $0x1e8] sm:$0xff] %vm300_vm0, %v4101_v41  ;;  %4800 = vst.msk [vmem:[#allocation4 + $0x1d8] sm:$0xff] %vm300_vm0, %v11263_v40  ;;  %v11283_v5 = vld [vmem:[#allocation3 + $0x68] sm:$0xff]  ;;  %v11300_v16 = vld [vmem:[#allocation3 + $0x70] sm:$0xff]  ;;  %v3653_v41 = vadd.f32 %v3652_v58, %v11150_v28  ;;  %v9061_v61 = vpop.f32.mrb[108].mxu1  ;;  %4653 = vrot.lane.b32.xlu0 %v11088_v57, %s9159_s18 }
 0x3d6   : > { %3856 = vst.msk [vmem:[#allocation3 + $0x9a] sm:$0xff] %vm300_vm0, %v3799_v26  ;;  %3908 = vst.msk [vmem:[#allocation4 + $0x258] sm:$0xff] %vm300_vm0, %v11269_v23  ;;  %v4104_v62 = vld [vmem:[#allocation3 + $0x7a] sm:$0xff]  ;;  %v3699_v32 = vmax.f32 %v3661_v10, 0.0  ;;  %4431 = vrot.lane.b32.xlu1 %v11079_v45, %s9159_s18  ;;  %v3665_v54 = vpop.f32.mrb[109].mxu1  ;;  %v3709_v10 = vand.u32 15, %v11345_v20 }
 0x3d7   : > { %4354 = vst.msk [vmem:[#allocation4 + $0x218] sm:$0xff] %vm300_vm0, %v11267_v33  ;;  %4576 = vst.msk [vmem:[#allocation4 + $0x1d0] sm:$0xff] %vm300_vm0, %v11269_v23  ;;  %v3697_v48 = vmax.f32 %v3653_v41, 0.0  ;;  %v3666_v29 = vadd.f32 %v3665_v54, %v3537_v18 }
 0x3d8   : > { %4798 = vst.msk [vmem:[#allocation4 + $0x188] sm:$0xff] %vm300_vm0, %v11274_v25  ;;  %3854 = vst.msk [vmem:[#allocation3 + $0x8a] sm:$0xff] %vm300_vm0, %v3797_v36  ;;  %v11320_v24 = vld [vmem:[#allocation3 + $0x92] sm:$0xff]  ;;  %v3803_v44 = vsel %vm11324_vm6, %v3699_v32, 0.0  ;;  %v3419_v32 = vadd.f32 %v11001_v52, %v10924_v13  ;;  %vm11428_vm8 = vcmp.lt.s32.totalorder %v3709_v10, 12  ;;  %vm8334_vm6 = vcmask 917312  }
 0x3d9   : > { %4130 = vst.msk [vmem:[#allocation4 + $0x210] sm:$0xff] %vm300_vm0, %v11274_v25  ;;  %3906 = vst.msk [vmem:[#allocation4 + $0x208] sm:$0xff] %vm300_vm0, %v11283_v5  ;;  %v4107_v26 = vld [vmem:[#allocation3 + $0x92] sm:$0xff]  ;;  %v3801_v9 = vsel %vm11338_vm7, %v3697_v48, 0.0  ;;  %4441 = vrot.lane.b32.xlu0 %v11127_v6, %s9159_s18  ;;  %vm8341_vm7 = vcmask 982912  }
 0x3da   : > { %4352 = vst.msk [vmem:[#allocation4 + $0x1c8] sm:$0xff] %vm300_vm0, %v11281_v55  ;;  %4574 = vst.msk [vmem:[#allocation4 + $0x180] sm:$0xff] %vm300_vm0, %v11283_v5  ;;  %v11333_v22 = vld [vmem:[#allocation3 + $0x82] sm:$0xff]  ;;  %4651 = vrot.lane.b32.xlu1 %v11086_v14, %s9159_s18 }
 0x3db   : > { %4353 = vst.msk [vmem:[#allocation4 + $0x1f0] sm:$0xff] %vm300_vm0, %v11298_v35  ;;  %3907 = vst.msk [vmem:[#allocation4 + $0x230] sm:$0xff] %vm300_vm0, %v11300_v16  ;;  %v11347_v28 = vld [vmem:[#allocation3 + $0x81] sm:$0xff] }
 0x3dc   : > { %4132 = vst.msk [vmem:[#allocation4 + $0x260] sm:$0xff] %vm300_vm0, %v4104_v62  ;;  %4575 = vst.msk [vmem:[#allocation4 + $0x1a8] sm:$0xff] %vm300_vm0, %v11300_v16  ;;  %v11349_v36 = vld [vmem:[#allocation3 + $0x80] sm:$0xff]  ;;  %v8982_v62 = vpop.f32.mrb[105].mxu0 }
 0x3dd   : > { %4803 = vst.msk [vmem:[#allocation4 + $0x250] sm:$0xff] %vm300_vm0, %v11320_v24  ;;  %3859 = vst.msk [vmem:[#allocation3 + $0xb2] sm:$0xff] %vm300_vm0, %v3698_v37  ;;  %v4105_v30 = vld [vmem:[#allocation3 + $0x82] sm:$0xff]  ;;  %v11361_v7 = vld [vmem:[#allocation3 + $0x9a] sm:$0xff]  ;;  %v8983_v37 = vadd.f32 %v8982_v62, %v8981_v60  ;;  %v8984_v45 = vpop.f32.mrb[106].mxu0  ;;  %v3711_v60 = vand.u32 15, %v11366_v0  ;;  %3993 = vrot.lane.b32.xlu0 %v11152_v8, %s9159_s18 }
 0x3de   : > { %4135 = vst.msk [vmem:[#allocation4 + $0x2d8] sm:$0xff] %vm300_vm0, %v4107_v26  ;;  %4801 = vst.msk [vmem:[#allocation4 + $0x200] sm:$0xff] %vm300_vm0, %v11333_v22  ;;  %v11368_v17 = vld [vmem:[#allocation3 + $0x99] sm:$0xff]  ;;  %v8985_v41 = vpop.f32.mrb[107].mxu0  ;;  %v9062_v26 = vpop.f32.mrb[110].mxu1  ;;  %3999 = vrot.lane.b32.xlu1 %v11170_v38, %s9159_s18 }
 0x3df   : > { %3857 = vst.msk [vmem:[#allocation3 + $0xa2] sm:$0xff] %vm300_vm0, %v3696_v34  ;;  %3909 = vst.msk [vmem:[#allocation4 + $0x280] sm:$0xff] %vm300_vm0, %v11349_v36  ;;  %v11370_v21 = vld [vmem:[#allocation3 + $0x98] sm:$0xff]  ;;  %v11375_v19 = vld [vmem:[#allocation3 + $0x8a] sm:$0xff]  ;;  %v3545_v4 = vadd.f32 %v8983_v37, %v3416_v12  ;;  %v8986_v20 = vadd.f32 %v8985_v41, %v8984_v45  ;;  %v3668_v18 = vpop.f32.mrb[111].mxu1  ;;  %vm11454_vm9 = vcmp.lt.s32.totalorder %v3711_v60, 12  ;;  %v4478_v41 = vpop.permute.xlu0 %4477 }
 0x3e0   : > { %4355 = vst.msk [vmem:[#allocation4 + $0x240] sm:$0xff] %vm300_vm0, %v11347_v28  ;;  %4577 = vst.msk [vmem:[#allocation4 + $0x1f8] sm:$0xff] %vm300_vm0, %v11349_v36  ;;  %v11382_v31 = vld [vmem:[#allocation3 + $0x89] sm:$0xff]  ;;  %v11398_v58 = vld [vmem:[#allocation3 + $0x91] sm:$0xff] }
 0x3e1   : > { %4133 = vst.msk [vmem:[#allocation4 + $0x288] sm:$0xff] %vm300_vm0, %v4105_v30  ;;  %4804 = vst.msk [vmem:[#allocation4 + $0x278] sm:$0xff] %vm300_vm0, %v11361_v7  ;;  %v11384_v11 = vld [vmem:[#allocation3 + $0x88] sm:$0xff]  ;;  %v11400_v34 = vld [vmem:[#allocation3 + $0x90] sm:$0xff]  ;;  %v3674_v52 = vadd.f32 %v9061_v61, %v3545_v4  ;;  %v3548_v12 = vadd.f32 %v8986_v20, %v3419_v32  ;;  %4213 = vrot.lane.b32.xlu0 %v11154_v1, %s9159_s18 }
 0x3e2   : > { %3860 = vst.msk [vmem:[#allocation3 + $0xba] sm:$0xff] %vm300_vm0, %v3803_v44  ;;  %3912 = vst.msk [vmem:[#allocation4 + $0x2f8] sm:$0xff] %vm300_vm0, %v11370_v21  ;;  %v4108_v43 = vld [vmem:[#allocation3 + $0x9a] sm:$0xff]  ;;  %v4550_v57 = vld [vmem:[#allocation3 + $0x88] sm:$0xff]  ;;  %v3700_v44 = vmax.f32 %v3666_v29, 0.0  ;;  %4219 = vrot.lane.b32.xlu1 %v11172_v51, %s9159_s18 }
 0x3e3   : > { %4358 = vst.msk [vmem:[#allocation4 + $0x2b8] sm:$0xff] %vm300_vm0, %v11368_v17  ;;  %4802 = vst.msk [vmem:[#allocation4 + $0x228] sm:$0xff] %vm300_vm0, %v11375_v19  ;;  %v4552_v48 = vld [vmem:[#allocation3 + $0x98] sm:$0xff]  ;;  %v3702_v54 = vmax.f32 %v3674_v52, 0.0  ;;  %v3677_v10 = vadd.f32 %v9062_v26, %v3548_v12 }
 0x3e4   : > { %3858 = vst.msk [vmem:[#allocation3 + $0xaa] sm:$0xff] %vm300_vm0, %v3801_v9  ;;  %4134 = vst.msk [vmem:[#allocation4 + $0x2b0] sm:$0xff] %vm300_vm0, %v11375_v19  ;;  %v11418_v30 = vld [vmem:[#allocation3 + $0xb2] sm:$0xff]  ;;  %v3669_v9 = vadd.f32 %v3668_v18, %v3540_v56 }
 0x3e5   : > { %3910 = vst.msk [vmem:[#allocation4 + $0x2a8] sm:$0xff] %vm300_vm0, %v11384_v11  ;;  %4356 = vst.msk [vmem:[#allocation4 + $0x268] sm:$0xff] %vm300_vm0, %v11382_v31  ;;  %v4111_v62 = vld [vmem:[#allocation3 + $0xb2] sm:$0xff]  ;;  %v3703_v4 = vmax.f32 %v3677_v10, 0.0  ;;  %4437 = vrot.lane.b32.xlu0 %v11139_v47, %s9159_s18 }
 0x3e6   : > { %4357 = vst.msk [vmem:[#allocation4 + $0x290] sm:$0xff] %vm300_vm0, %v11398_v58  ;;  %3911 = vst.msk [vmem:[#allocation4 + $0x2d0] sm:$0xff] %vm300_vm0, %v11400_v34  ;;  %v11426_v13 = vld [vmem:[#allocation3 + $0xa2] sm:$0xff]  ;;  %v3701_v14 = vmax.f32 %v3669_v9, 0.0  ;;  %4443 = vrot.lane.b32.xlu1 %v11166_v2, %s9159_s18 }
 0x3e7   : > { %4136 = vst.msk [vmem:[#allocation4 + $0x300] sm:$0xff] %vm300_vm0, %v4108_v43  ;;  %4579 = vst.msk [vmem:[#allocation4 + $0x248] sm:$0xff] %vm300_vm0, %v11400_v34  ;;  %v11434_v56 = vld [vmem:[#allocation3 + $0xa0] sm:$0xff]  ;;  %v3807_v9 = vsel %vm11454_vm9, %v3703_v4, 0.0 }
 0x3e8   : > { %4578 = vst.msk [vmem:[#allocation4 + $0x220] sm:$0xff] %vm300_vm0, %v4550_v57  ;;  %4580 = vst.msk [vmem:[#allocation4 + $0x270] sm:$0xff] %vm300_vm0, %v4552_v48  ;;  %v4331_v0 = vld [vmem:[#allocation3 + $0xa1] sm:$0xff]  ;;  %v3805_v26 = vsel %vm11428_vm8, %v3701_v14, 0.0  ;;  %vm8348_vm8 = vcmask 1048512  }
 0x3e9   : > { %4807 = vst.msk [vmem:[#allocation4 + $0x2f0] sm:$0xff] %vm300_vm0, %v11418_v30  ;;  %4139 = vst.msk [vmem:[#allocation4 + $0x378] sm:$0xff] %vm300_vm0, %v4111_v62  ;;  %v4553_v61 = vld [vmem:[#allocation3 + $0xa0] sm:$0xff]  ;;  %v11446_v43 = vld [vmem:[#allocation3 + $0xb8] sm:$0xff]  ;;  %4657 = vrot.lane.b32.xlu0 %v11152_v8, %s9159_s18 }
 0x3ea   : > { %4805 = vst.msk [vmem:[#allocation4 + $0x2a0] sm:$0xff] %vm300_vm0, %v11426_v13  ;;  %3861 = vst.msk [vmem:[#allocation3 + $0xc2] sm:$0xff] %vm300_vm0, %v3700_v44  ;;  %v11442_v45 = vld [vmem:[#allocation3 + $0xba] sm:$0xff]  ;;  %v4109_v60 = vld [vmem:[#allocation3 + $0xa2] sm:$0xff]  ;;  %3995 = vrot.lane.b32.xlu1 %v11184_v50, %s9159_s18 }
 0x3eb   : > { %3913 = vst.msk [vmem:[#allocation4 + $0x320] sm:$0xff] %vm300_vm0, %v11434_v56  ;;  %v11444_v6 = vld [vmem:[#allocation3 + $0xb9] sm:$0xff]  ;;  %4359 = vst.msk [vmem:[#allocation4 + $0x2e0] sm:$0xff] %vm300_vm0, %v4331_v0  ;;  %v11452_v29 = vld [vmem:[#allocation3 + $0xaa] sm:$0xff] }
 0x3ec   : > { %4581 = vst.msk [vmem:[#allocation4 + $0x298] sm:$0xff] %vm300_vm0, %v4553_v61  ;;  %4808 = vst.msk [vmem:[#allocation4 + $0x318] sm:$0xff] %vm300_vm0, %v11442_v45  ;;  %v11462_v57 = vld [vmem:[#allocation3 + $0xa9] sm:$0xff]  ;;  %v11478_v20 = vld [vmem:[#allocation3 + $0xb1] sm:$0xff] }
 0x3ed   : > { %v11464_v32 = vld [vmem:[#allocation3 + $0xa8] sm:$0xff]  ;;  %3916 = vst.msk [vmem:[#allocation4 + $0x398] sm:$0xff] %vm300_vm0, %v11446_v43  ;;  %4362 = vst.msk [vmem:[#allocation4 + $0x358] sm:$0xff] %vm300_vm0, %v11444_v6  ;;  %v11480_v18 = vld [vmem:[#allocation3 + $0xb0] sm:$0xff]  ;;  %4663 = vrot.lane.b32.xlu0 %v11170_v38, %s9159_s18 }
 0x3ee   : > { %4584 = vst.msk [vmem:[#allocation4 + $0x310] sm:$0xff] %vm300_vm0, %v11446_v43  ;;  %4806 = vst.msk [vmem:[#allocation4 + $0x2c8] sm:$0xff] %vm300_vm0, %v11452_v29  ;;  %v4110_v48 = vld [vmem:[#allocation3 + $0xaa] sm:$0xff]  ;;  %v4112_v62 = vld [vmem:[#allocation3 + $0xba] sm:$0xff]  ;;  %4215 = vrot.lane.b32.xlu1 %v11186_v63, %s9159_s18 }
 0x3ef   : > { %3863 = vst.msk [vmem:[#allocation3 + $0xd2] sm:$0xff] %vm300_vm0, %v3702_v54  ;;  %3862 = vst.msk [vmem:[#allocation3 + $0xca] sm:$0xff] %vm300_vm0, %v3805_v26  ;;  %v3887_v44 = vld [vmem:[#allocation3 + $0xb0] sm:$0xff] }
 0x3f0   : > { %3914 = vst.msk [vmem:[#allocation4 + $0x348] sm:$0xff] %vm300_vm0, %v11464_v32  ;;  %4360 = vst.msk [vmem:[#allocation4 + $0x308] sm:$0xff] %vm300_vm0, %v11462_v57 }
 0x3f1   : > { %4582 = vst.msk [vmem:[#allocation4 + $0x2c0] sm:$0xff] %vm300_vm0, %v11464_v32  ;;  %4138 = vst.msk [vmem:[#allocation4 + $0x350] sm:$0xff] %vm300_vm0, %v4110_v48  ;;  %v11501_v52 = vld [vmem:[#allocation3 + $0xc2] sm:$0xff]  ;;  %3997 = vrot.lane.b32.xlu0 %v11202_v39, %s9159_s18 }
 0x3f2   : > { %4583 = vst.msk [vmem:[#allocation4 + $0x2e8] sm:$0xff] %vm300_vm0, %v11480_v18  ;;  %4361 = vst.msk [vmem:[#allocation4 + $0x330] sm:$0xff] %vm300_vm0, %v11478_v20  ;;  %v11505_v12 = vld [vmem:[#allocation3 + $0xc0] sm:$0xff]  ;;  %4439 = vrot.lane.b32.xlu1 %v11177_v53, %s9159_s18 }
 0x3f3   : > { %3915 = vst.msk [vmem:[#allocation4 + $0x370] sm:$0xff] %vm300_vm0, %v3887_v44  ;;  %4137 = vst.msk [vmem:[#allocation4 + $0x328] sm:$0xff] %vm300_vm0, %v4109_v60  ;;  %v3889_v37 = vld [vmem:[#allocation3 + $0xc0] sm:$0xff] }
 0x3f4   : > { %3864 = vst.msk [vmem:[#allocation3 + $0xda] sm:$0xff] %vm300_vm0, %v3807_v9  ;;  %4140 = vst.msk [vmem:[#allocation4 + $0x3a0] sm:$0xff] %vm300_vm0, %v4112_v62  ;;  %v4335_v14 = vld [vmem:[#allocation3 + $0xc1] sm:$0xff] }
 0x3f5   : > { %4809 = vst.msk [vmem:[#allocation4 + $0x340] sm:$0xff] %vm300_vm0, %v11501_v52  ;;  %4585 = vst.msk [vmem:[#allocation4 + $0x338] sm:$0xff] %vm300_vm0, %v11505_v12  ;;  %v4113_v0 = vld [vmem:[#allocation3 + $0xc2] sm:$0xff]  ;;  %4217 = vrot.lane.b32.xlu0 %v11204_v59, %s9159_s18 }
 0x3f6   : > { %3917 = vst.msk [vmem:[#allocation4 + $0x3c0] sm:$0xff] %vm300_vm0, %v3889_v37  ;;  %4363 = vst.msk [vmem:[#allocation4 + $0x380] sm:$0xff] %vm300_vm0, %v4335_v14  ;;  %v11514_v51 = vld [vmem:[#allocation3 + $0xd2] sm:$0xff]  ;;  %v11516_v1 = vld [vmem:[#allocation3 + $0xca] sm:$0xff]  ;;  %4659 = vrot.lane.b32.xlu1 %v11184_v50, %s9159_s18 }
 0x3f7   : > { %4141 = vst.msk [vmem:[#allocation4 + $0x3c8] sm:$0xff] %vm300_vm0, %v4113_v0  ;;  %4811 = vst.msk [vmem:[#allocation4 + $0x390] sm:$0xff] %vm300_vm0, %v11514_v51  ;;  %v11526_v61 = vld [vmem:[#allocation3 + $0xc8] sm:$0xff]  ;;  %v11528_v54 = vld [vmem:[#allocation3 + $0xd1] sm:$0xff] }
 0x3f8   : > { %4810 = vst.msk [vmem:[#allocation4 + $0x368] sm:$0xff] %vm300_vm0, %v11516_v1  ;;  %v11530_v10 = vld [vmem:[#allocation3 + $0xd0] sm:$0xff]  ;;  %3918 = vst.msk [vmem:[#allocation4 + $0x3e8] sm:$0xff] %vm300_vm0, %v11526_v61  ;;  %v4558_v62 = vld [vmem:[#allocation3 + $0xc8] sm:$0xff] }
 0x3f9   : > { %v4114_v26 = vld [vmem:[#allocation3 + $0xca] sm:$0xff]  ;;  %4365 = vst.msk [vmem:[#allocation4 + $0x3d0] sm:$0xff] %vm300_vm0, %v11528_v54  ;;  %4587 = vst.msk [vmem:[#allocation4 + $0x388] sm:$0xff] %vm300_vm0, %v11530_v10  ;;  %v4115_v8 = vld [vmem:[#allocation3 + $0xd2] sm:$0xff]  ;;  %4661 = vrot.lane.b32.xlu0 %v11202_v39, %s9159_s18 }
 0x3fa   : > { %v4336_v2 = vld [vmem:[#allocation3 + $0xc9] sm:$0xff]  ;;  %4142 = vst.msk [vmem:[#allocation4 + $0x3f0] sm:$0xff] %vm300_vm0, %v4114_v26  ;;  %4586 = vst.msk [vmem:[#allocation4 + $0x360] sm:$0xff] %vm300_vm0, %v4558_v62  ;;  %4007 = vrot.lane.b32.xlu1 %v11267_v33, %s9159_s18 }
 0x3fb   : > { %v11538_v4 = vld [vmem:[#allocation3 + $0xda] sm:$0xff]  ;;  %4364 = vst.msk [vmem:[#allocation4 + $0x3a8] sm:$0xff] %vm300_vm0, %v4336_v2  ;;  %v3891_v37 = vld [vmem:[#allocation3 + $0xd0] sm:$0xff]  ;;  %4143 = vst.msk [vmem:[#allocation4 + $0x418] sm:$0xff] %vm300_vm0, %v4115_v8 }
 0x3fc   : > { %v11540_v47 = vld [vmem:[#allocation3 + $0xe1] sm:$0xff]  ;;  %4812 = vst.msk [vmem:[#allocation4 + $0x3b8] sm:$0xff] %vm300_vm0, %v11538_v4  ;;  %4144 = vst.msk [vmem:[#allocation4 + $0x440] sm:$0xff] %vm300_vm0, %v11538_v4  ;;  %v11552_v48 = vld [vmem:[#allocation3 + $0xd8] sm:$0xff] }
 0x3fd   : > { %4367 = vst.msk [vmem:[#allocation4 + $0x420] sm:$0xff] %vm300_vm0, %v11540_v47  ;;  %v11554_v44 = vld [vmem:[#allocation3 + $0xe0] sm:$0xff]  ;;  %3920 = vst.msk [vmem:[#allocation4 + $0x438] sm:$0xff] %vm300_vm0, %v11552_v48  ;;  %v4560_v9 = vld [vmem:[#allocation3 + $0xd8] sm:$0xff]  ;;  %4449 = vrot.lane.b32.xlu0 %v11225_v3, %s9159_s18 }
 0x3fe   : > { %v4338_v60 = vld [vmem:[#allocation3 + $0xd9] sm:$0xff]  ;;  %4312 = vst.msk [vmem:[#allocation4 + $0x440] sm:$0xff] %vm421_vm1, %v10991_v15  ;;  %4535 = vst.msk [vmem:[#allocation4 + $0x420] sm:$0xff] %vm421_vm1, %v4478_v41  ;;  %4227 = vrot.lane.b32.xlu1 %v11269_v23, %s9159_s18  ;;  %v4785_v41 = vld [vmem:[#allocation3 + $0xe2] sm:$0xff] }
 0x3ff   : > { %4366 = vst.msk [vmem:[#allocation4 + $0x3f8] sm:$0xff] %vm300_vm0, %v4338_v60  ;;  %4589 = vst.msk [vmem:[#allocation4 + $0x3d8] sm:$0xff] %vm300_vm0, %v11554_v44 }
 0x400   : > { %4588 = vst.msk [vmem:[#allocation4 + $0x3b0] sm:$0xff] %vm300_vm0, %v4560_v9  ;;  %3919 = vst.msk [vmem:[#allocation4 + $0x410] sm:$0xff] %vm300_vm0, %v3891_v37 }
 0x401   : > { %4001 = vrot.lane.b32.xlu0 %v11249_v27, %s9159_s18  ;;  %4813 = vst.msk [vmem:[#allocation4 + $0x3e0] sm:$0xff] %vm300_vm0, %v4785_v41 }
 0x402   : > { %4451 = vrot.lane.b32.xlu1 %v11263_v40, %s9159_s18 }
 0x405   : > { %4221 = vrot.lane.b32.xlu0 %v11251_v49, %s9159_s18 }
 0x406   : > { %4003 = vrot.lane.b32.xlu1 %v11281_v55, %s9159_s18 }
 0x409   : > { %4445 = vrot.lane.b32.xlu0 %v11238_v46, %s9159_s18 }
 0x40a   : > { %4223 = vrot.lane.b32.xlu1 %v11283_v5, %s9159_s18 }
 0x40d   : > { %4665 = vrot.lane.b32.xlu0 %v11249_v27, %s9159_s18 }
 0x40e   : > { %4447 = vrot.lane.b32.xlu1 %v11274_v25, %s9159_s18 }
 0x411   : > { %4671 = vrot.lane.b32.xlu0 %v11267_v33, %s9159_s18 }
 0x412   : > { %4015 = vrot.lane.b32.xlu1 %v11368_v17, %s9159_s18 }
 0x415   : > { %4005 = vrot.lane.b32.xlu0 %v11298_v35, %s9159_s18 }
 0x416   : > { %4235 = vrot.lane.b32.xlu1 %v11370_v21, %s9159_s18 }
 0x419   : > { %4225 = vrot.lane.b32.xlu0 %v11300_v16, %s9159_s18  ;;  %v3941_v16 = vld [vmem:[#allocation3 + $0xa1] sm:$0xff] }
 0x41a   : > { %4459 = vrot.lane.b32.xlu1 %v11361_v7, %s9159_s18 }
 0x41d   : > { %4667 = vrot.lane.b32.xlu0 %v11281_v55, %s9159_s18 }
 0x41e   : > { %4011 = vrot.lane.b32.xlu1 %v11382_v31, %s9159_s18 }
 0x421   : > { %4669 = vrot.lane.b32.xlu0 %v11298_v35, %s9159_s18  ;;  %v4613_v35 = vld [vmem:[#allocation3 + $0xc1] sm:$0xff] }
 0x422   : > { %4231 = vrot.lane.b32.xlu1 %v11384_v11, %s9159_s18 }
 0x425   : > { %4457 = vrot.lane.b32.xlu0 %v11320_v24, %s9159_s18 }
 0x426   : > { %4455 = vrot.lane.b32.xlu1 %v11375_v19, %s9159_s18 }
 0x429   : > { %4009 = vrot.lane.b32.xlu0 %v11347_v28, %s9159_s18 }
 0x42a   : > { %4023 = vrot.lane.b32.xlu1 %v11444_v6, %s9159_s18 }
 0x42b   : > { %v4434_v15 = vpop.permute.xlu0 %4433 }
 0x42c   : > { %4513 = vst.msk [vmem:[#allocation4 + $0xb0] sm:$0xff] %vm421_vm1, %v4434_v15  ;;  %v4977_v15 = vsub.s32 4, %v10069_v42 }
 0x42d   : > { %4229 = vrot.lane.b32.xlu0 %v11349_v36, %s9159_s18 }
 0x42e   : > { %4243 = vrot.lane.b32.xlu1 %v11446_v43, %s9159_s18 }
 0x42f   : > { %v3986_v53 = vpop.permute.xlu0 %3985 }
 0x430   : > { %v3992_v38 = vpop.permute.xlu1 %3991  ;;  %4065 = vst.msk [vmem:[#allocation4 + $0xa0] sm:$0xff] %vm421_vm1, %v3986_v53  ;;  %v4818_v53 = vld [vmem:[#allocation4 + $0x8] sm:$0xff] }
 0x431   : > { %4068 = vst.msk [vmem:[#allocation4 + $0x118] sm:$0xff] %vm421_vm1, %v3992_v38  ;;  %4453 = vrot.lane.b32.xlu0 %v11333_v22, %s9159_s18  ;;  %v4817_v38 = vld [vmem:[#allocation4] sm:$0xff] }
 0x432   : > { %4467 = vrot.lane.b32.xlu1 %v11442_v45, %s9159_s18  ;;  %v4786_v45 = vld [vmem:[#allocation3 + $0xea] sm:$0xff] }
 0x433   : > { %v4206_v63 = vpop.permute.xlu0 %4205  ;;  %4814 = vst.msk [vmem:[#allocation4 + $0x408] sm:$0xff] %vm300_vm0, %v4786_v45 }
 0x434   : > { %v4212_v50 = vpop.permute.xlu1 %4211  ;;  %4287 = vst.msk [vmem:[#allocation4 + $0x58] sm:$0xff] %vm421_vm1, %v4206_v63  ;;  %v4823_v63 = vld [vmem:[#allocation4 + $0x30] sm:$0xff] }
 0x435   : > { %4290 = vst.msk [vmem:[#allocation4 + $0xd0] sm:$0xff] %vm421_vm1, %v4212_v50  ;;  %4673 = vrot.lane.b32.xlu0 %v11347_v28, %s9159_s18  ;;  %v3948_v28 = vld [vmem:[#allocation3 + $0xd9] sm:$0xff]  ;;  %v4822_v50 = vld [vmem:[#allocation4 + $0x28] sm:$0xff] }
 0x436   : > { %4687 = vrot.lane.b32.xlu1 %v11444_v6, %s9159_s18 }
 0x437   : > { %v4430_v59 = vpop.permute.xlu0 %4429 }
 0x438   : > { %v4436_v39 = vpop.permute.xlu1 %4435  ;;  %4511 = vst.msk [vmem:[#allocation4 + $0x60] sm:$0xff] %vm421_vm1, %v4430_v59 }
 0x439   : > { %4514 = vst.msk [vmem:[#allocation4 + $0xd8] sm:$0xff] %vm421_vm1, %v4436_v39  ;;  %4013 = vrot.lane.b32.xlu0 %v11398_v58, %s9159_s18 }
 0x43a   : > { %4019 = vrot.lane.b32.xlu1 %v11462_v57, %s9159_s18 }
 0x43b   : > { %v4650_v46 = vpop.permute.xlu0 %4649 }
 0x43c   : > { %v4656_v3 = vpop.permute.xlu1 %4655  ;;  %4733 = vst.msk [vmem:[#allocation4 + $0x18] sm:$0xff] %vm421_vm1, %v4650_v46 }
 0x43d   : > { %4736 = vst.msk [vmem:[#allocation4 + $0x90] sm:$0xff] %vm421_vm1, %v4656_v3  ;;  %4233 = vrot.lane.b32.xlu0 %v11400_v34, %s9159_s18 }
 0x43e   : > { %4239 = vrot.lane.b32.xlu1 %v11464_v32, %s9159_s18 }
 0x43f   : > { %v3990_v49 = vpop.permute.xlu0 %3989 }
 0x440   : > { %v3988_v27 = vpop.permute.xlu1 %3987  ;;  %4067 = vst.msk [vmem:[#allocation4 + $0xf0] sm:$0xff] %vm421_vm1, %v3990_v49  ;;  %v4973_v49 = vsub.s32 3, %v10069_v42 }
 0x441   : > { %4066 = vst.msk [vmem:[#allocation4 + $0xc8] sm:$0xff] %vm421_vm1, %v3988_v27  ;;  %4675 = vrot.lane.b32.xlu0 %v11382_v31, %s9159_s18 }
 0x442   : > { %4463 = vrot.lane.b32.xlu1 %v11452_v29, %s9159_s18  ;;  %v4564_v29 = vld [vmem:[#allocation3 + $0xf8] sm:$0xff] }
 0x443   : > { %v4210_v33 = vpop.permute.xlu0 %4209  ;;  %4592 = vst.msk [vmem:[#allocation4 + $0x450] sm:$0xff] %vm300_vm0, %v4564_v29  ;;  %v4836_v29 = vld [vmem:[#allocation4 + $0x98] sm:$0xff] }
 0x444   : > { %v4208_v40 = vpop.permute.xlu1 %4207  ;;  %4289 = vst.msk [vmem:[#allocation4 + $0xa8] sm:$0xff] %vm421_vm1, %v4210_v33 }
 0x445   : > { %4288 = vst.msk [vmem:[#allocation4 + $0x80] sm:$0xff] %vm421_vm1, %v4208_v40  ;;  %4677 = vrot.lane.b32.xlu0 %v11398_v58, %s9159_s18 }
 0x446   : > { %4683 = vrot.lane.b32.xlu1 %v11462_v57, %s9159_s18 }
 0x447   : > { %v4654_v25 = vpop.permute.xlu0 %4653 }
 0x448   : > { %v4432_v23 = vpop.permute.xlu1 %4431  ;;  %4735 = vst.msk [vmem:[#allocation4 + $0x68] sm:$0xff] %vm421_vm1, %v4654_v25  ;;  %v4819_v25 = vld [vmem:[#allocation4 + $0x10] sm:$0xff] }
 0x449   : > { %4512 = vst.msk [vmem:[#allocation4 + $0x88] sm:$0xff] %vm421_vm1, %v4432_v23  ;;  %4465 = vrot.lane.b32.xlu0 %v11418_v30, %s9159_s18 }
 0x44a   : > { %4685 = vrot.lane.b32.xlu1 %v11478_v20, %s9159_s18 }
 0x44b   : > { %v4442_v5 = vpop.permute.xlu0 %4441 }
 0x44c   : > { %v4652_v55 = vpop.permute.xlu1 %4651  ;;  %4517 = vst.msk [vmem:[#allocation4 + $0x150] sm:$0xff] %vm421_vm1, %v4442_v5  ;;  %v4831_v5 = vld [vmem:[#allocation4 + $0x70] sm:$0xff] }
 0x44d   : > { %4734 = vst.msk [vmem:[#allocation4 + $0x40] sm:$0xff] %vm421_vm1, %v4652_v55  ;;  %4017 = vrot.lane.b32.xlu0 %v3941_v16, %s9159_s18  ;;  %v4824_v55 = vld [vmem:[#allocation4 + $0x38] sm:$0xff] }
 0x44e   : > { %4689 = vrot.lane.b32.xlu1 %v4613_v35, %s9159_s18 }
 0x44f   : > { %v3994_v22 = vpop.permute.xlu0 %3993 }
 0x450   : > { %v4000_v24 = vpop.permute.xlu1 %3999  ;;  %4069 = vst.msk [vmem:[#allocation4 + $0x140] sm:$0xff] %vm421_vm1, %v3994_v22 }
 0x451   : > { %4072 = vst.msk [vmem:[#allocation4 + $0x1b8] sm:$0xff] %vm421_vm1, %v4000_v24  ;;  %4237 = vrot.lane.b32.xlu0 %v11434_v56, %s9159_s18  ;;  %v3946_v56 = vld [vmem:[#allocation3 + $0xc9] sm:$0xff] }
 0x452   : > { %4031 = vrot.lane.b32.xlu1 %v3948_v28, %s9159_s18 }
 0x453   : > { %v4214_v7 = vpop.permute.xlu0 %4213 }
 0x454   : > { %v4220_v36 = vpop.permute.xlu1 %4219  ;;  %4291 = vst.msk [vmem:[#allocation4 + $0xf8] sm:$0xff] %vm421_vm1, %v4214_v7  ;;  %v4825_v22 = vld [vmem:[#allocation4 + $0x40] sm:$0xff] }
 0x455   : > { %4294 = vst.msk [vmem:[#allocation4 + $0x170] sm:$0xff] %vm421_vm1, %v4220_v36  ;;  %4461 = vrot.lane.b32.xlu0 %v11426_v13, %s9159_s18 }
 0x456   : > { %4251 = vrot.lane.b32.xlu1 %v11552_v48, %s9159_s18  ;;  %v4961_v48 = vsub.s32 0, %v10069_v42 }
 0x457   : > { %v4438_v19 = vpop.permute.xlu0 %4437 }
 0x458   : > { %v4444_v21 = vpop.permute.xlu1 %4443  ;;  %4515 = vst.msk [vmem:[#allocation4 + $0x100] sm:$0xff] %vm421_vm1, %v4438_v19 }
 0x459   : > { %4518 = vst.msk [vmem:[#allocation4 + $0x178] sm:$0xff] %vm421_vm1, %v4444_v21  ;;  %4681 = vrot.lane.b32.xlu0 %v3941_v16, %s9159_s18  ;;  %v4838_v16 = vld [vmem:[#allocation4 + $0xa8] sm:$0xff] }
 0x45a   : > { %4475 = vrot.lane.b32.xlu1 %v11538_v4, %s9159_s18 }
 0x45b   : > { %v4658_v11 = vpop.permute.xlu0 %4657 }
 0x45c   : > { %v3996_v31 = vpop.permute.xlu1 %3995  ;;  %4737 = vst.msk [vmem:[#allocation4 + $0xb8] sm:$0xff] %vm421_vm1, %v4658_v11  ;;  %v4837_v11 = vld [vmem:[#allocation4 + $0xa0] sm:$0xff] }
 0x45d   : > { %4070 = vst.msk [vmem:[#allocation4 + $0x168] sm:$0xff] %vm421_vm1, %v3996_v31  ;;  %4021 = vrot.lane.b32.xlu0 %v11478_v20, %s9159_s18 }
 0x45e   : > { %4695 = vrot.lane.b32.xlu1 %v3948_v28, %s9159_s18 }
 0x45f   : > { %v4664_v34 = vpop.permute.xlu0 %4663 }
 0x460   : > { %v4216_v58 = vpop.permute.xlu1 %4215  ;;  %4740 = vst.msk [vmem:[#allocation4 + $0x130] sm:$0xff] %vm421_vm1, %v4664_v34 }
 0x461   : > { %4292 = vst.msk [vmem:[#allocation4 + $0x120] sm:$0xff] %vm421_vm1, %v4216_v58  ;;  %4241 = vrot.lane.b32.xlu0 %v11480_v18, %s9159_s18 }
 0x462   : > { %4697 = vrot.lane.b32.xlu1 %v11540_v47, %s9159_s18 }
 0x463   : > { %v3998_v13 = vpop.permute.xlu0 %3997 }
 0x464   : > { %v4440_v30 = vpop.permute.xlu1 %4439  ;;  %4071 = vst.msk [vmem:[#allocation4 + $0x190] sm:$0xff] %vm421_vm1, %v3998_v13  ;;  %v4827_v13 = vld [vmem:[#allocation4 + $0x50] sm:$0xff] }
 0x465   : > { %4516 = vst.msk [vmem:[#allocation4 + $0x128] sm:$0xff] %vm421_vm1, %v4440_v30  ;;  %4473 = vrot.lane.b32.xlu0 %v11514_v51, %s9159_s18  ;;  %v4788_v51 = vld [vmem:[#allocation3 + $0xfa] sm:$0xff] }
 0x466   : > { %4027 = vrot.lane.b32.xlu1 %v3946_v56, %s9159_s18  ;;  %4816 = vst.msk [vmem:[#allocation4 + $0x458] sm:$0xff] %vm300_vm0, %v4788_v51 }
 0x467   : > { %v4218_v43 = vpop.permute.xlu0 %4217 }
 0x468   : > { %v4660_v6 = vpop.permute.xlu1 %4659  ;;  %4293 = vst.msk [vmem:[#allocation4 + $0x148] sm:$0xff] %vm421_vm1, %v4218_v43  ;;  %v4851_v43 = vld [vmem:[#allocation4 + $0x110] sm:$0xff] }
 0x469   : > { %4738 = vst.msk [vmem:[#allocation4 + $0xe0] sm:$0xff] %vm421_vm1, %v4660_v6  ;;  %4025 = vrot.lane.b32.xlu0 %v4613_v35, %s9159_s18  ;;  %v4826_v35 = vld [vmem:[#allocation4 + $0x48] sm:$0xff]  ;;  %v4821_v6 = vld [vmem:[#allocation4 + $0x20] sm:$0xff] }
 0x46a   : > { %4247 = vrot.lane.b32.xlu1 %v11526_v61, %s9159_s18  ;;  %v4787_v61 = vld [vmem:[#allocation3 + $0xf2] sm:$0xff] }
 0x46b   : > { %v4662_v32 = vpop.permute.xlu0 %4661  ;;  %4815 = vst.msk [vmem:[#allocation4 + $0x430] sm:$0xff] %vm300_vm0, %v4787_v61 }
 0x46c   : > { %v4008_v57 = vpop.permute.xlu1 %4007  ;;  %4739 = vst.msk [vmem:[#allocation4 + $0x108] sm:$0xff] %vm421_vm1, %v4662_v32  ;;  %v4820_v32 = vld [vmem:[#allocation4 + $0x18] sm:$0xff] }
 0x46d   : > { %4076 = vst.msk [vmem:[#allocation4 + $0x258] sm:$0xff] %vm421_vm1, %v4008_v57  ;;  %4245 = vrot.lane.b32.xlu0 %v11505_v12, %s9159_s18  ;;  %v4620_v12 = vld [vmem:[#allocation3 + $0xf9] sm:$0xff] }
 0x46e   : > { %4471 = vrot.lane.b32.xlu1 %v11516_v1, %s9159_s18 }
 0x46f   : > { %v4450_v18 = vpop.permute.xlu0 %4449 }
 0x470   : > { %v4228_v20 = vpop.permute.xlu1 %4227  ;;  %4521 = vst.msk [vmem:[#allocation4 + $0x1f0] sm:$0xff] %vm421_vm1, %v4450_v18  ;;  %v4841_v18 = vld [vmem:[#allocation4 + $0xc0] sm:$0xff] }
 0x471   : > { %4298 = vst.msk [vmem:[#allocation4 + $0x210] sm:$0xff] %vm421_vm1, %v4228_v20  ;;  %4469 = vrot.lane.b32.xlu0 %v11501_v52, %s9159_s18 }
 0x472   : > { %4691 = vrot.lane.b32.xlu1 %v3946_v56, %s9159_s18  ;;  %v4828_v56 = vld [vmem:[#allocation4 + $0x58] sm:$0xff] }
 0x473   : > { %v4002_v0 = vpop.permute.xlu0 %4001 }
 0x474   : > { %v4452_v14 = vpop.permute.xlu1 %4451  ;;  %4073 = vst.msk [vmem:[#allocation4 + $0x1e0] sm:$0xff] %vm421_vm1, %v4002_v0  ;;  %v4832_v0 = vld [vmem:[#allocation4 + $0x78] sm:$0xff] }
 0x475   : > { %4522 = vst.msk [vmem:[#allocation4 + $0x218] sm:$0xff] %vm421_vm1, %v4452_v14  ;;  %4253 = vrot.lane.b32.xlu0 %v11554_v44, %s9159_s18  ;;  %v4965_v44 = vsub.s32 1, %v10069_v42 }
 0x476   : > { %4693 = vrot.lane.b32.xlu1 %v11528_v54, %s9159_s18 }
 0x477   : > { %v4222_v52 = vpop.permute.xlu0 %4221 }
 0x478   : > { %v4004_v1 = vpop.permute.xlu1 %4003  ;;  %4295 = vst.msk [vmem:[#allocation4 + $0x198] sm:$0xff] %vm421_vm1, %v4222_v52  ;;  %v4840_v52 = vld [vmem:[#allocation4 + $0xb8] sm:$0xff] }
 0x479   : > { %4074 = vst.msk [vmem:[#allocation4 + $0x208] sm:$0xff] %vm421_vm1, %v4004_v1  ;;  %4029 = vrot.lane.b32.xlu0 %v11528_v54, %s9159_s18  ;;  %v4839_v1 = vld [vmem:[#allocation4 + $0xb0] sm:$0xff] }
 0x47a   : > { %4703 = vrot.lane.b32.xlu1 %v4620_v12, %s9159_s18 }
 0x47b   : > { %v4446_v2 = vpop.permute.xlu0 %4445 }
 0x47c   : > { %v4224_v26 = vpop.permute.xlu1 %4223  ;;  %4519 = vst.msk [vmem:[#allocation4 + $0x1a0] sm:$0xff] %vm421_vm1, %v4446_v2  ;;  %v4848_v2 = vld [vmem:[#allocation4 + $0xf8] sm:$0xff] }
 0x47d   : > { %4296 = vst.msk [vmem:[#allocation4 + $0x1c0] sm:$0xff] %vm421_vm1, %v4224_v26  ;;  %4249 = vrot.lane.b32.xlu0 %v11530_v10, %s9159_s18  ;;  %v4957_v10 = vld [vmem:[%s12735_s3] sm:$0x1f] }
 0x47e   : > { %v11764_v62 = vrot.slane %v4957_v10, %v4961_v48  ;;  %v11766_v8 = vrot.slane %v4957_v10, %v4965_v44  ;;  %v11778_v40 = vrot.slane %v4957_v10, %v4977_v15  ;;  %v11785_v21 = vrot.slane %v4957_v10, %v4973_v49  ;;  %v4829_v48 = vld [vmem:[#allocation4 + $0x60] sm:$0xff]  ;;  %v4847_v15 = vld [vmem:[#allocation4 + $0xf0] sm:$0xff]  ;;  %v4834_v49 = vld [vmem:[#allocation4 + $0x88] sm:$0xff] }
 0x47f   : > { %v4666_v47 = vpop.permute.xlu0 %4665 }
 0x480   : > { %v4448_v4 = vpop.permute.xlu1 %4447  ;;  %4741 = vst.msk [vmem:[#allocation4 + $0x158] sm:$0xff] %vm421_vm1, %v4666_v47  ;;  %v4984_v3 = vmul.f32 %v11764_v62, %v4817_v38  ;;  %v4985_v46 = vmul.f32 %v11766_v8, %v4818_v53  ;;  %v4989_v33 = vmul.f32 %v11764_v62, %v4822_v50  ;;  %v4990_v23 = vmul.f32 %v11766_v8, %v4823_v63  ;;  %v4849_v38 = vld [vmem:[#allocation4 + $0x100] sm:$0xff] }
 0x481   : > { %4520 = vst.msk [vmem:[#allocation4 + $0x1c8] sm:$0xff] %vm421_vm1, %v4448_v4  ;;  %4679 = vrot.lane.b32.xlu0 %v11368_v17, %s9159_s18  ;;  %v4969_v17 = vsub.s32 2, %v10069_v42  ;;  %v4998_v58 = vmul.f32 %v11778_v40, %v4831_v5  ;;  %v4993_v34 = vmul.f32 %v11778_v40, %v4826_v35  ;;  %v5005_v30 = vmul.f32 %v11766_v8, %v4838_v16  ;;  %v4853_v50 = vld [vmem:[#allocation4 + $0x120] sm:$0xff]  ;;  %v4850_v5 = vld [vmem:[#allocation4 + $0x108] sm:$0xff]  ;;  %s8489_s18 = sshll.u32 %s12782_s27, 1 }
 0x482   : > { %v5124_v36 = vadd.f32 %v4985_v46, %v4984_v3  ;;  %v5131_v31 = vadd.f32 %v4990_v23, %v4989_v33  ;;  %v4992_v45 = vmul.f32 %v11785_v21, %v4825_v22  ;;  %v5004_v14 = vmul.f32 %v11764_v62, %v4837_v11  ;;  %v4830_v46 = vld [vmem:[#allocation4 + $0x68] sm:$0xff]  ;;  %s278_s16 = scalar_lea.vmem %s12739_s7, %s8489_s18 }
 0x483   : > { %v4672_v60 = vpop.permute.xlu0 %4671  ;;  %v11772_v59 = vrot.slane %v4957_v10, %v4969_v17  ;;  %v4994_v61 = vmul.f32 %v11764_v62, %v4827_v13  ;;  %v4995_v41 = vmul.f32 %v11766_v8, %v4828_v56  ;;  %v11798_v26 = vsel %vm300_vm0, %v4998_v58, 0.0  ;;  %v4852_v10 = vld [vmem:[#allocation4 + $0x118] sm:$0xff]  ;;  %v4854_v16 = vld [vmem:[#allocation4 + $0x128] sm:$0xff] }
 0x484   : > { %v4016_v54 = vpop.permute.xlu1 %4015  ;;  %4744 = vst.msk [vmem:[#allocation4 + $0x1d0] sm:$0xff] %vm421_vm1, %v4672_v60  ;;  %v5134_v4 = vsel %vm300_vm0, %v4993_v34, 0.0  ;;  %v4988_v47 = vmul.f32 %v11778_v40, %v4821_v6  ;;  %v11804_v44 = vmul.f32 %v11778_v40, %v4851_v43  ;;  %v4833_v60 = vld [vmem:[#allocation4 + $0x80] sm:$0xff]  ;;  %v4987_v17 = vmul.f32 %v11785_v21, %v4820_v32 }
 0x485   : > { %4080 = vst.msk [vmem:[#allocation4 + $0x2f8] sm:$0xff] %vm421_vm1, %v4016_v54  ;;  %v4986_v28 = vmul.f32 %v11772_v59, %v4819_v25  ;;  %v4991_v19 = vmul.f32 %v11772_v59, %v4824_v55  ;;  %v5152_v54 = vadd.f32 %v5005_v30, %v5004_v14  ;;  %v11809_v53 = vmul.f32 %v11778_v40, %v4836_v29  ;;  %v4858_v30 = vld [vmem:[#allocation4 + $0x148] sm:$0xff]  ;;  %v4843_v29 = vld [vmem:[#allocation4 + $0xd0] sm:$0xff] }
 0x486   : > { %v5007_v3 = vmul.f32 %v11785_v21, %v4840_v52  ;;  %v4999_v33 = vmul.f32 %v11764_v62, %v4832_v0  ;;  %v4996_v25 = vmul.f32 %v11772_v59, %v4829_v48  ;;  %v5138_v55 = vadd.f32 %v4995_v41, %v4994_v61  ;;  %v4857_v0 = vld [vmem:[#allocation4 + $0x140] sm:$0xff]  ;;  %v4856_v52 = vld [vmem:[#allocation4 + $0x138] sm:$0xff]  ;;  %v4855_v48 = vld [vmem:[#allocation4 + $0x130] sm:$0xff] }
 0x487   : > { %v4006_v37 = vpop.permute.xlu0 %4005  ;;  %v5125_v20 = vadd.f32 %v5124_v36, %v4986_v28  ;;  %v5132_v12 = vadd.f32 %v5131_v31, %v4991_v19  ;;  %v5000_v35 = vmul.f32 %v11766_v8, %v4833_v60  ;;  %v5014_v28 = vmul.f32 %v11764_v62, %v4847_v15  ;;  %v4842_v19 = vld [vmem:[#allocation4 + $0xc8] sm:$0xff]  ;;  %v4844_v41 = vld [vmem:[#allocation4 + $0xd8] sm:$0xff] }
 0x488   : > { %v4236_v9 = vpop.permute.xlu1 %4235  ;;  %4075 = vst.msk [vmem:[#allocation4 + $0x230] sm:$0xff] %vm421_vm1, %v4006_v37  ;;  %v5008_v37 = vmul.f32 %v11778_v40, %v4841_v18  ;;  %v5016_v36 = vmul.f32 %v11772_v59, %v4849_v38  ;;  %v4997_v58 = vmul.f32 %v11785_v21, %v4830_v46  ;;  %v5001_v34 = vmul.f32 %v11772_v59, %v4834_v49 }
 0x489   : > { %4302 = vst.msk [vmem:[#allocation4 + $0x2b0] sm:$0xff] %vm421_vm1, %v4236_v9  ;;  %v5133_v9 = vadd.f32 %v5132_v12, %v4992_v45  ;;  %v5126_v11 = vadd.f32 %v5125_v20, %v4987_v17  ;;  %v5017_v45 = vmul.f32 %v11785_v21, %v4850_v5  ;;  %v5021_v43 = vmul.f32 %v11772_v59, %v4854_v16 }
 0x48a   : > { %v5127_v32 = vsel %vm300_vm0, %v4988_v47, 0.0  ;;  %v5139_v18 = vadd.f32 %v5138_v55, %v4996_v25  ;;  %v5145_v20 = vadd.f32 %v5000_v35, %v4999_v33  ;;  %v5009_v14 = vmul.f32 %v11764_v62, %v4842_v19  ;;  %v4860_v33 = vld [vmem:[#allocation4 + $0x158] sm:$0xff] }
 0x48b   : > { %v4226_v27 = vpop.permute.xlu0 %4225  ;;  %v5135_v31 = vadd.f32 %v5134_v4, %v5133_v9  ;;  %v5128_v4 = vadd.f32 %v5127_v32, %v5126_v11  ;;  %v5010_v60 = vmul.f32 %v11766_v8, %v4843_v29  ;;  %v5023_v46 = vmul.f32 %v11778_v40, %v4856_v52  ;;  %v4861_v11 = vld [vmem:[#allocation4 + $0x160] sm:$0xff]  ;;  %v4867_v32 = vld [vmem:[#allocation4 + $0x190] sm:$0xff]  ;;  %v4866_v52 = vld [vmem:[#allocation4 + $0x188] sm:$0xff] }
 0x48c   : > { %v4460_v39 = vpop.permute.xlu1 %4459  ;;  %4297 = vst.msk [vmem:[#allocation4 + $0x1e8] sm:$0xff] %vm421_vm1, %v4226_v27  ;;  %v5015_v27 = vmul.f32 %v11766_v8, %v4848_v2  ;;  %v5025_v2 = vmul.f32 %v11766_v8, %v4858_v30  ;;  %v5146_v47 = vadd.f32 %v5145_v20, %v5001_v34  ;;  %v5169_v25 = vsel %vm300_vm0, %v11804_v44, 0.0  ;;  %v4868_v34 = vld [vmem:[#allocation4 + $0x198] sm:$0xff] }
 0x48d   : > { %4526 = vst.msk [vmem:[#allocation4 + $0x2b8] sm:$0xff] %vm421_vm1, %v4460_v39  ;;  %v5006_v39 = vmul.f32 %v11772_v59, %v4839_v1  ;;  %v4835_v1 = vld [vmem:[#allocation4 + $0x90] sm:$0xff]  ;;  %v5159_v49 = vadd.f32 %v5010_v60, %v5009_v14  ;;  %v5022_v55 = vmul.f32 %v11785_v21, %v4855_v48  ;;  %v5028_v14 = vmul.f32 %v11778_v40, %v4861_v11  ;;  %v4876_v11 = vld [vmem:[#allocation4 + $0x1d8] sm:$0xff] }
 0x48e   : > { %v5166_v6 = vadd.f32 %v5015_v27, %v5014_v28  ;;  %v5011_v27 = vmul.f32 %v11772_v59, %v4844_v41 }
 0x48f   : > { %v4668_v7 = vpop.permute.xlu0 %4667  ;;  %v5153_v22 = vadd.f32 %v5152_v54, %v5006_v39  ;;  %v5140_v54 = vadd.f32 %v5139_v18, %v4997_v58  ;;  %v5027_v58 = vmul.f32 %v11785_v21, %v4860_v33 }
 0x490   : > { %v4012_v24 = vpop.permute.xlu1 %4011  ;;  %4742 = vst.msk [vmem:[#allocation4 + $0x180] sm:$0xff] %vm421_vm1, %v4668_v7  ;;  %v5020_v7 = vmul.f32 %v11766_v8, %v4853_v50  ;;  %v5167_v12 = vadd.f32 %v5166_v6, %v5016_v36  ;;  %v4845_v50 = vld [vmem:[#allocation4 + $0xe0] sm:$0xff]  ;;  %v5176_v6 = vsel %vm300_vm0, %v5023_v46, 0.0 }
 0x491   : > { %4078 = vst.msk [vmem:[#allocation4 + $0x2a8] sm:$0xff] %vm421_vm1, %v4012_v24  ;;  %v5019_v24 = vmul.f32 %v11764_v62, %v4852_v10  ;;  %v5154_v56 = vadd.f32 %v5153_v22, %v5007_v3  ;;  %v4862_v10 = vld [vmem:[#allocation4 + $0x168] sm:$0xff]  ;;  %v5002_v3 = vmul.f32 %v11785_v21, %v4835_v1  ;;  %v5142_v16 = vadd.f32 %v11798_v26, %v5140_v54 }
 0x492   : > { %v5168_v15 = vadd.f32 %v5167_v12, %v5017_v45  ;;  %v5029_v35 = vmul.f32 %v11764_v62, %v4862_v10  ;;  %v4846_v22 = vld [vmem:[#allocation4 + $0xe8] sm:$0xff]  ;;  %v5012_v28 = vmul.f32 %v11785_v21, %v4845_v50  ;;  %v5148_v26 = vsel %vm300_vm0, %v11809_v53, 0.0 }
 0x493   : > { %v4670_v51 = vpop.permute.xlu0 %4669  ;;  %v5173_v61 = vadd.f32 %v5020_v7, %v5019_v24  ;;  %v5147_v24 = vadd.f32 %v5146_v47, %v5002_v3  ;;  %v5035_v53 = vmul.f32 %v11766_v8, %v4868_v34  ;;  %v5034_v54 = vmul.f32 %v11764_v62, %v4867_v32  ;;  %v4873_v47 = vld [vmem:[#allocation4 + $0x1c0] sm:$0xff] }
 0x494   : > { %v4232_v57 = vpop.permute.xlu1 %4231  ;;  %4743 = vst.msk [vmem:[#allocation4 + $0x1a8] sm:$0xff] %vm421_vm1, %v4670_v51  ;;  %v5155_v51 = vsel %vm300_vm0, %v5008_v37, 0.0  ;;  %v4859_v37 = vld [vmem:[#allocation4 + $0x150] sm:$0xff]  ;;  %v5170_v19 = vadd.f32 %v5169_v25, %v5168_v15  ;;  %v5183_v15 = vsel %vm300_vm0, %v5028_v14, 0.0  ;;  %v5040_v33 = vmul.f32 %v11766_v8, %v4873_v47 }
 0x495   : > { %4300 = vst.msk [vmem:[#allocation4 + $0x260] sm:$0xff] %vm421_vm1, %v4232_v57  ;;  %v5156_v17 = vadd.f32 %v5155_v51, %v5154_v56  ;;  %v5174_v38 = vadd.f32 %v5173_v61, %v5021_v43  ;;  %v5026_v36 = vmul.f32 %v11772_v59, %v4859_v37  ;;  %v4864_v56 = vld [vmem:[#allocation4 + $0x178] sm:$0xff]  ;;  %v5013_v43 = vmul.f32 %v11778_v40, %v4846_v22  ;;  %v4874_v37 = vld [vmem:[#allocation4 + $0x1c8] sm:$0xff]  ;;  %v4903_v47 = vld [vmem:[#allocation4 + $0x2b0] sm:$0xff] }
 0x496   : > { %v5149_v18 = vadd.f32 %v5148_v26, %v5147_v24  ;;  %v5031_v61 = vmul.f32 %v11772_v59, %v4864_v56  ;;  %v5194_v50 = vadd.f32 %v5035_v53, %v5034_v54  ;;  %v4883_v53 = vld [vmem:[#allocation4 + $0x210] sm:$0xff] }
 0x497   : > { %v4458_v23 = vpop.permute.xlu0 %4457  ;;  %v4865_v45 = vld [vmem:[#allocation4 + $0x180] sm:$0xff]  ;;  %v5162_v48 = vsel %vm300_vm0, %v5013_v43, 0.0  ;;  %v4882_v43 = vld [vmem:[#allocation4 + $0x208] sm:$0xff]  ;;  %v5050_v54 = vmul.f32 %v11766_v8, %v4883_v53 }
 0x498   : > { %v4456_v63 = vpop.permute.xlu1 %4455  ;;  %4525 = vst.msk [vmem:[#allocation4 + $0x290] sm:$0xff] %vm421_vm1, %v4458_v23  ;;  %v4863_v23 = vld [vmem:[#allocation4 + $0x170] sm:$0xff]  ;;  %v5032_v41 = vmul.f32 %v11785_v21, %v4865_v45 }
 0x499   : > { %4524 = vst.msk [vmem:[#allocation4 + $0x268] sm:$0xff] %vm421_vm1, %v4456_v63  ;;  %v5024_v63 = vmul.f32 %v11764_v62, %v4857_v0  ;;  %v5030_v44 = vmul.f32 %v11766_v8, %v4863_v23  ;;  %v4869_v0 = vld [vmem:[#allocation4 + $0x1a0] sm:$0xff] }
 0x49a   : > { %v5036_v10 = vmul.f32 %v11772_v59, %v4869_v0  ;;  %v4877_v23 = vld [vmem:[#allocation4 + $0x1e0] sm:$0xff] }
 0x49b   : > { %v4010_v57 = vpop.permute.xlu0 %4009  ;;  %v5180_v5 = vadd.f32 %v5025_v2, %v5024_v63  ;;  %v4878_v63 = vld [vmem:[#allocation4 + $0x1e8] sm:$0xff] }
 0x49c   : > { %v4024_v13 = vpop.permute.xlu1 %4023  ;;  %4077 = vst.msk [vmem:[#allocation4 + $0x280] sm:$0xff] %vm421_vm1, %v4010_v57  ;;  %v5187_v57 = vadd.f32 %v5030_v44, %v5029_v35  ;;  %v5195_v35 = vadd.f32 %v5194_v50, %v5036_v10  ;;  %v5045_v24 = vmul.f32 %v11766_v8, %v4878_v63  ;;  %v5070_v50 = vmul.f32 %v11766_v8, %v4903_v47 }
 0x49d   : > { %4084 = vst.msk [vmem:[#allocation4 + $0x398] sm:$0xff] %vm421_vm1, %v4024_v13  ;;  %v5160_v13 = vadd.f32 %v5159_v49, %v5011_v27  ;;  %v5181_v29 = vadd.f32 %v5180_v5, %v5026_v36  ;;  %v4871_v27 = vld [vmem:[#allocation4 + $0x1b0] sm:$0xff]  ;;  %v5044_v36 = vmul.f32 %v11764_v62, %v4877_v23 }
 0x49e   : > { %5136 = vadd.xlane.f32.xlu1 %v5135_v31  ;;  %v5175_v31 = vadd.f32 %v5174_v38, %v5022_v55  ;;  %v5188_v60 = vadd.f32 %v5187_v57, %v5031_v61  ;;  %v5033_v38 = vmul.f32 %v11778_v40, %v4866_v52  ;;  %v4875_v55 = vld [vmem:[#allocation4 + $0x1d0] sm:$0xff] }
 0x49f   : > { %v4230_v39 = vpop.permute.xlu0 %4229  ;;  %v5161_v20 = vadd.f32 %v5160_v13, %v5012_v28  ;;  %v5182_v1 = vadd.f32 %v5181_v29, %v5027_v58  ;;  %v5038_v28 = vmul.f32 %v11778_v40, %v4871_v27  ;;  %v5042_v58 = vmul.f32 %v11785_v21, %v4875_v55  ;;  %v4904_v27 = vld [vmem:[#allocation4 + $0x2b8] sm:$0xff]  ;;  %v4906_v55 = vld [vmem:[#allocation4 + $0x2c8] sm:$0xff] }
 0x4a0   : > { %v4244_v9 = vpop.permute.xlu1 %4243  ;;  %4299 = vst.msk [vmem:[#allocation4 + $0x238] sm:$0xff] %vm421_vm1, %v4230_v39  ;;  %5129 = vadd.xlane.f32.xlu0 %v5128_v4  ;;  %v5177_v12 = vadd.f32 %v5176_v6, %v5175_v31  ;;  %v4870_v4 = vld [vmem:[#allocation4 + $0x1a8] sm:$0xff]  ;;  %v5189_v46 = vadd.f32 %v5188_v60, %v5032_v41  ;;  %v5190_v22 = vsel %vm300_vm0, %v5033_v38, 0.0  ;;  %v5208_v56 = vadd.f32 %v5045_v24, %v5044_v36  ;;  %v4884_v60 = vld [vmem:[#allocation4 + $0x218] sm:$0xff]  ;;  %v4891_v24 = vld [vmem:[#allocation4 + $0x250] sm:$0xff] }
 0x4a1   : > { %4306 = vst.msk [vmem:[#allocation4 + $0x350] sm:$0xff] %vm421_vm1, %v4244_v9  ;;  %v4872_v9 = vld [vmem:[#allocation4 + $0x1b8] sm:$0xff]  ;;  %v5184_v3 = vadd.f32 %v5183_v15, %v5182_v1  ;;  %v5037_v49 = vmul.f32 %v11785_v21, %v4870_v4  ;;  %v5197_v45 = vsel %vm300_vm0, %v5038_v28, 0.0  ;;  %v5043_v6 = vmul.f32 %v11778_v40, %v4876_v11  ;;  %v4902_v1 = vld [vmem:[#allocation4 + $0x2a8] sm:$0xff] }
 0x4a2   : > { %5157 = vadd.xlane.f32.xlu1 %v5156_v17  ;;  %v5163_v17 = vadd.f32 %v5162_v48, %v5161_v20  ;;  %v5039_v5 = vmul.f32 %v11764_v62, %v4872_v9  ;;  %v5069_v10 = vmul.f32 %v11764_v62, %v4902_v1  ;;  %v5071_v36 = vmul.f32 %v11772_v59, %v4904_v27 }
 0x4a3   : > { %v4454_v30 = vpop.permute.xlu0 %4453  ;;  %v5196_v31 = vadd.f32 %v5195_v35, %v5037_v49  ;;  %v5204_v52 = vsel %vm300_vm0, %v5043_v6, 0.0  ;;  %v5073_v11 = vmul.f32 %v11778_v40, %v4906_v55 }
 0x4a4   : > { %v4468_v7 = vpop.permute.xlu1 %4467  ;;  %4523 = vst.msk [vmem:[#allocation4 + $0x240] sm:$0xff] %vm421_vm1, %v4454_v30  ;;  %5143 = vadd.xlane.f32.xlu0 %v5142_v16  ;;  %v5041_v16 = vmul.f32 %v11772_v59, %v4874_v37  ;;  %v5201_v44 = vadd.f32 %v5040_v33, %v5039_v5  ;;  %v4879_v30 = vld [vmem:[#allocation4 + $0x1f0] sm:$0xff]  ;;  %v5243_v5 = vadd.f32 %v5070_v50, %v5069_v10 }
 0x4a5   : > { %4530 = vst.msk [vmem:[#allocation4 + $0x358] sm:$0xff] %vm421_vm1, %v4468_v7  ;;  %v5198_v57 = vadd.f32 %v5197_v45, %v5196_v31  ;;  %v5046_v20 = vmul.f32 %v11772_v59, %v4879_v30  ;;  %v4887_v37 = vld [vmem:[#allocation4 + $0x230] sm:$0xff] }
 0x4a6   : > { %5171 = vadd.xlane.f32.xlu1 %v5170_v19  ;;  %v5191_v19 = vadd.f32 %v5190_v22, %v5189_v46  ;;  %v5202_v13 = vadd.f32 %v5201_v44, %v5041_v16  ;;  %v5051_v46 = vmul.f32 %v11772_v59, %v4884_v60  ;;  %v5054_v22 = vmul.f32 %v11764_v62, %v4887_v37  ;;  %v4911_v10 = vld [vmem:[#allocation4 + $0x2f0] sm:$0xff] }
 0x4a7   : > { %v4674_v2 = vpop.permute.xlu0 %4673  ;;  %v4888_v9 = vld [vmem:[#allocation4 + $0x238] sm:$0xff] }
 0x4a8   : > { %v4688_v51 = vpop.permute.xlu1 %4687  ;;  %4745 = vst.msk [vmem:[#allocation4 + $0x1f8] sm:$0xff] %vm421_vm1, %v4674_v2  ;;  %5150 = vadd.xlane.f32.xlu0 %v5149_v18  ;;  %v5203_v32 = vadd.f32 %v5202_v13, %v5042_v58  ;;  %v4881_v18 = vld [vmem:[#allocation4 + $0x200] sm:$0xff]  ;;  %v5055_v49 = vmul.f32 %v11766_v8, %v4888_v9 }
 0x4a9   : > { %4752 = vst.msk [vmem:[#allocation4 + $0x310] sm:$0xff] %vm421_vm1, %v4688_v51  ;;  %v5209_v51 = vadd.f32 %v5208_v56, %v5046_v20  ;;  %v5048_v61 = vmul.f32 %v11778_v40, %v4881_v18  ;;  %v5058_v56 = vmul.f32 %v11778_v40, %v4891_v24 }
 0x4aa   : > { %5178 = vadd.xlane.f32.xlu1 %v5177_v12  ;;  %v5049_v12 = vmul.f32 %v11764_v62, %v4882_v43  ;;  %v5205_v2 = vadd.f32 %v5204_v52, %v5203_v32  ;;  %v5222_v58 = vadd.f32 %v5055_v49, %v5054_v22  ;;  %v5246_v32 = vsel %vm300_vm0, %v5073_v11, 0.0 }
 0x4ab   : > { %v4014_v25 = vpop.permute.xlu0 %4013  ;;  %v5211_v38 = vsel %vm300_vm0, %v5048_v61, 0.0  ;;  %v4889_v63 = vld [vmem:[#allocation4 + $0x240] sm:$0xff]  ;;  %v4912_v61 = vld [vmem:[#allocation4 + $0x2f8] sm:$0xff] }
 0x4ac   : > { %v4020_v39 = vpop.permute.xlu1 %4019  ;;  %4079 = vst.msk [vmem:[#allocation4 + $0x2d0] sm:$0xff] %vm421_vm1, %v4014_v25  ;;  %5164 = vadd.xlane.f32.xlu0 %v5163_v17  ;;  %v4886_v17 = vld [vmem:[#allocation4 + $0x228] sm:$0xff]  ;;  %v5215_v15 = vadd.f32 %v5050_v54, %v5049_v12  ;;  %v5056_v28 = vmul.f32 %v11772_v59, %v4889_v63 }
 0x4ad   : > { %4082 = vst.msk [vmem:[#allocation4 + $0x348] sm:$0xff] %vm421_vm1, %v4020_v39  ;;  %v5053_v25 = vmul.f32 %v11778_v40, %v4886_v17  ;;  %v5079_v17 = vmul.f32 %v11764_v62, %v4912_v61 }
 0x4ae   : > { %5185 = vadd.xlane.f32.xlu1 %v5184_v3  ;;  %v5216_v16 = vadd.f32 %v5215_v15, %v5051_v46  ;;  %v5223_v43 = vadd.f32 %v5222_v58, %v5056_v28  ;;  %v5078_v46 = vmul.f32 %v11778_v40, %v4911_v10  ;;  %v4926_v10 = vld [vmem:[#allocation4 + $0x368] sm:$0xff] }
 0x4af   : > { %v4234_v34 = vpop.permute.xlu0 %4233  ;;  %v4880_v26 = vld [vmem:[#allocation4 + $0x1f8] sm:$0xff] }
 0x4b0   : > { %v4240_v7 = vpop.permute.xlu1 %4239  ;;  %4301 = vst.msk [vmem:[#allocation4 + $0x288] sm:$0xff] %vm421_vm1, %v4234_v34  ;;  %v5047_v14 = vmul.f32 %v11785_v21, %v4880_v26  ;;  %v5218_v34 = vsel %vm300_vm0, %v5053_v25, 0.0  ;;  %v5244_v26 = vadd.f32 %v5243_v5, %v5071_v36  ;;  %v4915_v27 = vld [vmem:[#allocation4 + $0x310] sm:$0xff]  ;;  %v4916_v25 = vld [vmem:[#allocation4 + $0x318] sm:$0xff]  ;;  %v5253_v24 = vsel %vm300_vm0, %v5078_v46, 0.0 }
 0x4b1   : > { %4304 = vst.msk [vmem:[#allocation4 + $0x300] sm:$0xff] %vm421_vm1, %v4240_v7  ;;  %v5083_v22 = vmul.f32 %v11778_v40, %v4916_v25 }
 0x4b2   : > { %5192 = vadd.xlane.f32.xlu1 %v5191_v19  ;;  %v5210_v4 = vadd.f32 %v5209_v51, %v5047_v14 }
 0x4b3   : > { %v4676_v0 = vpop.permute.xlu0 %4675 }
 0x4b4   : > { %v4464_v29 = vpop.permute.xlu1 %4463  ;;  %4746 = vst.msk [vmem:[#allocation4 + $0x220] sm:$0xff] %vm421_vm1, %v4676_v0  ;;  %v5212_v3 = vadd.f32 %v5211_v38, %v5210_v4  ;;  %v5225_v0 = vsel %vm300_vm0, %v5058_v56, 0.0  ;;  %v4921_v56 = vld [vmem:[#allocation4 + $0x340] sm:$0xff] }
 0x4b5   : > { %4528 = vst.msk [vmem:[#allocation4 + $0x308] sm:$0xff] %vm421_vm1, %v4464_v29 }
 0x4b6   : > { %5199 = vadd.xlane.f32.xlu1 %v5198_v57 }
 0x4b7   : > { %v4678_v48 = vpop.permute.xlu0 %4677 }
 0x4b8   : > { %v4684_v41 = vpop.permute.xlu1 %4683  ;;  %4747 = vst.msk [vmem:[#allocation4 + $0x248] sm:$0xff] %vm421_vm1, %v4678_v48  ;;  %v4913_v1 = vld [vmem:[#allocation4 + $0x300] sm:$0xff] }
 0x4b9   : > { %4750 = vst.msk [vmem:[#allocation4 + $0x2c0] sm:$0xff] %vm421_vm1, %v4684_v41  ;;  %v5080_v48 = vmul.f32 %v11766_v8, %v4913_v1  ;;  %v4923_v1 = vld [vmem:[#allocation4 + $0x350] sm:$0xff] }
 0x4ba   : > { %5206 = vadd.xlane.f32.xlu1 %v5205_v2  ;;  %v4907_v2 = vld [vmem:[#allocation4 + $0x2d0] sm:$0xff] }
 0x4bb   : > { %v4466_v33 = vpop.permute.xlu0 %4465  ;;  %v4885_v23 = vld [vmem:[#allocation4 + $0x220] sm:$0xff]  ;;  %v5074_v9 = vmul.f32 %v11764_v62, %v4907_v2 }
 0x4bc   : > { %v4686_v39 = vpop.permute.xlu1 %4685  ;;  %4529 = vst.msk [vmem:[#allocation4 + $0x330] sm:$0xff] %vm421_vm1, %v4466_v33  ;;  %v5052_v35 = vmul.f32 %v11785_v21, %v4885_v23  ;;  %v4914_v54 = vld [vmem:[#allocation4 + $0x308] sm:$0xff] }
 0x4bd   : > { %4751 = vst.msk [vmem:[#allocation4 + $0x2e8] sm:$0xff] %vm421_vm1, %v4686_v39  ;;  %v5081_v15 = vmul.f32 %v11772_v59, %v4914_v54 }
 0x4be   : > { %5213 = vadd.xlane.f32.xlu1 %v5212_v3  ;;  %v5217_v19 = vadd.f32 %v5216_v16, %v5052_v35  ;;  %v5257_v3 = vadd.f32 %v5080_v48, %v5079_v17  ;;  %v5082_v16 = vmul.f32 %v11785_v21, %v4915_v27  ;;  %v5093_v27 = vmul.f32 %v11778_v40, %v4926_v10 }
 0x4bf   : > { %v4018_v44 = vpop.permute.xlu0 %4017  ;;  %v4890_v13 = vld [vmem:[#allocation4 + $0x248] sm:$0xff] }
 0x4c0   : > { %v4690_v7 = vpop.permute.xlu1 %4689  ;;  %v4905_v31 = vld [vmem:[#allocation4 + $0x2c0] sm:$0xff]  ;;  %4081 = vst.msk [vmem:[#allocation4 + $0x320] sm:$0xff] %vm421_vm1, %v4018_v44  ;;  %v5219_v45 = vadd.f32 %v5218_v34, %v5217_v19  ;;  %v5057_v6 = vmul.f32 %v11785_v21, %v4890_v13  ;;  %v5258_v55 = vadd.f32 %v5257_v3, %v5081_v15  ;;  %v9161_v34 = vmov 0  }
 0x4c1   : > { %4753 = vst.msk [vmem:[#allocation4 + $0x338] sm:$0xff] %vm421_vm1, %v4690_v7  ;;  %v5072_v30 = vmul.f32 %v11785_v21, %v4905_v31  ;;  %v5260_v31 = vsel %vm300_vm0, %v5083_v22, 0.0  ;;  %9077 = vset.pattern.permute.xlu0 %v9161_v34  ;;  %9076 = vset.pattern.permute.xlu1 %v9161_v34 }
 0x4c2   : > { %5220 = vadd.xlane.f32.xlu1 %v5219_v45  ;;  %v5224_v18 = vadd.f32 %v5223_v43, %v5057_v6  ;;  %v5259_v7 = vadd.f32 %v5258_v55, %v5082_v16 }
 0x4c3   : > { %v5245_v29 = vadd.f32 %v5244_v26, %v5072_v30  ;;  %v4238_v20 = vpop.permute.xlu0 %4237  ;;  %v4919_v13 = vld [vmem:[#allocation4 + $0x330] sm:$0xff] }
 0x4c4   : > { %v4032_v57 = vpop.permute.xlu1 %4031  ;;  %4303 = vst.msk [vmem:[#allocation4 + $0x2d8] sm:$0xff] %vm421_vm1, %v4238_v20  ;;  %v5226_v53 = vadd.f32 %v5225_v0, %v5224_v18  ;;  %v4910_v37 = vld [vmem:[#allocation4 + $0x2e8] sm:$0xff]  ;;  %v5261_v44 = vadd.f32 %v5260_v31, %v5259_v7  ;;  %v5088_v20 = vmul.f32 %v11778_v40, %v4921_v56  ;;  %v5274_v7 = vsel %vm300_vm0, %v5093_v27, 0.0  ;;  %v4899_v27 = vld [vmem:[#allocation4 + $0x290] sm:$0xff] }
 0x4c5   : > { %4088 = vst.msk [vmem:[#allocation4 + $0x438] sm:$0xff] %vm421_vm1, %v4032_v57  ;;  %v5247_v14 = vadd.f32 %v5246_v32, %v5245_v29  ;;  %v5077_v33 = vmul.f32 %v11785_v21, %v4910_v37  ;;  %v5086_v57 = vmul.f32 %v11772_v59, %v4919_v13 }
 0x4c6   : > { %5227 = vadd.xlane.f32.xlu1 %v5226_v53  ;;  %v4922_v53 = vld [vmem:[#allocation4 + $0x348] sm:$0xff]  ;;  %v5267_v61 = vsel %vm300_vm0, %v5088_v20, 0.0 }
 0x4c7   : > { %5248 = vadd.xlane.f32.xlu0 %v5247_v14  ;;  %v4462_v12 = vpop.permute.xlu0 %4461  ;;  %v4917_v11 = vld [vmem:[#allocation4 + $0x320] sm:$0xff] }
 0x4c8   : > { %v4252_v51 = vpop.permute.xlu1 %4251  ;;  %4527 = vst.msk [vmem:[#allocation4 + $0x2e0] sm:$0xff] %vm421_vm1, %v4462_v12  ;;  %v5084_v45 = vmul.f32 %v11764_v62, %v4917_v11  ;;  %v4920_v43 = vld [vmem:[#allocation4 + $0x338] sm:$0xff] }
 0x4c9   : > { %4310 = vst.msk [vmem:[#allocation4 + $0x3f0] sm:$0xff] %vm421_vm1, %v4252_v51  ;;  %v5087_v14 = vmul.f32 %v11785_v21, %v4920_v43 }
 0x4cb   : > { %v4682_v41 = vpop.permute.xlu0 %4681  ;;  %v4908_v4 = vld [vmem:[#allocation4 + $0x2d8] sm:$0xff] }
 0x4cc   : > { %v4476_v52 = vpop.permute.xlu1 %4475  ;;  %4749 = vst.msk [vmem:[#allocation4 + $0x298] sm:$0xff] %vm421_vm1, %v4682_v41  ;;  %v5075_v47 = vmul.f32 %v11766_v8, %v4908_v4  ;;  %v5089_v41 = vmul.f32 %v11764_v62, %v4922_v53  ;;  %v5090_v4 = vmul.f32 %v11766_v8, %v4923_v1  ;;  %v4892_v53 = vld [vmem:[#allocation4 + $0x258] sm:$0xff]  ;;  %v4897_v1 = vld [vmem:[#allocation4 + $0x280] sm:$0xff] }
 0x4cd   : > { %4534 = vst.msk [vmem:[#allocation4 + $0x3f8] sm:$0xff] %vm421_vm1, %v4476_v52 }
 0x4ce   : > { %v5250_v39 = vadd.f32 %v5075_v47, %v5074_v9  ;;  %v4924_v47 = vld [vmem:[#allocation4 + $0x358] sm:$0xff]  ;;  %v5271_v9 = vadd.f32 %v5090_v4, %v5089_v41 }
 0x4cf   : > { %v4022_v38 = vpop.permute.xlu0 %4021  ;;  %v4909_v50 = vld [vmem:[#allocation4 + $0x2e0] sm:$0xff] }
 0x4d0   : > { %v4696_v60 = vpop.permute.xlu1 %4695  ;;  %4083 = vst.msk [vmem:[#allocation4 + $0x370] sm:$0xff] %vm421_vm1, %v4022_v38  ;;  %v5076_v63 = vmul.f32 %v11772_v59, %v4909_v50  ;;  %v4932_v50 = vld [vmem:[#allocation4 + $0x398] sm:$0xff] }
 0x4d1   : > { %4756 = vst.msk [vmem:[#allocation4 + $0x3b0] sm:$0xff] %vm421_vm1, %v4696_v60 }
 0x4d2   : > { %v5251_v23 = vadd.f32 %v5250_v39, %v5076_v63  ;;  %v5091_v63 = vmul.f32 %v11772_v59, %v4924_v47  ;;  %v4896_v47 = vld [vmem:[#allocation4 + $0x278] sm:$0xff] }
 0x4d3   : > { %v4242_v5 = vpop.permute.xlu0 %4241 }
 0x4d4   : > { %v4698_v49 = vpop.permute.xlu1 %4697  ;;  %4305 = vst.msk [vmem:[#allocation4 + $0x328] sm:$0xff] %vm421_vm1, %v4242_v5  ;;  %v5252_v35 = vadd.f32 %v5251_v23, %v5077_v33  ;;  %v5272_v25 = vadd.f32 %v5271_v9, %v5091_v63  ;;  %v4931_v5 = vld [vmem:[#allocation4 + $0x390] sm:$0xff] }
 0x4d5   : > { %4757 = vst.msk [vmem:[#allocation4 + $0x3d8] sm:$0xff] %vm421_vm1, %v4698_v49  ;;  %v5098_v31 = vmul.f32 %v11778_v40, %v4931_v5 }
 0x4d6   : > { %v5254_v36 = vadd.f32 %v5253_v24, %v5252_v35  ;;  %v5099_v35 = vmul.f32 %v11764_v62, %v4932_v50  ;;  %v5064_v50 = vmul.f32 %v11764_v62, %v4897_v1 }
 0x4d7   : > { %v4474_v19 = vpop.permute.xlu0 %4473  ;;  %v4927_v17 = vld [vmem:[#allocation4 + $0x370] sm:$0xff]  ;;  %v5281_v43 = vsel %vm300_vm0, %v5098_v31, 0.0 }
 0x4d8   : > { %v4028_v28 = vpop.permute.xlu1 %4027  ;;  %4533 = vst.msk [vmem:[#allocation4 + $0x3d0] sm:$0xff] %vm421_vm1, %v4474_v19  ;;  %5255 = vadd.xlane.f32.xlu0 %v5254_v36  ;;  %v5094_v49 = vmul.f32 %v11764_v62, %v4927_v17 }
 0x4d9   : > { %4086 = vst.msk [vmem:[#allocation4 + $0x3e8] sm:$0xff] %vm421_vm1, %v4028_v28 }
 0x4db   : > { %v4026_v30 = vpop.permute.xlu0 %4025  ;;  %v4918_v26 = vld [vmem:[#allocation4 + $0x328] sm:$0xff] }
 0x4dc   : > { %v4248_v58 = vpop.permute.xlu1 %4247  ;;  %4085 = vst.msk [vmem:[#allocation4 + $0x3c0] sm:$0xff] %vm421_vm1, %v4026_v30  ;;  %5262 = vadd.xlane.f32.xlu0 %v5261_v44  ;;  %v5085_v6 = vmul.f32 %v11766_v8, %v4918_v26  ;;  %v4936_v26 = vld [vmem:[#allocation4 + $0x3b8] sm:$0xff] }
 0x4dd   : > { %4308 = vst.msk [vmem:[#allocation4 + $0x3a0] sm:$0xff] %vm421_vm1, %v4248_v58  ;;  %v4935_v58 = vld [vmem:[#allocation4 + $0x3b0] sm:$0xff]  ;;  %v4940_v63 = vld [vmem:[#allocation4 + $0x3d8] sm:$0xff] }
 0x4de   : > { %v5264_v32 = vadd.f32 %v5085_v6, %v5084_v45  ;;  %v5102_v45 = vmul.f32 %v11785_v21, %v4935_v58 }
 0x4df   : > { %v4246_v18 = vpop.permute.xlu0 %4245  ;;  %v4939_v17 = vld [vmem:[#allocation4 + $0x3d0] sm:$0xff] }
 0x4e0   : > { %v4472_v29 = vpop.permute.xlu1 %4471  ;;  %4307 = vst.msk [vmem:[#allocation4 + $0x378] sm:$0xff] %vm421_vm1, %v4246_v18  ;;  %v5265_v0 = vadd.f32 %v5264_v32, %v5086_v57  ;;  %v4942_v6 = vld [vmem:[#allocation4 + $0x3e8] sm:$0xff]  ;;  %v4893_v57 = vld [vmem:[#allocation4 + $0x260] sm:$0xff] }
 0x4e1   : > { %4532 = vst.msk [vmem:[#allocation4 + $0x3a8] sm:$0xff] %vm421_vm1, %v4472_v29  ;;  %v5103_v29 = vmul.f32 %v11778_v40, %v4936_v26  ;;  %v4898_v32 = vld [vmem:[#allocation4 + $0x288] sm:$0xff] }
 0x4e2   : > { %v5266_v12 = vadd.f32 %v5265_v0, %v5087_v14  ;;  %v4943_v0 = vld [vmem:[#allocation4 + $0x3f0] sm:$0xff]  ;;  %v5065_v41 = vmul.f32 %v11766_v8, %v4898_v32 }
 0x4e3   : > { %v4470_v52 = vpop.permute.xlu0 %4469  ;;  %v5288_v4 = vsel %vm300_vm0, %v5103_v29, 0.0 }
 0x4e4   : > { %v4692_v51 = vpop.permute.xlu1 %4691  ;;  %4531 = vst.msk [vmem:[#allocation4 + $0x380] sm:$0xff] %vm421_vm1, %v4470_v52  ;;  %v5268_v2 = vadd.f32 %v5267_v61, %v5266_v12  ;;  %v4933_v48 = vld [vmem:[#allocation4 + $0x3a0] sm:$0xff]  ;;  %v5109_v12 = vmul.f32 %v11764_v62, %v4942_v6  ;;  %v5060_v61 = vmul.f32 %v11766_v8, %v4893_v57  ;;  %v5236_v5 = vadd.f32 %v5065_v41, %v5064_v50 }
 0x4e5   : > { %4754 = vst.msk [vmem:[#allocation4 + $0x360] sm:$0xff] %vm421_vm1, %v4692_v51  ;;  %v5100_v39 = vmul.f32 %v11766_v8, %v4933_v48  ;;  %v4894_v51 = vld [vmem:[#allocation4 + $0x268] sm:$0xff]  ;;  %v4937_v52 = vld [vmem:[#allocation4 + $0x3c0] sm:$0xff]  ;;  %v4944_v48 = vld [vmem:[#allocation4 + $0x3f8] sm:$0xff] }
 0x4e6   : > { %5269 = vadd.xlane.f32.xlu0 %v5268_v2  ;;  %v4953_v6 = vld [vmem:[#allocation4 + $0x440] sm:$0xff] }
 0x4e7   : > { %v4254_v60 = vpop.permute.xlu0 %4253  ;;  %v4928_v15 = vld [vmem:[#allocation4 + $0x378] sm:$0xff]  ;;  %v5285_v36 = vadd.f32 %v5100_v39, %v5099_v35  ;;  %v5104_v39 = vmul.f32 %v11764_v62, %v4937_v52  ;;  %v5106_v35 = vmul.f32 %v11772_v59, %v4939_v17  ;;  %v4950_v52 = vld [vmem:[#allocation4 + $0x428] sm:$0xff] }
 0x4e8   : > { %v4694_v54 = vpop.permute.xlu1 %4693  ;;  %4311 = vst.msk [vmem:[#allocation4 + $0x418] sm:$0xff] %vm421_vm1, %v4254_v60  ;;  %v5095_v38 = vmul.f32 %v11766_v8, %v4928_v15  ;;  %v4934_v37 = vld [vmem:[#allocation4 + $0x3a8] sm:$0xff]  ;;  %v5110_v60 = vmul.f32 %v11766_v8, %v4943_v0  ;;  %v5059_v15 = vmul.f32 %v11764_v62, %v4892_v53 }
 0x4e9   : > { %4755 = vst.msk [vmem:[#allocation4 + $0x388] sm:$0xff] %vm421_vm1, %v4694_v54  ;;  %v5101_v16 = vmul.f32 %v11772_v59, %v4934_v37  ;;  %v4941_v54 = vld [vmem:[#allocation4 + $0x3e0] sm:$0xff] }
 0x4ea   : > { %v5278_v22 = vadd.f32 %v5095_v38, %v5094_v49  ;;  %v5061_v38 = vmul.f32 %v11772_v59, %v4894_v51  ;;  %v4900_v49 = vld [vmem:[#allocation4 + $0x298] sm:$0xff] }
 0x4eb   : > { %v4030_v33 = vpop.permute.xlu0 %4029  ;;  %v4929_v55 = vld [vmem:[#allocation4 + $0x380] sm:$0xff]  ;;  %v5286_v13 = vadd.f32 %v5285_v36, %v5101_v16  ;;  %v5067_v58 = vmul.f32 %v11785_v21, %v4900_v49 }
 0x4ec   : > { %v4704_v3 = vpop.permute.xlu1 %4703  ;;  %v4925_v46 = vld [vmem:[#allocation4 + $0x360] sm:$0xff]  ;;  %4087 = vst.msk [vmem:[#allocation4 + $0x410] sm:$0xff] %vm421_vm1, %v4030_v33  ;;  %v5096_v24 = vmul.f32 %v11772_v59, %v4929_v55  ;;  %v5229_v55 = vadd.f32 %v5060_v61, %v5059_v15  ;;  %v5120_v61 = vmul.f32 %v11766_v8, %v4953_v6 }
 0x4ed   : > { %4760 = vst.msk [vmem:[#allocation4 + $0x450] sm:$0xff] %vm421_vm1, %v4704_v3  ;;  %v5092_v23 = vmul.f32 %v11785_v21, %v4925_v46  ;;  %v5287_v14 = vadd.f32 %v5286_v13, %v5102_v45  ;;  %v5299_v46 = vadd.f32 %v5110_v60, %v5109_v12 }
 0x4ee   : > { %v5279_v11 = vadd.f32 %v5278_v22, %v5096_v24  ;;  %v4945_v24 = vld [vmem:[#allocation4 + $0x400] sm:$0xff]  ;;  %v4946_v22 = vld [vmem:[#allocation4 + $0x408] sm:$0xff]  ;;  %v5230_v31 = vadd.f32 %v5229_v55, %v5061_v38 }
 0x4ef   : > { %v5273_v28 = vadd.f32 %v5272_v25, %v5092_v23  ;;  %v4250_v44 = vpop.permute.xlu0 %4249  ;;  %v5289_v10 = vadd.f32 %v5288_v4, %v5287_v14  ;;  %v4948_v37 = vld [vmem:[#allocation4 + $0x418] sm:$0xff]  ;;  %v5108_v23 = vmul.f32 %v11778_v40, %v4941_v54  ;;  %v5063_v25 = vmul.f32 %v11778_v40, %v4896_v47  ;;  %v4951_v14 = vld [vmem:[#allocation4 + $0x430] sm:$0xff]  ;;  %v4954_v47 = vld [vmem:[#allocation4 + $0x448] sm:$0xff] }
 0x4f0   : > { %v4930_v19 = vld [vmem:[#allocation4 + $0x388] sm:$0xff]  ;;  %4309 = vst.msk [vmem:[#allocation4 + $0x3c8] sm:$0xff] %vm421_vm1, %v4250_v44  ;;  %v5115_v36 = vmul.f32 %v11766_v8, %v4948_v37  ;;  %v4949_v44 = vld [vmem:[#allocation4 + $0x420] sm:$0xff]  ;;  %v5112_v29 = vmul.f32 %v11785_v21, %v4945_v24  ;;  %v5113_v57 = vmul.f32 %v11778_v40, %v4946_v22  ;;  %v5118_v60 = vmul.f32 %v11778_v40, %v4951_v14 }
 0x4f1   : > { %v5275_v34 = vadd.f32 %v5274_v7, %v5273_v28  ;;  %v5097_v30 = vmul.f32 %v11785_v21, %v4930_v19  ;;  %v5111_v28 = vmul.f32 %v11772_v59, %v4944_v48  ;;  %v5107_v7 = vmul.f32 %v11785_v21, %v4940_v63  ;;  %v12008_v55 = vld [vmem:[#allocation5] ss:$0 sm:$0xff] }
 0x4f2   : > { %v5116_v0 = vmul.f32 %v11772_v59, %v4949_v44  ;;  %v5232_v51 = vsel %vm300_vm0, %v5063_v25, 0.0  ;;  %v5302_v48 = vsel %vm300_vm0, %v5113_v57, 0.0 }
 0x4f3   : > { %5276 = vadd.xlane.f32.xlu0 %v5275_v34  ;;  %v5280_v56 = vadd.f32 %v5279_v11, %v5097_v30  ;;  %v4680_v18 = vpop.permute.xlu0 %4679  ;;  %v4947_v2 = vld [vmem:[#allocation4 + $0x410] sm:$0xff]  ;;  %v5066_v11 = vmul.f32 %v11772_v59, %v4899_v27  ;;  %v4952_v34 = vld [vmem:[#allocation4 + $0x438] sm:$0xff]  ;;  %v5300_v13 = vadd.f32 %v5299_v46, %v5111_v28 }
 0x4f4   : > { %4748 = vst.msk [vmem:[#allocation4 + $0x270] sm:$0xff] %vm421_vm1, %v4680_v18  ;;  %v5114_v33 = vmul.f32 %v11764_v62, %v4947_v2  ;;  %v5119_v53 = vmul.f32 %v11764_v62, %v4952_v34  ;;  %v5117_v62 = vmul.f32 %v11785_v21, %v4950_v52  ;;  %vm8257_vm1 = vcmask 195712  }
 0x4f5   : > { %v5282_v20 = vadd.f32 %v5281_v43, %v5280_v56  ;;  %v4901_v56 = vld [vmem:[#allocation4 + $0x2a0] sm:$0xff]  ;;  %v5295_v43 = vsel %vm300_vm0, %v5108_v23, 0.0  ;;  %v5237_v32 = vadd.f32 %v5236_v5, %v5066_v11  ;;  %v5301_v4 = vadd.f32 %v5300_v13, %v5112_v29 }
 0x4f6   : > { %v5306_v45 = vadd.f32 %v5115_v36, %v5114_v33  ;;  %v5068_v12 = vmul.f32 %v11778_v40, %v4901_v56  ;;  %v5313_v17 = vadd.f32 %v5120_v61, %v5119_v53 }
 0x4f7   : > { %5283 = vadd.xlane.f32.xlu0 %v5282_v20  ;;  %v4938_v9 = vld [vmem:[#allocation4 + $0x3c8] sm:$0xff]  ;;  %v5238_v1 = vadd.f32 %v5237_v32, %v5067_v58  ;;  %v5303_v38 = vadd.f32 %v5302_v48, %v5301_v4 }
 0x4f8   : > { %v5105_v3 = vmul.f32 %v11766_v8, %v4938_v9  ;;  %v5307_v54 = vadd.f32 %v5306_v45, %v5116_v0  ;;  %v4956_v9 = vld [vmem:[#allocation4 + $0x458] sm:$0xff]  ;;  %v5239_v15 = vsel %vm300_vm0, %v5068_v12, 0.0  ;;  %v5121_v8 = vmul.f32 %v11772_v59, %v4954_v47 }
 0x4f9   : > { %v5240_v50 = vadd.f32 %v5239_v15, %v5238_v1  ;;  %v9162_v59 = vmov 1966171168  }
 0x4fa   : > { %v5292_v16 = vadd.f32 %v5105_v3, %v5104_v39  ;;  %v5308_v37 = vadd.f32 %v5307_v54, %v5117_v62  ;;  %v5309_v39 = vsel %vm300_vm0, %v5118_v60, 0.0  ;;  %v5123_v3 = vmul.f32 %v11778_v40, %v4956_v9 }
 0x4fb   : > { %5290 = vadd.xlane.f32.xlu0 %v5289_v10  ;;  %v4895_v19 = vld [vmem:[#allocation4 + $0x270] sm:$0xff]  ;;  %v5314_v46 = vadd.f32 %v5313_v17, %v5121_v8  ;;  %v5413_v25 = vunpack.c.l.s4 %v9162_v59 }
 0x4fc   : > { %v5293_v30 = vadd.f32 %v5292_v16, %v5106_v35  ;;  %v5062_v26 = vmul.f32 %v11785_v21, %v4895_v19  ;;  %v4955_v10 = vld [vmem:[#allocation4 + $0x450] sm:$0xff]  ;;  %v5310_v27 = vadd.f32 %v5309_v39, %v5308_v37  ;;  %v5316_v33 = vsel %vm300_vm0, %v5123_v3, 0.0 }
 0x4fd   : > { %v5122_v63 = vmul.f32 %v11785_v21, %v4955_v10  ;;  %v5414_v5 = vunpack.c.0.s8 %v5413_v25  ;;  %vm8250_vm0 = vcmask 130112  }
 0x4fe   : > { %v5294_v18 = vadd.f32 %v5293_v30, %v5107_v7  ;;  %v5231_v20 = vadd.f32 %v5230_v31, %v5062_v26 }
 0x4ff   : > { %v5315_v49 = vadd.f32 %v5314_v46, %v5122_v63  ;;  %v12012_v40 = vsub.s32 %v5414_v5, %v10069_v42 }
 0x500   : > { %v5296_v41 = vadd.f32 %v5295_v43, %v5294_v18  ;;  %v5233_v2 = vadd.f32 %v5232_v51, %v5231_v20 }
 0x501   : > { %v5317_v23 = vadd.f32 %v5316_v33, %v5315_v49 }
 0x502   : > { %5297 = vadd.xlane.f32.xlu0 %v5296_v41  ;;  %5234 = vadd.xlane.f32.xlu1 %v5233_v2 }
 0x506   : > { %5304 = vadd.xlane.f32.xlu0 %v5303_v38  ;;  %5241 = vadd.xlane.f32.xlu1 %v5240_v50 }
 0x50a   : > { %5311 = vadd.xlane.f32.xlu0 %v5310_v27 }
 0x50e   : > { %5318 = vadd.xlane.f32.xlu0 %v5317_v23 }
 0x52b   : > { %v5137_v21 = vpop.xlane.xlu1 %5136 }
 0x52c   : > { %v5328_v35 = vadd.f32 %v12008_v55, %v5137_v21 }
 0x52d   : > { %v5130_v22 = vpop.xlane.xlu0 %5129 }
 0x52e   : > { %v5356_v16 = vmax.f32 %v5328_v35, 0.0  ;;  %v5327_v7 = vadd.f32 %v12008_v55, %v5130_v22 }
 0x52f   : > { %v5158_v24 = vpop.xlane.xlu1 %5157 }
 0x530   : > { %v5460_v28 = vcombine.high %v5356_v16, %v5356_v16  ;;  %v5331_v36 = vadd.f32 %v12008_v55, %v5158_v24  ;;  %v5467_v19 = vrot.slane %v5356_v16, %v12012_v40  ;;  %v5355_v58 = vmax.f32 %v5327_v7, 0.0 }
 0x531   : > { %v5144_v43 = vpop.xlane.xlu0 %5143 }
 0x532   : > { %v5359_v31 = vmax.f32 %v5331_v36, 0.0  ;;  %v5474_v11 = vrot.slane %v5460_v28, %v12012_v40  ;;  %v5475_v34 = vcombine.high %v5467_v19, %v5467_v19  ;;  %v5411_v45 = vcombine.high %v5355_v58, %v5355_v58 }
 0x533   : > { %v5172_v44 = vpop.xlane.xlu1 %5171  ;;  %v5483_v29 = vrot.slane %v5467_v19, %v12012_v40  ;;  %v5418_v20 = vrot.slane %v5355_v58, %v12012_v40  ;;  %v5329_v53 = vadd.f32 %v12008_v55, %v5144_v43 }
 0x534   : > { %v5607_v30 = vcombine.high %v5359_v31, %v5359_v31  ;;  %v5476_v26 = vcombine.high %v5474_v11, %v5474_v11  ;;  %v5614_v13 = vrot.slane %v5359_v31, %v12012_v40  ;;  %v5333_v56 = vadd.f32 %v12008_v55, %v5172_v44 }
 0x535   : > { %v5497_v6 = vrot.slane %v5475_v34, %v12012_v40  ;;  %v5425_v0 = vrot.slane %v5411_v45, %v12012_v40  ;;  %v5490_v51 = vrot.slane %v5474_v11, %v12012_v40  ;;  %v5426_v54 = vcombine.high %v5418_v20, %v5418_v20  ;;  %v5151_v46 = vpop.xlane.xlu0 %5150 }
 0x536   : > { %v5621_v57 = vrot.slane %v5607_v30, %v12012_v40  ;;  %v5504_v32 = vrot.slane %v5476_v26, %v12012_v40  ;;  %v5622_v18 = vcombine.high %v5614_v13, %v5614_v13  ;;  %v5361_v14 = vmax.f32 %v5333_v56, 0.0 }
 0x537   : > { %v6832_v12 = vcombine.low %v5483_v29, %v5497_v6  ;;  %v8589_v1 = vcombine.high %v5483_v29, %v5497_v6  ;;  %v5179_v41 = vpop.xlane.xlu1 %5178  ;;  %v5427_v48 = vcombine.high %v5425_v0, %v5425_v0  ;;  %v5357_v10 = vmax.f32 %v5329_v53, 0.0 }
 0x538   : > { %v5623_v52 = vcombine.high %v5621_v57, %v5621_v57  ;;  %v5705_v61 = vcombine.high %v5361_v14, %v5361_v14  ;;  %v6834_v2 = vcombine.low %v5490_v51, %v5504_v32  ;;  %v5644_v4 = vrot.slane %v5622_v18, %v12012_v40 }
 0x539   : > { %v8590_v47 = vcombine.high %v5490_v51, %v5504_v32  ;;  %v5712_v60 = vrot.slane %v5361_v14, %v12012_v40  ;;  %v12031_v62 = vrot.slane %v6832_v12, %v12012_v40  ;;  %v12034_v9 = vrot.slane %v8589_v1, %v12012_v40  ;;  %v5165_v56 = vpop.xlane.xlu0 %5164 }
 0x53a   : > { %v5630_v17 = vrot.slane %v5614_v13, %v12012_v40  ;;  %v5334_v15 = vadd.f32 %v12008_v55, %v5179_v41  ;;  %v5637_v8 = vrot.slane %v5621_v57, %v12012_v40  ;;  %v5651_v38 = vrot.slane %v5623_v52, %v12012_v40 }
 0x53b   : > { %v5719_v50 = vrot.slane %v5705_v61, %v12012_v40  ;;  %v12042_v37 = vrot.slane %v6834_v2, %v12012_v40  ;;  %v5720_v39 = vcombine.high %v5712_v60, %v5712_v60  ;;  %v5509_v3 = vcombine.high %v5357_v10, %v5357_v10  ;;  %v5186_v57 = vpop.xlane.xlu1 %5185 }
 0x53c   : > { %v6979_v63 = vcombine.low %v5630_v17, %v5644_v4  ;;  %v12045_v27 = vrot.slane %v8590_v47, %v12012_v40  ;;  %v8595_v49 = vcombine.high %v5630_v17, %v5644_v4  ;;  %v5448_v33 = vrot.slane %v5426_v54, %v12012_v40 }
 0x53d   : > { %v5455_v23 = vrot.slane %v5427_v48, %v12012_v40  ;;  %v6864_v59 = vcombine.low %v12031_v62, %v12034_v9  ;;  %v5434_v25 = vrot.slane %v5418_v20, %v12012_v40  ;;  %v5516_v5 = vrot.slane %v5357_v10, %v12012_v40 }
 0x53e   : > { %v5362_v21 = vmax.f32 %v5334_v15, 0.0  ;;  %v6981_v35 = vcombine.low %v5637_v8, %v5651_v38  ;;  %v5441_v16 = vrot.slane %v5425_v0, %v12012_v40  ;;  %v5721_v24 = vcombine.high %v5719_v50, %v5719_v50 }
 0x53f   : > { %v5523_v22 = vrot.slane %v5509_v3, %v12012_v40  ;;  %v8596_v28 = vcombine.high %v5637_v8, %v5651_v38  ;;  %v12056_v36 = vrot.slane %v6979_v63, %v12012_v40  ;;  %v5742_v7 = vrot.slane %v5720_v39, %v12012_v40 }
 0x540   : > { %v5330_v19 = vadd.f32 %v12008_v55, %v5151_v46  ;;  %v12061_v31 = vrot.slane %v8595_v49, %v12012_v40  ;;  %v6783_v11 = vcombine.low %v5434_v25, %v5448_v33  ;;  %v8587_v58 = vcombine.high %v5434_v25, %v5448_v33 }
 0x541   : > { %v6785_v44 = vcombine.low %v5441_v16, %v5455_v23  ;;  %v8588_v34 = vcombine.high %v5441_v16, %v5455_v23  ;;  %v5728_v30 = vrot.slane %v5712_v60, %v12012_v40  ;;  %v5524_v26 = vcombine.high %v5516_v5, %v5516_v5 }
 0x542   : > { %v5754_v13 = vcombine.high %v5362_v21, %v5362_v21  ;;  %v12065_v45 = vrot.slane %v6981_v35, %v12012_v40  ;;  %v5749_v6 = vrot.slane %v5721_v24, %v12012_v40  ;;  %v5525_v43 = vcombine.high %v5523_v22, %v5523_v22  ;;  %v5193_v24 = vpop.xlane.xlu1 %5192 }
 0x543   : > { %v5761_v29 = vrot.slane %v5362_v21, %v12012_v40  ;;  %v12070_v32 = vrot.slane %v8596_v28, %v12012_v40  ;;  %v7077_v18 = vcombine.low %v5728_v30, %v5742_v7  ;;  %v8599_v20 = vcombine.high %v5728_v30, %v5742_v7 }
 0x544   : > { %v5358_v14 = vmax.f32 %v5330_v19, 0.0  ;;  %v7011_v0 = vcombine.low %v12056_v36, %v12061_v31  ;;  %v12075_v53 = vrot.slane %v6783_v11, %v12012_v40  ;;  %v5735_v51 = vrot.slane %v5719_v50, %v12012_v40 }
 0x545   : > { %v5332_v12 = vadd.f32 %v12008_v55, %v5165_v56  ;;  %v12080_v1 = vrot.slane %v8587_v58, %v12012_v40  ;;  %v5546_v52 = vrot.slane %v5524_v26, %v12012_v40  ;;  %v5768_v61 = vrot.slane %v5754_v13, %v12012_v40 }
 0x546   : > { %v5335_v41 = vadd.f32 %v12008_v55, %v5186_v57  ;;  %v7079_v2 = vcombine.low %v5735_v51, %v5749_v6  ;;  %v5532_v4 = vrot.slane %v5516_v5, %v12012_v40  ;;  %v5553_v54 = vrot.slane %v5525_v43, %v12012_v40 }
 0x547   : > { %v5769_v47 = vcombine.high %v5761_v29, %v5761_v29  ;;  %v8600_v48 = vcombine.high %v5735_v51, %v5749_v6  ;;  %v12088_v60 = vrot.slane %v7077_v18, %v12012_v40  ;;  %v12091_v10 = vrot.slane %v8599_v20, %v12012_v40 }
 0x548   : > { %v5558_v17 = vcombine.high %v5358_v14, %v5358_v14  ;;  %v12094_v15 = vrot.slane %v6785_v44, %v12012_v40  ;;  %v12097_v8 = vrot.slane %v8588_v34, %v12012_v40  ;;  %v5539_v38 = vrot.slane %v5523_v22, %v12012_v40 }
 0x549   : > { %v5360_v50 = vmax.f32 %v5332_v12, 0.0  ;;  %v6881_v63 = vcombine.low %v5532_v4, %v5546_v52  ;;  %v8591_v39 = vcombine.high %v5532_v4, %v5546_v52  ;;  %v5770_v3 = vcombine.high %v5768_v61, %v5768_v61 }
 0x54a   : > { %v5565_v46 = vrot.slane %v5358_v14, %v12012_v40  ;;  %v6815_v49 = vcombine.low %v12075_v53, %v12080_v1  ;;  %v6883_v33 = vcombine.low %v5539_v38, %v5553_v54  ;;  %v5791_v23 = vrot.slane %v5769_v47, %v12012_v40 }
 0x54b   : > { %v5363_v25 = vmax.f32 %v5335_v41, 0.0  ;;  %v12105_v5 = vrot.slane %v7079_v2, %v12012_v40  ;;  %v12108_v21 = vrot.slane %v8600_v48, %v12012_v40  ;;  %v7109_v35 = vcombine.low %v12088_v60, %v12091_v10  ;;  %v5200_v2 = vpop.xlane.xlu1 %5199 }
 0x54c   : > { %v5572_v16 = vrot.slane %v5558_v17, %v12012_v40  ;;  %v8592_v22 = vcombine.high %v5539_v38, %v5553_v54  ;;  %v5777_v28 = vrot.slane %v5761_v29, %v12012_v40  ;;  %v5656_v7 = vcombine.high %v5360_v50, %v5360_v50 }
 0x54d   : > { %v5663_v19 = vrot.slane %v5360_v50, %v12012_v40  ;;  %v12116_v11 = vrot.slane %v6881_v63, %v12012_v40  ;;  %v12119_v58 = vrot.slane %v8591_v39, %v12012_v40  ;;  %v5798_v44 = vrot.slane %v5770_v3, %v12012_v40 }
 0x54e   : > { %v5573_v34 = vcombine.high %v5565_v46, %v5565_v46  ;;  %v12123_v30 = vrot.slane %v6883_v33, %v12012_v40  ;;  %v5784_v26 = vrot.slane %v5768_v61, %v12012_v40  ;;  %v7126_v13 = vcombine.low %v5777_v28, %v5791_v23 }
 0x54f   : > { %v5803_v56 = vcombine.high %v5363_v25, %v5363_v25  ;;  %v8601_v6 = vcombine.high %v5777_v28, %v5791_v23  ;;  %v5574_v43 = vcombine.high %v5572_v16, %v5572_v16  ;;  %v5810_v29 = vrot.slane %v5363_v25, %v12012_v40 }
 0x550   : > { %v6865_v57 = vcombine.low %v12042_v37, %v12045_v27  ;;  %v12130_v18 = vrot.slane %v8592_v22, %v12012_v40  ;;  %v5670_v20 = vrot.slane %v5656_v7, %v12012_v40  ;;  %v5671_v14 = vcombine.high %v5663_v19, %v5663_v19 }
 0x551   : > { %v5336_v51 = vadd.f32 %v12008_v55, %v5193_v24  ;;  %v6913_v12 = vcombine.low %v12116_v11, %v12119_v58  ;;  %v7128_v52 = vcombine.low %v5784_v26, %v5798_v44  ;;  %v8602_v61 = vcombine.high %v5784_v26, %v5798_v44 }
 0x552   : > { %v5595_v41 = vrot.slane %v5573_v34, %v12012_v40  ;;  %v12138_v4 = vrot.slane %v7126_v13, %v12012_v40  ;;  %v5581_v37 = vrot.slane %v5565_v46, %v12012_v40  ;;  %v5588_v27 = vrot.slane %v5572_v16, %v12012_v40 }
 0x553   : > { %v5817_v54 = vrot.slane %v5803_v56, %v12012_v40  ;;  %v12144_v47 = vrot.slane %v8601_v6, %v12012_v40  ;;  %v5602_v48 = vrot.slane %v5574_v43, %v12012_v40  ;;  %v5818_v17 = vcombine.high %v5810_v29, %v5810_v29 }
 0x554   : > { %v6879_v38 = vrot.slane %v6865_v57, %v12012_v40  ;;  %v5672_v50 = vcombine.high %v5670_v20, %v5670_v20  ;;  %v5693_v63 = vrot.slane %v5671_v14, %v12012_v40  ;;  %v5364_v39 = vmax.f32 %v5336_v51, 0.0 }
 0x555   : > { %v6872_v3 = vrot.slane %v6864_v59, %v12012_v40  ;;  %v12154_v46 = vrot.slane %v7128_v52, %v12012_v40  ;;  %v12157_v33 = vrot.slane %v8602_v61, %v12012_v40  ;;  %v6930_v23 = vcombine.low %v5581_v37, %v5595_v41  ;;  %v5207_v59 = vpop.xlane.xlu1 %5206 }
 0x556   : > { %v6816_v25 = vcombine.low %v12094_v15, %v12097_v8  ;;  %v5679_v16 = vrot.slane %v5663_v19, %v12012_v40  ;;  %v5819_v24 = vcombine.high %v5817_v54, %v5817_v54  ;;  %v5337_v28 = vadd.f32 %v12008_v55, %v5200_v2 }
 0x557   : > { %v6880_v22 = vcombine.low %v6872_v3, %v6879_v38  ;;  %v8593_v7 = vcombine.high %v5581_v37, %v5595_v41  ;;  %v6932_v44 = vcombine.low %v5588_v27, %v5602_v48  ;;  %v8594_v62 = vcombine.high %v5588_v27, %v5602_v48 }
 0x558   : > { %v5840_v9 = vrot.slane %v5818_v17, %v12012_v40  ;;  %v5700_v34 = vrot.slane %v5672_v50, %v12012_v40  ;;  %v7028_v26 = vcombine.low %v5679_v16, %v5693_v63  ;;  %v5852_v13 = vcombine.high %v5364_v39, %v5364_v39 }
 0x559   : > { %v5859_v56 = vrot.slane %v5364_v39, %v12012_v40  ;;  %8159 = vperm.xlu0 %9077, %v6880_v22   ;;  %v8597_v15 = vcombine.high %v5679_v16, %v5693_v63  ;;  %v5826_v8 = vrot.slane %v5810_v29, %v12012_v40  ;;  %v6823_v19 = vrot.slane %v6815_v49, %v12012_v40 }
 0x55a   : > { %v6830_v6 = vrot.slane %v6816_v25, %v12012_v40  ;;  %v5686_v43 = vrot.slane %v5670_v20, %v12012_v40  ;;  %v5847_v57 = vrot.slane %v5819_v24, %v12012_v40  ;;  %v5365_v14 = vmax.f32 %v5337_v28, 0.0 }
 0x55b   : > { %v5338_v51 = vadd.f32 %v12008_v55, %v5207_v59  ;;  %v12176_v52 = vrot.slane %v6930_v23, %v12012_v40  ;;  %v7175_v61 = vcombine.low %v5826_v8, %v5840_v9  ;;  %v8603_v41 = vcombine.high %v5826_v8, %v5840_v9 }
 0x55c   : > { %v6831_v29 = vcombine.low %v6823_v19, %v6830_v6  ;;  %v6947_v2 = vrot.slane %v8593_v7, %v12012_v40  ;;  %v5833_v53 = vrot.slane %v5817_v54, %v12012_v40  ;;  %v5866_v1 = vrot.slane %v5852_v13, %v12012_v40 }
 0x55d   : > { %v5867_v49 = vcombine.high %v5859_v56, %v5859_v56  ;;  %v7030_v37 = vcombine.low %v5686_v43, %v5700_v34  ;;  %v8598_v20 = vcombine.high %v5686_v43, %v5700_v34  ;;  %v12182_v27 = vrot.slane %v7028_v26, %v12012_v40  ;;  %v5214_v34 = vpop.xlane.xlu1 %5213 }
 0x55e   : > { %v12185_v48 = vrot.slane %v8597_v15, %v12012_v40  ;;  %8156 = vperm.xlu1 %9076, %v6831_v29   ;;  %v7158_v17 = vcombine.low %v12138_v4, %v12144_v47  ;;  %v7177_v38 = vcombine.low %v5833_v53, %v5847_v57  ;;  %v5901_v50 = vcombine.high %v5365_v14, %v5365_v14 }
 0x55f   : > { %v5366_v63 = vmax.f32 %v5338_v51, 0.0  ;;  %v6954_v54 = vrot.slane %v6932_v44, %v12012_v40  ;;  %v8604_v39 = vcombine.high %v5833_v53, %v5847_v57  ;;  %v7185_v3 = vrot.slane %v7175_v61, %v12012_v40 }
 0x560   : > { %v7192_v23 = vrot.slane %v8603_v41, %v12012_v40  ;;  %v6961_v25 = vrot.slane %v8594_v62, %v12012_v40  ;;  %v5868_v16 = vcombine.high %v5866_v1, %v5866_v1  ;;  %v5889_v24 = vrot.slane %v5867_v49, %v12012_v40 }
 0x561   : > { %v5908_v22 = vrot.slane %v5365_v14, %v12012_v40  ;;  %v6962_v28 = vcombine.low %v12176_v52, %v6947_v2  ;;  %v12197_v4 = vrot.slane %v7030_v37, %v12012_v40  ;;  %v12200_v47 = vrot.slane %v8598_v20, %v12012_v40  ;;  %v5221_v58 = vpop.xlane.xlu1 %5220 }
 0x562   : > { %v7060_v7 = vcombine.low %v12182_v27, %v12185_v48  ;;  %v7199_v44 = vrot.slane %v7177_v38, %v12012_v40  ;;  %v5875_v62 = vrot.slane %v5859_v56, %v12012_v40  ;;  %v5915_v9 = vrot.slane %v5901_v50, %v12012_v40 }
 0x563   : > { %v5950_v59 = vcombine.high %v5366_v63, %v5366_v63  ;;  %v7206_v26 = vrot.slane %v8604_v39, %v12012_v40  ;;  %v7207_v13 = vcombine.low %v7185_v3, %v7192_v23  ;;  %v12209_v15 = vrot.slane %v5866_v1, %v12012_v40 }
 0x564   : > { %v6914_v8 = vcombine.low %v12123_v30, %v12130_v18  ;;  %v12214_v19 = vrot.slane %v5868_v16, %v12012_v40  ;;  %v7224_v6 = vcombine.low %v5875_v62, %v5889_v24  ;;  %v5916_v43 = vcombine.high %v5908_v22, %v5908_v22 }
 0x565   : > { %v12217_v56 = vrot.slane %v5908_v22, %v12012_v40  ;;  %v6921_v57 = vrot.slane %v6913_v12, %v12012_v40  ;;  %v5339_v51 = vadd.f32 %v12008_v55, %v5214_v34  ;;  %v7159_v30 = vcombine.low %v12154_v46, %v12157_v33 }
 0x566   : > { %v6928_v14 = vrot.slane %v6914_v8, %v12012_v40  ;;  %v5917_v18 = vcombine.high %v5915_v9, %v5915_v9  ;;  %v5957_v52 = vrot.slane %v5366_v63, %v12012_v40  ;;  %v5964_v61 = vrot.slane %v5950_v59, %v12012_v40 }
 0x567   : > { %v7166_v41 = vrot.slane %v7158_v17, %v12012_v40  ;;  %v5367_v2 = vmax.f32 %v5339_v51, 0.0  ;;  %v7173_v53 = vrot.slane %v7159_v30, %v12012_v40  ;;  %v6963_v11 = vcombine.low %v6954_v54, %v6961_v25 }
 0x568   : > { %v6929_v29 = vcombine.low %v6921_v57, %v6928_v14  ;;  %v8605_v12 = vcombine.high %v5875_v62, %v5889_v24  ;;  %v7226_v1 = vcombine.low %v12209_v15, %v12214_v19  ;;  %v5931_v49 = vrot.slane %v5915_v9, %v12012_v40 }
 0x569   : > { %v5938_v46 = vrot.slane %v5916_v43, %v12012_v40  ;;  %v5999_v33 = vcombine.high %v5367_v2, %v5367_v2  ;;  %v7174_v37 = vcombine.low %v7166_v41, %v7173_v53  ;;  %v6970_v20 = vrot.slane %v6962_v28, %v12012_v40 }
 0x56a   : > { %8162 = vperm.xlu1 %9076, %v6929_v29   ;;  %v6977_v17 = vrot.slane %v6963_v11, %v12012_v40  ;;  %v5965_v38 = vcombine.high %v5957_v52, %v5957_v52  ;;  %v5340_v50 = vadd.f32 %v12008_v55, %v5221_v58  ;;  %v7012_v63 = vcombine.low %v12065_v45, %v12070_v32 }
 0x56b   : > { %v7208_v54 = vcombine.low %v7199_v44, %v7206_v26  ;;  %v5945_v39 = vrot.slane %v5917_v18, %v12012_v40  ;;  %v5966_v3 = vcombine.high %v5964_v61, %v5964_v61  ;;  %v6006_v23 = vrot.slane %v5367_v2, %v12012_v40  ;;  %8177 = vperm.xlu0 %9077, %v7174_v37  }
 0x56c   : > { %v6978_v25 = vcombine.low %v6970_v20, %v6977_v17  ;;  %v5368_v16 = vmax.f32 %v5340_v50, 0.0  ;;  %v7026_v24 = vrot.slane %v7012_v63, %v12012_v40  ;;  %v7215_v22 = vrot.slane %v7207_v13, %v12012_v40  ;;  %v5228_v13 = vpop.xlane.xlu1 %5227 }
 0x56d   : > { %v7222_v28 = vrot.slane %v7208_v54, %v12012_v40  ;;  %v8606_v62 = vcombine.high %v12209_v15, %v12214_v19  ;;  %v12248_v45 = vrot.slane %v7224_v6, %v12012_v40  ;;  %v6013_v32 = vrot.slane %v5999_v33, %v12012_v40 }
 0x56e   : > { %8165 = vperm.xlu1 %9076, %v6978_v25   ;;  %v7019_v44 = vrot.slane %v7011_v0, %v12012_v40  ;;  %v12256_v9 = vrot.slane %v8605_v12, %v12012_v40  ;;  %v5987_v59 = vrot.slane %v5965_v38, %v12012_v40  ;;  %v6048_v34 = vcombine.high %v5368_v16, %v5368_v16 }
 0x56f   : > { %v7223_v26 = vcombine.low %v7215_v22, %v7222_v28  ;;  %v7273_v15 = vcombine.low %v12217_v56, %v5938_v46  ;;  %v8607_v8 = vcombine.high %v12217_v56, %v5938_v46  ;;  %v6014_v19 = vcombine.high %v6006_v23, %v6006_v23 }
 0x570   : > { %v7027_v6 = vcombine.low %v7019_v44, %v7026_v24  ;;  %v7275_v43 = vcombine.low %v5931_v49, %v5945_v39  ;;  %v5973_v57 = vrot.slane %v5957_v52, %v12012_v40  ;;  %v5994_v36 = vrot.slane %v5966_v3, %v12012_v40 }
 0x571   : > { %v6062_v31 = vrot.slane %v6048_v34, %v12012_v40  ;;  %8180 = vperm.xlu0 %9077, %v7223_v26   ;;  %v7248_v0 = vrot.slane %v7226_v1, %v12012_v40  ;;  %v8608_v14 = vcombine.high %v5931_v49, %v5945_v39  ;;  %v6015_v51 = vcombine.high %v6013_v32, %v6013_v32 }
 0x572   : > { %8168 = vperm.xlu1 %9076, %v7027_v6   ;;  %v5341_v30 = vadd.f32 %v12008_v55, %v5228_v13  ;;  %v7255_v18 = vrot.slane %v8606_v62, %v12012_v40  ;;  %v5980_v56 = vrot.slane %v5964_v61, %v12012_v40  ;;  %v7322_v41 = vcombine.low %v5973_v57, %v5987_v59 }
 0x573   : > { %v6055_v29 = vrot.slane %v5368_v16, %v12012_v40  ;;  %v7256_v52 = vcombine.low %v12248_v45, %v12256_v9  ;;  %v7283_v2 = vrot.slane %v7273_v15, %v12012_v40  ;;  %v8609_v53 = vcombine.high %v5973_v57, %v5987_v59 }
 0x574   : > { %v6036_v11 = vrot.slane %v6014_v19, %v12012_v40  ;;  %v7290_v58 = vrot.slane %v8607_v8, %v12012_v40  ;;  %v7297_v12 = vrot.slane %v7275_v43, %v12012_v40  ;;  %v7324_v1 = vcombine.low %v5980_v56, %v5994_v36 }
 0x575   : > { %v6064_v49 = vcombine.high %v6062_v31, %v6062_v31  ;;  %v7304_v46 = vrot.slane %v8608_v14, %v12012_v40  ;;  %v6022_v61 = vrot.slane %v6006_v23, %v12012_v40  ;;  %v6043_v33 = vrot.slane %v6015_v51, %v12012_v40 }
 0x576   : > { %v5369_v37 = vmax.f32 %v5341_v30, 0.0  ;;  %v8610_v20 = vcombine.high %v5980_v56, %v5994_v36  ;;  %v12279_v17 = vrot.slane %v7322_v41, %v12012_v40  ;;  %v6063_v38 = vcombine.high %v6055_v29, %v6055_v29 }
 0x577   : > { %v7061_v50 = vcombine.low %v12197_v4, %v12200_v47  ;;  %v12284_v63 = vrot.slane %v8609_v53, %v12012_v40  ;;  %v6029_v54 = vrot.slane %v6013_v32, %v12012_v40  ;;  %v7371_v39 = vcombine.low %v6022_v61, %v6036_v11 }
 0x578   : > { %v6097_v3 = vcombine.high %v5369_v37, %v5369_v37  ;;  %v7305_v25 = vcombine.low %v7283_v2, %v7290_v58  ;;  %v7346_v23 = vrot.slane %v7324_v1, %v12012_v40  ;;  %v6092_v16 = vrot.slane %v6064_v49, %v12012_v40  ;;  %v5249_v1 = vpop.xlane.xlu0 %5248 }
 0x579   : > { %v6104_v24 = vrot.slane %v5369_v37, %v12012_v40  ;;  %v8611_v22 = vcombine.high %v6022_v61, %v6036_v11  ;;  %v7373_v28 = vcombine.low %v6029_v54, %v6043_v33  ;;  %v8612_v62 = vcombine.high %v6029_v54, %v6043_v33 }
 0x57a   : > { %v6111_v45 = vrot.slane %v6097_v3, %v12012_v40  ;;  %v6078_v4 = vrot.slane %v6062_v31, %v12012_v40  ;;  %v6085_v47 = vrot.slane %v6063_v38, %v12012_v40  ;;  %v7068_v32 = vrot.slane %v7060_v7, %v12012_v40 }
 0x57b   : > { %v7075_v44 = vrot.slane %v7061_v50, %v12012_v40  ;;  %v7353_v9 = vrot.slane %v8610_v20, %v12012_v40  ;;  %v7354_v59 = vcombine.low %v12279_v17, %v12284_v63  ;;  %v7381_v34 = vrot.slane %v7371_v39, %v12012_v40 }
 0x57c   : > { %v6071_v26 = vrot.slane %v6055_v29, %v12012_v40  ;;  %v7422_v13 = vcombine.low %v6078_v4, %v6092_v16  ;;  %v6112_v15 = vcombine.high %v6104_v24, %v6104_v24  ;;  %v6113_v8 = vcombine.high %v6111_v45, %v6111_v45  ;;  %v5256_v3 = vpop.xlane.xlu0 %5255 }
 0x57d   : > { %v7076_v19 = vcombine.low %v7068_v32, %v7075_v44  ;;  %v7388_v6 = vrot.slane %v8611_v22, %v12012_v40  ;;  %v7395_v27 = vrot.slane %v7373_v28, %v12012_v40  ;;  %v7402_v48 = vrot.slane %v8612_v62, %v12012_v40 }
 0x57e   : > { %v7257_v7 = vcombine.low %v7248_v0, %v7255_v18  ;;  %v7420_v43 = vcombine.low %v6071_v26, %v6085_v47  ;;  %v8613_v57 = vcombine.high %v6071_v26, %v6085_v47  ;;  %v8614_v36 = vcombine.high %v6078_v4, %v6092_v16 }
 0x57f   : > { %v6141_v31 = vrot.slane %v6113_v8, %v12012_v40  ;;  %8171 = vperm.xlu1 %9076, %v7076_v19   ;;  %v7264_v14 = vrot.slane %v7256_v52, %v12012_v40  ;;  %v7110_v30 = vcombine.low %v12105_v5, %v12108_v21  ;;  %v7306_v56 = vcombine.low %v7297_v12, %v7304_v46 }
 0x580   : > { %v7271_v51 = vrot.slane %v7257_v7, %v12012_v40  ;;  %v7444_v41 = vrot.slane %v7422_v13, %v12012_v40  ;;  %v6127_v29 = vrot.slane %v6111_v45, %v12012_v40  ;;  %v6134_v0 = vrot.slane %v6112_v15, %v12012_v40 }
 0x581   : > { %v7117_v18 = vrot.slane %v7109_v35, %v12012_v40  ;;  %v7124_v52 = vrot.slane %v7110_v30, %v12012_v40  ;;  %v7313_v53 = vrot.slane %v7305_v25, %v12012_v40  ;;  %v7320_v11 = vrot.slane %v7306_v56, %v12012_v40 }
 0x582   : > { %v7272_v2 = vcombine.low %v7264_v14, %v7271_v51  ;;  %v7451_v5 = vrot.slane %v8614_v36, %v12012_v40  ;;  %v6120_v21 = vrot.slane %v6104_v24, %v12012_v40  ;;  %v7471_v58 = vcombine.low %v6127_v29, %v6141_v31 }
 0x583   : > { %v7355_v12 = vcombine.low %v7346_v23, %v7353_v9  ;;  %v8616_v49 = vcombine.high %v6127_v29, %v6141_v31  ;;  %v7125_v46 = vcombine.low %v7117_v18, %v7124_v52  ;;  %v7321_v61 = vcombine.low %v7313_v53, %v7320_v11 }
 0x584   : > { %8183 = vperm.xlu0 %9077, %v7272_v2   ;;  %v7404_v60 = vcombine.low %v7395_v27, %v7402_v48  ;;  %v7403_v10 = vcombine.low %v7381_v34, %v7388_v6  ;;  %v7430_v35 = vrot.slane %v7420_v43, %v12012_v40  ;;  %v7437_v37 = vrot.slane %v8613_v57, %v12012_v40 }
 0x585   : > { %v7369_v33 = vrot.slane %v7355_v12, %v12012_v40  ;;  %v7469_v20 = vcombine.low %v6120_v21, %v6134_v0  ;;  %v8615_v17 = vcombine.high %v6120_v21, %v6134_v0  ;;  %8174 = vperm.xlu1 %9076, %v7125_v46   ;;  %v7362_v38 = vrot.slane %v7354_v59, %v12012_v40  ;;  %v5263_v59 = vpop.xlane.xlu0 %5262 }
 0x586   : > { %v7493_v50 = vrot.slane %v7471_v58, %v12012_v40  ;;  %v7500_v63 = vrot.slane %v8616_v49, %v12012_v40  ;;  %v7418_v39 = vrot.slane %v7404_v60, %v12012_v40  ;;  %v7453_v25 = vcombine.low %v7444_v41, %v7451_v5 }
 0x587   : > { %v7370_v54 = vcombine.low %v7362_v38, %v7369_v33  ;;  %v5344_v23 = vadd.f32 %v12008_v55, %v5249_v1  ;;  %v7452_v16 = vcombine.low %v7430_v35, %v7437_v37  ;;  %v7479_v24 = vrot.slane %v7469_v20, %v12012_v40 }
 0x588   : > { %8186 = vperm.xlu0 %9077, %v7321_v61   ;;  %v7486_v22 = vrot.slane %v8615_v17, %v12012_v40  ;;  %v7411_v28 = vrot.slane %v7403_v10, %v12012_v40  ;;  %v7467_v45 = vrot.slane %v7453_v25, %v12012_v40  ;;  %v7502_v4 = vcombine.low %v7493_v50, %v7500_v63 }
 0x589   : > { %v5372_v47 = vmax.f32 %v5344_v23, 0.0  ;;  %v5345_v44 = vadd.f32 %v12008_v55, %v5256_v3  ;;  %v7460_v9 = vrot.slane %v7452_v16, %v12012_v40  ;;  %v5346_v13 = vadd.f32 %v12008_v55, %v5263_v59  ;;  %v5270_v7 = vpop.xlane.xlu0 %5269 }
 0x58a   : > { %v7419_v62 = vcombine.low %v7411_v28, %v7418_v39  ;;  %v7501_v32 = vcombine.low %v7479_v24, %v7486_v22  ;;  %v7516_v26 = vrot.slane %v7502_v4, %v12012_v40  ;;  %v5347_v31 = vadd.f32 %v12008_v55, %v5270_v7 }
 0x58b   : > { %v7468_v34 = vcombine.low %v7460_v9, %v7467_v45  ;;  %v6244_v15 = vcombine.high %v5372_v47, %v5372_v47  ;;  %v5373_v8 = vmax.f32 %v5345_v44, 0.0  ;;  %v6251_v27 = vrot.slane %v5372_v47, %v12012_v40 }
 0x58c   : > { %8189 = vperm.xlu0 %9077, %v7370_v54   ;;  %v7509_v19 = vrot.slane %v7501_v32, %v12012_v40  ;;  %v5374_v48 = vmax.f32 %v5346_v13, 0.0  ;;  %v5375_v0 = vmax.f32 %v5347_v31, 0.0 }
 0x58d   : > { %v6258_v43 = vrot.slane %v6244_v15, %v12012_v40  ;;  %v6293_v57 = vcombine.high %v5373_v8, %v5373_v8  ;;  %v6300_v36 = vrot.slane %v5373_v8, %v12012_v40  ;;  %v6259_v14 = vcombine.high %v6251_v27, %v6251_v27  ;;  %v5277_v18 = vpop.xlane.xlu0 %5276 }
 0x58e   : > { %v7517_v6 = vcombine.low %v7509_v19, %v7516_v26  ;;  %v6342_v51 = vcombine.high %v5374_v48, %v5374_v48  ;;  %v6349_v30 = vrot.slane %v5374_v48, %v12012_v40  ;;  %v6267_v21 = vrot.slane %v6251_v27, %v12012_v40 }
 0x58f   : > { %v6260_v56 = vcombine.high %v6258_v43, %v6258_v43  ;;  %v6307_v41 = vrot.slane %v6293_v57, %v12012_v40  ;;  %v6308_v29 = vcombine.high %v6300_v36, %v6300_v36  ;;  %v6281_v2 = vrot.slane %v6259_v14, %v12012_v40  ;;  %v5235_v10 = vpop.xlane.xlu1 %5234 }
 0x590   : > { %8192 = vperm.xlu0 %9077, %v7419_v62   ;;  %v6356_v52 = vrot.slane %v6342_v51, %v12012_v40  ;;  %v6357_v53 = vcombine.high %v6349_v30, %v6349_v30  ;;  %v6274_v12 = vrot.slane %v6258_v43, %v12012_v40  ;;  %v6391_v1 = vcombine.high %v5375_v0, %v5375_v0 }
 0x591   : > { %v6288_v11 = vrot.slane %v6260_v56, %v12012_v40  ;;  %v6309_v5 = vcombine.high %v6307_v41, %v6307_v41  ;;  %v6330_v58 = vrot.slane %v6308_v29, %v12012_v40  ;;  %v7616_v49 = vcombine.low %v6267_v21, %v6281_v2  ;;  %v5284_v17 = vpop.xlane.xlu0 %5283 }
 0x592   : > { %v6316_v46 = vrot.slane %v6300_v36, %v12012_v40  ;;  %v6358_v61 = vcombine.high %v6356_v52, %v6356_v52  ;;  %v6379_v60 = vrot.slane %v6357_v53, %v12012_v40  ;;  %v8621_v35 = vcombine.high %v6267_v21, %v6281_v2 }
 0x593   : > { %v7618_v33 = vcombine.low %v6274_v12, %v6288_v11  ;;  %v8622_v37 = vcombine.high %v6274_v12, %v6288_v11  ;;  %v6337_v20 = vrot.slane %v6309_v5, %v12012_v40  ;;  %v6365_v63 = vrot.slane %v6349_v30, %v12012_v40  ;;  %v5242_v19 = vpop.xlane.xlu1 %5241 }
 0x594   : > { %8195 = vperm.xlu0 %9077, %v7468_v34   ;;  %v7665_v38 = vcombine.low %v6316_v46, %v6330_v58  ;;  %v8623_v50 = vcombine.high %v6316_v46, %v6330_v58  ;;  %v6398_v54 = vrot.slane %v5375_v0, %v12012_v40  ;;  %v6323_v39 = vrot.slane %v6307_v41, %v12012_v40 }
 0x595   : > { %v6405_v3 = vrot.slane %v6391_v1, %v12012_v40  ;;  %v5348_v25 = vadd.f32 %v12008_v55, %v5277_v18  ;;  %v5342_v23 = vadd.f32 %v12008_v55, %v5235_v10  ;;  %v12362_v16 = vrot.slane %v7616_v49, %v12012_v40  ;;  %v5291_v15 = vpop.xlane.xlu0 %5290 }
 0x596   : > { %v6386_v24 = vrot.slane %v6358_v61, %v12012_v40  ;;  %v7714_v22 = vcombine.low %v6365_v63, %v6379_v60  ;;  %v8625_v28 = vcombine.high %v6365_v63, %v6379_v60  ;;  %v12366_v62 = vrot.slane %v8621_v35, %v12012_v40 }
 0x597   : > { %v12369_v45 = vrot.slane %v7618_v33, %v12012_v40  ;;  %v7667_v4 = vcombine.low %v6323_v39, %v6337_v20  ;;  %v6372_v47 = vrot.slane %v6356_v52, %v12012_v40  ;;  %v8624_v32 = vcombine.high %v6323_v39, %v6337_v20 }
 0x598   : > { %8198 = vperm.xlu0 %9077, %v7517_v6   ;;  %v12373_v44 = vrot.slane %v7665_v38, %v12012_v40  ;;  %v12376_v9 = vrot.slane %v8623_v50, %v12012_v40  ;;  %v6406_v59 = vcombine.high %v6398_v54, %v6398_v54  ;;  %v12379_v34 = vrot.slane %v8622_v37, %v12012_v40 }
 0x599   : > { %v6407_v26 = vcombine.high %v6405_v3, %v6405_v3  ;;  %v5376_v13 = vmax.f32 %v5348_v25, 0.0  ;;  %v5370_v8 = vmax.f32 %v5342_v23, 0.0  ;;  %v7716_v6 = vcombine.low %v6372_v47, %v6386_v24  ;;  %v5298_v0 = vpop.xlane.xlu0 %5297 }
 0x59a   : > { %v8626_v27 = vcombine.high %v6372_v47, %v6386_v24  ;;  %v12382_v48 = vrot.slane %v7714_v22, %v12012_v40  ;;  %v12385_v7 = vrot.slane %v8625_v28, %v12012_v40  ;;  %v7648_v43 = vcombine.low %v12362_v16, %v12366_v62 }
 0x59b   : > { %v12390_v57 = vrot.slane %v7667_v4, %v12012_v40  ;;  %v6146_v36 = vcombine.high %v5370_v8, %v5370_v8  ;;  %v6153_v31 = vrot.slane %v5370_v8, %v12012_v40  ;;  %v12394_v14 = vrot.slane %v8624_v32, %v12012_v40 }
 0x59c   : > { %v7697_v51 = vcombine.low %v12373_v44, %v12376_v9  ;;  %v6428_v30 = vrot.slane %v6406_v59, %v12012_v40  ;;  %v5343_v56 = vadd.f32 %v12008_v55, %v5242_v19  ;;  %v6435_v41 = vrot.slane %v6407_v26, %v12012_v40 }
 0x59d   : > { %v6440_v29 = vcombine.high %v5376_v13, %v5376_v13  ;;  %v6160_v18 = vrot.slane %v6146_v36, %v12012_v40  ;;  %v6161_v2 = vcombine.high %v6153_v31, %v6153_v31  ;;  %v12403_v52 = vrot.slane %v7716_v6, %v12012_v40 }
 0x59e   : > { %v12406_v53 = vrot.slane %v8626_v27, %v12012_v40  ;;  %v7746_v11 = vcombine.low %v12382_v48, %v12385_v7  ;;  %v6414_v5 = vrot.slane %v6398_v54, %v12012_v40  ;;  %v6421_v21 = vrot.slane %v6405_v3, %v12012_v40 }
 0x59f   : > { %v6447_v58 = vrot.slane %v5376_v13, %v12012_v40  ;;  %v5349_v12 = vadd.f32 %v12008_v55, %v5284_v17  ;;  %v6162_v1 = vcombine.high %v6160_v18, %v6160_v18  ;;  %v5350_v49 = vadd.f32 %v12008_v55, %v5291_v15 }
 0x5a0   : > { %v12416_v46 = vadd.f32 %v12008_v55, %v5298_v0  ;;  %v6183_v61 = vrot.slane %v6161_v2, %v12012_v40  ;;  %v5371_v60 = vmax.f32 %v5343_v56, 0.0  ;;  %v7763_v10 = vcombine.low %v6414_v5, %v6428_v30 }
 0x5a1   : > { %v8627_v35 = vcombine.high %v6414_v5, %v6428_v30  ;;  %v7765_v33 = vcombine.low %v6421_v21, %v6435_v41  ;;  %v6454_v37 = vrot.slane %v6440_v29, %v12012_v40  ;;  %v6169_v20 = vrot.slane %v6153_v31, %v12012_v40 }
 0x5a2   : > { %v6190_v38 = vrot.slane %v6162_v1, %v12012_v40  ;;  %v6195_v50 = vcombine.high %v5371_v60, %v5371_v60  ;;  %v6202_v17 = vrot.slane %v5371_v60, %v12012_v40  ;;  %v8628_v63 = vcombine.high %v6421_v21, %v6435_v41 }
 0x5a3   : > { %v6455_v54 = vcombine.high %v6447_v58, %v6447_v58  ;;  %v6463_v55 = vrot.slane %v6447_v58, %v12012_v40  ;;  %v5377_v39 = vmax.f32 %v5349_v12, 0.0  ;;  %v6176_v3 = vrot.slane %v6160_v18, %v12012_v40  ;;  %v5305_v58 = vpop.xlane.xlu0 %5304 }
 0x5a4   : > { %v7518_v25 = vcombine.low %v6169_v20, %v6183_v61  ;;  %v8617_v23 = vcombine.high %v6169_v20, %v6183_v61  ;;  %v6209_v24 = vrot.slane %v6195_v50, %v12012_v40  ;;  %v12427_v22 = vrot.slane %v7763_v10, %v12012_v40 }
 0x5a5   : > { %v12430_v28 = vrot.slane %v8627_v35, %v12012_v40  ;;  %v12433_v4 = vrot.slane %v7765_v33, %v12012_v40  ;;  %v6210_v47 = vcombine.high %v6202_v17, %v6202_v17  ;;  %v6456_v32 = vcombine.high %v6454_v37, %v6454_v37 }
 0x5a6   : > { %v7520_v59 = vcombine.low %v6176_v3, %v6190_v38  ;;  %v8618_v26 = vcombine.high %v6176_v3, %v6190_v38  ;;  %v6211_v13 = vcombine.high %v6209_v24, %v6209_v24  ;;  %v12436_v15 = vrot.slane %v8628_v63, %v12012_v40 }
 0x5a7   : > { %v6489_v8 = vcombine.high %v5377_v39, %v5377_v39  ;;  %v6218_v19 = vrot.slane %v6202_v17, %v12012_v40  ;;  %v6232_v6 = vrot.slane %v6210_v47, %v12012_v40  ;;  %v6477_v27 = vrot.slane %v6455_v54, %v12012_v40  ;;  %v9150_v47 = vld [vmem:[#allocation5] ss:$0 sm:$0xff] }
 0x5a8   : > { %v6496_v36 = vrot.slane %v5377_v39, %v12012_v40  ;;  %v7528_v31 = vrot.slane %v7518_v25, %v12012_v40  ;;  %v7535_v30 = vrot.slane %v8617_v23, %v12012_v40  ;;  %v6225_v56 = vrot.slane %v6209_v24, %v12012_v40 }
 0x5a9   : > { %v6239_v41 = vrot.slane %v6211_v13, %v12012_v40  ;;  %v7567_v29 = vcombine.low %v6218_v19, %v6232_v6  ;;  %v8619_v0 = vcombine.high %v6218_v19, %v6232_v6  ;;  %v6484_v18 = vrot.slane %v6456_v32, %v12012_v40 }
 0x5aa   : > { %v5378_v2 = vmax.f32 %v5350_v49, 0.0  ;;  %v7542_v5 = vrot.slane %v7520_v59, %v12012_v40  ;;  %v7549_v21 = vrot.slane %v8618_v26, %v12012_v40  ;;  %v6470_v12 = vrot.slane %v6454_v37, %v12012_v40  ;;  %v5312_v26 = vpop.xlane.xlu0 %5311 }
 0x5ab   : > { %v6503_v1 = vrot.slane %v6489_v8, %v12012_v40  ;;  %v7569_v61 = vcombine.low %v6225_v56, %v6239_v41  ;;  %v8620_v60 = vcombine.high %v6225_v56, %v6239_v41  ;;  %v7812_v10 = vcombine.low %v6463_v55, %v6477_v27 }
 0x5ac   : > { %v8629_v35 = vcombine.high %v6463_v55, %v6477_v27  ;;  %v7577_v33 = vrot.slane %v7567_v29, %v12012_v40  ;;  %v7584_v20 = vrot.slane %v8619_v0, %v12012_v40  ;;  %v6504_v38 = vcombine.high %v6496_v36, %v6496_v36 }
 0x5ad   : > { %v7550_v50 = vcombine.low %v7528_v31, %v7535_v30  ;;  %v7591_v49 = vrot.slane %v7569_v61, %v12012_v40  ;;  %v7598_v17 = vrot.slane %v8620_v60, %v12012_v40  ;;  %v7795_v63 = vcombine.low %v12427_v22, %v12430_v28 }
 0x5ae   : > { %v7814_v37 = vcombine.low %v6470_v12, %v6484_v18  ;;  %v6538_v54 = vcombine.high %v5378_v2, %v5378_v2  ;;  %v7551_v39 = vcombine.low %v7542_v5, %v7549_v21  ;;  %v8630_v3 = vcombine.high %v6470_v12, %v6484_v18 }
 0x5af   : > { %v6505_v25 = vcombine.high %v6503_v1, %v6503_v1  ;;  %v6545_v55 = vrot.slane %v5378_v2, %v12012_v40  ;;  %v5379_v23 = vmax.f32 %v12416_v46, 0.0  ;;  %v12460_v24 = vrot.slane %v7812_v10, %v12012_v40  ;;  %v5319_v10 = vpop.xlane.xlu0 %5318 }
 0x5b0   : > { %v5352_v32 = vadd.f32 %v9150_v47, %v5305_v58  ;;  %v7599_v59 = vcombine.low %v7577_v33, %v7584_v20  ;;  %v7600_v13 = vcombine.low %v7591_v49, %v7598_v17  ;;  %v12463_v8 = vrot.slane %v8629_v35, %v12012_v40 }
 0x5b1   : > { %v6526_v19 = vrot.slane %v6504_v38, %v12012_v40  ;;  %v7558_v6 = vrot.slane %v7550_v50, %v12012_v40  ;;  %v7565_v27 = vrot.slane %v7551_v39, %v12012_v40  ;;  %v12469_v31 = vrot.slane %v7814_v37, %v12012_v40 }
 0x5b2   : > { %v6512_v46 = vrot.slane %v6496_v36, %v12012_v40  ;;  %v6519_v30 = vrot.slane %v6503_v1, %v12012_v40  ;;  %v6552_v56 = vrot.slane %v6538_v54, %v12012_v40  ;;  %v6533_v41 = vrot.slane %v6505_v25, %v12012_v40 }
 0x5b3   : > { %v6553_v29 = vcombine.high %v6545_v55, %v6545_v55  ;;  %v6587_v0 = vcombine.high %v5379_v23, %v5379_v23  ;;  %v7566_v18 = vcombine.low %v7558_v6, %v7565_v27  ;;  %v5380_v2 = vmax.f32 %v5352_v32, 0.0 }
 0x5b4   : > { %v7607_v5 = vrot.slane %v7599_v59, %v12012_v40  ;;  %v7614_v21 = vrot.slane %v7600_v13, %v12012_v40  ;;  %v7649_v58 = vcombine.low %v12369_v45, %v12379_v34  ;;  %v12480_v12 = vrot.slane %v8630_v3, %v12012_v40 }
 0x5b5   : > { %v7844_v36 = vcombine.low %v12460_v24, %v12463_v8  ;;  %v7861_v1 = vcombine.low %v6512_v46, %v6526_v19  ;;  %v5353_v61 = vadd.f32 %v9150_v47, %v5312_v26  ;;  %8201 = vperm.xlu0 %9077, %v7566_v18   ;;  %v8631_v60 = vcombine.high %v6512_v46, %v6526_v19 }
 0x5b6   : > { %v7615_v35 = vcombine.low %v7607_v5, %v7614_v21  ;;  %v7663_v33 = vrot.slane %v7649_v58, %v12012_v40  ;;  %v7698_v20 = vcombine.low %v12390_v57, %v12394_v14  ;;  %v6554_v38 = vcombine.high %v6552_v56, %v6552_v56 }
 0x5b7   : > { %v6561_v45 = vrot.slane %v6545_v55, %v12012_v40  ;;  %v6575_v34 = vrot.slane %v6553_v29, %v12012_v40  ;;  %v6594_v50 = vrot.slane %v5379_v23, %v12012_v40  ;;  %v7863_v49 = vcombine.low %v6519_v30, %v6533_v41 }
 0x5b8   : > { %v6601_v17 = vrot.slane %v6587_v0, %v12012_v40  ;;  %v6636_v37 = vcombine.high %v5380_v2, %v5380_v2  ;;  %8204 = vperm.xlu1 %9076, %v7615_v35   ;;  %v7656_v54 = vrot.slane %v7648_v43, %v12012_v40  ;;  %v8632_v39 = vcombine.high %v6519_v30, %v6533_v41 }
 0x5b9   : > { %v12496_v57 = vrot.slane %v7861_v1, %v12012_v40  ;;  %v5381_v14 = vmax.f32 %v5353_v61, 0.0  ;;  %v5354_v3 = vadd.f32 %v9150_v47, %v5319_v10  ;;  %v12499_v25 = vrot.slane %v8631_v60, %v12012_v40 }
 0x5ba   : > { %v7664_v55 = vcombine.low %v7656_v54, %v7663_v33  ;;  %v7712_v23 = vrot.slane %v7698_v20, %v12012_v40  ;;  %v7747_v32 = vcombine.low %v12403_v52, %v12406_v53  ;;  %v6568_v59 = vrot.slane %v6552_v56, %v12012_v40 }
 0x5bb   : > { %v6582_v16 = vrot.slane %v6554_v38, %v12012_v40  ;;  %v7910_v62 = vcombine.low %v6561_v45, %v6575_v34  ;;  %v6602_v43 = vcombine.high %v6594_v50, %v6594_v50  ;;  %v8633_v26 = vcombine.high %v6561_v45, %v6575_v34 }
 0x5bc   : > { %v6603_v13 = vcombine.high %v6601_v17, %v6601_v17  ;;  %v6650_v19 = vrot.slane %v6636_v37, %v12012_v40  ;;  %8207 = vperm.xlu1 %9076, %v7664_v55   ;;  %v7705_v47 = vrot.slane %v7697_v51, %v12012_v40  ;;  %v7885_v6 = vrot.slane %v7863_v49, %v12012_v40 }
 0x5bd   : > { %v7892_v52 = vrot.slane %v8632_v39, %v12012_v40  ;;  %v6685_v53 = vcombine.high %v5381_v14, %v5381_v14  ;;  %v5382_v27 = vmax.f32 %v5354_v3, 0.0  ;;  %v7893_v46 = vcombine.low %v12496_v57, %v12499_v25 }
 0x5be   : > { %v7713_v30 = vcombine.low %v7705_v47, %v7712_v23  ;;  %v7761_v56 = vrot.slane %v7747_v32, %v12012_v40  ;;  %v7796_v41 = vcombine.low %v12433_v4, %v12436_v15  ;;  %v7912_v29 = vcombine.low %v6568_v59, %v6582_v16 }
 0x5bf   : > { %v8634_v0 = vcombine.high %v6568_v59, %v6582_v16  ;;  %v6624_v44 = vrot.slane %v6602_v43, %v12012_v40  ;;  %v6643_v9 = vrot.slane %v5380_v2, %v12012_v40  ;;  %v12521_v51 = vrot.slane %v7910_v62, %v12012_v40 }
 0x5c0   : > { %v6631_v18 = vrot.slane %v6603_v13, %v12012_v40  ;;  %v6652_v5 = vcombine.high %v6650_v19, %v6650_v19  ;;  %8210 = vperm.xlu1 %9076, %v7713_v30   ;;  %v7754_v21 = vrot.slane %v7746_v11, %v12012_v40  ;;  %v12529_v4 = vrot.slane %v8633_v26, %v12012_v40 }
 0x5c1   : > { %v6610_v15 = vrot.slane %v6594_v50, %v12012_v40  ;;  %v6699_v58 = vrot.slane %v6685_v53, %v12012_v40  ;;  %v6734_v2 = vcombine.high %v5382_v27, %v5382_v27  ;;  %v6617_v1 = vrot.slane %v6601_v17, %v12012_v40 }
 0x5c2   : > { %v7762_v61 = vcombine.low %v7754_v21, %v7761_v56  ;;  %v7810_v60 = vrot.slane %v7796_v41, %v12012_v40  ;;  %v7845_v10 = vcombine.low %v12469_v31, %v12480_v12  ;;  %v7934_v35 = vrot.slane %v7912_v29, %v12012_v40 }
 0x5c3   : > { %v7959_v48 = vcombine.low %v6610_v15, %v6624_v44  ;;  %v6651_v7 = vcombine.high %v6643_v9, %v6643_v9  ;;  %v6692_v11 = vrot.slane %v5381_v14, %v12012_v40  ;;  %v7941_v33 = vrot.slane %v8634_v0, %v12012_v40 }
 0x5c4   : > { %v7961_v20 = vcombine.low %v6617_v1, %v6631_v18  ;;  %v6680_v38 = vrot.slane %v6652_v5, %v12012_v40  ;;  %8213 = vperm.xlu1 %9076, %v7762_v61   ;;  %v7803_v45 = vrot.slane %v7795_v63, %v12012_v40  ;;  %v7942_v31 = vcombine.low %v12521_v51, %v12529_v4 }
 0x5c5   : > { %v8636_v12 = vcombine.high %v6617_v1, %v6631_v18  ;;  %v6701_v34 = vcombine.high %v6699_v58, %v6699_v58  ;;  %v6748_v50 = vrot.slane %v6734_v2, %v12012_v40  ;;  %v6666_v49 = vrot.slane %v6650_v19, %v12012_v40 }
 0x5c6   : > { %v7811_v17 = vcombine.low %v7803_v45, %v7810_v60  ;;  %v7859_v37 = vrot.slane %v7845_v10, %v12012_v40  ;;  %v7894_v54 = vcombine.low %v7885_v6, %v7892_v52  ;;  %v8635_v39 = vcombine.high %v6610_v15, %v6624_v44 }
 0x5c7   : > { %v7969_v14 = vrot.slane %v7959_v48, %v12012_v40  ;;  %v6673_v3 = vrot.slane %v6651_v7, %v12012_v40  ;;  %v6700_v22 = vcombine.high %v6692_v11, %v6692_v11  ;;  %v7983_v28 = vrot.slane %v7961_v20, %v12012_v40 }
 0x5c8   : > { %v8010_v63 = vcombine.low %v6666_v49, %v6680_v38  ;;  %v6741_v55 = vrot.slane %v5382_v27, %v12012_v40  ;;  %8216 = vperm.xlu1 %9076, %v7811_v17   ;;  %v7852_v23 = vrot.slane %v7844_v36, %v12012_v40  ;;  %v7990_v32 = vrot.slane %v8636_v12, %v12012_v40 }
 0x5c9   : > { %v6659_v59 = vrot.slane %v6643_v9, %v12012_v40  ;;  %v6729_v16 = vrot.slane %v6701_v34, %v12012_v40  ;;  %v6750_v62 = vcombine.high %v6748_v50, %v6748_v50  ;;  %v8638_v43 = vcombine.high %v6666_v49, %v6680_v38 }
 0x5ca   : > { %v7860_v26 = vcombine.low %v7852_v23, %v7859_v37  ;;  %v7908_v13 = vrot.slane %v7894_v54, %v12012_v40  ;;  %v7943_v19 = vcombine.low %v7934_v35, %v7941_v33  ;;  %v6715_v52 = vrot.slane %v6699_v58, %v12012_v40 }
 0x5cb   : > { %v8008_v47 = vcombine.low %v6659_v59, %v6673_v3  ;;  %v8637_v6 = vcombine.high %v6659_v59, %v6673_v3  ;;  %v6722_v53 = vrot.slane %v6700_v22, %v12012_v40  ;;  %v7976_v24 = vrot.slane %v8635_v39, %v12012_v40 }
 0x5cc   : > { %v8032_v8 = vrot.slane %v8010_v63, %v12012_v40  ;;  %v6749_v36 = vcombine.high %v6741_v55, %v6741_v55  ;;  %8219 = vperm.xlu1 %9076, %v7860_v26   ;;  %v7901_v27 = vrot.slane %v7893_v46, %v12012_v40  ;;  %v6708_v30 = vrot.slane %v6692_v11, %v12012_v40 }
 0x5cd   : > { %v8059_v56 = vcombine.low %v6715_v52, %v6729_v16  ;;  %v8640_v41 = vcombine.high %v6715_v52, %v6729_v16  ;;  %v6778_v29 = vrot.slane %v6750_v62, %v12012_v40  ;;  %v8039_v0 = vrot.slane %v8638_v43, %v12012_v40 }
 0x5ce   : > { %v7909_v44 = vcombine.low %v7901_v27, %v7908_v13  ;;  %v7957_v9 = vrot.slane %v7943_v19, %v12012_v40  ;;  %v7992_v51 = vcombine.low %v7983_v28, %v7990_v32  ;;  %v8018_v18 = vrot.slane %v8008_v47, %v12012_v40 }
 0x5cf   : > { %v8025_v5 = vrot.slane %v8637_v6, %v12012_v40  ;;  %v8057_v21 = vcombine.low %v6708_v30, %v6722_v53  ;;  %v6764_v57 = vrot.slane %v6748_v50, %v12012_v40  ;;  %v7991_v25 = vcombine.low %v7969_v14, %v7976_v24 }
 0x5d0   : > { %v8639_v46 = vcombine.high %v6708_v30, %v6722_v53  ;;  %v6771_v4 = vrot.slane %v6749_v36, %v12012_v40  ;;  %8222 = vperm.xlu1 %9076, %v7909_v44   ;;  %v7950_v15 = vrot.slane %v7942_v31, %v12012_v40  ;;  %v8081_v58 = vrot.slane %v8059_v56, %v12012_v40 }
 0x5d1   : > { %v8088_v2 = vrot.slane %v8640_v41, %v12012_v40  ;;  %v6757_v1 = vrot.slane %v6741_v55, %v12012_v40  ;;  %v8108_v61 = vcombine.low %v6764_v57, %v6778_v29  ;;  %v8642_v60 = vcombine.high %v6764_v57, %v6778_v29 }
 0x5d2   : > { %v7958_v10 = vcombine.low %v7950_v15, %v7957_v9  ;;  %v8006_v35 = vrot.slane %v7992_v51, %v12012_v40  ;;  %v8041_v48 = vcombine.low %v8032_v8, %v8039_v0  ;;  %v8040_v7 = vcombine.low %v8018_v18, %v8025_v5 }
 0x5d3   : > { %v8067_v11 = vrot.slane %v8057_v21, %v12012_v40  ;;  %v8074_v33 = vrot.slane %v8639_v46, %v12012_v40  ;;  %v8106_v20 = vcombine.low %v6757_v1, %v6771_v4  ;;  %v8641_v38 = vcombine.high %v6757_v1, %v6771_v4 }
 0x5d4   : > { %8225 = vperm.xlu1 %9076, %v7958_v10   ;;  %v7999_v45 = vrot.slane %v7991_v25, %v12012_v40  ;;  %v8130_v31 = vrot.slane %v8108_v61, %v12012_v40  ;;  %v8137_v12 = vrot.slane %v8642_v60, %v12012_v40  ;;  %v8055_v50 = vrot.slane %v8041_v48, %v12012_v40 }
 0x5d5   : > { %v8090_v49 = vcombine.low %v8081_v58, %v8088_v2  ;;  %v8089_v17 = vcombine.low %v8067_v11, %v8074_v33  ;;  %v8116_v37 = vrot.slane %v8106_v20, %v12012_v40  ;;  %v8123_v54 = vrot.slane %v8641_v38, %v12012_v40 }
 0x5d6   : > { %v8007_v34 = vcombine.low %v7999_v45, %v8006_v35  ;;  %v8048_v39 = vrot.slane %v8040_v7, %v12012_v40  ;;  %v8139_v22 = vcombine.low %v8130_v31, %v8137_v12  ;;  %v12780_v27 = vlaneseq }
 0x5d7   : > { %v8104_v3 = vrot.slane %v8090_v49, %v12012_v40  ;;  %v8138_v28 = vcombine.low %v8116_v37, %v8123_v54  ;;  %v8097_v63 = vrot.slane %v8089_v17, %v12012_v40 }
 0x5d8   : > { %8228 = vperm.xlu1 %9076, %v8007_v34   ;;  %v8056_v14 = vcombine.low %v8048_v39, %v8055_v50  ;;  %v8153_v23 = vrot.slane %v8139_v22, %v12012_v40  ;;  %v8160_v19 = vpop.permute.xlu0 %8159  ;;  %v12607_v30 = vand.u32 127, %v12780_v27  ;;  %vm8427_vm9 = vcmp.lt.s32.totalorder %v12780_v27, 224 }
 0x5d9   : > { %v8105_v55 = vcombine.low %v8097_v63, %v8104_v3  ;;  %v8146_v32 = vrot.slane %v8138_v28, %v12012_v40 }
 0x5da   : > { %v8252_v56 = vadd.s32 4294967280, %v12607_v30  ;;  %v8245_v29 = vadd.s32 4294967288, %v12607_v30  ;;  %v8259_v0 = vadd.s32 4294967272, %v12607_v30  ;;  %v8266_v44 = vadd.s32 4294967264, %v12607_v30 }
 0x5db   : > { %v8154_v59 = vcombine.low %v8146_v32, %v8153_v23  ;;  %v12619_v51 = vsub.s32 %v12607_v30, %v10069_v42  ;;  %v8273_v18 = vadd.s32 4294967256, %v12607_v30  ;;  %v8280_v21 = vadd.s32 4294967248, %v12607_v30 }
 0x5dc   : > { %8231 = vperm.xlu1 %9076, %v8056_v14   ;;  %v12623_v5 = vsub.s32 %v8252_v56, %v10069_v42  ;;  %v12629_v25 = vsub.s32 %v8245_v29, %v10069_v42  ;;  %v12632_v46 = vsub.s32 %v8259_v0, %v10069_v42  ;;  %v12635_v4 = vsub.s32 %v8266_v44, %v10069_v42 }
 0x5dd   : > { %v8157_v16 = vpop.permute.xlu1 %8156  ;;  %v12639_v58 = vsub.s32 %v8273_v18, %v10069_v42  ;;  %v12643_v1 = vsub.s32 %v8280_v21, %v10069_v42  ;;  %v8287_v35 = vadd.s32 4294967240, %v12607_v30  ;;  %v8294_v38 = vadd.s32 4294967232, %v12607_v30 }
 0x5de   : > { %v8244_v15 = vrot.slane %v8157_v16, %v12619_v51  ;;  %v8249_v10 = vrot.slane %v8160_v19, %v12629_v25  ;;  %v8301_v17 = vadd.s32 4294967224, %v12607_v30  ;;  %v8308_v22 = vadd.s32 4294967216, %v12607_v30 }
 0x5df   : > { %v12661_v12 = vsub.s32 %v8287_v35, %v10069_v42  ;;  %v12668_v54 = vsub.s32 %v8294_v38, %v10069_v42  ;;  %v8315_v28 = vadd.s32 4294967208, %v12607_v30  ;;  %v8343_v56 = vadd.s32 4294967176, %v12607_v30 }
 0x5e0   : > { %8234 = vperm.xlu1 %9076, %v8105_v55   ;;  %v8251_v11 = vsel %vm8250_vm0, %v8249_v10, %v8244_v15  ;;  %v8304_v55 = vsub.s32 %v8301_v17, %v10069_v42 }
 0x5e4   : > { %8237 = vperm.xlu1 %9076, %v8154_v59   ;;  %v8322_v59 = vadd.s32 4294967200, %v12607_v30 }
 0x5e9   : > { %v8163_v62 = vpop.permute.xlu1 %8162 }
 0x5ea   : > { %v8178_v47 = vpop.permute.xlu0 %8177  ;;  %v8256_v2 = vrot.slane %v8163_v62, %v12623_v5  ;;  %v8311_v62 = vsub.s32 %v8308_v22, %v10069_v42 }
 0x5eb   : > { %v8291_v3 = vrot.slane %v8178_v47, %v12661_v12  ;;  %v8336_v47 = vadd.s32 4294967184, %v12607_v30 }
 0x5ec   : > { %v8258_v20 = vsel %vm8257_vm1, %v8256_v2, %v8251_v11 }
 0x5ed   : > { %v8166_v43 = vpop.permute.xlu1 %8165 }
 0x5ee   : > { %v8263_v48 = vrot.slane %v8166_v43, %v12632_v46  ;;  %v8329_v43 = vadd.s32 4294967192, %v12607_v30 }
 0x5f0   : > { %v12598_v53 = vpop.permute.xlu0 %8180  ;;  %v8265_v34 = vsel %vm8264_vm10, %v8263_v48, %v8258_v20 }
 0x5f1   : > { %v8169_v26 = vpop.permute.xlu1 %8168  ;;  %v8298_v32 = vrot.slane %v12598_v53, %v12668_v54 }
 0x5f2   : > { %v8270_v7 = vrot.slane %v8169_v26, %v12635_v4 }
 0x5f4   : > { %v8272_v50 = vsel %vm8271_vm11, %v8270_v7, %v8265_v34 }
 0x5fe   : > { %v8172_v13 = vpop.permute.xlu1 %8171 }
 0x5ff   : > { %v8277_v33 = vrot.slane %v8172_v13, %v12639_v58  ;;  %v8318_v13 = vsub.s32 %v8315_v28, %v10069_v42 }
 0x601   : > { %v8279_v37 = vsel %vm8278_vm12, %v8277_v33, %v8272_v50 }
 0x603   : > { %v12602_v8 = vpop.permute.xlu0 %8183 }
 0x604   : > { %v8175_v6 = vpop.permute.xlu1 %8174  ;;  %v8305_v53 = vrot.slane %v12602_v8, %v8304_v55  ;;  %v8332_v8 = vsub.s32 %v8329_v43, %v10069_v42 }
 0x605   : > { %v8284_v45 = vrot.slane %v8175_v6, %v12643_v1 }
 0x607   : > { %v12615_v9 = vpop.permute.xlu0 %8186  ;;  %v8286_v39 = vsel %vm8285_vm13, %v8284_v45, %v8279_v37 }
 0x608   : > { %v8293_v23 = vsel %vm8292_vm14, %v8291_v3, %v8286_v39 }
 0x609   : > { %v8300_v19 = vsel %vm8299_vm15, %v8298_v32, %v8293_v23 }
 0x60b   : > { %v12645_v61 = vpop.permute.xlu0 %8189 }
 0x60f   : > { %v8193_v49 = vpop.permute.xlu0 %8192 }
 0x613   : > { %v8196_v63 = vpop.permute.xlu0 %8195 }
 0x614   : > { %v8333_v48 = vrot.slane %v8196_v63, %v8332_v8 }
 0x617   : > { %v8199_v44 = vpop.permute.xlu0 %8198 }
 0x637   : > { %v12596_v52 = vpop.permute.xlu1 %8204 }
 0x638   : > { %v8353_v29 = vrot.slane %v12596_v52, %v12619_v51  ;;  %v8339_v51 = vsub.s32 %v8336_v47, %v10069_v42 }
 0x63b   : > { %v12600_v24 = vpop.permute.xlu1 %8207 }
 0x63c   : > { %v8357_v26 = vrot.slane %v12600_v24, %v12629_v25  ;;  %v8325_v24 = vsub.s32 %v8322_v59, %v10069_v42 }
 0x63e   : > { %v8358_v30 = vsel %vm8250_vm0, %v8357_v26, %v8353_v29 }
 0x63f   : > { %v12604_v36 = vpop.permute.xlu1 %8210 }
 0x640   : > { %v8362_v6 = vrot.slane %v12604_v36, %v12623_v5  ;;  %v8307_v36 = vsel %vm8306_vm2, %v8305_v53, %v8300_v19 }
 0x642   : > { %v8363_v5 = vsel %vm8257_vm1, %v8362_v6, %v8358_v30 }
 0x643   : > { %v12610_v41 = vpop.permute.xlu1 %8213 }
 0x644   : > { %v8367_v0 = vrot.slane %v12610_v41, %v12632_v46  ;;  %v8312_v41 = vrot.slane %v12615_v9, %v8311_v62  ;;  %v8346_v46 = vsub.s32 %v8343_v56, %v10069_v42  ;;  %v8340_v42 = vrot.slane %v8199_v44, %v8339_v51 }
 0x646   : > { %v8314_v2 = vsel %vm8313_vm3, %v8312_v41, %v8307_v36 }
 0x647   : > { %v12626_v57 = vpop.permute.xlu1 %8216 }
 0x648   : > { %v8372_v18 = vrot.slane %v12626_v57, %v12635_v4  ;;  %v8319_v57 = vrot.slane %v12645_v61, %v8318_v13  ;;  %v8368_v4 = vsel %vm8264_vm10, %v8367_v0, %v8363_v5 }
 0x64a   : > { %v8373_v9 = vsel %vm8271_vm11, %v8372_v18, %v8368_v4  ;;  %v8321_v33 = vsel %vm8320_vm4, %v8319_v57, %v8314_v2 }
 0x64b   : > { %v12647_v60 = vpop.permute.xlu1 %8219 }
 0x64c   : > { %v8377_v52 = vrot.slane %v12647_v60, %v12639_v58  ;;  %v8326_v58 = vrot.slane %v8193_v49, %v8325_v24  ;;  %v8202_v60 = vpop.permute.xlu0 %8201 }
 0x64d   : > { %v8347_v20 = vrot.slane %v8202_v60, %v8346_v46 }
 0x64e   : > { %v8328_v45 = vsel %vm8327_vm5, %v8326_v58, %v8321_v33 }
 0x64f   : > { %v12658_v31 = vpop.permute.xlu1 %8222  ;;  %v8335_v34 = vsel %vm8334_vm6, %v8333_v48, %v8328_v45 }
 0x650   : > { %v8382_v25 = vrot.slane %v12658_v31, %v12643_v1  ;;  %v8378_v1 = vsel %vm8278_vm12, %v8377_v52, %v8373_v9  ;;  %v8342_v17 = vsel %vm8341_vm7, %v8340_v42, %v8335_v34 }
 0x652   : > { %v8383_v7 = vsel %vm8285_vm13, %v8382_v25, %v8378_v1 }
 0x653   : > { %v8226_v14 = vpop.permute.xlu1 %8225 }
 0x654   : > { %v8387_v15 = vrot.slane %v8226_v14, %v12661_v12 }
 0x656   : > { %v8388_v38 = vsel %vm8292_vm14, %v8387_v15, %v8383_v7 }
 0x657   : > { %v8229_v16 = vpop.permute.xlu1 %8228 }
 0x658   : > { %v8392_v10 = vrot.slane %v8229_v16, %v12668_v54  ;;  %v8349_v54 = vsel %vm8348_vm8, %v8347_v20, %v8342_v17 }
 0x65a   : > { %v8393_v31 = vsel %vm8299_vm15, %v8392_v10, %v8388_v38 }
 0x65b   : > { %v8232_v21 = vpop.permute.xlu1 %8231 }
 0x65c   : > { %v8397_v61 = vrot.slane %v8232_v21, %v8304_v55 }
 0x65e   : > { %v8398_v50 = vsel %vm8306_vm2, %v8397_v61, %v8393_v31 }
 0x65f   : > { %v8235_v35 = vpop.permute.xlu1 %8234 }
 0x660   : > { %v8402_v11 = vrot.slane %v8235_v35, %v8311_v62 }
 0x662   : > { %v8403_v37 = vsel %vm8313_vm3, %v8402_v11, %v8398_v50 }
 0x663   : > { %v8238_v12 = vpop.permute.xlu1 %8237 }
 0x664   : > { %v8407_v49 = vrot.slane %v8238_v12, %v8318_v13 }
 0x666   : > { %v8408_v39 = vsel %vm8320_vm4, %v8407_v49, %v8403_v37 }
 0x667   : > { %v8409_v14 = vcombine.low %v8349_v54, %v8408_v39 }
 0x669   : > { %v8416_v3 = vrot.slane %v8409_v14, %v12012_v40 }
 0x66b   : > { %v8423_v22 = vrot.slane %v8416_v3, %v12012_v40 }
 0x66d   : > { %8429 = vst.msk [vmem:[%s278_s16] sm:$0x3] %vm8427_vm9, %v8423_v22 }
 0x66e PF: > { %s19_s26 = sadd.s32 1, %s9157_s26  }
 0x66f   : > { %p16_p4 = scmp.ge.s32.totalorder %s19_s26, 4  }
 0x671   :  { %18 = sbr.rel (!%p16_p4) target bundleno = 3 (0x3), region = 78 }

</bundles_post_ra>
